<compile_context>
chip_gen: v5e
topology: v5e:2x2
jax: 0.10.0
libtpu: 0.0.40
codegen_flags: <defaults>
</compile_context>

<pallas_src>
import functools

import jax
import jax.numpy as jnp
from jax import lax
from jax.experimental import pallas as pl
from jax.experimental.pallas import tpu as pltpu


def _round_up(x, m):
    return (x + m - 1) // m * m


# ----------------------------- Pallas kernel -------------------------------

def _fused_bottleneck_kernel(x_ref, mask_ref, w1_ref, b1_ref, w2_ref, b2_ref,
                             w3_ref, b3_ref, o_ref, buf1_ref, buf2_ref,
                             *, H, Wp, d2, base, add, cdt):
    """One batch element: conv1 -> conv2 -> conv3 (+ residual), all in VMEM.

    Flat layout: activation rows are y*Wp + x' (x' = width-padded column),
    channels on the lane axis.  `base` is the row offset of the valid slab
    inside the scratch buffers (head guard + top row-padding).
    """
    HWp = H * Wp

    xs = x_ref[0]                       # (HWp, Cp) f32, padded-width layout
    mask = mask_ref[...]                # (HWp, 1)  f32, 1.0 on valid pixels

    # ---- conv1: 1x1 + folded-BN bias + ReLU (single MXU matmul) ----
    h = jnp.dot(xs.astype(cdt), w1_ref[...],
                preferred_element_type=jnp.float32)
    h = jnp.maximum(h + b1_ref[...], 0.0) * mask          # zero the halo cols

    buf1_ref[...] = jnp.zeros_like(buf1_ref)               # zero halo/guards
    buf1_ref[base:base + HWp, :] = h.astype(buf1_ref.dtype)

    # ---- conv2: 3x3 (dilation d2) as 9 shifted flat-row matmuls ----
    acc = None
    for ky in range(3):
        for kx in range(3):
            s = base + (ky - 1) * d2 * Wp + (kx - 1) * d2
            tap = buf1_ref[s:s + HWp, :]
            part = jnp.dot(tap, w2_ref[ky * 3 + kx],
                           preferred_element_type=jnp.float32)
            acc = part if acc is None else acc + part
    h = jnp.maximum(acc + b2_ref[...], 0.0) * mask

    buf2_ref[...] = jnp.zeros_like(buf2_ref)
    buf2_ref[base:base + HWp, :] = h.astype(buf2_ref.dtype)

    # ---- conv3: 3x3 (dilation 1) as 9 shifted flat-row matmuls ----
    acc = None
    for ky in range(3):
        for kx in range(3):
            s = base + (ky - 1) * Wp + (kx - 1)
            tap = buf2_ref[s:s + HWp, :]
            part = jnp.dot(tap, w3_ref[ky * 3 + kx],
                           preferred_element_type=jnp.float32)
            acc = part if acc is None else acc + part
    y = jnp.maximum(acc + b3_ref[...], 0.0)                # (HWp, Cop) f32

    # ---- residual add + ReLU (f32 epilogue) ----
    if add:
        y = jnp.maximum(y + xs, 0.0)

    o_ref[0] = y.astype(o_ref.dtype)                       # lane-dense store


# ------------------------------ JAX wrapper ---------------------------------

def resnet_bottleneck_forward(x_nchw, params, dilation=1, add=True,
                              compute_dtype=jnp.float32):
    """x_nchw: (N, nIn, H, W) f32 -> (N, nOut, H, W) f32 (BN in eval mode)."""
    N, Cin, H, W = x_nchw.shape
    nH = params["w1"].shape[-1]
    nOut = params["w3"].shape[-1]
    if add and Cin != nOut:
        raise ValueError("residual add requires nIn == nOut")

    LANE = 128
    Cp = _round_up(Cin, LANE)
    Hh = _round_up(nH, LANE)
    Cop = _round_up(nOut, LANE)
    cdt = compute_dtype
    d2 = int(dilation)
    p = max(d2, 1)                       # halo width (covers both 3x3 convs)
    Wp = W + 2 * p
    HWp = H * Wp

    # Scratch layout: [head guard | top pad rows | H*Wp valid slab |
    #                  bottom pad rows | tail guard], all zeroed except slab.
    base = _round_up(max(p, 8) + p * Wp, 8)           # 8-aligned slab start
    Rtot = _round_up(base + HWp + p * Wp + max(p, 8), 8)

    # NCHW -> NHWC, pad channels to Cp, pad width by p, flatten spatial rows.
    x = jnp.transpose(x_nchw, (0, 2, 3, 1)).astype(jnp.float32)
    x = jnp.pad(x, ((0, 0), (0, 0), (p, p), (0, Cp - Cin)))
    x = x.reshape(N, HWp, Cp)

    # Valid-pixel mask in the same flat padded-width layout.
    mask = jnp.pad(jnp.ones((H, W), jnp.float32), ((0, 0), (p, p)))
    mask = mask.reshape(HWp, 1)

    # Fold BN scale into conv weights (per output channel); pad to MXU shapes.
    w1 = params["w1"].reshape(Cin, nH) * params["s1"][None, :]
    w1 = jnp.pad(w1, ((0, Cp - Cin), (0, Hh - nH))).astype(cdt)
    w2 = params["w2"].reshape(9, nH, nH) * params["s2"][None, None, :]
    w2 = jnp.pad(w2, ((0, 0), (0, Hh - nH), (0, Hh - nH))).astype(cdt)
    w3 = params["w3"].reshape(9, nH, nOut) * params["s3"][None, None, :]
    w3 = jnp.pad(w3, ((0, 0), (0, Hh - nH), (0, Cop - nOut))).astype(cdt)
    b1 = jnp.pad(params["b1"], (0, Hh - nH)).reshape(1, Hh).astype(jnp.float32)
    b2 = jnp.pad(params["b2"], (0, Hh - nH)).reshape(1, Hh).astype(jnp.float32)
    b3 = jnp.pad(params["b3"], (0, Cop - nOut)).reshape(1, Cop).astype(jnp.float32)

    kernel = functools.partial(_fused_bottleneck_kernel, H=H, Wp=Wp, d2=d2,
                               base=base, add=add, cdt=cdt)

    out = pl.pallas_call(
        kernel,
        grid=(N,),
        in_specs=[
            pl.BlockSpec((1, HWp, Cp), lambda b: (b, 0, 0)),     # x
            pl.BlockSpec((HWp, 1), lambda b: (0, 0)),            # mask
            pl.BlockSpec((Cp, Hh), lambda b: (0, 0)),            # w1
            pl.BlockSpec((1, Hh), lambda b: (0, 0)),             # b1
            pl.BlockSpec((9, Hh, Hh), lambda b: (0, 0, 0)),      # w2
            pl.BlockSpec((1, Hh), lambda b: (0, 0)),             # b2
            pl.BlockSpec((9, Hh, Cop), lambda b: (0, 0, 0)),     # w3
            pl.BlockSpec((1, Cop), lambda b: (0, 0)),            # b3
        ],
        out_specs=pl.BlockSpec((1, HWp, Cop), lambda b: (b, 0, 0)),
        out_shape=jax.ShapeDtypeStruct((N, HWp, Cop), jnp.float32),
        scratch_shapes=[
            pltpu.VMEM((Rtot, Hh), cdt),      # conv1 output (padded layout)
            pltpu.VMEM((Rtot, Hh), cdt),      # conv2 output (padded layout)
        ],
        compiler_params=pltpu.CompilerParams(
            dimension_semantics=("parallel",)),
    )(x, mask, w1, b1, w2, b2, w3, b3)

    out = out.reshape(N, H, Wp, Cop)[:, :, p:p + W, :nOut]
    return jnp.transpose(out, (0, 3, 1, 2))                 # -> NCHW


def _fold_bn(gamma, beta, mean, var, eps=1e-3):
    scale = gamma / jnp.sqrt(var + eps)
    bias = beta - mean * scale
    return scale, bias


# --------------------------- pure-JAX reference -----------------------------

def _cbr_ref(x_nhwc, w_hwio, scale, bias, ksize, dilation=1):
    p = ((ksize - 1) // 2) * dilation
    y = lax.conv_general_dilated(
        x_nhwc, w_hwio, window_strides=(1, 1),
        padding=[(p, p), (p, p)], rhs_dilation=(dilation, dilation),
        dimension_numbers=("NHWC", "HWIO", "NHWC"))
    return jnp.maximum(y * scale + bias, 0.0)


def resnet_bottleneck_ref(x_nchw, params, dilation=1, add=True):
    x = jnp.transpose(x_nchw, (0, 2, 3, 1))
    h = _cbr_ref(x, params["w1"], params["s1"], params["b1"], 1)
    h = _cbr_ref(h, params["w2"], params["s2"], params["b2"], 3, dilation)
    h = _cbr_ref(h, params["w3"], params["s3"], params["b3"], 3)
    if add:
        h = jnp.maximum(h + x, 0.0)
    return jnp.transpose(h, (0, 3, 1, 2))


# ---------------------------------- main -------------------------------------

if __name__ == "__main__":
    nIn = nOut = 4
    nHidden = 16
    N, H, W = 2, 16, 16

    key = jax.random.PRNGKey(0)
    ks = jax.random.split(key, 8)

    def bn_params(k, c):
        k1, k2, k3, k4 = jax.random.split(k, 4)
        gamma = 1.0 + 0.1 * jax.random.normal(k1, (c,), jnp.float32)
        beta = 0.1 * jax.random.normal(k2, (c,), jnp.float32)
        mean = 0.1 * jax.random.normal(k3, (c,), jnp.float32)
        var = 1.0 + 0.1 * jax.random.uniform(k4, (c,), jnp.float32)
        return _fold_bn(gamma, beta, mean, var, eps=1e-3)

    s1, b1 = bn_params(ks[3], nHidden)
    s2, b2 = bn_params(ks[4], nHidden)
    s3, b3 = bn_params(ks[5], nOut)

    params = dict(
        # conv weights stored HWIO (kH, kW, Cin, Cout), no conv bias
        w1=0.3 * jax.random.normal(ks[0], (1, 1, nIn, nHidden), jnp.float32),
        w2=0.1 * jax.random.normal(ks[1], (3, 3, nHidden, nHidden), jnp.float32),
        w3=0.1 * jax.random.normal(ks[2], (3, 3, nHidden, nOut), jnp.float32),
        s1=s1, b1=b1, s2=s2, b2=b2, s3=s3, b3=b3,
    )

    x = jax.random.normal(ks[6], (N, nIn, H, W), jnp.float32)

    for dil in (1, 2):
        fwd = jax.jit(functools.partial(resnet_bottleneck_forward,
                                        dilation=dil, add=True))
        out = jax.block_until_ready(fwd(x, params))
        ref = resnet_bottleneck_ref(x, params, dilation=dil, add=True)
        assert out.shape == (N, nOut, H, W)
        err = float(jnp.max(jnp.abs(out - ref)))
        assert err < 1e-3, err

    print("KERNEL_OK")
</pallas_src>

<mosaic_0001>
module attributes {stable_mosaic.version = 11 : i64} {
  func.func @_fused_bottleneck_kernel(%arg0: i32, %arg1: memref<1x288x128xf32, #tpu.memory_space<vmem>>, %arg2: memref<288x1xf32, #tpu.memory_space<vmem>>, %arg3: memref<128x128xf32, #tpu.memory_space<vmem>>, %arg4: memref<1x128xf32, #tpu.memory_space<vmem>>, %arg5: memref<9x128x128xf32, #tpu.memory_space<vmem>>, %arg6: memref<1x128xf32, #tpu.memory_space<vmem>>, %arg7: memref<9x128x128xf32, #tpu.memory_space<vmem>>, %arg8: memref<1x128xf32, #tpu.memory_space<vmem>>, %arg9: memref<1x288x128xf32, #tpu.memory_space<vmem>>, %arg10: memref<352x128xf32, #tpu.memory_space<vmem>>, %arg11: memref<352x128xf32, #tpu.memory_space<vmem>>) attributes {dimension_semantics = [#tpu.dimension_semantics<parallel>], iteration_bounds = array<i64: 2>, scalar_prefetch = 0 : i64, scratch_operands = 2 : i64, tpu.core_type = #tpu.core_type<tc>, window_params = [{transform_indices = @transform_0, window_bounds = array<i64: 1, 288, 128>}, {pipeline_mode = #tpu.pipeline_mode<synchronous>, transform_indices = @transform_1, window_bounds = array<i64: 288, 1>}, {pipeline_mode = #tpu.pipeline_mode<synchronous>, transform_indices = @transform_2, window_bounds = array<i64: 128, 128>}, {pipeline_mode = #tpu.pipeline_mode<synchronous>, transform_indices = @transform_3, window_bounds = array<i64: 1, 128>}, {pipeline_mode = #tpu.pipeline_mode<synchronous>, transform_indices = @transform_4, window_bounds = array<i64: 9, 128, 128>}, {pipeline_mode = #tpu.pipeline_mode<synchronous>, transform_indices = @transform_5, window_bounds = array<i64: 1, 128>}, {pipeline_mode = #tpu.pipeline_mode<synchronous>, transform_indices = @transform_6, window_bounds = array<i64: 9, 128, 128>}, {pipeline_mode = #tpu.pipeline_mode<synchronous>, transform_indices = @transform_7, window_bounds = array<i64: 1, 128>}, {transform_indices = @transform_8, window_bounds = array<i64: 1, 288, 128>}]} {
    %c0 = arith.constant 0 : index
    %c0_0 = arith.constant 0 : index
    %c0_1 = arith.constant 0 : index
    %0 = vector.load %arg1[%c0, %c0_0, %c0_1] : memref<1x288x128xf32, #tpu.memory_space<vmem>>, vector<1x288x128xf32>
    %1 = vector.shape_cast %0 : vector<1x288x128xf32> to vector<288x128xf32>
    %c0_2 = arith.constant 0 : index
    %c0_3 = arith.constant 0 : index
    %2 = vector.load %arg2[%c0_2, %c0_3] : memref<288x1xf32, #tpu.memory_space<vmem>>, vector<288x1xf32>
    %c0_4 = arith.constant 0 : index
    %c0_5 = arith.constant 0 : index
    %3 = vector.load %arg3[%c0_4, %c0_5] : memref<128x128xf32, #tpu.memory_space<vmem>>, vector<128x128xf32>
    %cst = arith.constant dense<0.000000e+00> : vector<288x128xf32>
    %4 = tpu.matmul %1, %3, %cst {dimension_numbers = #tpu.dot_dimension_numbers<[1], [0], [0], [1], [0, 0, 1, 1], [], []>} : vector<288x128xf32>, vector<128x128xf32>, vector<288x128xf32> -> vector<288x128xf32>
    %c0_6 = arith.constant 0 : index
    %c0_7 = arith.constant 0 : index
    %5 = vector.load %arg4[%c0_6, %c0_7] : memref<1x128xf32, #tpu.memory_space<vmem>>, vector<1x128xf32>
    %6 = vector.broadcast %5 : vector<1x128xf32> to vector<288x128xf32>
    %7 = arith.addf %4, %6 : vector<288x128xf32>
    %cst_8 = arith.constant 0.000000e+00 : f32
    %8 = vector.broadcast %cst_8 : f32 to vector<288x128xf32>
    %9 = arith.maximumf %7, %8 : vector<288x128xf32>
    %10 = vector.broadcast %2 : vector<288x1xf32> to vector<288x128xf32>
    %11 = arith.mulf %9, %10 : vector<288x128xf32>
    %cst_9 = arith.constant 0.000000e+00 : f32
    %12 = vector.broadcast %cst_9 : f32 to vector<352x128xf32>
    %c0_10 = arith.constant 0 : index
    %c0_11 = arith.constant 0 : index
    %13 = vector.load %arg10[%c0_10, %c0_11] : memref<352x128xf32, #tpu.memory_space<vmem>>, vector<352x128xf32>
    tpu.vector_store %arg10[%c0_10, %c0_11], %12 {strides = array<i32>} : memref<352x128xf32, #tpu.memory_space<vmem>>, vector<352x128xf32>,
    %c32 = arith.constant 32 : index
    %c0_12 = arith.constant 0 : index
    %14 = vector.load %arg10[%c32, %c0_12] : memref<352x128xf32, #tpu.memory_space<vmem>>, vector<288x128xf32>
    tpu.vector_store %arg10[%c32, %c0_12], %11 {strides = array<i32>} : memref<352x128xf32, #tpu.memory_space<vmem>>, vector<288x128xf32>,
    %c13 = arith.constant 13 : index
    %c0_13 = arith.constant 0 : index
    %15 = vector.load %arg10[%c13, %c0_13] : memref<352x128xf32, #tpu.memory_space<vmem>>, vector<288x128xf32>
    %c0_14 = arith.constant 0 : index
    %c0_15 = arith.constant 0 : index
    %c0_16 = arith.constant 0 : index
    %16 = vector.load %arg5[%c0_14, %c0_15, %c0_16] : memref<9x128x128xf32, #tpu.memory_space<vmem>>, vector<1x128x128xf32>
    %17 = vector.shape_cast %16 : vector<1x128x128xf32> to vector<128x128xf32>
    %cst_17 = arith.constant dense<0.000000e+00> : vector<288x128xf32>
    %18 = tpu.matmul %15, %17, %cst_17 {dimension_numbers = #tpu.dot_dimension_numbers<[1], [0], [0], [1], [0, 0, 1, 1], [], []>} : vector<288x128xf32>, vector<128x128xf32>, vector<288x128xf32> -> vector<288x128xf32>
    %c14 = arith.constant 14 : index
    %c0_18 = arith.constant 0 : index
    %19 = vector.load %arg10[%c14, %c0_18] : memref<352x128xf32, #tpu.memory_space<vmem>>, vector<288x128xf32>
    %c1 = arith.constant 1 : index
    %c0_19 = arith.constant 0 : index
    %c0_20 = arith.constant 0 : index
    %20 = vector.load %arg5[%c1, %c0_19, %c0_20] : memref<9x128x128xf32, #tpu.memory_space<vmem>>, vector<1x128x128xf32>
    %21 = vector.shape_cast %20 : vector<1x128x128xf32> to vector<128x128xf32>
    %cst_21 = arith.constant dense<0.000000e+00> : vector<288x128xf32>
    %22 = tpu.matmul %19, %21, %cst_21 {dimension_numbers = #tpu.dot_dimension_numbers<[1], [0], [0], [1], [0, 0, 1, 1], [], []>} : vector<288x128xf32>, vector<128x128xf32>, vector<288x128xf32> -> vector<288x128xf32>
    %23 = arith.addf %18, %22 : vector<288x128xf32>
    %c15 = arith.constant 15 : index
    %c0_22 = arith.constant 0 : index
    %24 = vector.load %arg10[%c15, %c0_22] : memref<352x128xf32, #tpu.memory_space<vmem>>, vector<288x128xf32>
    %c2 = arith.constant 2 : index
    %c0_23 = arith.constant 0 : index
    %c0_24 = arith.constant 0 : index
    %25 = vector.load %arg5[%c2, %c0_23, %c0_24] : memref<9x128x128xf32, #tpu.memory_space<vmem>>, vector<1x128x128xf32>
    %26 = vector.shape_cast %25 : vector<1x128x128xf32> to vector<128x128xf32>
    %cst_25 = arith.constant dense<0.000000e+00> : vector<288x128xf32>
    %27 = tpu.matmul %24, %26, %cst_25 {dimension_numbers = #tpu.dot_dimension_numbers<[1], [0], [0], [1], [0, 0, 1, 1], [], []>} : vector<288x128xf32>, vector<128x128xf32>, vector<288x128xf32> -> vector<288x128xf32>
    %28 = arith.addf %23, %27 : vector<288x128xf32>
    %c31 = arith.constant 31 : index
    %c0_26 = arith.constant 0 : index
    %29 = vector.load %arg10[%c31, %c0_26] : memref<352x128xf32, #tpu.memory_space<vmem>>, vector<288x128xf32>
    %c3 = arith.constant 3 : index
    %c0_27 = arith.constant 0 : index
    %c0_28 = arith.constant 0 : index
    %30 = vector.load %arg5[%c3, %c0_27, %c0_28] : memref<9x128x128xf32, #tpu.memory_space<vmem>>, vector<1x128x128xf32>
    %31 = vector.shape_cast %30 : vector<1x128x128xf32> to vector<128x128xf32>
    %cst_29 = arith.constant dense<0.000000e+00> : vector<288x128xf32>
    %32 = tpu.matmul %29, %31, %cst_29 {dimension_numbers = #tpu.dot_dimension_numbers<[1], [0], [0], [1], [0, 0, 1, 1], [], []>} : vector<288x128xf32>, vector<128x128xf32>, vector<288x128xf32> -> vector<288x128xf32>
    %33 = arith.addf %28, %32 : vector<288x128xf32>
    %c32_30 = arith.constant 32 : index
    %c0_31 = arith.constant 0 : index
    %34 = vector.load %arg10[%c32_30, %c0_31] : memref<352x128xf32, #tpu.memory_space<vmem>>, vector<288x128xf32>
    %c4 = arith.constant 4 : index
    %c0_32 = arith.constant 0 : index
    %c0_33 = arith.constant 0 : index
    %35 = vector.load %arg5[%c4, %c0_32, %c0_33] : memref<9x128x128xf32, #tpu.memory_space<vmem>>, vector<1x128x128xf32>
    %36 = vector.shape_cast %35 : vector<1x128x128xf32> to vector<128x128xf32>
    %cst_34 = arith.constant dense<0.000000e+00> : vector<288x128xf32>
    %37 = tpu.matmul %34, %36, %cst_34 {dimension_numbers = #tpu.dot_dimension_numbers<[1], [0], [0], [1], [0, 0, 1, 1], [], []>} : vector<288x128xf32>, vector<128x128xf32>, vector<288x128xf32> -> vector<288x128xf32>
    %38 = arith.addf %33, %37 : vector<288x128xf32>
    %c33 = arith.constant 33 : index
    %c0_35 = arith.constant 0 : index
    %39 = vector.load %arg10[%c33, %c0_35] : memref<352x128xf32, #tpu.memory_space<vmem>>, vector<288x128xf32>
    %c5 = arith.constant 5 : index
    %c0_36 = arith.constant 0 : index
    %c0_37 = arith.constant 0 : index
    %40 = vector.load %arg5[%c5, %c0_36, %c0_37] : memref<9x128x128xf32, #tpu.memory_space<vmem>>, vector<1x128x128xf32>
    %41 = vector.shape_cast %40 : vector<1x128x128xf32> to vector<128x128xf32>
    %cst_38 = arith.constant dense<0.000000e+00> : vector<288x128xf32>
    %42 = tpu.matmul %39, %41, %cst_38 {dimension_numbers = #tpu.dot_dimension_numbers<[1], [0], [0], [1], [0, 0, 1, 1], [], []>} : vector<288x128xf32>, vector<128x128xf32>, vector<288x128xf32> -> vector<288x128xf32>
    %43 = arith.addf %38, %42 : vector<288x128xf32>
    %c49 = arith.constant 49 : index
    %c0_39 = arith.constant 0 : index
    %44 = vector.load %arg10[%c49, %c0_39] : memref<352x128xf32, #tpu.memory_space<vmem>>, vector<288x128xf32>
    %c6 = arith.constant 6 : index
    %c0_40 = arith.constant 0 : index
    %c0_41 = arith.constant 0 : index
    %45 = vector.load %arg5[%c6, %c0_40, %c0_41] : memref<9x128x128xf32, #tpu.memory_space<vmem>>, vector<1x128x128xf32>
    %46 = vector.shape_cast %45 : vector<1x128x128xf32> to vector<128x128xf32>
    %cst_42 = arith.constant dense<0.000000e+00> : vector<288x128xf32>
    %47 = tpu.matmul %44, %46, %cst_42 {dimension_numbers = #tpu.dot_dimension_numbers<[1], [0], [0], [1], [0, 0, 1, 1], [], []>} : vector<288x128xf32>, vector<128x128xf32>, vector<288x128xf32> -> vector<288x128xf32>
    %48 = arith.addf %43, %47 : vector<288x128xf32>
    %c50 = arith.constant 50 : index
    %c0_43 = arith.constant 0 : index
    %49 = vector.load %arg10[%c50, %c0_43] : memref<352x128xf32, #tpu.memory_space<vmem>>, vector<288x128xf32>
    %c7 = arith.constant 7 : index
    %c0_44 = arith.constant 0 : index
    %c0_45 = arith.constant 0 : index
    %50 = vector.load %arg5[%c7, %c0_44, %c0_45] : memref<9x128x128xf32, #tpu.memory_space<vmem>>, vector<1x128x128xf32>
    %51 = vector.shape_cast %50 : vector<1x128x128xf32> to vector<128x128xf32>
    %cst_46 = arith.constant dense<0.000000e+00> : vector<288x128xf32>
    %52 = tpu.matmul %49, %51, %cst_46 {dimension_numbers = #tpu.dot_dimension_numbers<[1], [0], [0], [1], [0, 0, 1, 1], [], []>} : vector<288x128xf32>, vector<128x128xf32>, vector<288x128xf32> -> vector<288x128xf32>
    %53 = arith.addf %48, %52 : vector<288x128xf32>
    %c51 = arith.constant 51 : index
    %c0_47 = arith.constant 0 : index
    %54 = vector.load %arg10[%c51, %c0_47] : memref<352x128xf32, #tpu.memory_space<vmem>>, vector<288x128xf32>
    %c8 = arith.constant 8 : index
    %c0_48 = arith.constant 0 : index
    %c0_49 = arith.constant 0 : index
    %55 = vector.load %arg5[%c8, %c0_48, %c0_49] : memref<9x128x128xf32, #tpu.memory_space<vmem>>, vector<1x128x128xf32>
    %56 = vector.shape_cast %55 : vector<1x128x128xf32> to vector<128x128xf32>
    %cst_50 = arith.constant dense<0.000000e+00> : vector<288x128xf32>
    %57 = tpu.matmul %54, %56, %cst_50 {dimension_numbers = #tpu.dot_dimension_numbers<[1], [0], [0], [1], [0, 0, 1, 1], [], []>} : vector<288x128xf32>, vector<128x128xf32>, vector<288x128xf32> -> vector<288x128xf32>
    %58 = arith.addf %53, %57 : vector<288x128xf32>
    %c0_51 = arith.constant 0 : index
    %c0_52 = arith.constant 0 : index
    %59 = vector.load %arg6[%c0_51, %c0_52] : memref<1x128xf32, #tpu.memory_space<vmem>>, vector<1x128xf32>
    %60 = vector.broadcast %59 : vector<1x128xf32> to vector<288x128xf32>
    %61 = arith.addf %58, %60 : vector<288x128xf32>
    %cst_53 = arith.constant 0.000000e+00 : f32
    %62 = vector.broadcast %cst_53 : f32 to vector<288x128xf32>
    %63 = arith.maximumf %61, %62 : vector<288x128xf32>
    %64 = vector.broadcast %2 : vector<288x1xf32> to vector<288x128xf32>
    %65 = arith.mulf %63, %64 : vector<288x128xf32>
    %cst_54 = arith.constant 0.000000e+00 : f32
    %66 = vector.broadcast %cst_54 : f32 to vector<352x128xf32>
    %c0_55 = arith.constant 0 : index
    %c0_56 = arith.constant 0 : index
    %67 = vector.load %arg11[%c0_55, %c0_56] : memref<352x128xf32, #tpu.memory_space<vmem>>, vector<352x128xf32>
    tpu.vector_store %arg11[%c0_55, %c0_56], %66 {strides = array<i32>} : memref<352x128xf32, #tpu.memory_space<vmem>>, vector<352x128xf32>,
    %c32_57 = arith.constant 32 : index
    %c0_58 = arith.constant 0 : index
    %68 = vector.load %arg11[%c32_57, %c0_58] : memref<352x128xf32, #tpu.memory_space<vmem>>, vector<288x128xf32>
    tpu.vector_store %arg11[%c32_57, %c0_58], %65 {strides = array<i32>} : memref<352x128xf32, #tpu.memory_space<vmem>>, vector<288x128xf32>,
    %c13_59 = arith.constant 13 : index
    %c0_60 = arith.constant 0 : index
    %69 = vector.load %arg11[%c13_59, %c0_60] : memref<352x128xf32, #tpu.memory_space<vmem>>, vector<288x128xf32>
    %c0_61 = arith.constant 0 : index
    %c0_62 = arith.constant 0 : index
    %c0_63 = arith.constant 0 : index
    %70 = vector.load %arg7[%c0_61, %c0_62, %c0_63] : memref<9x128x128xf32, #tpu.memory_space<vmem>>, vector<1x128x128xf32>
    %71 = vector.shape_cast %70 : vector<1x128x128xf32> to vector<128x128xf32>
    %cst_64 = arith.constant dense<0.000000e+00> : vector<288x128xf32>
    %72 = tpu.matmul %69, %71, %cst_64 {dimension_numbers = #tpu.dot_dimension_numbers<[1], [0], [0], [1], [0, 0, 1, 1], [], []>} : vector<288x128xf32>, vector<128x128xf32>, vector<288x128xf32> -> vector<288x128xf32>
    %c14_65 = arith.constant 14 : index
    %c0_66 = arith.constant 0 : index
    %73 = vector.load %arg11[%c14_65, %c0_66] : memref<352x128xf32, #tpu.memory_space<vmem>>, vector<288x128xf32>
    %c1_67 = arith.constant 1 : index
    %c0_68 = arith.constant 0 : index
    %c0_69 = arith.constant 0 : index
    %74 = vector.load %arg7[%c1_67, %c0_68, %c0_69] : memref<9x128x128xf32, #tpu.memory_space<vmem>>, vector<1x128x128xf32>
    %75 = vector.shape_cast %74 : vector<1x128x128xf32> to vector<128x128xf32>
    %cst_70 = arith.constant dense<0.000000e+00> : vector<288x128xf32>
    %76 = tpu.matmul %73, %75, %cst_70 {dimension_numbers = #tpu.dot_dimension_numbers<[1], [0], [0], [1], [0, 0, 1, 1], [], []>} : vector<288x128xf32>, vector<128x128xf32>, vector<288x128xf32> -> vector<288x128xf32>
    %77 = arith.addf %72, %76 : vector<288x128xf32>
    %c15_71 = arith.constant 15 : index
    %c0_72 = arith.constant 0 : index
    %78 = vector.load %arg11[%c15_71, %c0_72] : memref<352x128xf32, #tpu.memory_space<vmem>>, vector<288x128xf32>
    %c2_73 = arith.constant 2 : index
    %c0_74 = arith.constant 0 : index
    %c0_75 = arith.constant 0 : index
    %79 = vector.load %arg7[%c2_73, %c0_74, %c0_75] : memref<9x128x128xf32, #tpu.memory_space<vmem>>, vector<1x128x128xf32>
    %80 = vector.shape_cast %79 : vector<1x128x128xf32> to vector<128x128xf32>
    %cst_76 = arith.constant dense<0.000000e+00> : vector<288x128xf32>
    %81 = tpu.matmul %78, %80, %cst_76 {dimension_numbers = #tpu.dot_dimension_numbers<[1], [0], [0], [1], [0, 0, 1, 1], [], []>} : vector<288x128xf32>, vector<128x128xf32>, vector<288x128xf32> -> vector<288x128xf32>
    %82 = arith.addf %77, %81 : vector<288x128xf32>
    %c31_77 = arith.constant 31 : index
    %c0_78 = arith.constant 0 : index
    %83 = vector.load %arg11[%c31_77, %c0_78] : memref<352x128xf32, #tpu.memory_space<vmem>>, vector<288x128xf32>
    %c3_79 = arith.constant 3 : index
    %c0_80 = arith.constant 0 : index
    %c0_81 = arith.constant 0 : index
    %84 = vector.load %arg7[%c3_79, %c0_80, %c0_81] : memref<9x128x128xf32, #tpu.memory_space<vmem>>, vector<1x128x128xf32>
    %85 = vector.shape_cast %84 : vector<1x128x128xf32> to vector<128x128xf32>
    %cst_82 = arith.constant dense<0.000000e+00> : vector<288x128xf32>
    %86 = tpu.matmul %83, %85, %cst_82 {dimension_numbers = #tpu.dot_dimension_numbers<[1], [0], [0], [1], [0, 0, 1, 1], [], []>} : vector<288x128xf32>, vector<128x128xf32>, vector<288x128xf32> -> vector<288x128xf32>
    %87 = arith.addf %82, %86 : vector<288x128xf32>
    %c32_83 = arith.constant 32 : index
    %c0_84 = arith.constant 0 : index
    %88 = vector.load %arg11[%c32_83, %c0_84] : memref<352x128xf32, #tpu.memory_space<vmem>>, vector<288x128xf32>
    %c4_85 = arith.constant 4 : index
    %c0_86 = arith.constant 0 : index
    %c0_87 = arith.constant 0 : index
    %89 = vector.load %arg7[%c4_85, %c0_86, %c0_87] : memref<9x128x128xf32, #tpu.memory_space<vmem>>, vector<1x128x128xf32>
    %90 = vector.shape_cast %89 : vector<1x128x128xf32> to vector<128x128xf32>
    %cst_88 = arith.constant dense<0.000000e+00> : vector<288x128xf32>
    %91 = tpu.matmul %88, %90, %cst_88 {dimension_numbers = #tpu.dot_dimension_numbers<[1], [0], [0], [1], [0, 0, 1, 1], [], []>} : vector<288x128xf32>, vector<128x128xf32>, vector<288x128xf32> -> vector<288x128xf32>
    %92 = arith.addf %87, %91 : vector<288x128xf32>
    %c33_89 = arith.constant 33 : index
    %c0_90 = arith.constant 0 : index
    %93 = vector.load %arg11[%c33_89, %c0_90] : memref<352x128xf32, #tpu.memory_space<vmem>>, vector<288x128xf32>
    %c5_91 = arith.constant 5 : index
    %c0_92 = arith.constant 0 : index
    %c0_93 = arith.constant 0 : index
    %94 = vector.load %arg7[%c5_91, %c0_92, %c0_93] : memref<9x128x128xf32, #tpu.memory_space<vmem>>, vector<1x128x128xf32>
    %95 = vector.shape_cast %94 : vector<1x128x128xf32> to vector<128x128xf32>
    %cst_94 = arith.constant dense<0.000000e+00> : vector<288x128xf32>
    %96 = tpu.matmul %93, %95, %cst_94 {dimension_numbers = #tpu.dot_dimension_numbers<[1], [0], [0], [1], [0, 0, 1, 1], [], []>} : vector<288x128xf32>, vector<128x128xf32>, vector<288x128xf32> -> vector<288x128xf32>
    %97 = arith.addf %92, %96 : vector<288x128xf32>
    %c49_95 = arith.constant 49 : index
    %c0_96 = arith.constant 0 : index
    %98 = vector.load %arg11[%c49_95, %c0_96] : memref<352x128xf32, #tpu.memory_space<vmem>>, vector<288x128xf32>
    %c6_97 = arith.constant 6 : index
    %c0_98 = arith.constant 0 : index
    %c0_99 = arith.constant 0 : index
    %99 = vector.load %arg7[%c6_97, %c0_98, %c0_99] : memref<9x128x128xf32, #tpu.memory_space<vmem>>, vector<1x128x128xf32>
    %100 = vector.shape_cast %99 : vector<1x128x128xf32> to vector<128x128xf32>
    %cst_100 = arith.constant dense<0.000000e+00> : vector<288x128xf32>
    %101 = tpu.matmul %98, %100, %cst_100 {dimension_numbers = #tpu.dot_dimension_numbers<[1], [0], [0], [1], [0, 0, 1, 1], [], []>} : vector<288x128xf32>, vector<128x128xf32>, vector<288x128xf32> -> vector<288x128xf32>
    %102 = arith.addf %97, %101 : vector<288x128xf32>
    %c50_101 = arith.constant 50 : index
    %c0_102 = arith.constant 0 : index
    %103 = vector.load %arg11[%c50_101, %c0_102] : memref<352x128xf32, #tpu.memory_space<vmem>>, vector<288x128xf32>
    %c7_103 = arith.constant 7 : index
    %c0_104 = arith.constant 0 : index
    %c0_105 = arith.constant 0 : index
    %104 = vector.load %arg7[%c7_103, %c0_104, %c0_105] : memref<9x128x128xf32, #tpu.memory_space<vmem>>, vector<1x128x128xf32>
    %105 = vector.shape_cast %104 : vector<1x128x128xf32> to vector<128x128xf32>
    %cst_106 = arith.constant dense<0.000000e+00> : vector<288x128xf32>
    %106 = tpu.matmul %103, %105, %cst_106 {dimension_numbers = #tpu.dot_dimension_numbers<[1], [0], [0], [1], [0, 0, 1, 1], [], []>} : vector<288x128xf32>, vector<128x128xf32>, vector<288x128xf32> -> vector<288x128xf32>
    %107 = arith.addf %102, %106 : vector<288x128xf32>
    %c51_107 = arith.constant 51 : index
    %c0_108 = arith.constant 0 : index
    %108 = vector.load %arg11[%c51_107, %c0_108] : memref<352x128xf32, #tpu.memory_space<vmem>>, vector<288x128xf32>
    %c8_109 = arith.constant 8 : index
    %c0_110 = arith.constant 0 : index
    %c0_111 = arith.constant 0 : index
    %109 = vector.load %arg7[%c8_109, %c0_110, %c0_111] : memref<9x128x128xf32, #tpu.memory_space<vmem>>, vector<1x128x128xf32>
    %110 = vector.shape_cast %109 : vector<1x128x128xf32> to vector<128x128xf32>
    %cst_112 = arith.constant dense<0.000000e+00> : vector<288x128xf32>
    %111 = tpu.matmul %108, %110, %cst_112 {dimension_numbers = #tpu.dot_dimension_numbers<[1], [0], [0], [1], [0, 0, 1, 1], [], []>} : vector<288x128xf32>, vector<128x128xf32>, vector<288x128xf32> -> vector<288x128xf32>
    %112 = arith.addf %107, %111 : vector<288x128xf32>
    %c0_113 = arith.constant 0 : index
    %c0_114 = arith.constant 0 : index
    %113 = vector.load %arg8[%c0_113, %c0_114] : memref<1x128xf32, #tpu.memory_space<vmem>>, vector<1x128xf32>
    %114 = vector.broadcast %113 : vector<1x128xf32> to vector<288x128xf32>
    %115 = arith.addf %112, %114 : vector<288x128xf32>
    %cst_115 = arith.constant 0.000000e+00 : f32
    %116 = vector.broadcast %cst_115 : f32 to vector<288x128xf32>
    %117 = arith.maximumf %115, %116 : vector<288x128xf32>
    %118 = arith.addf %117, %1 : vector<288x128xf32>
    %cst_116 = arith.constant 0.000000e+00 : f32
    %119 = vector.broadcast %cst_116 : f32 to vector<288x128xf32>
    %120 = arith.maximumf %118, %119 : vector<288x128xf32>
    %c0_117 = arith.constant 0 : index
    %c0_118 = arith.constant 0 : index
    %c0_119 = arith.constant 0 : index
    %121 = vector.load %arg9[%c0_117, %c0_118, %c0_119] : memref<1x288x128xf32, #tpu.memory_space<vmem>>, vector<1x288x128xf32>
    %122 = vector.shape_cast %121 : vector<1x288x128xf32> to vector<288x128xf32>
    %123 = vector.shape_cast %120 : vector<288x128xf32> to vector<1x288x128xf32>
    tpu.vector_store %arg9[%c0_117, %c0_118, %c0_119], %123 {strides = array<i32>} : memref<1x288x128xf32, #tpu.memory_space<vmem>>, vector<1x288x128xf32>,
    return
  }
  func.func @transform_0(%arg0: i32) -> (i32, i32, i32) {
    %c0_i32 = arith.constant 0 : i32
    %c0_i32_0 = arith.constant 0 : i32
    %c0_i32_1 = arith.constant 0 : i32
    return %arg0, %c0_i32, %c0_i32_0 : i32, i32, i32
  }
  func.func @transform_1(%arg0: i32) -> (i32, i32) {
    %c0_i32 = arith.constant 0 : i32
    %c0_i32_0 = arith.constant 0 : i32
    %c0_i32_1 = arith.constant 0 : i32
    return %c0_i32, %c0_i32_0 : i32, i32
  }
  func.func @transform_2(%arg0: i32) -> (i32, i32) {
    %c0_i32 = arith.constant 0 : i32
    %c0_i32_0 = arith.constant 0 : i32
    %c0_i32_1 = arith.constant 0 : i32
    return %c0_i32, %c0_i32_0 : i32, i32
  }
  func.func @transform_3(%arg0: i32) -> (i32, i32) {
    %c0_i32 = arith.constant 0 : i32
    %c0_i32_0 = arith.constant 0 : i32
    %c0_i32_1 = arith.constant 0 : i32
    return %c0_i32, %c0_i32_0 : i32, i32
  }
  func.func @transform_4(%arg0: i32) -> (i32, i32, i32) {
    %c0_i32 = arith.constant 0 : i32
    %c0_i32_0 = arith.constant 0 : i32
    %c0_i32_1 = arith.constant 0 : i32
    %c0_i32_2 = arith.constant 0 : i32
    return %c0_i32, %c0_i32_0, %c0_i32_1 : i32, i32, i32
  }
  func.func @transform_5(%arg0: i32) -> (i32, i32) {
    %c0_i32 = arith.constant 0 : i32
    %c0_i32_0 = arith.constant 0 : i32
    %c0_i32_1 = arith.constant 0 : i32
    return %c0_i32, %c0_i32_0 : i32, i32
  }
  func.func @transform_6(%arg0: i32) -> (i32, i32, i32) {
    %c0_i32 = arith.constant 0 : i32
    %c0_i32_0 = arith.constant 0 : i32
    %c0_i32_1 = arith.constant 0 : i32
    %c0_i32_2 = arith.constant 0 : i32
    return %c0_i32, %c0_i32_0, %c0_i32_1 : i32, i32, i32
  }
  func.func @transform_7(%arg0: i32) -> (i32, i32) {
    %c0_i32 = arith.constant 0 : i32
    %c0_i32_0 = arith.constant 0 : i32
    %c0_i32_1 = arith.constant 0 : i32
    return %c0_i32, %c0_i32_0 : i32, i32
  }
  func.func @transform_8(%arg0: i32) -> (i32, i32, i32) {
    %c0_i32 = arith.constant 0 : i32
    %c0_i32_0 = arith.constant 0 : i32
    %c0_i32_1 = arith.constant 0 : i32
    return %arg0, %c0_i32, %c0_i32_0 : i32, i32, i32
  }
}

</mosaic_0001>

<bundles_post_ra>
// kernel: resnet_bottleneck_forward.1
= control target key start
LH: loop header
LB: loop body
LE: loop exit
PB: predicated region body
PF: predicated region fallthrough
CT: control target
= control target key end

     0   :  { %s5415_s27 = smov 0   ;;  %s8637_s0 = inlined_call_operand.vmem [shape: f32[2,288,128], index: 0, kind: input, shape index: {}]   ;;  %s8638_s1 = inlined_call_operand.vmem [shape: f32[288,1], index: 1, kind: input, shape index: {}]   ;;  %s8639_s2 = inlined_call_operand.vmem [shape: f32[128,128], index: 2, kind: input, shape index: {}]   ;;  %s8640_s3 = inlined_call_operand.vmem [shape: f32[1,128], index: 3, kind: input, shape index: {}]   ;;  %s8641_s4 = inlined_call_operand.vmem [shape: f32[9,128,128], index: 4, kind: input, shape index: {}]   ;;  %s8642_s5 = inlined_call_operand.vmem [shape: f32[1,128], index: 5, kind: input, shape index: {}]   ;;  %s8643_s6 = inlined_call_operand.vmem [shape: f32[9,128,128], index: 6, kind: input, shape index: {}]   ;;  %s8644_s7 = inlined_call_operand.vmem [shape: f32[1,128], index: 7, kind: input, shape index: {}]   ;;  %s8645_s8 = inlined_call_operand.vmem [shape: f32[2,288,128], index: 8, kind: output, shape index: {}]  }
   0x1 LB: > { %s4992_s28 = sadd.s32 4294967295, %s5366_s27   ;;  %p4996_p0 = scmp.ge.s32.totalorder %s5366_s27, 1  ;;  %s5366_s27 = sphi %s5415_s27, %s18_s27  }
   0x2   : > { %p262_p1 = scmp.lt.s32.totalorder %s5366_s27, 3 }
   0x4   : > { %p263_p2 = pnand %p4996_p0, %p262_p1 }
   0x6   : > { %266 = sbr.rel (%p263_p2) target bundleno = 1951 (0x79f), region = 52 }
   0xb   : > { %v393_v0 = vld [vmem:[%s8639_s2 + $0x78] sm:$0xff]  ;;  %v392_v1 = vld [vmem:[%s8639_s2 + $0x70] sm:$0xff]  ;;  %v391_v2 = vld [vmem:[%s8639_s2 + $0x68] sm:$0xff]  ;;  %v5368_v7 = vmov 0   ;;  %p296_p3 = scmp.lt.s32.totalorder %s4992_s28, 1 }
   0xc   : > { %398 = vmatpush.msra.mxu0 %v393_v0  ;;  %5257 = vmatpush.msra.mxu3 %v393_v0  ;;  %v390_v3 = vld [vmem:[%s8639_s2 + $0x60] sm:$0xff]  ;;  %v389_v4 = vld [vmem:[%s8639_s2 + $0x58] sm:$0xff]  ;;  %v388_v5 = vld [vmem:[%s8639_s2 + $0x50] sm:$0xff] }
   0xd   : > { %v342_v6 = vld [vmem:[%s8638_s1] sm:$0xff]  ;;  %5316 = vset.pattern.permute.xlu0 %v5368_v7  ;;  %v387_v8 = vld [vmem:[%s8639_s2 + $0x48] sm:$0xff]  ;;  %5317 = vset.pattern.permute.xlu1 %v5368_v7  ;;  %v385_v10 = vld [vmem:[%s8639_s2 + $0x38] sm:$0xff]  ;;  %s9262_s28 = smov (!%p296_p3, %s4992_s28), 1 }
   0xe   : > { %399 = vmatpush.msra.mxu0 %v392_v1  ;;  %5258 = vmatpush.msra.mxu3 %v392_v1  ;;  %v386_v9 = vld [vmem:[%s8639_s2 + $0x40] sm:$0xff]  ;;  %v384_v11 = vld [vmem:[%s8639_s2 + $0x30] sm:$0xff]  ;;  %v343_v12 = vld [vmem:[%s8638_s1 + $0x8] sm:$0xff]  ;;  %s5305_s17 = smul.u32 288, %s9262_s28 }
   0xf   : > { %561 = vperm.xlu0 %5316, %v342_v6   ;;  %5318 = vset.pattern.permute.xlu2 %v5368_v7  ;;  %v383_v13 = vld [vmem:[%s8639_s2 + $0x28] sm:$0xff]  ;;  %v382_v14 = vld [vmem:[%s8639_s2 + $0x20] sm:$0xff]  ;;  %v381_v15 = vld [vmem:[%s8639_s2 + $0x18] sm:$0xff] }
  0x10   : > { %400 = vmatpush.msra.mxu0 %v391_v2  ;;  %5259 = vmatpush.msra.mxu3 %v391_v2  ;;  %v380_v16 = vld [vmem:[%s8639_s2 + $0x10] sm:$0xff]  ;;  %v379_v18 = vld [vmem:[%s8639_s2 + $0x8] sm:$0xff]  ;;  %s5489_s26 = scalar_lea.vmem %s8637_s0, %s5305_s17  ;;  %v378_v19 = vld [vmem:[%s8639_s2] sm:$0xff]  ;;  %s8396_s15 = scalar_lea.vmem %s8645_s8, %s5305_s17 }
  0x11   : > { %v344_v17 = vld [vmem:[%s8638_s1 + $0x10] sm:$0xff]  ;;  %v306_v20 = vld [vmem:[%s5489_s26] sm:$0xff]  ;;  %v345_v21 = vld [vmem:[%s8638_s1 + $0x18] sm:$0xff] }
  0x12   : > { %401 = vmatpush.msra.mxu0 %v390_v3  ;;  %5260 = vmatpush.msra.mxu3 %v390_v3  ;;  %v307_v22 = vld [vmem:[%s5489_s26 + $0x8] sm:$0xff]  ;;  %v308_v23 = vld [vmem:[%s5489_s26 + $0x10] sm:$0xff]  ;;  %v309_v24 = vld [vmem:[%s5489_s26 + $0x18] sm:$0xff] }
  0x13   : > { %571 = vperm.xlu1 %5317, %v344_v17   ;;  %v367_v25 = vld [vmem:[%s8638_s1 + $0xc8] sm:$0xff]  ;;  %v366_v26 = vld [vmem:[%s8638_s1 + $0xc0] sm:$0xff]  ;;  %v349_v29 = vld [vmem:[%s8638_s1 + $0x38] sm:$0xff] }
  0x14   : > { %402 = vmatpush.msra.mxu0 %v389_v4  ;;  %5261 = vmatpush.msra.mxu3 %v389_v4  ;;  %v310_v27 = vld [vmem:[%s5489_s26 + $0x20] sm:$0xff]  ;;  %v368_v30 = vld [vmem:[%s8638_s1 + $0xd0] sm:$0xff]  ;;  %v311_v31 = vld [vmem:[%s5489_s26 + $0x28] sm:$0xff] }
  0x15   : > { %v346_v28 = vld [vmem:[%s8638_s1 + $0x20] sm:$0xff]  ;;  %v347_v32 = vld [vmem:[%s8638_s1 + $0x28] sm:$0xff]  ;;  %v312_v34 = vld [vmem:[%s5489_s26 + $0x30] sm:$0xff] }
  0x16   : > { %403 = vmatpush.msra.mxu0 %v388_v5  ;;  %5262 = vmatpush.msra.mxu3 %v388_v5  ;;  %v350_v33 = vld [vmem:[%s8638_s1 + $0x40] sm:$0xff]  ;;  %v348_v35 = vld [vmem:[%s8638_s1 + $0x30] sm:$0xff]  ;;  %v313_v37 = vld [vmem:[%s5489_s26 + $0x38] sm:$0xff] }
  0x17   : > { %566 = vperm.xlu0 %5316, %v343_v12   ;;  %581 = vperm.xlu2 %5318, %v346_v28   ;;  %v370_v36 = vld [vmem:[%s8638_s1 + $0xe0] sm:$0xff]  ;;  %v5014_v38 = vld [vmem:[%s8641_s4 + $0xf8] sm:$0xff]  ;;  %v5013_v40 = vld [vmem:[%s8641_s4 + $0xf0] sm:$0xff] }
  0x18   : > { %404 = vmatpush.msra.mxu0 %v387_v8  ;;  %5263 = vmatpush.msra.mxu3 %v387_v8  ;;  %v5538_v39 = vld [vmem:[%s8641_s4 + $0x78] sm:$0xff]  ;;  %v5547_v41 = vld [vmem:[%s8641_s4 + $0x70] sm:$0xff]  ;;  %v371_v43 = vld [vmem:[%s8638_s1 + $0xe8] sm:$0xff] }
  0x19   : > { %960 = vmatpush.msra.mxu1 %v5014_v38  ;;  %1085 = vmatpush.msra.mxu2 %v5538_v39  ;;  %v352_v42 = vld [vmem:[%s8638_s1 + $0x50] sm:$0xff]  ;;  %v314_v44 = vld [vmem:[%s5489_s26 + $0x40] sm:$0xff]  ;;  %v5012_v45 = vld [vmem:[%s8641_s4 + $0xe8] sm:$0xff] }
  0x1a   : > { %405 = vmatpush.msra.mxu0 %v386_v9  ;;  %5264 = vmatpush.msra.mxu3 %v386_v9  ;;  %v5563_v46 = vld [vmem:[%s8641_s4 + $0x68] sm:$0xff]  ;;  %v5011_v47 = vld [vmem:[%s8641_s4 + $0xe0] sm:$0xff]  ;;  %v333_v49 = vld [vmem:[%s5489_s26 + $0xd8] sm:$0xff] }
  0x1b   : > { %576 = vperm.xlu1 %5317, %v345_v21   ;;  %961 = vmatpush.msra.mxu1 %v5013_v40  ;;  %v5572_v48 = vld [vmem:[%s8641_s4 + $0x60] sm:$0xff]  ;;  %v5010_v50 = vld [vmem:[%s8641_s4 + $0xd8] sm:$0xff]  ;;  %v5009_v54 = vld [vmem:[%s8641_s4 + $0xd0] sm:$0xff] }
  0x1c   : > { %406 = vmatpush.msra.mxu0 %v385_v10  ;;  %5265 = vmatpush.msra.mxu3 %v385_v10  ;;  %v5581_v51 = vld [vmem:[%s8641_s4 + $0x58] sm:$0xff]  ;;  %v5596_v55 = vld [vmem:[%s8641_s4 + $0x50] sm:$0xff]  ;;  %v315_v56 = vld [vmem:[%s5489_s26 + $0x48] sm:$0xff] }
  0x1d   : > { %1086 = vmatpush.msra.mxu2 %v5547_v41  ;;  %962 = vmatpush.msra.mxu1 %v5012_v45  ;;  %v369_v52 = vld [vmem:[%s8638_s1 + $0xd8] sm:$0xff]  ;;  %v5008_v57 = vld [vmem:[%s8641_s4 + $0xc8] sm:$0xff]  ;;  %v5007_v59 = vld [vmem:[%s8641_s4 + $0xc0] sm:$0xff] }
  0x1e   : > { %407 = vmatpush.msra.mxu0 %v384_v11  ;;  %5266 = vmatpush.msra.mxu3 %v384_v11  ;;  %v353_v53 = vld [vmem:[%s8638_s1 + $0x58] sm:$0xff]  ;;  %v5607_v58 = vld [vmem:[%s8641_s4 + $0x48] sm:$0xff]  ;;  %v5616_v60 = vld [vmem:[%s8641_s4 + $0x40] sm:$0xff] }
  0x1f   : > { %681 = vperm.xlu0 %5316, %v366_v26   ;;  %586 = vperm.xlu2 %5318, %v347_v32   ;;  %v334_v61 = vld [vmem:[%s5489_s26 + $0xe0] sm:$0xff]  ;;  %v5006_v62 = vld [vmem:[%s8641_s4 + $0xb8] sm:$0xff]  ;;  %v351_v0 = vld [vmem:[%s8638_s1 + $0x48] sm:$0xff] }
  0x20   : > { %408 = vmatpush.msra.mxu0 %v383_v13  ;;  %5267 = vmatpush.msra.mxu3 %v383_v13  ;;  %v5625_v63 = vld [vmem:[%s8641_s4 + $0x38] sm:$0xff]  ;;  %v5637_v2 = vld [vmem:[%s8641_s4 + $0xb0] sm:$0xff]  ;;  %v5004_v5 = vld [vmem:[%s8641_s4 + $0xa8] sm:$0xff] }
  0x21   : > { %1087 = vmatpush.msra.mxu2 %v5563_v46  ;;  %963 = vmatpush.msra.mxu1 %v5011_v47  ;;  %v373_v1 = vld [vmem:[%s8638_s1 + $0xf8] sm:$0xff]  ;;  %v5642_v3 = vld [vmem:[%s8641_s4 + $0x30] sm:$0xff]  ;;  %v5654_v6 = vld [vmem:[%s8641_s4 + $0x28] sm:$0xff] }
  0x22   : > { %409 = vmatpush.msra.mxu0 %v382_v14  ;;  %5268 = vmatpush.msra.mxu3 %v382_v14  ;;  %v316_v4 = vld [vmem:[%s5489_s26 + $0x50] sm:$0xff]  ;;  %v5003_v7 = vld [vmem:[%s8641_s4 + $0xa0] sm:$0xff]  ;;  %v335_v9 = vld [vmem:[%s5489_s26 + $0xe8] sm:$0xff] }
  0x23   : > { %686 = vperm.xlu1 %5317, %v367_v25   ;;  %1088 = vmatpush.msra.mxu2 %v5572_v48  ;;  %v5663_v8 = vld [vmem:[%s8641_s4 + $0x20] sm:$0xff]  ;;  %v5669_v10 = vld [vmem:[%s8641_s4 + $0x98] sm:$0xff]  ;;  %v355_v12 = vld [vmem:[%s8638_s1 + $0x68] sm:$0xff] }
  0x24   : > { %410 = vmatpush.msra.mxu0 %v381_v15  ;;  %5269 = vmatpush.msra.mxu3 %v381_v15  ;;  %v5674_v11 = vld [vmem:[%s8641_s4 + $0x18] sm:$0xff]  ;;  %v374_v13 = vld [vmem:[%s8638_s1 + $0x100] sm:$0xff]  ;;  %v5001_v14 = vld [vmem:[%s8641_s4 + $0x90] sm:$0xff] }
  0x25   : > { %964 = vmatpush.msra.mxu1 %v5010_v50  ;;  %1089 = vmatpush.msra.mxu2 %v5581_v51  ;;  %v5689_v15 = vld [vmem:[%s8641_s4 + $0x10] sm:$0xff]  ;;  %v317_v17 = vld [vmem:[%s5489_s26 + $0x58] sm:$0xff]  ;;  %v5710_v21 = vld [vmem:[%s8641_s4] sm:$0xff] }
  0x26   : > { %411 = vmatpush.msra.mxu0 %v380_v16  ;;  %5270 = vmatpush.msra.mxu3 %v380_v16  ;;  %v5369_v16 = vmov 0.0   ;;  %v318_v25 = vld [vmem:[%s5489_s26 + $0x60] sm:$0xff]  ;;  %v372_v26 = vld [vmem:[%s8638_s1 + $0xf0] sm:$0xff]  ;;  %v337_v28 = vld [vmem:[%s5489_s26 + $0xf8] sm:$0xff] }
  0x27   : > { %691 = vperm.xlu0 %5316, %v368_v30   ;;  %591 = vperm.xlu2 %5318, %v348_v35   ;;  %776 = vst [vmem:[#allocation2 + $0x8] sm:$0xff] %v5369_v16  ;;  %v354_v32 = vld [vmem:[%s8638_s1 + $0x60] sm:$0xff]  ;;  %v320_v35 = vld [vmem:[%s5489_s26 + $0x70] sm:$0xff] }
  0x28   : > { %412 = vmatpush.msra.mxu0 %v379_v18  ;;  %5271 = vmatpush.msra.mxu3 %v379_v18  ;;  %777 = vst [vmem:[#allocation2 + $0x10] sm:$0xff] %v5369_v16  ;;  %v5000_v18 = vld [vmem:[%s8641_s4 + $0x88] sm:$0xff] }
  0x29   : > { %965 = vmatpush.msra.mxu1 %v5009_v54  ;;  %1090 = vmatpush.msra.mxu2 %v5596_v55  ;;  %778 = vst [vmem:[#allocation2 + $0x18] sm:$0xff] %v5369_v16 }
  0x2a   : > { %413 = vmatpush.msra.mxu0 %v378_v19  ;;  %5272 = vmatpush.msra.mxu3 %v378_v19  ;;  %v5701_v19 = vld [vmem:[%s8641_s4 + $0x8] sm:$0xff]  ;;  %815 = vst [vmem:[#allocation2 + $0x140] sm:$0xff] %v5369_v16 }
  0x2b   : > { %414 = vmatmul.f32.vlgmr.msra.gmra.mxu0 %v306_v20  ;;  %596 = vperm.xlu1 %5317, %v349_v29   ;;  %v4999_v20 = vld [vmem:[%s8641_s4 + $0x80] sm:$0xff]  ;;  %816 = vst [vmem:[#allocation2 + $0x148] sm:$0xff] %v5369_v16 }
  0x2c   : > { %5273 = vmatpush.msrb.mxu3 %v5014_v38  ;;  %966 = vmatpush.msra.mxu1 %v5008_v57  ;;  %817 = vst [vmem:[#allocation2 + $0x150] sm:$0xff] %v5369_v16  ;;  %v359_v38 = vld [vmem:[%s8638_s1 + $0x88] sm:$0xff] }
  0x2d   : > { %495 = vmatmul.f32.vlgmr.msra.gmra.mxu3 %v333_v49  ;;  %1091 = vmatpush.msra.mxu2 %v5607_v58  ;;  %2821 = vst [vmem:[#allocation3 + $0x8] sm:$0xff] %v5369_v16 }
  0x2e   : > { %5274 = vmatpush.msrb.mxu3 %v5013_v40  ;;  %967 = vmatpush.msra.mxu1 %v5007_v59  ;;  %2822 = vst [vmem:[#allocation3 + $0x10] sm:$0xff] %v5369_v16  ;;  %v340_v40 = vld [vmem:[%s5489_s26 + $0x110] sm:$0xff] }
  0x2f   : > { %601 = vperm.xlu0 %5316, %v350_v33   ;;  %696 = vperm.xlu2 %5318, %v369_v52   ;;  %2823 = vst [vmem:[#allocation3 + $0x18] sm:$0xff] %v5369_v16  ;;  %v357_v33 = vld [vmem:[%s8638_s1 + $0x78] sm:$0xff]  ;;  %v323_v52 = vld [vmem:[%s5489_s26 + $0x88] sm:$0xff] }
  0x30   : > { %5275 = vmatpush.msrb.mxu3 %v5012_v45  ;;  %1092 = vmatpush.msra.mxu2 %v5616_v60  ;;  %2860 = vst [vmem:[#allocation3 + $0x140] sm:$0xff] %v5369_v16  ;;  %v908_v29 = vld [vmem:[#allocation2 + $0x16] sm:$0xff]  ;;  %v375_v45 = vld [vmem:[%s8638_s1 + $0x108] sm:$0xff] }
  0x31   : > { %968 = vmatpush.msra.mxu1 %v5006_v62  ;;  %2861 = vst [vmem:[#allocation3 + $0x148] sm:$0xff] %v5369_v16  ;;  %v856_v30 = vld [vmem:[#allocation2 + $0x15] sm:$0xff] }
  0x32   : > { %5276 = vmatpush.msrb.mxu3 %v5011_v47  ;;  %1093 = vmatpush.msra.mxu2 %v5625_v63  ;;  %2862 = vst [vmem:[#allocation3 + $0x150] sm:$0xff] %v5369_v16 }
  0x33   : > { %417 = vmatmul.f32.gmra.mxu0 %v307_v22  ;;  %701 = vperm.xlu1 %5317, %v370_v36   ;;  %v336_v22 = vld [vmem:[%s5489_s26 + $0xf0] sm:$0xff]  ;;  %v339_v36 = vld [vmem:[%s5489_s26 + $0x108] sm:$0xff] }
  0x34   : > { %5277 = vmatpush.msrb.mxu3 %v5010_v50  ;;  %969 = vmatpush.msra.mxu1 %v5637_v2  ;;  %v341_v50 = vld [vmem:[%s5489_s26 + $0x118] sm:$0xff] }
  0x35   : > { %498 = vmatmul.f32.gmra.mxu3 %v334_v61  ;;  %1094 = vmatpush.msra.mxu2 %v5642_v3 }
  0x36   : > { %5278 = vmatpush.msrb.mxu3 %v5009_v54  ;;  %970 = vmatpush.msra.mxu1 %v5004_v5  ;;  %v358_v54 = vld [vmem:[%s8638_s1 + $0x80] sm:$0xff] }
  0x37   : > { %706 = vperm.xlu0 %5316, %v371_v43   ;;  %606 = vperm.xlu2 %5318, %v351_v0  }
  0x38   : > { %1095 = vmatpush.msra.mxu2 %v5654_v6  ;;  %971 = vmatpush.msra.mxu1 %v5003_v7 }
  0x39   : > { %5279 = vmatpush.msrb.mxu3 %v5008_v57  ;;  %v365_v57 = vld [vmem:[%s8638_s1 + $0xb8] sm:$0xff] }
  0x3a   : > { %1096 = vmatpush.msra.mxu2 %v5663_v8  ;;  %972 = vmatpush.msra.mxu1 %v5669_v10 }
  0x3b   : > { %420 = vmatmul.f32.gmra.mxu0 %v308_v23  ;;  %611 = vperm.xlu1 %5317, %v352_v42   ;;  %v907_v23 = vld [vmem:[#allocation2 + $0xe] sm:$0xff]  ;;  %v322_v42 = vld [vmem:[%s5489_s26 + $0x80] sm:$0xff] }
  0x3c   : > { %1097 = vmatpush.msra.mxu2 %v5674_v11  ;;  %973 = vmatpush.msra.mxu1 %v5001_v14 }
  0x3d   : > { %501 = vmatmul.f32.gmra.mxu3 %v335_v9 }
  0x3e   : > { %1098 = vmatpush.msra.mxu2 %v5689_v15  ;;  %5280 = vmatpush.msrb.mxu3 %v5007_v59 }
  0x3f   : > { %616 = vperm.xlu0 %5316, %v353_v53   ;;  %974 = vmatpush.msra.mxu1 %v5000_v18 }
  0x40   : > { %1099 = vmatpush.msra.mxu2 %v5701_v19  ;;  %5281 = vmatpush.msrb.mxu3 %v5006_v62  ;;  %v324_v62 = vld [vmem:[%s5489_s26 + $0x90] sm:$0xff] }
  0x41   : > { %975 = vmatpush.msra.mxu1 %v4999_v20  ;;  %711 = vperm.xlu2 %5318, %v372_v26  }
  0x42   : > { %1100 = vmatpush.msra.mxu2 %v5710_v21  ;;  %976 = vmatmul.f32.vlgmr.msra.gmra.mxu1 %v907_v23  ;;  %v361_v23 = vld [vmem:[%s8638_s1 + $0x98] sm:$0xff] }
  0x43   : > { %423 = vmatmul.f32.gmra.mxu0 %v309_v24  ;;  %716 = vperm.xlu1 %5317, %v373_v1   ;;  %v855_v24 = vld [vmem:[#allocation2 + $0xd] sm:$0xff] }
  0x44   : > { %1101 = vmatmul.f32.vlgmr.msra.gmra.mxu2 %v855_v24  ;;  %5282 = vmatpush.msrb.mxu3 %v5637_v2  ;;  %v363_v2 = vld [vmem:[%s8638_s1 + $0xa8] sm:$0xff] }
  0x45   : > { %504 = vmatmul.f32.gmra.mxu3 %v336_v22  ;;  %v5043_v22 = vld [vmem:[%s8641_s4 + $0x1e0] sm:$0xff] }
  0x46   : > { %5283 = vmatpush.msrb.mxu3 %v5004_v5 }
  0x47   : > { %721 = vperm.xlu0 %5316, %v374_v13  }
  0x48   : > { %5284 = vmatpush.msrb.mxu3 %v5003_v7  ;;  %v325_v7 = vld [vmem:[%s5489_s26 + $0x98] sm:$0xff] }
  0x49   : > { %621 = vperm.xlu2 %5318, %v354_v32   ;;  %v327_v32 = vld [vmem:[%s5489_s26 + $0xa8] sm:$0xff] }
  0x4a   : > { %979 = vmatmul.f32.gmra.mxu1 %v908_v29  ;;  %5285 = vmatpush.msrb.mxu3 %v5669_v10 }
  0x4b   : > { %426 = vmatmul.f32.gmra.mxu0 %v310_v27  ;;  %626 = vperm.xlu1 %5317, %v355_v12   ;;  %v356_v27 = vld [vmem:[%s8638_s1 + $0x70] sm:$0xff] }
  0x4c   : > { %1104 = vmatmul.f32.gmra.mxu2 %v856_v30  ;;  %5286 = vmatpush.msrb.mxu3 %v5001_v14  ;;  %v376_v12 = vld [vmem:[%s8638_s1 + $0x110] sm:$0xff]  ;;  %v5040_v30 = vld [vmem:[%s8641_s4 + $0x1c8] sm:$0xff] }
  0x4d   : > { %507 = vmatmul.f32.gmra.mxu3 %v337_v28  ;;  %v5045_v14 = vld [vmem:[%s8641_s4 + $0x1f0] sm:$0xff] }
  0x4e   : > { %5287 = vmatpush.msrb.mxu3 %v5000_v18  ;;  %v5044_v18 = vld [vmem:[%s8641_s4 + $0x1e8] sm:$0xff] }
  0x4f   : > { %631 = vperm.xlu0 %5316, %v356_v27   ;;  %v5041_v27 = vld [vmem:[%s8641_s4 + $0x1d0] sm:$0xff] }
  0x50   : > { %5288 = vmatpush.msrb.mxu3 %v4999_v20  ;;  %v326_v20 = vld [vmem:[%s5489_s26 + $0xa0] sm:$0xff] }
  0x51   : > { %726 = vperm.xlu2 %5318, %v375_v45  }
  0x52   : > { %5289 = vmatpush.msra.mxu3 %v5538_v39  ;;  %v5747_v39 = vld [vmem:[%s8640_s3] ss:$0 sm:$0xff] }
  0x53   : > { %429 = vmatmul.f32.gmra.mxu0 %v311_v31  ;;  %v319_v31 = vld [vmem:[%s5489_s26 + $0x68] sm:$0xff]  ;;  %636 = vperm.xlu1 %5317, %v357_v33  }
  0x54   : > { %5290 = vmatpush.msra.mxu3 %v5547_v41 }
  0x56   : > { %5291 = vmatpush.msra.mxu3 %v5563_v46  ;;  %v360_v46 = vld [vmem:[%s8638_s1 + $0x90] sm:$0xff] }
  0x57   : > { %646 = vperm.xlu0 %5316, %v359_v38   ;;  %v364_v38 = vld [vmem:[%s8638_s1 + $0xb0] sm:$0xff] }
  0x58   : > { %5292 = vmatpush.msra.mxu3 %v5572_v48  ;;  %v362_v48 = vld [vmem:[%s8638_s1 + $0xa0] sm:$0xff] }
  0x59   : > { %641 = vperm.xlu2 %5318, %v358_v54   ;;  %v5034_v54 = vld [vmem:[%s8641_s4 + $0x198] sm:$0xff] }
  0x5a   : > { %5293 = vmatpush.msra.mxu3 %v5581_v51 }
  0x5b   : > { %432 = vmatmul.f32.gmra.mxu0 %v312_v34  ;;  %v338_v34 = vld [vmem:[%s5489_s26 + $0x100] sm:$0xff]  ;;  %651 = vperm.xlu1 %5317, %v360_v46   ;;  %v5036_v46 = vld [vmem:[%s8641_s4 + $0x1a8] sm:$0xff] }
  0x5c   : > { %510 = vmatmul.f32.gmra.mxu3 %v338_v34 }
  0x5d   : > { %5294 = vmatpush.msra.mxu3 %v5596_v55 }
  0x5f   : > { %5295 = vmatpush.msra.mxu3 %v5607_v58  ;;  %661 = vperm.xlu0 %5316, %v362_v48   ;;  %v328_v48 = vld [vmem:[%s5489_s26 + $0xb0] sm:$0xff] }
  0x61   : > { %5296 = vmatpush.msra.mxu3 %v5616_v60  ;;  %656 = vperm.xlu2 %5318, %v361_v23  }
  0x63   : > { %435 = vmatmul.f32.gmra.mxu0 %v313_v37  ;;  %v321_v37 = vld [vmem:[%s5489_s26 + $0x78] sm:$0xff]  ;;  %5297 = vmatpush.msra.mxu3 %v5625_v63 }
  0x64   : > { %513 = vmatmul.f32.gmra.mxu3 %v339_v36  ;;  %666 = vperm.xlu1 %5317, %v363_v2  }
  0x65   : > { %5298 = vmatpush.msra.mxu3 %v5642_v3 }
  0x67   : > { %5299 = vmatpush.msra.mxu3 %v5654_v6  ;;  %676 = vperm.xlu0 %5316, %v365_v57  }
  0x69   : > { %5300 = vmatpush.msra.mxu3 %v5663_v8  ;;  %671 = vperm.xlu2 %5318, %v364_v38  }
  0x6b   : > { %438 = vmatmul.f32.gmra.mxu0 %v314_v44  ;;  %5301 = vmatpush.msra.mxu3 %v5674_v11  ;;  %v5046_v11 = vld [vmem:[%s8641_s4 + $0x1f8] sm:$0xff] }
  0x6c   : > { %516 = vmatmul.f32.gmra.mxu3 %v340_v40  ;;  %1477 = vmatpush.msrb.mxu0 %v5046_v11  ;;  %v330_v11 = vld [vmem:[%s5489_s26 + $0xc0] sm:$0xff] }
  0x6d   : > { %5302 = vmatpush.msra.mxu3 %v5689_v15  ;;  %731 = vperm.xlu1 %5317, %v376_v12  }
  0x6e   : > { %1478 = vmatpush.msrb.mxu0 %v5045_v14 }
  0x6f   : > { %5303 = vmatpush.msra.mxu3 %v5701_v19 }
  0x70   : > { %1479 = vmatpush.msrb.mxu0 %v5044_v18 }
  0x71   : > { %5304 = vmatpush.msra.mxu3 %v5710_v21 }
  0x72   : > { %1480 = vmatpush.msrb.mxu0 %v5043_v22 }
  0x73   : > { %441 = vmatmul.f32.gmra.mxu0 %v315_v56 }
  0x74   : > { %519 = vmatmul.f32.gmra.mxu3 %v341_v50 }
  0x7b   : > { %444 = vmatmul.f32.gmra.mxu0 %v316_v4 }
  0x81   : > { %v5752_v43 = vpop.permute.xlu0 %561 }
  0x82   : > { %8695 = vst [vmem:[#allocation4_spill] sm:$0xff] %v5752_v43 }
  0x83   : > { %447 = vmatmul.f32.gmra.mxu0 %v317_v17  ;;  %v5808_v17 = vpop.permute.xlu2 %581 }
  0x84   : > { %8699 = vst [vmem:[#allocation8_spill] sm:$0xff] %v5808_v17 }
  0x85   : > { %v5785_v63 = vpop.permute.xlu1 %571 }
  0x86   : > { %8697 = vst [vmem:[#allocation6_spill] sm:$0xff] %v5785_v63 }
  0x89   : > { %v5775_v55 = vpop.permute.xlu0 %566 }
  0x8a   : > { %8696 = vst [vmem:[#allocation5_spill] sm:$0xff] %v5775_v55 }
  0x8b   : > { %450 = vmatmul.f32.gmra.mxu0 %v318_v25  ;;  %v5042_v25 = vld [vmem:[%s8641_s4 + $0x1d8] sm:$0xff]  ;;  %v5832_v33 = vpop.permute.xlu2 %586 }
  0x8c   : > { %1481 = vmatpush.msrb.mxu0 %v5042_v25  ;;  %8700 = vst [vmem:[#allocation9_spill] sm:$0xff] %v5832_v33 }
  0x8d   : > { %v5796_v9 = vpop.permute.xlu1 %576 }
  0x8e   : > { %8698 = vst [vmem:[#allocation7_spill] sm:$0xff] %v5796_v9  ;;  %1482 = vmatpush.msrb.mxu0 %v5041_v27 }
  0x90   : > { %1483 = vmatpush.msrb.mxu0 %v5040_v30 }
  0x91   : > { %v5848_v45 = vpop.permute.xlu0 %681 }
  0x92   : > { %8701 = vst [vmem:[#allocation10_spill] sm:$0xff] %v5848_v45 }
  0x93   : > { %453 = vmatmul.f32.gmra.mxu0 %v319_v31 }
  0x9b   : > { %456 = vmatmul.f32.gmra.mxu0 %v320_v35  ;;  %v5039_v35 = vld [vmem:[%s8641_s4 + $0x1c0] sm:$0xff] }
  0x9c   : > { %1484 = vmatpush.msrb.mxu0 %v5039_v35  ;;  %v332_v35 = vld [vmem:[%s5489_s26 + $0xd0] sm:$0xff] }
  0xa3   : > { %459 = vmatmul.f32.gmra.mxu0 %v321_v37  ;;  %v5038_v37 = vld [vmem:[%s8641_s4 + $0x1b8] sm:$0xff] }
  0xa4   : > { %1485 = vmatpush.msrb.mxu0 %v5038_v37 }
  0xa8   : > { %v415_v41 = vpop.f32.mrf.mxu0 }
  0xa9   : > { %v416_v44 = vadd.f32 %v5747_v39, %v415_v41  ;;  %v5037_v41 = vld [vmem:[%s8641_s4 + $0x1b0] sm:$0xff] }
  0xaa   : > { %1486 = vmatpush.msrb.mxu0 %v5037_v41 }
  0xab   : > { %v523_v47 = vmax.f32 %v416_v44, 0.0  ;;  %462 = vmatmul.f32.gmra.mxu0 %v322_v42 }
  0xac   : > { %1487 = vmatpush.msrb.mxu0 %v5036_v46 }
  0xad   : > { %v739_v49 = vmul.f32 %v5752_v43, %v523_v47 }
  0xaf   : > { %819 = vst [vmem:[#allocation2 + $0x20] sm:$0xff] %v739_v49  ;;  %v5854_v49 = vpop.permute.xlu1 %686 }
  0xb0   : > { %v418_v51 = vpop.f32.mrf.mxu0  ;;  %8702 = vst [vmem:[#allocation11_spill] sm:$0xff] %v5854_v49  ;;  %v496_v25 = vpop.f32.mrf.mxu3 }
  0xb1   : > { %v419_v53 = vadd.f32 %v5747_v39, %v418_v51  ;;  %v5035_v51 = vld [vmem:[%s8641_s4 + $0x1a0] sm:$0xff]  ;;  %v497_v27 = vadd.f32 %v5747_v39, %v496_v25 }
  0xb2   : > { %1488 = vmatpush.msrb.mxu0 %v5035_v51 }
  0xb3   : > { %v524_v56 = vmax.f32 %v419_v53, 0.0  ;;  %465 = vmatmul.f32.gmra.mxu0 %v323_v52  ;;  %v5860_v52 = vpop.permute.xlu2 %591 }
  0xb4   : > { %8703 = vst [vmem:[#allocation12_spill] sm:$0xff] %v5860_v52  ;;  %1489 = vmatpush.msrb.mxu0 %v5034_v54 }
  0xb5   : > { %v740_v58 = vmul.f32 %v5775_v55, %v524_v56  ;;  %v377_v56 = vld [vmem:[%s8638_s1 + $0x118] sm:$0xff] }
  0xb6   : > { %v909_v59 = vld [vmem:[#allocation2 + $0x1e] sm:$0xff]  ;;  %736 = vperm.xlu2 %5318, %v377_v56  }
  0xb7   : > { %v857_v60 = vld [vmem:[#allocation2 + $0x1d] sm:$0xff]  ;;  %820 = vst [vmem:[#allocation2 + $0x28] sm:$0xff] %v740_v58  ;;  %982 = vmatmul.f32.gmra.mxu1 %v909_v59  ;;  %v5033_v58 = vld [vmem:[%s8641_s4 + $0x190] sm:$0xff] }
  0xb8   : > { %1107 = vmatmul.f32.gmra.mxu2 %v857_v60  ;;  %v421_v61 = vpop.f32.mrf.mxu0  ;;  %1490 = vmatpush.msrb.mxu0 %v5033_v58  ;;  %v1424_v56 = vld [vmem:[#allocation2 + $0x1f] sm:$0xff] }
  0xb9   : > { %v422_v0 = vadd.f32 %v5747_v39, %v421_v61  ;;  %v5032_v61 = vld [vmem:[%s8641_s4 + $0x188] sm:$0xff] }
  0xba   : > { %1491 = vmatpush.msrb.mxu0 %v5032_v61 }
  0xbb   : > { %v525_v1 = vmax.f32 %v422_v0, 0.0  ;;  %468 = vmatmul.f32.gmra.mxu0 %v324_v62  ;;  %v329_v0 = vld [vmem:[%s5489_s26 + $0xb8] sm:$0xff]  ;;  %v5886_v12 = vpop.permute.xlu2 %696 }
  0xbc   : > { %8706 = vst [vmem:[#allocation15_spill] sm:$0xff] %v5886_v12 }
  0xbd   : > { %v741_v3 = vmul.f32 %v5785_v63, %v525_v1  ;;  %v5876_v1 = vpop.permute.xlu0 %691 }
  0xbe   : > { %v910_v4 = vld [vmem:[#allocation2 + $0x26] sm:$0xff]  ;;  %8704 = vst [vmem:[#allocation13_spill] sm:$0xff] %v5876_v1 }
  0xbf   : > { %v858_v5 = vld [vmem:[#allocation2 + $0x25] sm:$0xff]  ;;  %821 = vst [vmem:[#allocation2 + $0x30] sm:$0xff] %v741_v3  ;;  %985 = vmatmul.f32.gmra.mxu1 %v910_v4  ;;  %v5882_v4 = vpop.permute.xlu1 %596 }
  0xc0   : > { %1110 = vmatmul.f32.gmra.mxu2 %v858_v5  ;;  %v424_v6 = vpop.f32.mrf.mxu0  ;;  %v5031_v3 = vld [vmem:[%s8641_s4 + $0x180] sm:$0xff]  ;;  %8705 = vst [vmem:[#allocation14_spill] sm:$0xff] %v5882_v4 }
  0xc1   : > { %v425_v8 = vadd.f32 %v5747_v39, %v424_v6  ;;  %1492 = vmatpush.msrb.mxu0 %v5031_v3 }
  0xc3   : > { %v526_v10 = vmax.f32 %v425_v8, 0.0  ;;  %471 = vmatmul.f32.gmra.mxu0 %v325_v7 }
  0xc5   : > { %v742_v13 = vmul.f32 %v5796_v9, %v526_v10  ;;  %v5889_v14 = vpop.permute.xlu0 %601 }
  0xc6   : > { %v911_v15 = vld [vmem:[#allocation2 + $0x2e] sm:$0xff]  ;;  %8707 = vst [vmem:[#allocation16_spill] sm:$0xff] %v5889_v14 }
  0xc7   : > { %v859_v16 = vld [vmem:[#allocation2 + $0x2d] sm:$0xff]  ;;  %822 = vst [vmem:[#allocation2 + $0x38] sm:$0xff] %v742_v13  ;;  %988 = vmatmul.f32.gmra.mxu1 %v911_v15  ;;  %v5893_v22 = vpop.permute.xlu1 %701 }
  0xc8   : > { %1113 = vmatmul.f32.gmra.mxu2 %v859_v16  ;;  %v427_v19 = vpop.f32.mrf.mxu0  ;;  %8708 = vst [vmem:[#allocation17_spill] sm:$0xff] %v5893_v22 }
  0xc9   : > { %v428_v21 = vadd.f32 %v5747_v39, %v427_v19 }
  0xcb   : > { %v527_v24 = vmax.f32 %v428_v21, 0.0  ;;  %474 = vmatmul.f32.gmra.mxu0 %v326_v20  ;;  %v331_v21 = vld [vmem:[%s5489_s26 + $0xc8] sm:$0xff] }
  0xcd   : > { %v743_v26 = vmul.f32 %v5808_v17, %v527_v24  ;;  %v5896_v24 = vpop.permute.xlu2 %606  ;;  %v1212_v17 = vld [vmem:[#allocation2 + $0x1f] sm:$0xff] }
  0xce   : > { %v912_v28 = vld [vmem:[#allocation2 + $0x36] sm:$0xff]  ;;  %8709 = vst [vmem:[#allocation18_spill] sm:$0xff] %v5896_v24 }
  0xcf   : > { %v860_v29 = vld [vmem:[#allocation2 + $0x35] sm:$0xff]  ;;  %823 = vst [vmem:[#allocation2 + $0x40] sm:$0xff] %v743_v26  ;;  %991 = vmatmul.f32.gmra.mxu1 %v912_v28  ;;  %v5905_v38 = vpop.permute.xlu1 %611 }
  0xd0   : > { %1116 = vmatmul.f32.gmra.mxu2 %v860_v29  ;;  %v430_v31 = vpop.f32.mrf.mxu0  ;;  %v550_v29 = vmax.f32 %v497_v27, 0.0  ;;  %8711 = vst [vmem:[#allocation20_spill] sm:$0xff] %v5905_v38  ;;  %v1426_v27 = vld [vmem:[#allocation2 + $0x2f] sm:$0xff] }
  0xd1   : > { %v431_v34 = vadd.f32 %v5747_v39, %v430_v31 }
  0xd3   : > { %v528_v36 = vmax.f32 %v431_v34, 0.0  ;;  %477 = vmatmul.f32.gmra.mxu0 %v327_v32  ;;  %v766_v32 = vmul.f32 %v5886_v12, %v550_v29 }
  0xd5   : > { %v744_v40 = vmul.f32 %v5832_v33, %v528_v36  ;;  %v5902_v36 = vpop.permute.xlu0 %706  ;;  %846 = vst [vmem:[#allocation2 + $0xf8] sm:$0xff] %v766_v32 }
  0xd6   : > { %v913_v42 = vld [vmem:[#allocation2 + $0x3e] sm:$0xff]  ;;  %8710 = vst [vmem:[#allocation19_spill] sm:$0xff] %v5902_v36 }
  0xd7   : > { %v861_v44 = vld [vmem:[#allocation2 + $0x3d] sm:$0xff]  ;;  %824 = vst [vmem:[#allocation2 + $0x48] sm:$0xff] %v744_v40  ;;  %994 = vmatmul.f32.gmra.mxu1 %v913_v42  ;;  %v499_v40 = vpop.f32.mrf.mxu3 }
  0xd8   : > { %1119 = vmatmul.f32.gmra.mxu2 %v861_v44  ;;  %v433_v47 = vpop.f32.mrf.mxu0  ;;  %v500_v42 = vadd.f32 %v5747_v39, %v499_v40 }
  0xd9   : > { %v434_v50 = vadd.f32 %v5747_v39, %v433_v47 }
  0xda   : > { %v551_v46 = vmax.f32 %v500_v42, 0.0 }
  0xdb   : > { %v529_v53 = vmax.f32 %v434_v50, 0.0  ;;  %480 = vmatmul.f32.gmra.mxu0 %v328_v48 }
  0xdc   : > { %v767_v50 = vmul.f32 %v5893_v22, %v551_v46 }
  0xdd   : > { %v745_v57 = vmul.f32 %v5860_v52, %v529_v53  ;;  %v5913_v53 = vpop.permute.xlu2 %711 }
  0xde   : > { %v914_v59 = vld [vmem:[#allocation2 + $0x46] sm:$0xff]  ;;  %8712 = vst [vmem:[#allocation21_spill] sm:$0xff] %v5913_v53 }
  0xdf   : > { %v862_v60 = vld [vmem:[#allocation2 + $0x45] sm:$0xff]  ;;  %825 = vst [vmem:[#allocation2 + $0x50] sm:$0xff] %v745_v57  ;;  %997 = vmatmul.f32.gmra.mxu1 %v914_v59  ;;  %v5916_v57 = vpop.permute.xlu0 %616  ;;  %v502_v58 = vpop.f32.mrf.mxu3 }
  0xe0   : > { %1122 = vmatmul.f32.gmra.mxu2 %v862_v60  ;;  %v436_v62 = vpop.f32.mrf.mxu0  ;;  %847 = vst [vmem:[#allocation2 + $0x100] sm:$0xff] %v767_v50  ;;  %v503_v60 = vadd.f32 %v5747_v39, %v502_v58 }
  0xe1   : > { %v437_v2 = vadd.f32 %v5747_v39, %v436_v62  ;;  %8713 = vst [vmem:[#allocation22_spill] sm:$0xff] %v5916_v57 }
  0xe2   : > { %v552_v62 = vmax.f32 %v503_v60, 0.0 }
  0xe3   : > { %v530_v5 = vmax.f32 %v437_v2, 0.0  ;;  %483 = vmatmul.f32.gmra.mxu0 %v329_v0 }
  0xe4   : > { %v768_v3 = vmul.f32 %v5902_v36, %v552_v62 }
  0xe5   : > { %v746_v6 = vmul.f32 %v5882_v4, %v530_v5 }
  0xe6   : > { %v915_v7 = vld [vmem:[#allocation2 + $0x4e] sm:$0xff]  ;;  %848 = vst [vmem:[#allocation2 + $0x108] sm:$0xff] %v768_v3 }
  0xe7   : > { %v863_v8 = vld [vmem:[#allocation2 + $0x4d] sm:$0xff]  ;;  %826 = vst [vmem:[#allocation2 + $0x58] sm:$0xff] %v746_v6  ;;  %1000 = vmatmul.f32.gmra.mxu1 %v915_v7  ;;  %v5924_v6 = vpop.permute.xlu1 %716  ;;  %v5935_v25 = vpop.permute.xlu0 %721 }
  0xe8   : > { %1125 = vmatmul.f32.gmra.mxu2 %v863_v8  ;;  %v439_v10 = vpop.f32.mrf.mxu0  ;;  %8714 = vst [vmem:[#allocation23_spill] sm:$0xff] %v5924_v6  ;;  %v1425_v8 = vld [vmem:[#allocation2 + $0x27] sm:$0xff] }
  0xe9   : > { %v440_v13 = vadd.f32 %v5747_v39, %v439_v10  ;;  %v5927_v10 = vpop.permute.xlu2 %621  ;;  %8716 = vst [vmem:[#allocation25_spill] sm:$0xff] %v5935_v25 }
  0xea   : > { %8715 = vst [vmem:[#allocation24_spill] sm:$0xff] %v5927_v10 }
  0xeb   : > { %v531_v15 = vmax.f32 %v440_v13, 0.0  ;;  %486 = vmatmul.f32.gmra.mxu0 %v330_v11  ;;  %v505_v11 = vpop.f32.mrf.mxu3 }
  0xed   : > { %v747_v16 = vmul.f32 %v5889_v14, %v531_v15  ;;  %v506_v15 = vadd.f32 %v5747_v39, %v505_v11 }
  0xee   : > { %v916_v18 = vld [vmem:[#allocation2 + $0x56] sm:$0xff] }
  0xef   : > { %v864_v19 = vld [vmem:[#allocation2 + $0x55] sm:$0xff]  ;;  %827 = vst [vmem:[#allocation2 + $0x60] sm:$0xff] %v747_v16  ;;  %1003 = vmatmul.f32.gmra.mxu1 %v916_v18  ;;  %v553_v18 = vmax.f32 %v506_v15, 0.0 }
  0xf0   : > { %1128 = vmatmul.f32.gmra.mxu2 %v864_v19  ;;  %v442_v20 = vpop.f32.mrf.mxu0  ;;  %v5062_v15 = vld [vmem:[%s8641_s4 + $0x278] sm:$0xff] }
  0xf1   : > { %v443_v23 = vadd.f32 %v5747_v39, %v442_v20  ;;  %v5941_v32 = vpop.permute.xlu2 %726  ;;  %1691 = vmatpush.msrb.mxu1 %v5062_v15 }
  0xf2   : > { %8718 = vst [vmem:[#allocation27_spill] sm:$0xff] %v5941_v32 }
  0xf3   : > { %v532_v26 = vmax.f32 %v443_v23, 0.0  ;;  %489 = vmatmul.f32.gmra.mxu0 %v331_v21  ;;  %v769_v21 = vmul.f32 %v5913_v53, %v553_v18  ;;  %v508_v29 = vpop.f32.mrf.mxu3 }
  0xf5   : > { %v748_v28 = vmul.f32 %v5896_v24, %v532_v26  ;;  %849 = vst [vmem:[#allocation2 + $0x110] sm:$0xff] %v769_v21 }
  0xf6   : > { %v917_v30 = vld [vmem:[#allocation2 + $0x5e] sm:$0xff] }
  0xf7   : > { %v865_v31 = vld [vmem:[#allocation2 + $0x5d] sm:$0xff]  ;;  %828 = vst [vmem:[#allocation2 + $0x68] sm:$0xff] %v748_v28  ;;  %1006 = vmatmul.f32.gmra.mxu1 %v917_v30  ;;  %v5938_v28 = vpop.permute.xlu1 %626 }
  0xf8   : > { %1131 = vmatmul.f32.gmra.mxu2 %v865_v31  ;;  %v445_v34 = vpop.f32.mrf.mxu0  ;;  %8717 = vst [vmem:[#allocation26_spill] sm:$0xff] %v5938_v28  ;;  %v509_v31 = vadd.f32 %v5747_v39, %v508_v29 }
  0xf9   : > { %v446_v37 = vadd.f32 %v5747_v39, %v445_v34 }
  0xfb   : > { %v533_v41 = vmax.f32 %v446_v37, 0.0  ;;  %492 = vmatmul.f32.gmra.mxu0 %v332_v35  ;;  %v554_v35 = vmax.f32 %v509_v31, 0.0  ;;  %v511_v50 = vpop.f32.mrf.mxu3 }
  0xfd   : > { %v5909_v44 = vmul.f32 %v5905_v38, %v533_v41  ;;  %v770_v41 = vmul.f32 %v5924_v6, %v554_v35 }
  0xfe   : > { %v918_v47 = vld [vmem:[#allocation2 + $0x66] sm:$0xff] }
  0xff   : > { %v866_v48 = vld [vmem:[#allocation2 + $0x65] sm:$0xff]  ;;  %829 = vst [vmem:[#allocation2 + $0x70] sm:$0xff] %v5909_v44  ;;  %1009 = vmatmul.f32.gmra.mxu1 %v918_v47  ;;  %v1427_v47 = vld [vmem:[#allocation2 + $0x37] sm:$0xff]  ;;  %v5955_v62 = vpop.permute.xlu1 %636 }
 0x100   : > { %1134 = vmatmul.f32.gmra.mxu2 %v866_v48  ;;  %v448_v51 = vpop.f32.mrf.mxu0  ;;  %850 = vst [vmem:[#allocation2 + $0x118] sm:$0xff] %v770_v41  ;;  %v5949_v48 = vpop.permute.xlu0 %631  ;;  %v2286_v63 = vld [vmem:[#allocation2 + $0x62] sm:$0xff] }
 0x101   : > { %v449_v54 = vadd.f32 %v5747_v39, %v448_v51  ;;  %8719 = vst [vmem:[#allocation28_spill] sm:$0xff] %v5949_v48 }
 0x102   : > { %8720 = vst [vmem:[#allocation29_spill] sm:$0xff] %v5955_v62 }
 0x103   : > { %v534_v59 = vmax.f32 %v449_v54, 0.0  ;;  %1493 = vmatmul.f32.vlgmr.msrb.gmra.mxu0 %v1424_v56  ;;  %v512_v54 = vadd.f32 %v5747_v39, %v511_v50  ;;  %v514_v11 = vpop.f32.mrf.mxu3 }
 0x104   : > { %v515_v18 = vadd.f32 %v5747_v39, %v514_v11 }
 0x105   : > { %v5920_v61 = vmul.f32 %v5916_v57, %v534_v59  ;;  %v555_v58 = vmax.f32 %v512_v54, 0.0 }
 0x106   : > { %v919_v0 = vld [vmem:[#allocation2 + $0x6e] sm:$0xff]  ;;  %v556_v21 = vmax.f32 %v515_v18, 0.0 }
 0x107   : > { %v867_v2 = vld [vmem:[#allocation2 + $0x6d] sm:$0xff]  ;;  %830 = vst [vmem:[#allocation2 + $0x78] sm:$0xff] %v5920_v61  ;;  %1012 = vmatmul.f32.gmra.mxu1 %v919_v0  ;;  %v5957_v0 = vpop.permute.xlu2 %641 }
 0x108   : > { %1137 = vmatmul.f32.gmra.mxu2 %v867_v2  ;;  %v451_v5 = vpop.f32.mrf.mxu0  ;;  %8721 = vst [vmem:[#allocation30_spill] sm:$0xff] %v5957_v0  ;;  %v771_v2 = vmul.f32 %v5935_v25, %v555_v58 }
 0x109   : > { %v452_v7 = vadd.f32 %v5747_v39, %v451_v5  ;;  %v5961_v5 = vpop.f32.mrf.mxu1 }
 0x10a   : > { %851 = vst [vmem:[#allocation2 + $0x120] sm:$0xff] %v771_v2 }
 0x10b   : > { %v535_v13 = vmax.f32 %v452_v7, 0.0  ;;  %1496 = vmatmul.f32.gmra.mxu0 %v1425_v8  ;;  %v1428_v8 = vld [vmem:[#allocation2 + $0x3f] sm:$0xff]  ;;  %v517_v41 = vpop.f32.mrf.mxu3 }
 0x10c   : > { %v518_v58 = vadd.f32 %v5747_v39, %v517_v41 }
 0x10d   : > { %v5931_v16 = vmul.f32 %v5927_v10, %v535_v13  ;;  %v1643_v10 = vld [vmem:[#allocation2 + $0x48] sm:$0xff] }
 0x10e   : > { %v920_v19 = vld [vmem:[#allocation2 + $0x76] sm:$0xff]  ;;  %v557_v15 = vmax.f32 %v518_v58, 0.0 }
 0x10f   : > { %v868_v20 = vld [vmem:[#allocation2 + $0x75] sm:$0xff]  ;;  %831 = vst [vmem:[#allocation2 + $0x80] sm:$0xff] %v5931_v16  ;;  %1015 = vmatmul.f32.gmra.mxu1 %v920_v19  ;;  %v5975_v29 = vpop.permute.xlu2 %656 }
 0x110   : > { %1140 = vmatmul.f32.gmra.mxu2 %v868_v20  ;;  %v454_v23 = vpop.f32.mrf.mxu0  ;;  %v5971_v20 = vpop.f32.mrf.mxu2  ;;  %8723 = vst [vmem:[#allocation32_spill] sm:$0xff] %v5975_v29 }
 0x111   : > { %v455_v26 = vadd.f32 %v5747_v39, %v454_v23 }
 0x113   : > { %v536_v30 = vmax.f32 %v455_v26, 0.0  ;;  %1499 = vmatmul.f32.gmra.mxu0 %v1426_v27  ;;  %v5973_v27 = vpop.permute.xlu1 %651  ;;  %v520_v11 = vpop.f32.mrf.mxu3 }
 0x114   : > { %8722 = vst [vmem:[#allocation31_spill] sm:$0xff] %v5973_v27  ;;  %v521_v18 = vadd.f32 %v5747_v39, %v520_v11 }
 0x115   : > { %v5944_v34 = vmul.f32 %v5938_v28, %v536_v30  ;;  %v772_v30 = vmul.f32 %v5941_v32, %v556_v21  ;;  %v939_v28 = vld [vmem:[#allocation2 + $0x10e] sm:$0xff] }
 0x116   : > { %v921_v37 = vld [vmem:[#allocation2 + $0x7e] sm:$0xff] }
 0x117   : > { %v869_v40 = vld [vmem:[#allocation2 + $0x7d] sm:$0xff]  ;;  %832 = vst [vmem:[#allocation2 + $0x88] sm:$0xff] %v5944_v34  ;;  %1018 = vmatmul.f32.gmra.mxu1 %v921_v37  ;;  %v1429_v37 = vld [vmem:[#allocation2 + $0x47] sm:$0xff] }
 0x118   : > { %1143 = vmatmul.f32.gmra.mxu2 %v869_v40  ;;  %v457_v42 = vpop.f32.mrf.mxu0  ;;  %852 = vst [vmem:[#allocation2 + $0x128] sm:$0xff] %v772_v30  ;;  %v5980_v40 = vpop.f32.mrf.mxu1 }
 0x119   : > { %v458_v46 = vadd.f32 %v5747_v39, %v457_v42  ;;  %v5994_v2 = vpop.f32.mrf.mxu2 }
 0x11b   : > { %v537_v51 = vmax.f32 %v458_v46, 0.0  ;;  %1502 = vmatmul.f32.gmra.mxu0 %v1427_v47  ;;  %v5987_v54 = vpop.permute.xlu1 %666 }
 0x11c   : > { %8725 = vst [vmem:[#allocation34_spill] sm:$0xff] %v5987_v54 }
 0x11d   : > { %v5953_v56 = vmul.f32 %v5949_v48, %v537_v51  ;;  %v5985_v51 = vpop.permute.xlu2 %671  ;;  %v1642_v48 = vld [vmem:[#allocation2 + $0x40] sm:$0xff] }
 0x11e   : > { %v922_v59 = vld [vmem:[#allocation2 + $0x86] sm:$0xff]  ;;  %8724 = vst [vmem:[#allocation33_spill] sm:$0xff] %v5985_v51 }
 0x11f   : > { %v870_v60 = vld [vmem:[#allocation2 + $0x85] sm:$0xff]  ;;  %833 = vst [vmem:[#allocation2 + $0x90] sm:$0xff] %v5953_v56  ;;  %1021 = vmatmul.f32.gmra.mxu1 %v922_v59  ;;  %v5061_v59 = vld [vmem:[%s8641_s4 + $0x270] sm:$0xff] }
 0x120   : > { %1146 = vmatmul.f32.gmra.mxu2 %v870_v60  ;;  %v460_v3 = vpop.f32.mrf.mxu0  ;;  %1692 = vmatpush.msrb.mxu1 %v5061_v59  ;;  %v1431_v59 = vld [vmem:[#allocation2 + $0x57] sm:$0xff]  ;;  %v2290_v55 = vld [vmem:[#allocation2 + $0x82] sm:$0xff] }
 0x121   : > { %v461_v7 = vadd.f32 %v5747_v39, %v460_v3 }
 0x123   : > { %v538_v13 = vmax.f32 %v461_v7, 0.0  ;;  %1505 = vmatmul.f32.gmra.mxu0 %v1428_v8  ;;  %v1430_v7 = vld [vmem:[#allocation2 + $0x4f] sm:$0xff]  ;;  %v5997_v8 = vpop.permute.xlu0 %646 }
 0x124   : > { %8726 = vst [vmem:[#allocation35_spill] sm:$0xff] %v5997_v8 }
 0x125   : > { %v5969_v19 = vmul.f32 %v5955_v62, %v538_v13  ;;  %v938_v62 = vld [vmem:[#allocation2 + $0x106] sm:$0xff] }
 0x126   : > { %v923_v23 = vld [vmem:[#allocation2 + $0x8e] sm:$0xff] }
 0x127   : > { %v871_v26 = vld [vmem:[#allocation2 + $0x8d] sm:$0xff]  ;;  %834 = vst [vmem:[#allocation2 + $0x98] sm:$0xff] %v5969_v19  ;;  %1024 = vmatmul.f32.gmra.mxu1 %v923_v23 }
 0x128   : > { %1149 = vmatmul.f32.gmra.mxu2 %v871_v26  ;;  %v463_v31 = vpop.f32.mrf.mxu0  ;;  %v558_v26 = vmax.f32 %v521_v18, 0.0 }
 0x129   : > { %v464_v35 = vadd.f32 %v5747_v39, %v463_v31 }
 0x12b   : > { %v539_v42 = vmax.f32 %v464_v35, 0.0  ;;  %1508 = vmatmul.f32.gmra.mxu0 %v1429_v37  ;;  %v6003_v35 = vpop.permute.xlu2 %736  ;;  %v6005_v37 = vpop.permute.xlu1 %731 }
 0x12c   : > { %8727 = vst [vmem:[#allocation36_spill] sm:$0xff] %v6003_v35  ;;  %v774_v41 = vmul.f32 %v6003_v35, %v558_v26 }
 0x12d   : > { %v5983_v46 = vmul.f32 %v5957_v0, %v539_v42  ;;  %8728 = vst [vmem:[#allocation37_spill] sm:$0xff] %v6005_v37  ;;  %v773_v42 = vmul.f32 %v6005_v37, %v557_v15  ;;  %v5060_v15 = vld [vmem:[%s8641_s4 + $0x268] sm:$0xff]  ;;  %v1641_v0 = vld [vmem:[#allocation2 + $0x38] sm:$0xff] }
 0x12e   : > { %v924_v47 = vld [vmem:[#allocation2 + $0x96] sm:$0xff]  ;;  %854 = vst [vmem:[#allocation2 + $0x138] sm:$0xff] %v774_v41  ;;  %1693 = vmatpush.msrb.mxu1 %v5060_v15 }
 0x12f   : > { %v872_v50 = vld [vmem:[#allocation2 + $0x95] sm:$0xff]  ;;  %835 = vst [vmem:[#allocation2 + $0xa0] sm:$0xff] %v5983_v46  ;;  %1027 = vmatmul.f32.gmra.mxu1 %v924_v47 }
 0x130   : > { %1152 = vmatmul.f32.gmra.mxu2 %v872_v50  ;;  %v466_v60 = vpop.f32.mrf.mxu0  ;;  %853 = vst [vmem:[#allocation2 + $0x130] sm:$0xff] %v773_v42  ;;  %v1432_v42 = vld [vmem:[#allocation2 + $0x5f] sm:$0xff] }
 0x131   : > { %v467_v3 = vadd.f32 %v5747_v39, %v466_v60 }
 0x133   : > { %v540_v13 = vmax.f32 %v467_v3, 0.0  ;;  %1511 = vmatmul.f32.gmra.mxu0 %v1430_v7 }
 0x134   : > { %v983_v21 = vpop.f32.mrf.mxu1 }
 0x135   : > { %v6001_v23 = vmul.f32 %v5997_v8, %v540_v13  ;;  %v937_v8 = vld [vmem:[#allocation2 + $0xfe] sm:$0xff] }
 0x136   : > { %v925_v30 = vld [vmem:[#allocation2 + $0x9e] sm:$0xff] }
 0x137   : > { %v873_v31 = vld [vmem:[#allocation2 + $0x9d] sm:$0xff]  ;;  %836 = vst [vmem:[#allocation2 + $0xa8] sm:$0xff] %v6001_v23  ;;  %1030 = vmatmul.f32.gmra.mxu1 %v925_v30 }
 0x138   : > { %1155 = vmatmul.f32.gmra.mxu2 %v873_v31  ;;  %v469_v47 = vpop.f32.mrf.mxu0  ;;  %v5077_v31 = vld [vmem:[%s8641_s4 + $0x2f0] sm:$0xff] }
 0x139   : > { %v470_v50 = vadd.f32 %v5747_v39, %v469_v47 }
 0x13b   : > { %v1108_v58 = vpop.f32.mrf.mxu2  ;;  %v541_v60 = vmax.f32 %v470_v50, 0.0  ;;  %1514 = vmatmul.f32.gmra.mxu0 %v1431_v59 }
 0x13c   : > { %v6011_v3 = vadd.f32 %v1108_v58, %v983_v21  ;;  %v986_v7 = vpop.f32.mrf.mxu1  ;;  %v5078_v21 = vld [vmem:[%s8641_s4 + $0x2f8] sm:$0xff]  ;;  %v5076_v58 = vld [vmem:[%s8641_s4 + $0x2e8] sm:$0xff] }
 0x13d   : > { %v6014_v11 = vmul.f32 %v5973_v27, %v541_v60  ;;  %1905 = vmatpush.msrb.mxu2 %v5078_v21  ;;  %v5058_v21 = vld [vmem:[%s8641_s4 + $0x258] sm:$0xff]  ;;  %v1640_v27 = vld [vmem:[#allocation2 + $0x30] sm:$0xff] }
 0x13e   : > { %v926_v13 = vld [vmem:[#allocation2 + $0xa6] sm:$0xff] }
 0x13f   : > { %v874_v18 = vld [vmem:[#allocation2 + $0xa5] sm:$0xff]  ;;  %837 = vst [vmem:[#allocation2 + $0xb0] sm:$0xff] %v6014_v11  ;;  %1033 = vmatmul.f32.gmra.mxu1 %v926_v13  ;;  %1906 = vmatpush.msrb.mxu2 %v5077_v31 }
 0x140   : > { %1158 = vmatmul.f32.gmra.mxu2 %v874_v18  ;;  %v472_v26 = vpop.f32.mrf.mxu0  ;;  %v5059_v13 = vld [vmem:[%s8641_s4 + $0x260] sm:$0xff] }
 0x141   : > { %v473_v30 = vadd.f32 %v5747_v39, %v472_v26  ;;  %1907 = vmatpush.msrb.mxu2 %v5076_v58  ;;  %v5075_v18 = vld [vmem:[%s8641_s4 + $0x2e0] sm:$0xff]  ;;  %1694 = vmatpush.msrb.mxu1 %v5059_v13  ;;  %v5074_v26 = vld [vmem:[%s8641_s4 + $0x2d8] sm:$0xff] }
 0x142   : > { %v1433_v58 = vld [vmem:[#allocation2 + $0x67] sm:$0xff] }
 0x143   : > { %v1111_v41 = vpop.f32.mrf.mxu2  ;;  %v542_v47 = vmax.f32 %v473_v30, 0.0  ;;  %1517 = vmatmul.f32.gmra.mxu0 %v1432_v42  ;;  %1908 = vmatpush.msrb.mxu2 %v5075_v18  ;;  %v5073_v42 = vld [vmem:[%s8641_s4 + $0x2d0] sm:$0xff] }
 0x144   : > { %v6027_v50 = vadd.f32 %v1111_v41, %v986_v7  ;;  %v989_v59 = vpop.f32.mrf.mxu1  ;;  %1695 = vmatpush.msrb.mxu1 %v5058_v21  ;;  %v5057_v41 = vld [vmem:[%s8641_s4 + $0x250] sm:$0xff]  ;;  %v6063_v21 = vpop.permute.xlu0 %661 }
 0x145   : > { %v6033_v60 = vmul.f32 %v5975_v29, %v542_v47  ;;  %1909 = vmatpush.msrb.mxu2 %v5074_v26  ;;  %8729 = vst [vmem:[#allocation38_spill] sm:$0xff] %v6063_v21 }
 0x146   : > { %v927_v7 = vld [vmem:[#allocation2 + $0xae] sm:$0xff]  ;;  %1696 = vmatpush.msrb.mxu1 %v5057_v41 }
 0x147   : > { %v875_v15 = vld [vmem:[#allocation2 + $0xad] sm:$0xff]  ;;  %838 = vst [vmem:[#allocation2 + $0xb8] sm:$0xff] %v6033_v60  ;;  %1036 = vmatmul.f32.gmra.mxu1 %v927_v7  ;;  %1910 = vmatpush.msrb.mxu2 %v5073_v42 }
 0x148   : > { %1161 = vmatmul.f32.gmra.mxu2 %v875_v15  ;;  %v475_v30 = vpop.f32.mrf.mxu0  ;;  %v5056_v7 = vld [vmem:[%s8641_s4 + $0x248] sm:$0xff] }
 0x149   : > { %v476_v31 = vadd.f32 %v5747_v39, %v475_v30  ;;  %v5072_v15 = vld [vmem:[%s8641_s4 + $0x2c8] sm:$0xff]  ;;  %1697 = vmatpush.msrb.mxu1 %v5056_v7 }
 0x14a   : > { %1911 = vmatpush.msrb.mxu2 %v5072_v15  ;;  %v5053_v15 = vld [vmem:[%s8641_s4 + $0x230] sm:$0xff] }
 0x14b   : > { %v1114_v47 = vpop.f32.mrf.mxu2  ;;  %v543_v13 = vmax.f32 %v476_v31, 0.0  ;;  %1520 = vmatmul.f32.gmra.mxu0 %v1433_v58  ;;  %v5071_v31 = vld [vmem:[%s8641_s4 + $0x2c0] sm:$0xff]  ;;  %v5070_v58 = vld [vmem:[%s8641_s4 + $0x2b8] sm:$0xff] }
 0x14c   : > { %v6055_v18 = vadd.f32 %v1114_v47, %v989_v59  ;;  %v992_v26 = vpop.f32.mrf.mxu1  ;;  %v5055_v59 = vld [vmem:[%s8641_s4 + $0x240] sm:$0xff]  ;;  %1912 = vmatpush.msrb.mxu2 %v5071_v31  ;;  %v5054_v47 = vld [vmem:[%s8641_s4 + $0x238] sm:$0xff]  ;;  %v6140_v53 = vpop.permute.xlu0 %676 }
 0x14d   : > { %v6066_v30 = vmul.f32 %v6063_v21, %v543_v13  ;;  %1698 = vmatpush.msrb.mxu1 %v5055_v59  ;;  %v5069_v59 = vld [vmem:[%s8641_s4 + $0x2b0] sm:$0xff]  ;;  %8730 = vst [vmem:[#allocation39_spill] sm:$0xff] %v6140_v53 }
 0x14e   : > { %v928_v41 = vld [vmem:[#allocation2 + $0xb6] sm:$0xff]  ;;  %1913 = vmatpush.msrb.mxu2 %v5070_v58  ;;  %v5068_v58 = vld [vmem:[%s8641_s4 + $0x2a8] sm:$0xff] }
 0x14f   : > { %v876_v42 = vld [vmem:[#allocation2 + $0xb5] sm:$0xff]  ;;  %839 = vst [vmem:[#allocation2 + $0xc0] sm:$0xff] %v6066_v30  ;;  %1039 = vmatmul.f32.gmra.mxu1 %v928_v41 }
 0x150   : > { %1164 = vmatmul.f32.gmra.mxu2 %v876_v42  ;;  %v478_v13 = vpop.f32.mrf.mxu0  ;;  %1699 = vmatpush.msrb.mxu1 %v5054_v47  ;;  %v1434_v41 = vld [vmem:[#allocation2 + $0x6f] sm:$0xff] }
 0x151   : > { %v479_v7 = vadd.f32 %v5747_v39, %v478_v13  ;;  %1914 = vmatpush.msrb.mxu2 %v5069_v59  ;;  %v5052_v47 = vld [vmem:[%s8641_s4 + $0x228] sm:$0xff] }
 0x152   : > { %1700 = vmatpush.msrb.mxu1 %v5053_v15 }
 0x153   : > { %v1117_v31 = vpop.f32.mrf.mxu2  ;;  %v544_v42 = vmax.f32 %v479_v7, 0.0  ;;  %1523 = vmatmul.f32.gmra.mxu0 %v1434_v41  ;;  %1915 = vmatpush.msrb.mxu2 %v5068_v58  ;;  %v5067_v7 = vld [vmem:[%s8641_s4 + $0x2a0] sm:$0xff]  ;;  %v5066_v41 = vld [vmem:[%s8641_s4 + $0x298] sm:$0xff]  ;;  %v5049_v58 = vld [vmem:[%s8641_s4 + $0x210] sm:$0xff] }
 0x154   : > { %v6088_v35 = vadd.f32 %v1117_v31, %v992_v26  ;;  %v995_v13 = vpop.f32.mrf.mxu1  ;;  %1701 = vmatpush.msrb.mxu1 %v5052_v47  ;;  %v5051_v26 = vld [vmem:[%s8641_s4 + $0x220] sm:$0xff]  ;;  %v5050_v31 = vld [vmem:[%s8641_s4 + $0x218] sm:$0xff] }
 0x155   : > { %v6097_v37 = vmul.f32 %v5987_v54, %v544_v42  ;;  %1916 = vmatpush.msrb.mxu2 %v5067_v7 }
 0x156   : > { %v929_v15 = vld [vmem:[#allocation2 + $0xbe] sm:$0xff]  ;;  %1702 = vmatpush.msrb.mxu1 %v5051_v26  ;;  %v5065_v26 = vld [vmem:[%s8641_s4 + $0x290] sm:$0xff] }
 0x157   : > { %v877_v59 = vld [vmem:[#allocation2 + $0xbd] sm:$0xff]  ;;  %840 = vst [vmem:[#allocation2 + $0xc8] sm:$0xff] %v6097_v37  ;;  %1042 = vmatmul.f32.gmra.mxu1 %v929_v15  ;;  %1917 = vmatpush.msrb.mxu2 %v5066_v41  ;;  %v5064_v41 = vld [vmem:[%s8641_s4 + $0x288] sm:$0xff] }
 0x158   : > { %1167 = vmatmul.f32.gmra.mxu2 %v877_v59  ;;  %v481_v42 = vpop.f32.mrf.mxu0  ;;  %1703 = vmatpush.msrb.mxu1 %v5050_v31  ;;  %v1435_v15 = vld [vmem:[#allocation2 + $0x77] sm:$0xff]  ;;  %v5048_v31 = vld [vmem:[%s8641_s4 + $0x208] sm:$0xff] }
 0x159   : > { %v482_v47 = vadd.f32 %v5747_v39, %v481_v42  ;;  %1918 = vmatpush.msrb.mxu2 %v5065_v26 }
 0x15a   : > { %1704 = vmatpush.msrb.mxu1 %v5049_v58 }
 0x15b   : > { %v1120_v7 = vpop.f32.mrf.mxu2  ;;  %v545_v59 = vmax.f32 %v482_v47, 0.0  ;;  %1526 = vmatmul.f32.gmra.mxu0 %v1435_v15  ;;  %1919 = vmatpush.msrb.mxu2 %v5064_v41  ;;  %v5063_v47 = vld [vmem:[%s8641_s4 + $0x280] sm:$0xff] }
 0x15c   : > { %v6119_v32 = vadd.f32 %v1120_v7, %v995_v13  ;;  %v998_v42 = vpop.f32.mrf.mxu1  ;;  %1705 = vmatpush.msrb.mxu1 %v5048_v31  ;;  %v5047_v13 = vld [vmem:[%s8641_s4 + $0x200] sm:$0xff] }
 0x15d   : > { %v6128_v25 = vmul.f32 %v5985_v51, %v545_v59  ;;  %1920 = vmatpush.msrb.mxu2 %v5063_v47  ;;  %v1436_v31 = vld [vmem:[#allocation2 + $0x7f] sm:$0xff]  ;;  %v1438_v51 = vld [vmem:[#allocation2 + $0x8f] sm:$0xff] }
 0x15e   : > { %v930_v58 = vld [vmem:[#allocation2 + $0xc6] sm:$0xff]  ;;  %1706 = vmatpush.msrb.mxu1 %v5047_v13 }
 0x15f   : > { %v878_v26 = vld [vmem:[#allocation2 + $0xc5] sm:$0xff]  ;;  %841 = vst [vmem:[#allocation2 + $0xd0] sm:$0xff] %v6128_v25  ;;  %1045 = vmatmul.f32.gmra.mxu1 %v930_v58 }
 0x160   : > { %1170 = vmatmul.f32.gmra.mxu2 %v878_v26  ;;  %v484_v7 = vpop.f32.mrf.mxu0 }
 0x161   : > { %v485_v15 = vadd.f32 %v5747_v39, %v484_v7 }
 0x163   : > { %v1123_v59 = vpop.f32.mrf.mxu2  ;;  %v546_v41 = vmax.f32 %v485_v15, 0.0  ;;  %1529 = vmatmul.f32.gmra.mxu0 %v1436_v31  ;;  %v1437_v15 = vld [vmem:[#allocation2 + $0x87] sm:$0xff] }
 0x164   : > { %v6138_v6 = vadd.f32 %v1123_v59, %v998_v42  ;;  %v1001_v36 = vpop.f32.mrf.mxu1 }
 0x165   : > { %v6143_v22 = vmul.f32 %v6140_v53, %v546_v41 }
 0x166   : > { %v931_v13 = vld [vmem:[#allocation2 + $0xce] sm:$0xff] }
 0x167   : > { %v879_v47 = vld [vmem:[#allocation2 + $0xcd] sm:$0xff]  ;;  %842 = vst [vmem:[#allocation2 + $0xd8] sm:$0xff] %v6143_v22  ;;  %1048 = vmatmul.f32.gmra.mxu1 %v931_v13 }
 0x168   : > { %1173 = vmatmul.f32.gmra.mxu2 %v879_v47  ;;  %v487_v58 = vpop.f32.mrf.mxu0 }
 0x169   : > { %v488_v26 = vadd.f32 %v5747_v39, %v487_v58 }
 0x16b   : > { %v1126_v7 = vpop.f32.mrf.mxu2  ;;  %v547_v42 = vmax.f32 %v488_v26, 0.0  ;;  %1532 = vmatmul.f32.gmra.mxu0 %v1437_v15 }
 0x16c   : > { %v6147_v59 = vadd.f32 %v1126_v7, %v1001_v36  ;;  %v1004_v31 = vpop.f32.mrf.mxu1 }
 0x16d   : > { %v6150_v12 = vmul.f32 %v5848_v45, %v547_v42  ;;  %v1638_v45 = vld [vmem:[#allocation2 + $0x20] sm:$0xff] }
 0x16e   : > { %v932_v41 = vld [vmem:[#allocation2 + $0xd6] sm:$0xff] }
 0x16f   : > { %v880_v53 = vld [vmem:[#allocation2 + $0xd5] sm:$0xff]  ;;  %843 = vst [vmem:[#allocation2 + $0xe0] sm:$0xff] %v6150_v12  ;;  %1051 = vmatmul.f32.gmra.mxu1 %v932_v41 }
 0x170   : > { %1176 = vmatmul.f32.gmra.mxu2 %v880_v53  ;;  %v490_v13 = vpop.f32.mrf.mxu0 }
 0x171   : > { %v491_v47 = vadd.f32 %v5747_v39, %v490_v13  ;;  %v5322_v39 = vld [vmem:[%s8640_s3] ss:$0 sm:$0xff] }
 0x173   : > { %v1129_v58 = vpop.f32.mrf.mxu2  ;;  %v548_v54 = vmax.f32 %v491_v47, 0.0  ;;  %1535 = vmatmul.f32.gmra.mxu0 %v1438_v51 }
 0x174   : > { %v6154_v26 = vadd.f32 %v1129_v58, %v1004_v31  ;;  %v1007_v36 = vpop.f32.mrf.mxu1  ;;  %v1439_v31 = vld [vmem:[#allocation2 + $0x97] sm:$0xff] }
 0x175   : > { %v6157_v7 = vmul.f32 %v5854_v49, %v548_v54 }
 0x176   : > { %v933_v15 = vld [vmem:[#allocation2 + $0xde] sm:$0xff] }
 0x177   : > { %v881_v42 = vld [vmem:[#allocation2 + $0xdd] sm:$0xff]  ;;  %844 = vst [vmem:[#allocation2 + $0xe8] sm:$0xff] %v6157_v7  ;;  %1054 = vmatmul.f32.gmra.mxu1 %v933_v15 }
 0x178   : > { %1179 = vmatmul.f32.gmra.mxu2 %v881_v42  ;;  %v493_v53 = vpop.f32.mrf.mxu0  ;;  %v1852_v15 = vld [vmem:[#allocation2 + $0x21] sm:$0xff] }
 0x179   : > { %v494_v41 = vadd.f32 %v5322_v39, %v493_v53  ;;  %v1440_v39 = vld [vmem:[#allocation2 + $0x9f] sm:$0xff] }
 0x17a   : > { %v1448_v4 = vld [vmem:[#allocation2 + $0xdf] sm:$0xff] }
 0x17b   : > { %v1132_v13 = vpop.f32.mrf.mxu2  ;;  %v549_v47 = vmax.f32 %v494_v41, 0.0  ;;  %1538 = vmatmul.f32.gmra.mxu0 %v1439_v31  ;;  %v1639_v31 = vld [vmem:[#allocation2 + $0x28] sm:$0xff] }
 0x17c   : > { %v6163_v51 = vadd.f32 %v1132_v13, %v1007_v36  ;;  %v1010_v54 = vpop.f32.mrf.mxu1 }
 0x17d   : > { %v6166_v58 = vmul.f32 %v5876_v1, %v549_v47  ;;  %v1853_v47 = vld [vmem:[#allocation2 + $0x29] sm:$0xff] }
 0x17e   : > { %v934_v49 = vld [vmem:[#allocation2 + $0xe6] sm:$0xff] }
 0x17f   : > { %845 = vst [vmem:[#allocation2 + $0xf0] sm:$0xff] %v6166_v58  ;;  %1057 = vmatmul.f32.vlgmr.msrb.gmra.mxu3 %v934_v49  ;;  %1707 = vmatmul.f32.vlgmr.msrb.gmra.mxu1 %v1638_v45  ;;  %v1441_v45 = vld [vmem:[#allocation2 + $0xa7] sm:$0xff] }
 0x180   : > { %1921 = vmatmul.f32.vlgmr.msrb.gmra.mxu2 %v1852_v15  ;;  %v6169_v42 = vpop.f32.mrf.mxu0 }
 0x183   : > { %v1135_v53 = vpop.f32.mrf.mxu2  ;;  %1541 = vmatmul.f32.gmra.mxu0 %v1440_v39 }
 0x184   : > { %v6171_v41 = vadd.f32 %v1135_v53, %v1010_v54  ;;  %v1013_v36 = vpop.f32.mrf.mxu1  ;;  %v1854_v54 = vld [vmem:[#allocation2 + $0x31] sm:$0xff] }
 0x186   : > { %v935_v13 = vld [vmem:[#allocation2 + $0xee] sm:$0xff]  ;;  %v936_v29 = vld [vmem:[#allocation2 + $0xf6] sm:$0xff] }
 0x187   : > { %1060 = vmatmul.f32.gmra.mxu3 %v935_v13  ;;  %1710 = vmatmul.f32.gmra.mxu1 %v1639_v31  ;;  %v1442_v13 = vld [vmem:[#allocation2 + $0xaf] sm:$0xff] }
 0x188   : > { %1924 = vmatmul.f32.gmra.mxu2 %v1853_v47  ;;  %v6173_v1 = vpop.f32.mrf.mxu0 }
 0x18b   : > { %v1138_v49 = vpop.f32.mrf.mxu2  ;;  %1544 = vmatmul.f32.gmra.mxu0 %v1441_v45 }
 0x18c   : > { %v6175_v21 = vadd.f32 %v1138_v49, %v1013_v36  ;;  %v1016_v15 = vpop.f32.mrf.mxu1  ;;  %v1855_v36 = vld [vmem:[#allocation2 + $0x39] sm:$0xff] }
 0x18f   : > { %1063 = vmatmul.f32.gmra.mxu3 %v936_v29  ;;  %1713 = vmatmul.f32.gmra.mxu1 %v1640_v27  ;;  %v1443_v27 = vld [vmem:[#allocation2 + $0xb7] sm:$0xff] }
 0x190   : > { %1927 = vmatmul.f32.gmra.mxu2 %v1854_v54  ;;  %v6177_v53 = vpop.f32.mrf.mxu0 }
 0x191   : > { %8731 = vst [vmem:[#allocation40_spill] sm:$0xff] %v6177_v53  ;;  %v2494_v53 = vld [vmem:[#allocation2 + $0x33] sm:$0xff] }
 0x193   : > { %v1141_v39 = vpop.f32.mrf.mxu2  ;;  %1547 = vmatmul.f32.gmra.mxu0 %v1442_v13 }
 0x194   : > { %v6179_v31 = vadd.f32 %v1141_v39, %v1016_v15  ;;  %v1019_v47 = vpop.f32.mrf.mxu1  ;;  %v1856_v15 = vld [vmem:[#allocation2 + $0x41] sm:$0xff] }
 0x197   : > { %1066 = vmatmul.f32.gmra.mxu3 %v937_v8  ;;  %1716 = vmatmul.f32.gmra.mxu1 %v1641_v0  ;;  %v1444_v0 = vld [vmem:[#allocation2 + $0xbf] sm:$0xff] }
 0x198   : > { %1930 = vmatmul.f32.gmra.mxu2 %v1855_v36  ;;  %v6181_v49 = vpop.f32.mrf.mxu0 }
 0x199   : > { %8732 = vst [vmem:[#allocation41_spill] sm:$0xff] %v6181_v49 }
 0x19b   : > { %v1144_v29 = vpop.f32.mrf.mxu2  ;;  %1550 = vmatmul.f32.gmra.mxu0 %v1443_v27  ;;  %v1445_v27 = vld [vmem:[#allocation2 + $0xc7] sm:$0xff] }
 0x19c   : > { %v6183_v45 = vadd.f32 %v1144_v29, %v1019_v47  ;;  %v1022_v54 = vpop.f32.mrf.mxu1  ;;  %v1857_v47 = vld [vmem:[#allocation2 + $0x49] sm:$0xff] }
 0x19f   : > { %1069 = vmatmul.f32.gmra.mxu3 %v938_v62  ;;  %1719 = vmatmul.f32.gmra.mxu1 %v1642_v48  ;;  %v5030_v62 = vld [vmem:[%s8641_s4 + $0x178] sm:$0xff] }
 0x1a0   : > { %1933 = vmatmul.f32.gmra.mxu2 %v1856_v15  ;;  %v6185_v39 = vpop.f32.mrf.mxu0  ;;  %1263 = vmatpush.msrb.mxu3 %v5030_v62 }
 0x1a1   : > { %8733 = vst [vmem:[#allocation42_spill] sm:$0xff] %v6185_v39 }
 0x1a3   : > { %v1147_v8 = vpop.f32.mrf.mxu2  ;;  %1553 = vmatmul.f32.gmra.mxu0 %v1444_v0  ;;  %v1858_v0 = vld [vmem:[#allocation2 + $0x51] sm:$0xff] }
 0x1a4   : > { %v6187_v13 = vadd.f32 %v1147_v8, %v1022_v54  ;;  %v1025_v36 = vpop.f32.mrf.mxu1  ;;  %v1644_v8 = vld [vmem:[#allocation2 + $0x50] sm:$0xff] }
 0x1a7   : > { %1072 = vmatmul.f32.gmra.mxu3 %v939_v28  ;;  %1722 = vmatmul.f32.gmra.mxu1 %v1643_v10  ;;  %v5029_v28 = vld [vmem:[%s8641_s4 + $0x170] sm:$0xff] }
 0x1a8   : > { %1936 = vmatmul.f32.gmra.mxu2 %v1857_v47  ;;  %v6192_v48 = vpop.f32.mrf.mxu0  ;;  %1264 = vmatpush.msrb.mxu3 %v5029_v28  ;;  %v940_v10 = vld [vmem:[#allocation2 + $0x116] sm:$0xff]  ;;  %v5027_v28 = vld [vmem:[%s8641_s4 + $0x160] sm:$0xff] }
 0x1a9   : > { %8734 = vst [vmem:[#allocation43_spill] sm:$0xff] %v6192_v48 }
 0x1ab   : > { %v1150_v29 = vpop.f32.mrf.mxu2  ;;  %1556 = vmatmul.f32.gmra.mxu0 %v1445_v27 }
 0x1ac   : > { %v6194_v15 = vadd.f32 %v1150_v29, %v1025_v36  ;;  %v1028_v54 = vpop.f32.mrf.mxu1  ;;  %v5028_v36 = vld [vmem:[%s8641_s4 + $0x168] sm:$0xff] }
 0x1ad   : > { %1265 = vmatpush.msrb.mxu3 %v5028_v36  ;;  %v1446_v29 = vld [vmem:[#allocation2 + $0xcf] sm:$0xff] }
 0x1af   : > { %1075 = vmatmul.f32.gmra.mxu3 %v940_v10  ;;  %1725 = vmatmul.f32.gmra.mxu1 %v1644_v8  ;;  %v941_v10 = vld [vmem:[#allocation2 + $0x11e] sm:$0xff] }
 0x1b0   : > { %1939 = vmatmul.f32.gmra.mxu2 %v1858_v0  ;;  %v6199_v47 = vpop.f32.mrf.mxu0  ;;  %1266 = vmatpush.msrb.mxu3 %v5027_v28  ;;  %v1645_v8 = vld [vmem:[#allocation2 + $0x58] sm:$0xff]  ;;  %v5025_v28 = vld [vmem:[%s8641_s4 + $0x150] sm:$0xff] }
 0x1b1   : > { %8735 = vst [vmem:[#allocation44_spill] sm:$0xff] %v6199_v47  ;;  %v1859_v0 = vld [vmem:[#allocation2 + $0x59] sm:$0xff] }
 0x1b3   : > { %v1153_v62 = vpop.f32.mrf.mxu2  ;;  %1559 = vmatmul.f32.gmra.mxu0 %v1446_v29 }
 0x1b4   : > { %v6204_v27 = vadd.f32 %v1153_v62, %v1028_v54  ;;  %v1031_v57 = vpop.f32.mrf.mxu1  ;;  %v5026_v54 = vld [vmem:[%s8641_s4 + $0x158] sm:$0xff] }
 0x1b5   : > { %1267 = vmatpush.msrb.mxu3 %v5026_v54  ;;  %v1447_v62 = vld [vmem:[#allocation2 + $0xd7] sm:$0xff] }
 0x1b7   : > { %1078 = vmatmul.f32.gmra.mxu3 %v941_v10  ;;  %1728 = vmatmul.f32.gmra.mxu1 %v1645_v8  ;;  %v942_v10 = vld [vmem:[#allocation2 + $0x126] sm:$0xff] }
 0x1b8   : > { %1942 = vmatmul.f32.gmra.mxu2 %v1859_v0  ;;  %v6209_v38 = vpop.f32.mrf.mxu0  ;;  %1268 = vmatpush.msrb.mxu3 %v5025_v28  ;;  %v1646_v8 = vld [vmem:[#allocation2 + $0x60] sm:$0xff]  ;;  %v1647_v28 = vld [vmem:[#allocation2 + $0x68] sm:$0xff] }
 0x1b9   : > { %8736 = vst [vmem:[#allocation45_spill] sm:$0xff] %v6209_v38  ;;  %v1860_v0 = vld [vmem:[#allocation2 + $0x61] sm:$0xff]  ;;  %v1211_v38 = vld [vmem:[#allocation2 + $0x17] sm:$0xff] }
 0x1bb   : > { %v1156_v36 = vpop.f32.mrf.mxu2  ;;  %1562 = vmatmul.f32.gmra.mxu0 %v1447_v62  ;;  %v882_v62 = vld [vmem:[#allocation2 + $0xe5] sm:$0xff] }
 0x1bc   : > { %v6214_v29 = vadd.f32 %v1156_v36, %v1031_v57  ;;  %v1034_v24 = vpop.f32.mrf.mxu1  ;;  %v5024_v57 = vld [vmem:[%s8641_s4 + $0x148] sm:$0xff] }
 0x1bd   : > { %1269 = vmatpush.msrb.mxu3 %v5024_v57  ;;  %v5022_v57 = vld [vmem:[%s8641_s4 + $0x138] sm:$0xff] }
 0x1bf   : > { %1081 = vmatmul.f32.gmra.mxu3 %v942_v10  ;;  %1731 = vmatmul.f32.gmra.mxu1 %v1646_v8  ;;  %v1861_v10 = vld [vmem:[#allocation2 + $0x69] sm:$0xff]  ;;  %v5023_v8 = vld [vmem:[%s8641_s4 + $0x140] sm:$0xff] }
 0x1c0   : > { %1945 = vmatmul.f32.gmra.mxu2 %v1860_v0  ;;  %v6219_v14 = vpop.f32.mrf.mxu0  ;;  %1270 = vmatpush.msrb.mxu3 %v5023_v8 }
 0x1c1   : > { %8737 = vst [vmem:[#allocation46_spill] sm:$0xff] %v6219_v14  ;;  %v1862_v14 = vld [vmem:[#allocation2 + $0x71] sm:$0xff] }
 0x1c2   : > { %1271 = vmatpush.msrb.mxu3 %v5022_v57  ;;  %v5020_v57 = vld [vmem:[%s8641_s4 + $0x128] sm:$0xff] }
 0x1c3   : > { %v1159_v54 = vpop.f32.mrf.mxu2  ;;  %1565 = vmatmul.f32.gmra.mxu0 %v1448_v4 }
 0x1c4   : > { %v6221_v52 = vadd.f32 %v1159_v54, %v1034_v24  ;;  %v1037_v36 = vpop.f32.mrf.mxu1  ;;  %v1449_v24 = vld [vmem:[#allocation2 + $0xe7] sm:$0xff] }
 0x1c7   : > { %1182 = vmatmul.f32.vlgmr.msra.gmra.mxu3 %v882_v62  ;;  %1734 = vmatmul.f32.gmra.mxu1 %v1647_v28  ;;  %v883_v28 = vld [vmem:[#allocation2 + $0xed] sm:$0xff] }
 0x1c8   : > { %1948 = vmatmul.f32.gmra.mxu2 %v1861_v10  ;;  %v6229_v0 = vpop.f32.mrf.mxu0 }
 0x1c9   : > { %8738 = vst [vmem:[#allocation47_spill] sm:$0xff] %v6229_v0 }
 0x1cb   : > { %v1162_v4 = vpop.f32.mrf.mxu2  ;;  %1568 = vmatmul.f32.gmra.mxu0 %v1449_v24 }
 0x1cc   : > { %v6231_v54 = vadd.f32 %v1162_v4, %v1037_v36  ;;  %v1040_v62 = vpop.f32.mrf.mxu1  ;;  %v5021_v36 = vld [vmem:[%s8641_s4 + $0x130] sm:$0xff] }
 0x1cd   : > { %1272 = vmatpush.msrb.mxu3 %v5021_v36  ;;  %v1450_v4 = vld [vmem:[#allocation2 + $0xef] sm:$0xff] }
 0x1cf   : > { %1185 = vmatmul.f32.gmra.mxu3 %v883_v28  ;;  %1737 = vmatmul.f32.gmra.mxu1 %v5909_v44  ;;  %v884_v44 = vld [vmem:[#allocation2 + $0xf5] sm:$0xff] }
 0x1d0   : > { %1951 = vmatmul.f32.gmra.mxu2 %v1862_v14  ;;  %v6237_v10 = vpop.f32.mrf.mxu0  ;;  %1273 = vmatpush.msrb.mxu3 %v5020_v57  ;;  %v1863_v14 = vld [vmem:[#allocation2 + $0x79] sm:$0xff] }
 0x1d1   : > { %8739 = vst [vmem:[#allocation48_spill] sm:$0xff] %v6237_v10  ;;  %v5018_v57 = vld [vmem:[%s8641_s4 + $0x118] sm:$0xff] }
 0x1d3   : > { %v1165_v8 = vpop.f32.mrf.mxu2  ;;  %1571 = vmatmul.f32.gmra.mxu0 %v1450_v4 }
 0x1d4   : > { %v6242_v24 = vadd.f32 %v1165_v8, %v1040_v62  ;;  %v1043_v0 = vpop.f32.mrf.mxu1  ;;  %v5019_v62 = vld [vmem:[%s8641_s4 + $0x120] sm:$0xff]  ;;  %v1451_v8 = vld [vmem:[#allocation2 + $0xf7] sm:$0xff] }
 0x1d5   : > { %1274 = vmatpush.msrb.mxu3 %v5019_v62 }
 0x1d7   : > { %1188 = vmatmul.f32.gmra.mxu3 %v884_v44  ;;  %1740 = vmatmul.f32.gmra.mxu1 %v5920_v61  ;;  %v885_v61 = vld [vmem:[#allocation2 + $0xfd] sm:$0xff] }
 0x1d8   : > { %1954 = vmatmul.f32.gmra.mxu2 %v1863_v14  ;;  %v6248_v28 = vpop.f32.mrf.mxu0  ;;  %1275 = vmatpush.msrb.mxu3 %v5018_v57  ;;  %v1864_v44 = vld [vmem:[#allocation2 + $0x81] sm:$0xff]  ;;  %v5110_v57 = vld [vmem:[%s8641_s4 + $0x3f8] sm:$0xff] }
 0x1d9   : > { %8740 = vst [vmem:[#allocation49_spill] sm:$0xff] %v6248_v28  ;;  %v1452_v28 = vld [vmem:[#allocation2 + $0xff] sm:$0xff]  ;;  %2333 = vmatpush.msra.mxu0 %v5110_v57  ;;  %v1453_v57 = vld [vmem:[#allocation2 + $0x107] sm:$0xff] }
 0x1db   : > { %v1168_v36 = vpop.f32.mrf.mxu2  ;;  %1574 = vmatmul.f32.gmra.mxu0 %v1451_v8 }
 0x1dc   : > { %v6253_v4 = vadd.f32 %v1168_v36, %v1043_v0  ;;  %v1046_v10 = vpop.f32.mrf.mxu1  ;;  %v5017_v0 = vld [vmem:[%s8641_s4 + $0x110] sm:$0xff] }
 0x1dd   : > { %1276 = vmatpush.msrb.mxu3 %v5017_v0 }
 0x1df   : > { %1191 = vmatmul.f32.gmra.mxu3 %v885_v61  ;;  %1743 = vmatmul.f32.gmra.mxu1 %v5931_v16  ;;  %v5016_v16 = vld [vmem:[%s8641_s4 + $0x108] sm:$0xff]  ;;  %v5109_v61 = vld [vmem:[%s8641_s4 + $0x3f0] sm:$0xff] }
 0x1e0   : > { %1957 = vmatmul.f32.gmra.mxu2 %v1864_v44  ;;  %v6259_v14 = vpop.f32.mrf.mxu0  ;;  %1277 = vmatpush.msrb.mxu3 %v5016_v16  ;;  %v886_v44 = vld [vmem:[#allocation2 + $0x105] sm:$0xff] }
 0x1e1   : > { %8741 = vst [vmem:[#allocation50_spill] sm:$0xff] %v6259_v14  ;;  %2334 = vmatpush.msra.mxu0 %v5109_v61  ;;  %v5107_v16 = vld [vmem:[%s8641_s4 + $0x3e0] sm:$0xff]  ;;  %v5106_v61 = vld [vmem:[%s8641_s4 + $0x3d8] sm:$0xff] }
 0x1e3   : > { %v1171_v62 = vpop.f32.mrf.mxu2  ;;  %1577 = vmatmul.f32.gmra.mxu0 %v1452_v28 }
 0x1e4   : > { %v6264_v36 = vadd.f32 %v1171_v62, %v1046_v10  ;;  %v1049_v8 = vpop.f32.mrf.mxu1  ;;  %v1865_v10 = vld [vmem:[#allocation2 + $0x89] sm:$0xff] }
 0x1e5   : > { %v5108_v62 = vld [vmem:[%s8641_s4 + $0x3e8] sm:$0xff] }
 0x1e6   : > { %2335 = vmatpush.msra.mxu0 %v5108_v62  ;;  %v887_v62 = vld [vmem:[#allocation2 + $0x10d] sm:$0xff] }
 0x1e7   : > { %1194 = vmatmul.f32.gmra.mxu3 %v886_v44  ;;  %1746 = vmatmul.f32.gmra.mxu1 %v5944_v34  ;;  %v5015_v34 = vld [vmem:[%s8641_s4 + $0x100] sm:$0xff] }
 0x1e8   : > { %1960 = vmatmul.f32.gmra.mxu2 %v1865_v10  ;;  %v6276_v28 = vpop.f32.mrf.mxu0  ;;  %2336 = vmatpush.msra.mxu0 %v5107_v16  ;;  %v5105_v10 = vld [vmem:[%s8641_s4 + $0x3d0] sm:$0xff]  ;;  %v5104_v16 = vld [vmem:[%s8641_s4 + $0x3c8] sm:$0xff] }
 0x1e9   : > { %8742 = vst [vmem:[#allocation51_spill] sm:$0xff] %v6276_v28  ;;  %1278 = vmatpush.msrb.mxu3 %v5015_v34  ;;  %v1454_v28 = vld [vmem:[#allocation2 + $0x10f] sm:$0xff] }
 0x1ea   : > { %2337 = vmatpush.msra.mxu0 %v5106_v61 }
 0x1eb   : > { %v1174_v0 = vpop.f32.mrf.mxu2  ;;  %1580 = vmatmul.f32.gmra.mxu0 %v1453_v57  ;;  %v5094_v57 = vld [vmem:[%s8641_s4 + $0x378] sm:$0xff] }
 0x1ec   : > { %v6284_v14 = vadd.f32 %v1174_v0, %v1049_v8  ;;  %v1052_v44 = vpop.f32.mrf.mxu1  ;;  %v1866_v8 = vld [vmem:[#allocation2 + $0x91] sm:$0xff]  ;;  %2338 = vmatpush.msra.mxu0 %v5105_v10  ;;  %2119 = vmatpush.msra.mxu3 %v5094_v57 }
 0x1ed   : > { %v888_v57 = vld [vmem:[#allocation2 + $0x115] sm:$0xff] }
 0x1ee   : > { %2339 = vmatpush.msra.mxu0 %v5104_v16  ;;  %v1867_v16 = vld [vmem:[#allocation2 + $0x99] sm:$0xff] }
 0x1ef   : > { %1197 = vmatmul.f32.gmra.mxu3 %v887_v62  ;;  %1749 = vmatmul.f32.gmra.mxu1 %v5953_v56  ;;  %v5103_v56 = vld [vmem:[%s8641_s4 + $0x3c0] sm:$0xff]  ;;  %v5102_v62 = vld [vmem:[%s8641_s4 + $0x3b8] sm:$0xff] }
 0x1f0   : > { %1963 = vmatmul.f32.gmra.mxu2 %v1866_v8  ;;  %v6296_v0 = vpop.f32.mrf.mxu0  ;;  %2340 = vmatpush.msra.mxu0 %v5103_v56  ;;  %v5101_v8 = vld [vmem:[%s8641_s4 + $0x3b0] sm:$0xff] }
 0x1f1   : > { %8743 = vst [vmem:[#allocation52_spill] sm:$0xff] %v6296_v0  ;;  %v1455_v0 = vld [vmem:[#allocation2 + $0x117] sm:$0xff] }
 0x1f2   : > { %2341 = vmatpush.msra.mxu0 %v5102_v62 }
 0x1f3   : > { %v1177_v34 = vpop.f32.mrf.mxu2  ;;  %1583 = vmatmul.f32.gmra.mxu0 %v1454_v28  ;;  %v5100_v28 = vld [vmem:[%s8641_s4 + $0x3a8] sm:$0xff] }
 0x1f4   : > { %v6307_v61 = vadd.f32 %v1177_v34, %v1052_v44  ;;  %v1055_v10 = vpop.f32.mrf.mxu1  ;;  %2342 = vmatpush.msra.mxu0 %v5101_v8  ;;  %v5126_v44 = vld [vmem:[%s8641_s4 + $0x478] sm:$0xff] }
 0x1f5   : > { %2547 = vmatpush.msra.mxu1 %v5126_v44  ;;  %v889_v44 = vld [vmem:[#allocation2 + $0x11d] sm:$0xff] }
 0x1f6   : > { %2343 = vmatpush.msra.mxu0 %v5100_v28  ;;  %v1868_v28 = vld [vmem:[#allocation2 + $0xa1] sm:$0xff] }
 0x1f7   : > { %1200 = vmatmul.f32.gmra.mxu3 %v888_v57  ;;  %1752 = vmatmul.f32.gmra.mxu1 %v5969_v19  ;;  %v5099_v19 = vld [vmem:[%s8641_s4 + $0x3a0] sm:$0xff]  ;;  %v5098_v57 = vld [vmem:[%s8641_s4 + $0x398] sm:$0xff] }
 0x1f8   : > { %1966 = vmatmul.f32.gmra.mxu2 %v1867_v16  ;;  %v6322_v34 = vpop.f32.mrf.mxu0  ;;  %2344 = vmatpush.msra.mxu0 %v5099_v19  ;;  %v5097_v16 = vld [vmem:[%s8641_s4 + $0x390] sm:$0xff]  ;;  %v1456_v19 = vld [vmem:[#allocation2 + $0x11f] sm:$0xff] }
 0x1f9   : > { %8744 = vst [vmem:[#allocation53_spill] sm:$0xff] %v6322_v34  ;;  %v1457_v34 = vld [vmem:[#allocation2 + $0x127] sm:$0xff] }
 0x1fa   : > { %2345 = vmatpush.msra.mxu0 %v5098_v57 }
 0x1fb   : > { %v1180_v56 = vpop.f32.mrf.mxu2  ;;  %1586 = vmatmul.f32.gmra.mxu0 %v1455_v0  ;;  %v5096_v0 = vld [vmem:[%s8641_s4 + $0x388] sm:$0xff] }
 0x1fc   : > { %v6327_v62 = vadd.f32 %v1180_v56, %v1055_v10  ;;  %v6329_v8 = vpop.f32.mrf.mxu1  ;;  %2346 = vmatpush.msra.mxu0 %v5097_v16  ;;  %v5093_v10 = vld [vmem:[%s8641_s4 + $0x370] sm:$0xff] }
 0x1fd   : > { %2120 = vmatpush.msra.mxu3 %v5093_v10 }
 0x1fe   : > { %2347 = vmatpush.msra.mxu0 %v5096_v0  ;;  %v5125_v0 = vld [vmem:[%s8641_s4 + $0x470] sm:$0xff] }
 0x1ff   : > { %1203 = vmatmul.f32.gmra.mxu3 %v889_v44  ;;  %1755 = vmatmul.f32.gmra.mxu1 %v5983_v46  ;;  %v5095_v46 = vld [vmem:[%s8641_s4 + $0x380] sm:$0xff] }
 0x200   : > { %1969 = vmatmul.f32.gmra.mxu2 %v1868_v28  ;;  %v6349_v57 = vpop.f32.mrf.mxu0  ;;  %2348 = vmatpush.msra.mxu0 %v5095_v46  ;;  %v890_v44 = vld [vmem:[#allocation2 + $0x125] sm:$0xff] }
 0x201   : > { %8745 = vst [vmem:[#allocation54_spill] sm:$0xff] %v6349_v57  ;;  %v1869_v28 = vld [vmem:[#allocation2 + $0xa9] sm:$0xff]  ;;  %2548 = vmatpush.msra.mxu1 %v5125_v0 }
 0x202   : > { %v6344_v56 = vpop.f32.mrf.mxu3 }
 0x203   : > { %1589 = vmatmul.f32.gmra.mxu0 %v1456_v19  ;;  %v1210_v19 = vld [vmem:[#allocation2 + $0xf] sm:$0xff] }
 0x204   : > { %v6351_v16 = vpop.f32.mrf.mxu1 }
 0x205   : > { %8746 = vst [vmem:[#allocation55_spill] sm:$0xff] %v6351_v16  ;;  %v2495_v16 = vld [vmem:[#allocation2 + $0x3b] sm:$0xff] }
 0x207   : > { %1206 = vmatmul.f32.gmra.mxu3 %v890_v44  ;;  %1758 = vmatmul.f32.gmra.mxu1 %v6001_v23  ;;  %v1870_v23 = vld [vmem:[#allocation2 + $0xb1] sm:$0xff] }
 0x208   : > { %1972 = vmatmul.f32.gmra.mxu2 %v1869_v28  ;;  %v6361_v57 = vpop.f32.mrf.mxu0  ;;  %v1458_v44 = vld [vmem:[#allocation2 + $0x12f] sm:$0xff] }
 0x209   : > { %8748 = vst [vmem:[#allocation57_spill] sm:$0xff] %v6361_v57  ;;  %v5124_v57 = vld [vmem:[%s8641_s4 + $0x468] sm:$0xff] }
 0x20a   : > { %v6354_v10 = vpop.f32.mrf.mxu3  ;;  %2549 = vmatpush.msra.mxu1 %v5124_v57  ;;  %v1213_v57 = vld [vmem:[#allocation2 + $0x27] sm:$0xff] }
 0x20b   : > { %1592 = vmatmul.f32.gmra.mxu0 %v1457_v34  ;;  %v5092_v34 = vld [vmem:[%s8641_s4 + $0x368] sm:$0xff] }
 0x20c   : > { %v6359_v33 = vpop.f32.mrf.mxu1  ;;  %2121 = vmatpush.msra.mxu3 %v5092_v34 }
 0x20d   : > { %8747 = vst [vmem:[#allocation56_spill] sm:$0xff] %v6359_v33 }
 0x20f   : > { %1279 = vmatmul.f32.vlgmr.msrb.gmra.mxu3 %v1210_v19  ;;  %1761 = vmatmul.f32.gmra.mxu1 %v6014_v11  ;;  %v1871_v11 = vld [vmem:[#allocation2 + $0xb9] sm:$0xff] }
 0x210   : > { %1975 = vmatmul.f32.gmra.mxu2 %v1870_v23  ;;  %v6371_v0 = vpop.f32.mrf.mxu0  ;;  %v1459_v23 = vld [vmem:[#allocation2 + $0x137] sm:$0xff] }
 0x211   : > { %8750 = vst [vmem:[#allocation59_spill] sm:$0xff] %v6371_v0  ;;  %v5091_v0 = vld [vmem:[%s8641_s4 + $0x360] sm:$0xff] }
 0x212   : > { %v6364_v46 = vpop.f32.mrf.mxu3  ;;  %2122 = vmatpush.msra.mxu3 %v5091_v0  ;;  %v1874_v0 = vld [vmem:[#allocation2 + $0xd1] sm:$0xff] }
 0x213   : > { %1595 = vmatmul.f32.gmra.mxu0 %v1458_v44 }
 0x214   : > { %v6369_v28 = vpop.f32.mrf.mxu1 }
 0x215   : > { %8749 = vst [vmem:[#allocation58_spill] sm:$0xff] %v6369_v28 }
 0x217   : > { %1282 = vmatmul.f32.gmra.mxu3 %v1211_v38  ;;  %1764 = vmatmul.f32.gmra.mxu1 %v6033_v60  ;;  %v1872_v38 = vld [vmem:[#allocation2 + $0xc1] sm:$0xff] }
 0x218   : > { %1978 = vmatmul.f32.gmra.mxu2 %v1871_v11  ;;  %v6382_v60 = vpop.f32.mrf.mxu0  ;;  %v2280_v11 = vld [vmem:[#allocation2 + $0x32] sm:$0xff] }
 0x219   : > { %8752 = vst [vmem:[#allocation61_spill] sm:$0xff] %v6382_v60  ;;  %v2281_v60 = vld [vmem:[#allocation2 + $0x3a] sm:$0xff] }
 0x21a   : > { %v6374_v19 = vpop.f32.mrf.mxu3 }
 0x21b   : > { %1598 = vmatmul.f32.gmra.mxu0 %v1459_v23 }
 0x21c   : > { %v6376_v44 = vpop.f32.mrf.mxu1 }
 0x21d   : > { %8751 = vst [vmem:[#allocation60_spill] sm:$0xff] %v6376_v44 }
 0x21f   : > { %1285 = vmatmul.f32.gmra.mxu3 %v1212_v17  ;;  %1767 = vmatmul.f32.gmra.mxu1 %v6066_v30  ;;  %v1873_v17 = vld [vmem:[#allocation2 + $0xc9] sm:$0xff]  ;;  %v6392_v30 = vpop.f32.mrf.mxu2 }
 0x220   : > { %1981 = vmatmul.f32.gmra.mxu2 %v1872_v38  ;;  %v6396_v47 = vpop.f32.mrf.mxu0 }
 0x221   : > { %8754 = vst [vmem:[#allocation63_spill] sm:$0xff] %v6396_v47 }
 0x222   : > { %v6384_v34 = vpop.f32.mrf.mxu3 }
 0x223   : > { %2349 = vmatmul.f32.vlgmr.msra.gmra.mxu0 %v2280_v11 }
 0x224   : > { %v6386_v23 = vpop.f32.mrf.mxu1 }
 0x225   : > { %8753 = vst [vmem:[#allocation62_spill] sm:$0xff] %v6386_v23  ;;  %v1214_v23 = vld [vmem:[#allocation2 + $0x2f] sm:$0xff] }
 0x227   : > { %1288 = vmatmul.f32.gmra.mxu3 %v1213_v57  ;;  %1770 = vmatmul.f32.gmra.mxu1 %v6097_v37  ;;  %v5123_v37 = vld [vmem:[%s8641_s4 + $0x460] sm:$0xff]  ;;  %v6406_v9 = vpop.f32.mrf.mxu2 }
 0x228   : > { %1984 = vmatmul.f32.gmra.mxu2 %v1873_v17  ;;  %2550 = vmatpush.msra.mxu1 %v5123_v37  ;;  %v2282_v17 = vld [vmem:[#allocation2 + $0x42] sm:$0xff]  ;;  %8756 = vst [vmem:[#allocation65_spill] sm:$0xff] %v6406_v9  ;;  %v6410_v47 = vpop.f32.mrf.mxu0  ;;  %v2295_v9 = vld [vmem:[#allocation2 + $0xaa] sm:$0xff] }
 0x229   : > { %8758 = vst [vmem:[#allocation67_spill] sm:$0xff] %v6410_v47  ;;  %v1216_v47 = vld [vmem:[#allocation2 + $0x3f] sm:$0xff] }
 0x22a   : > { %v6394_v38 = vpop.f32.mrf.mxu3 }
 0x22b   : > { %2352 = vmatmul.f32.gmra.mxu0 %v2281_v60 }
 0x22c   : > { %v6398_v11 = vpop.f32.mrf.mxu1 }
 0x22d   : > { %8755 = vst [vmem:[#allocation64_spill] sm:$0xff] %v6398_v11 }
 0x22f   : > { %1291 = vmatmul.f32.gmra.mxu3 %v1214_v23  ;;  %1773 = vmatmul.f32.gmra.mxu1 %v6128_v25  ;;  %v1215_v23 = vld [vmem:[#allocation2 + $0x37] sm:$0xff] }
 0x230   : > { %1987 = vmatmul.f32.gmra.mxu2 %v1874_v0  ;;  %v1875_v25 = vld [vmem:[#allocation2 + $0xd9] sm:$0xff]  ;;  %v6422_v48 = vpop.f32.mrf.mxu0 }
 0x231   : > { %v5090_v0 = vld [vmem:[%s8641_s4 + $0x358] sm:$0xff]  ;;  %8761 = vst [vmem:[#allocation70_spill] sm:$0xff] %v6422_v48 }
 0x232   : > { %v6404_v57 = vpop.f32.mrf.mxu3  ;;  %2123 = vmatpush.msra.mxu3 %v5090_v0  ;;  %v2284_v0 = vld [vmem:[#allocation2 + $0x52] sm:$0xff] }
 0x233   : > { %2355 = vmatmul.f32.gmra.mxu0 %v2282_v17  ;;  %v2283_v17 = vld [vmem:[#allocation2 + $0x4a] sm:$0xff] }
 0x234   : > { %v6408_v60 = vpop.f32.mrf.mxu1 }
 0x235   : > { %8757 = vst [vmem:[#allocation66_spill] sm:$0xff] %v6408_v60  ;;  %v6420_v60 = vpop.f32.mrf.mxu2 }
 0x236   : > { %8760 = vst [vmem:[#allocation69_spill] sm:$0xff] %v6420_v60  ;;  %v2291_v60 = vld [vmem:[#allocation2 + $0x8a] sm:$0xff] }
 0x237   : > { %1294 = vmatmul.f32.gmra.mxu3 %v1215_v23  ;;  %1776 = vmatmul.f32.gmra.mxu1 %v6143_v22  ;;  %v1876_v22 = vld [vmem:[#allocation2 + $0xe1] sm:$0xff]  ;;  %v5122_v23 = vld [vmem:[%s8641_s4 + $0x458] sm:$0xff] }
 0x238   : > { %1990 = vmatmul.f32.gmra.mxu2 %v1875_v25  ;;  %2551 = vmatpush.msra.mxu1 %v5122_v23 }
 0x23a   : > { %v6416_v37 = vpop.f32.mrf.mxu3 }
 0x23b   : > { %2358 = vmatmul.f32.gmra.mxu0 %v2283_v17 }
 0x23c   : > { %v6418_v11 = vpop.f32.mrf.mxu1 }
 0x23d   : > { %8759 = vst [vmem:[#allocation68_spill] sm:$0xff] %v6418_v11  ;;  %v1217_v11 = vld [vmem:[#allocation2 + $0x47] sm:$0xff]  ;;  %v6433_v48 = vpop.f32.mrf.mxu2 }
 0x23e   : > { %8763 = vst [vmem:[#allocation72_spill] sm:$0xff] %v6433_v48 }
 0x23f   : > { %1297 = vmatmul.f32.gmra.mxu3 %v1216_v47  ;;  %1779 = vmatmul.f32.gmra.mxu1 %v6150_v12  ;;  %v1877_v47 = vld [vmem:[#allocation2 + $0xe9] sm:$0xff] }
 0x240   : > { %1993 = vmatmul.f32.gmra.mxu2 %v1876_v22  ;;  %v5089_v12 = vld [vmem:[%s8641_s4 + $0x350] sm:$0xff]  ;;  %v6438_v22 = vpop.f32.mrf.mxu0 }
 0x241   : > { %8764 = vst [vmem:[#allocation73_spill] sm:$0xff] %v6438_v22  ;;  %2124 = vmatpush.msra.mxu3 %v5089_v12  ;;  %v5121_v12 = vld [vmem:[%s8641_s4 + $0x450] sm:$0xff]  ;;  %v1665_v22 = vld [vmem:[#allocation2 + $0xf8] sm:$0xff] }
 0x242   : > { %v6428_v25 = vpop.f32.mrf.mxu3  ;;  %2552 = vmatpush.msra.mxu1 %v5121_v12 }
 0x243   : > { %2361 = vmatmul.f32.gmra.mxu0 %v2284_v0  ;;  %v2285_v0 = vld [vmem:[#allocation2 + $0x5a] sm:$0xff] }
 0x244   : > { %v6430_v17 = vpop.f32.mrf.mxu1 }
 0x245   : > { %8762 = vst [vmem:[#allocation71_spill] sm:$0xff] %v6430_v17 }
 0x247   : > { %1300 = vmatmul.f32.gmra.mxu3 %v1217_v11  ;;  %1782 = vmatmul.f32.gmra.mxu1 %v6157_v7  ;;  %v1218_v11 = vld [vmem:[#allocation2 + $0x4f] sm:$0xff] }
 0x248   : > { %1996 = vmatmul.f32.gmra.mxu2 %v1877_v47  ;;  %v1878_v7 = vld [vmem:[#allocation2 + $0xf1] sm:$0xff]  ;;  %v6445_v47 = vpop.f32.mrf.mxu2  ;;  %v6449_v48 = vpop.f32.mrf.mxu0 }
 0x249   : > { %8766 = vst [vmem:[#allocation75_spill] sm:$0xff] %v6445_v47 }
 0x24a   : > { %v6440_v23 = vpop.f32.mrf.mxu3  ;;  %8767 = vst [vmem:[#allocation76_spill] sm:$0xff] %v6449_v48 }
 0x24b   : > { %2364 = vmatmul.f32.gmra.mxu0 %v2285_v0 }
 0x24c   : > { %v6442_v17 = vpop.f32.mrf.mxu1 }
 0x24d   : > { %8765 = vst [vmem:[#allocation74_spill] sm:$0xff] %v6442_v17  ;;  %v2287_v17 = vld [vmem:[#allocation2 + $0x6a] sm:$0xff] }
 0x24f   : > { %1303 = vmatmul.f32.gmra.mxu3 %v1218_v11  ;;  %1785 = vmatmul.f32.gmra.mxu1 %v6166_v58  ;;  %v1219_v11 = vld [vmem:[#allocation2 + $0x57] sm:$0xff] }
 0x250   : > { %1999 = vmatmul.f32.gmra.mxu2 %v1878_v7  ;;  %v1879_v58 = vld [vmem:[#allocation2 + $0xf9] sm:$0xff]  ;;  %v6461_v48 = vpop.f32.mrf.mxu2  ;;  %v6465_v12 = vpop.f32.mrf.mxu0 }
 0x251   : > { %8769 = vst [vmem:[#allocation78_spill] sm:$0xff] %v6461_v48  ;;  %v5120_v48 = vld [vmem:[%s8641_s4 + $0x448] sm:$0xff] }
 0x252   : > { %v6447_v44 = vpop.f32.mrf.mxu3  ;;  %8771 = vst [vmem:[#allocation80_spill] sm:$0xff] %v6465_v12  ;;  %2553 = vmatpush.msra.mxu1 %v5120_v48  ;;  %v1221_v12 = vld [vmem:[#allocation2 + $0x67] sm:$0xff] }
 0x253   : > { %2367 = vmatmul.f32.gmra.mxu0 %v2286_v63  ;;  %v5088_v63 = vld [vmem:[%s8641_s4 + $0x348] sm:$0xff]  ;;  %v5087_v48 = vld [vmem:[%s8641_s4 + $0x340] sm:$0xff] }
 0x254   : > { %v6454_v0 = vpop.f32.mrf.mxu1  ;;  %2125 = vmatpush.msra.mxu3 %v5088_v63 }
 0x255   : > { %8768 = vst [vmem:[#allocation77_spill] sm:$0xff] %v6454_v0  ;;  %v1220_v0 = vld [vmem:[#allocation2 + $0x5f] sm:$0xff] }
 0x256   : > { %2126 = vmatpush.msra.mxu3 %v5087_v48 }
 0x257   : > { %1306 = vmatmul.f32.gmra.mxu3 %v1219_v11  ;;  %1788 = vmatmul.f32.gmra.mxu1 %v1665_v22  ;;  %v1666_v11 = vld [vmem:[#allocation2 + $0x100] sm:$0xff] }
 0x258   : > { %2002 = vmatmul.f32.gmra.mxu2 %v1879_v58  ;;  %v1880_v22 = vld [vmem:[#allocation2 + $0x101] sm:$0xff]  ;;  %v6474_v63 = vpop.f32.mrf.mxu2  ;;  %v6476_v28 = vpop.f32.mrf.mxu0 }
 0x259   : > { %8773 = vst [vmem:[#allocation82_spill] sm:$0xff] %v6474_v63 }
 0x25a   : > { %v6456_v7 = vpop.f32.mrf.mxu3  ;;  %8774 = vst [vmem:[#allocation83_spill] sm:$0xff] %v6476_v28 }
 0x25b   : > { %2370 = vmatmul.f32.gmra.mxu0 %v2287_v17  ;;  %v2288_v17 = vld [vmem:[#allocation2 + $0x72] sm:$0xff] }
 0x25c   : > { %v6463_v47 = vpop.f32.mrf.mxu1 }
 0x25d   : > { %8770 = vst [vmem:[#allocation79_spill] sm:$0xff] %v6463_v47  ;;  %v1667_v47 = vld [vmem:[#allocation2 + $0x108] sm:$0xff] }
 0x25f   : > { %1309 = vmatmul.f32.gmra.mxu3 %v1220_v0  ;;  %1791 = vmatmul.f32.gmra.mxu1 %v1666_v11  ;;  %v1881_v0 = vld [vmem:[#allocation2 + $0x109] sm:$0xff] }
 0x260   : > { %2005 = vmatmul.f32.gmra.mxu2 %v1880_v22  ;;  %v2289_v22 = vld [vmem:[#allocation2 + $0x7a] sm:$0xff]  ;;  %v6488_v28 = vpop.f32.mrf.mxu2 }
 0x261   : > { %8776 = vst [vmem:[#allocation85_spill] sm:$0xff] %v6488_v28 }
 0x262   : > { %v6467_v58 = vpop.f32.mrf.mxu3 }
 0x263   : > { %2373 = vmatmul.f32.gmra.mxu0 %v2288_v17 }
 0x264   : > { %v6469_v39 = vpop.f32.mrf.mxu1 }
 0x265   : > { %8772 = vst [vmem:[#allocation81_spill] sm:$0xff] %v6469_v39  ;;  %v5119_v39 = vld [vmem:[%s8641_s4 + $0x440] sm:$0xff] }
 0x266   : > { %2554 = vmatpush.msra.mxu1 %v5119_v39  ;;  %v5117_v39 = vld [vmem:[%s8641_s4 + $0x430] sm:$0xff] }
 0x267   : > { %1312 = vmatmul.f32.gmra.mxu3 %v1221_v12  ;;  %1794 = vmatmul.f32.gmra.mxu1 %v1667_v47  ;;  %v1222_v12 = vld [vmem:[#allocation2 + $0x6f] sm:$0xff] }
 0x268   : > { %2008 = vmatmul.f32.gmra.mxu2 %v1881_v0  ;;  %v1668_v47 = vld [vmem:[#allocation2 + $0x110] sm:$0xff] }
 0x269   : > { %v1882_v0 = vld [vmem:[#allocation2 + $0x111] sm:$0xff] }
 0x26a   : > { %v6478_v11 = vpop.f32.mrf.mxu3 }
 0x26b   : > { %2376 = vmatmul.f32.gmra.mxu0 %v2289_v22  ;;  %v5118_v22 = vld [vmem:[%s8641_s4 + $0x438] sm:$0xff] }
 0x26c   : > { %v6480_v17 = vpop.f32.mrf.mxu1  ;;  %2555 = vmatpush.msra.mxu1 %v5118_v22  ;;  %v1669_v22 = vld [vmem:[#allocation2 + $0x118] sm:$0xff] }
 0x26d   : > { %8775 = vst [vmem:[#allocation84_spill] sm:$0xff] %v6480_v17  ;;  %v6493_v17 = vpop.f32.mrf.mxu0 }
 0x26e   : > { %8777 = vst [vmem:[#allocation86_spill] sm:$0xff] %v6493_v17  ;;  %2556 = vmatpush.msra.mxu1 %v5117_v39  ;;  %v5142_v39 = vld [vmem:[%s8643_s6 + $0xf8] sm:$0xff] }
 0x26f   : > { %1315 = vmatmul.f32.gmra.mxu3 %v1222_v12  ;;  %1797 = vmatmul.f32.gmra.mxu1 %v1668_v47  ;;  %v5116_v12 = vld [vmem:[%s8641_s4 + $0x428] sm:$0xff]  ;;  %v5115_v47 = vld [vmem:[%s8641_s4 + $0x420] sm:$0xff]  ;;  %v5114_v17 = vld [vmem:[%s8641_s4 + $0x418] sm:$0xff] }
 0x270   : > { %2011 = vmatmul.f32.gmra.mxu2 %v1882_v0  ;;  %v1223_v0 = vld [vmem:[#allocation2 + $0x77] sm:$0xff]  ;;  %2557 = vmatpush.msra.mxu1 %v5116_v12 }
 0x271   : > { %3005 = vmatpush.msra.mxu2 %v5142_v39  ;;  %v1224_v39 = vld [vmem:[#allocation2 + $0x7f] sm:$0xff] }
 0x272   : > { %v6495_v63 = vpop.f32.mrf.mxu3  ;;  %2558 = vmatpush.msra.mxu1 %v5115_v47  ;;  %v5113_v47 = vld [vmem:[%s8641_s4 + $0x410] sm:$0xff] }
 0x273   : > { %2379 = vmatmul.f32.gmra.mxu0 %v2290_v55  ;;  %v1883_v55 = vld [vmem:[#allocation2 + $0x119] sm:$0xff] }
 0x274   : > { %v6500_v48 = vpop.f32.mrf.mxu1  ;;  %2559 = vmatpush.msra.mxu1 %v5114_v17  ;;  %v1670_v17 = vld [vmem:[#allocation2 + $0x120] sm:$0xff] }
 0x275   : > { %8778 = vst [vmem:[#allocation87_spill] sm:$0xff] %v6500_v48  ;;  %v6514_v48 = vpop.f32.mrf.mxu2  ;;  %v6518_v12 = vpop.f32.mrf.mxu0 }
 0x276   : > { %8779 = vst [vmem:[#allocation88_spill] sm:$0xff] %v6514_v48  ;;  %2560 = vmatpush.msra.mxu1 %v5113_v47 }
 0x277   : > { %1318 = vmatmul.f32.gmra.mxu3 %v1223_v0  ;;  %1800 = vmatmul.f32.gmra.mxu1 %v1669_v22  ;;  %8780 = vst [vmem:[#allocation89_spill] sm:$0xff] %v6518_v12  ;;  %v5112_v22 = vld [vmem:[%s8641_s4 + $0x408] sm:$0xff]  ;;  %v5086_v12 = vld [vmem:[%s8641_s4 + $0x338] sm:$0xff] }
 0x278   : > { %2014 = vmatmul.f32.gmra.mxu2 %v1883_v55  ;;  %v5111_v55 = vld [vmem:[%s8641_s4 + $0x400] sm:$0xff]  ;;  %2561 = vmatpush.msra.mxu1 %v5112_v22 }
 0x279   : > { %2127 = vmatpush.msra.mxu3 %v5086_v12  ;;  %v1225_v22 = vld [vmem:[#allocation2 + $0x87] sm:$0xff]  ;;  %v5141_v12 = vld [vmem:[%s8643_s6 + $0xf0] sm:$0xff] }
 0x27a   : > { %v6516_v28 = vpop.f32.mrf.mxu3  ;;  %2562 = vmatpush.msra.mxu1 %v5111_v55  ;;  %3006 = vmatpush.msra.mxu2 %v5141_v12  ;;  %v2294_v12 = vld [vmem:[#allocation2 + $0xa2] sm:$0xff] }
 0x27b   : > { %2382 = vmatmul.f32.gmra.mxu0 %v2291_v60  ;;  %v1884_v60 = vld [vmem:[#allocation2 + $0x121] sm:$0xff] }
 0x27c   : > { %v6523_v0 = vpop.f32.mrf.mxu1 }
 0x27d   : > { %8781 = vst [vmem:[#allocation90_spill] sm:$0xff] %v6523_v0  ;;  %v2292_v0 = vld [vmem:[#allocation2 + $0x92] sm:$0xff]  ;;  %v6536_v48 = vpop.f32.mrf.mxu2  ;;  %v6540_v33 = vpop.f32.mrf.mxu0 }
 0x27e   : > { %8782 = vst [vmem:[#allocation91_spill] sm:$0xff] %v6536_v48  ;;  %v1672_v48 = vld [vmem:[#allocation2 + $0x130] sm:$0xff] }
 0x27f   : > { %1321 = vmatmul.f32.gmra.mxu3 %v1224_v39  ;;  %1803 = vmatmul.f32.gmra.mxu1 %v1670_v17  ;;  %8784 = vst [vmem:[#allocation93_spill] sm:$0xff] %v6540_v33  ;;  %v1671_v39 = vld [vmem:[#allocation2 + $0x128] sm:$0xff] }
 0x280   : > { %2017 = vmatmul.f32.gmra.mxu2 %v1884_v60  ;;  %v1885_v17 = vld [vmem:[#allocation2 + $0x129] sm:$0xff] }
 0x281   : > { %v1226_v33 = vld [vmem:[#allocation2 + $0x8f] sm:$0xff] }
 0x282   : > { %v6534_v47 = vpop.f32.mrf.mxu3 }
 0x283   : > { %2385 = vmatmul.f32.gmra.mxu0 %v2292_v0  ;;  %v2293_v0 = vld [vmem:[#allocation2 + $0x9a] sm:$0xff] }
 0x284   : > { %v6538_v49 = vpop.f32.mrf.mxu1 }
 0x285   : > { %8783 = vst [vmem:[#allocation92_spill] sm:$0xff] %v6538_v49  ;;  %v6549_v49 = vpop.f32.mrf.mxu2  ;;  %v6551_v43 = vpop.f32.mrf.mxu0 }
 0x286   : > { %8786 = vst [vmem:[#allocation95_spill] sm:$0xff] %v6549_v49  ;;  %v1673_v49 = vld [vmem:[#allocation2 + $0x138] sm:$0xff] }
 0x287   : > { %1324 = vmatmul.f32.gmra.mxu3 %v1225_v22  ;;  %1806 = vmatmul.f32.gmra.mxu1 %v1671_v39  ;;  %8787 = vst [vmem:[#allocation96_spill] sm:$0xff] %v6551_v43  ;;  %v1886_v22 = vld [vmem:[#allocation2 + $0x131] sm:$0xff]  ;;  %v1887_v43 = vld [vmem:[#allocation2 + $0x139] sm:$0xff] }
 0x288   : > { %2020 = vmatmul.f32.gmra.mxu2 %v1885_v17  ;;  %v5085_v39 = vld [vmem:[%s8641_s4 + $0x330] sm:$0xff] }
 0x289   : > { %2128 = vmatpush.msra.mxu3 %v5085_v39 }
 0x28a   : > { %v6545_v55 = vpop.f32.mrf.mxu3 }
 0x28b   : > { %2388 = vmatmul.f32.gmra.mxu0 %v2293_v0 }
 0x28c   : > { %v6547_v60 = vpop.f32.mrf.mxu1 }
 0x28d   : > { %8785 = vst [vmem:[#allocation94_spill] sm:$0xff] %v6547_v60  ;;  %v1227_v60 = vld [vmem:[#allocation2 + $0x97] sm:$0xff] }
 0x28f   : > { %1327 = vmatmul.f32.gmra.mxu3 %v1226_v33  ;;  %1809 = vmatmul.f32.gmra.mxu1 %v1672_v48  ;;  %v6560_v33 = vpop.f32.mrf.mxu2  ;;  %v6562_v48 = vpop.f32.mrf.mxu0 }
 0x290   : > { %2023 = vmatmul.f32.gmra.mxu2 %v1886_v22  ;;  %8789 = vst [vmem:[#allocation98_spill] sm:$0xff] %v6560_v33  ;;  %v1229_v33 = vld [vmem:[#allocation2 + $0xa7] sm:$0xff] }
 0x291   : > { %8790 = vst [vmem:[#allocation99_spill] sm:$0xff] %v6562_v48 }
 0x292   : > { %v6556_v17 = vpop.f32.mrf.mxu3 }
 0x293   : > { %2391 = vmatmul.f32.gmra.mxu0 %v2294_v12  ;;  %v5140_v12 = vld [vmem:[%s8643_s6 + $0xe8] sm:$0xff] }
 0x294   : > { %v6558_v0 = vpop.f32.mrf.mxu1  ;;  %3007 = vmatpush.msra.mxu2 %v5140_v12 }
 0x295   : > { %8788 = vst [vmem:[#allocation97_spill] sm:$0xff] %v6558_v0  ;;  %v1228_v0 = vld [vmem:[#allocation2 + $0x9f] sm:$0xff] }
 0x297   : > { %1330 = vmatmul.f32.gmra.mxu3 %v1227_v60  ;;  %1812 = vmatmul.f32.gmra.mxu1 %v1673_v49  ;;  %v2296_v60 = vld [vmem:[#allocation2 + $0xb2] sm:$0xff] }
 0x298   : > { %2026 = vmatmul.f32.gmra.mxu2 %v1887_v43  ;;  %v6571_v43 = vpop.f32.mrf.mxu0 }
 0x299   : > { %8792 = vst [vmem:[#allocation101_spill] sm:$0xff] %v6571_v43  ;;  %v1230_v43 = vld [vmem:[#allocation2 + $0xaf] sm:$0xff] }
 0x29a   : > { %v6564_v22 = vpop.f32.mrf.mxu3 }
 0x29b   : > { %2394 = vmatmul.f32.gmra.mxu0 %v2295_v9 }
 0x29c   : > { %v6566_v39 = vpop.f32.mrf.mxu1 }
 0x29d   : > { %8791 = vst [vmem:[#allocation100_spill] sm:$0xff] %v6566_v39  ;;  %v5084_v39 = vld [vmem:[%s8641_s4 + $0x328] sm:$0xff] }
 0x29e   : > { %2129 = vmatpush.msra.mxu3 %v5084_v39 }
 0x29f   : > { %1333 = vmatmul.f32.gmra.mxu3 %v1228_v0  ;;  %2563 = vmatmul.f32.vlgmr.msra.gmra.mxu1 %v2494_v53  ;;  %v2297_v0 = vld [vmem:[#allocation2 + $0xba] sm:$0xff] }
 0x2a2   : > { %v1286_v49 = vpop.f32.mrf.mxu3 }
 0x2a3   : > { %v6574_v48 = vadd.f32 %v1286_v49, %v6011_v3  ;;  %2397 = vmatmul.f32.gmra.mxu0 %v2296_v60  ;;  %v6586_v49 = vpop.f32.mrf.mxu0  ;;  %v5139_v60 = vld [vmem:[%s8643_s6 + $0xe0] sm:$0xff] }
 0x2a4   : > { %v6576_v9 = vpop.f32.mrf.mxu1  ;;  %8795 = vst [vmem:[#allocation104_spill] sm:$0xff] %v6586_v49  ;;  %3008 = vmatpush.msra.mxu2 %v5139_v60  ;;  %v2497_v49 = vld [vmem:[#allocation2 + $0x4b] sm:$0xff] }
 0x2a5   : > { %8793 = vst [vmem:[#allocation102_spill] sm:$0xff] %v6576_v9  ;;  %v2496_v9 = vld [vmem:[#allocation2 + $0x43] sm:$0xff] }
 0x2a7   : > { %1336 = vmatmul.f32.gmra.mxu3 %v1229_v33  ;;  %2566 = vmatmul.f32.gmra.mxu1 %v2495_v16  ;;  %v2298_v33 = vld [vmem:[#allocation2 + $0xc2] sm:$0xff] }
 0x2aa   : > { %v1289_v53 = vpop.f32.mrf.mxu3 }
 0x2ab   : > { %v6582_v12 = vadd.f32 %v1289_v53, %v6027_v50  ;;  %2400 = vmatmul.f32.gmra.mxu0 %v2297_v0  ;;  %v5083_v53 = vld [vmem:[%s8641_s4 + $0x320] sm:$0xff]  ;;  %v1231_v0 = vld [vmem:[#allocation2 + $0xb7] sm:$0xff] }
 0x2ac   : > { %v6584_v3 = vpop.f32.mrf.mxu1  ;;  %2130 = vmatpush.msra.mxu3 %v5083_v53  ;;  %v5138_v53 = vld [vmem:[%s8643_s6 + $0xd8] sm:$0xff] }
 0x2ad   : > { %8794 = vst [vmem:[#allocation103_spill] sm:$0xff] %v6584_v3  ;;  %v6599_v3 = vpop.f32.mrf.mxu0  ;;  %3009 = vmatpush.msra.mxu2 %v5138_v53  ;;  %v2301_v53 = vld [vmem:[#allocation2 + $0xda] sm:$0xff] }
 0x2ae   : > { %8797 = vst [vmem:[#allocation106_spill] sm:$0xff] %v6599_v3 }
 0x2af   : > { %1339 = vmatmul.f32.gmra.mxu3 %v1230_v43  ;;  %2569 = vmatmul.f32.gmra.mxu1 %v2496_v9  ;;  %v2299_v9 = vld [vmem:[#allocation2 + $0xca] sm:$0xff] }
 0x2b2   : > { %v1292_v16 = vpop.f32.mrf.mxu3 }
 0x2b3   : > { %v6592_v39 = vadd.f32 %v1292_v16, %v6055_v18  ;;  %2403 = vmatmul.f32.gmra.mxu0 %v2298_v33  ;;  %v1232_v16 = vld [vmem:[#allocation2 + $0xbf] sm:$0xff]  ;;  %v2498_v33 = vld [vmem:[#allocation2 + $0x53] sm:$0xff] }
 0x2b4   : > { %v6594_v50 = vpop.f32.mrf.mxu1 }
 0x2b5   : > { %8796 = vst [vmem:[#allocation105_spill] sm:$0xff] %v6594_v50  ;;  %v6609_v3 = vpop.f32.mrf.mxu0 }
 0x2b6   : > { %8799 = vst [vmem:[#allocation108_spill] sm:$0xff] %v6609_v3 }
 0x2b7   : > { %1342 = vmatmul.f32.gmra.mxu3 %v1231_v0  ;;  %2572 = vmatmul.f32.gmra.mxu1 %v2497_v49  ;;  %v2300_v0 = vld [vmem:[#allocation2 + $0xd2] sm:$0xff] }
 0x2ba   : > { %v1295_v43 = vpop.f32.mrf.mxu3 }
 0x2bb   : > { %v6602_v60 = vadd.f32 %v1295_v43, %v6088_v35  ;;  %2406 = vmatmul.f32.gmra.mxu0 %v2299_v9  ;;  %v1233_v43 = vld [vmem:[#allocation2 + $0xc7] sm:$0xff]  ;;  %v2499_v9 = vld [vmem:[#allocation2 + $0x5b] sm:$0xff] }
 0x2bc   : > { %v6604_v18 = vpop.f32.mrf.mxu1 }
 0x2bd   : > { %8798 = vst [vmem:[#allocation107_spill] sm:$0xff] %v6604_v18  ;;  %v6619_v3 = vpop.f32.mrf.mxu0 }
 0x2bf   : > { %1345 = vmatmul.f32.gmra.mxu3 %v1232_v16  ;;  %2575 = vmatmul.f32.gmra.mxu1 %v2498_v33  ;;  %v5082_v16 = vld [vmem:[%s8641_s4 + $0x318] sm:$0xff] }
 0x2c0   : > { %2131 = vmatpush.msra.mxu3 %v5082_v16  ;;  %v2302_v16 = vld [vmem:[#allocation2 + $0xe2] sm:$0xff] }
 0x2c2   : > { %v1298_v49 = vpop.f32.mrf.mxu3 }
 0x2c3   : > { %v6612_v50 = vadd.f32 %v1298_v49, %v6119_v32  ;;  %2409 = vmatmul.f32.gmra.mxu0 %v2300_v0  ;;  %v1234_v49 = vld [vmem:[#allocation2 + $0xcf] sm:$0xff]  ;;  %v2500_v0 = vld [vmem:[#allocation2 + $0x63] sm:$0xff] }
 0x2c4   : > { %v6614_v35 = vpop.f32.mrf.mxu1 }
 0x2c5   : > { %8800 = vst [vmem:[#allocation109_spill] sm:$0xff] %v6614_v35 }
 0x2c7   : > { %1348 = vmatmul.f32.gmra.mxu3 %v1233_v43  ;;  %2578 = vmatmul.f32.gmra.mxu1 %v2499_v9  ;;  %v5137_v43 = vld [vmem:[%s8643_s6 + $0xd0] sm:$0xff] }
 0x2c8   : > { %3010 = vmatpush.msra.mxu2 %v5137_v43  ;;  %v2303_v43 = vld [vmem:[#allocation2 + $0xea] sm:$0xff] }
 0x2ca   : > { %v1301_v33 = vpop.f32.mrf.mxu3 }
 0x2cb   : > { %v6622_v18 = vadd.f32 %v1301_v33, %v6138_v6  ;;  %2412 = vmatmul.f32.gmra.mxu0 %v2301_v53  ;;  %v6634_v33 = vpop.f32.mrf.mxu0  ;;  %v1235_v53 = vld [vmem:[#allocation2 + $0xd7] sm:$0xff] }
 0x2cc   : > { %v6624_v32 = vpop.f32.mrf.mxu1 }
 0x2cd   : > { %8801 = vst [vmem:[#allocation110_spill] sm:$0xff] %v6622_v18 }
 0x2ce   : > { %8802 = vst [vmem:[#allocation111_spill] sm:$0xff] %v6624_v32  ;;  %v2501_v32 = vld [vmem:[#allocation2 + $0x6b] sm:$0xff] }
 0x2cf   : > { %1351 = vmatmul.f32.gmra.mxu3 %v1234_v49  ;;  %2581 = vmatmul.f32.gmra.mxu1 %v2500_v0  ;;  %v5081_v49 = vld [vmem:[%s8641_s4 + $0x310] sm:$0xff] }
 0x2d0   : > { %2132 = vmatpush.msra.mxu3 %v5081_v49 }
 0x2d2   : > { %v1304_v9 = vpop.f32.mrf.mxu3 }
 0x2d3   : > { %v6630_v35 = vadd.f32 %v1304_v9, %v6147_v59  ;;  %2415 = vmatmul.f32.gmra.mxu0 %v2302_v16  ;;  %v1236_v9 = vld [vmem:[#allocation2 + $0xdf] sm:$0xff]  ;;  %v2502_v16 = vld [vmem:[#allocation2 + $0x73] sm:$0xff] }
 0x2d4   : > { %v6632_v6 = vpop.f32.mrf.mxu1 }
 0x2d5   : > { %8803 = vst [vmem:[#allocation112_spill] sm:$0xff] %v6630_v35 }
 0x2d6   : > { %8804 = vst [vmem:[#allocation113_spill] sm:$0xff] %v6632_v6  ;;  %v6644_v6 = vpop.f32.mrf.mxu0 }
 0x2d7   : > { %1354 = vmatmul.f32.gmra.mxu3 %v1235_v53  ;;  %2584 = vmatmul.f32.gmra.mxu1 %v2501_v32  ;;  %v2304_v53 = vld [vmem:[#allocation2 + $0xf2] sm:$0xff] }
 0x2da   : > { %v1307_v0 = vpop.f32.mrf.mxu3 }
 0x2db   : > { %v6640_v18 = vadd.f32 %v1307_v0, %v6154_v26  ;;  %2418 = vmatmul.f32.gmra.mxu0 %v2303_v43  ;;  %v5136_v26 = vld [vmem:[%s8643_s6 + $0xc8] sm:$0xff]  ;;  %v2503_v43 = vld [vmem:[#allocation2 + $0x7b] sm:$0xff] }
 0x2dc   : > { %v6642_v59 = vpop.f32.mrf.mxu1  ;;  %v1237_v0 = vld [vmem:[#allocation2 + $0xe7] sm:$0xff]  ;;  %3011 = vmatpush.msra.mxu2 %v5136_v26 }
 0x2dd   : > { %8805 = vst [vmem:[#allocation114_spill] sm:$0xff] %v6640_v18 }
 0x2de   : > { %8806 = vst [vmem:[#allocation115_spill] sm:$0xff] %v6642_v59  ;;  %v6654_v59 = vpop.f32.mrf.mxu0 }
 0x2df   : > { %1357 = vmatmul.f32.gmra.mxu3 %v1236_v9  ;;  %2587 = vmatmul.f32.gmra.mxu1 %v2502_v16  ;;  %v2305_v16 = vld [vmem:[#allocation2 + $0xfa] sm:$0xff] }
 0x2e2   : > { %v1310_v32 = vpop.f32.mrf.mxu3 }
 0x2e3   : > { %v6647_v35 = vadd.f32 %v1310_v32, %v6163_v51  ;;  %2421 = vmatmul.f32.gmra.mxu0 %v2304_v53  ;;  %v5080_v32 = vld [vmem:[%s8641_s4 + $0x308] sm:$0xff] }
 0x2e4   : > { %v6649_v49 = vpop.f32.mrf.mxu1  ;;  %v1238_v53 = vld [vmem:[#allocation2 + $0xef] sm:$0xff]  ;;  %2133 = vmatpush.msra.mxu3 %v5080_v32 }
 0x2e5   : > { %8807 = vst [vmem:[#allocation116_spill] sm:$0xff] %v6647_v35  ;;  %v2307_v32 = vld [vmem:[#allocation2 + $0x10a] sm:$0xff] }
 0x2e6   : > { %8808 = vst [vmem:[#allocation117_spill] sm:$0xff] %v6649_v49  ;;  %v2504_v49 = vld [vmem:[#allocation2 + $0x83] sm:$0xff] }
 0x2e7   : > { %1360 = vmatmul.f32.gmra.mxu3 %v1237_v0  ;;  %2590 = vmatmul.f32.gmra.mxu1 %v2503_v43  ;;  %v2306_v0 = vld [vmem:[#allocation2 + $0x102] sm:$0xff]  ;;  %v6664_v43 = vpop.f32.mrf.mxu0 }
 0x2ea   : > { %v1313_v9 = vpop.f32.mrf.mxu3 }
 0x2eb   : > { %v6657_v18 = vadd.f32 %v1313_v9, %v6171_v41  ;;  %2424 = vmatmul.f32.gmra.mxu0 %v2305_v16  ;;  %v5135_v9 = vld [vmem:[%s8643_s6 + $0xc0] sm:$0xff]  ;;  %v1239_v16 = vld [vmem:[#allocation2 + $0xf7] sm:$0xff] }
 0x2ec   : > { %v6659_v51 = vpop.f32.mrf.mxu1  ;;  %3012 = vmatpush.msra.mxu2 %v5135_v9  ;;  %v2308_v9 = vld [vmem:[#allocation2 + $0x112] sm:$0xff] }
 0x2ed   : > { %8809 = vst [vmem:[#allocation118_spill] sm:$0xff] %v6657_v18  ;;  %v1243_v18 = vld [vmem:[#allocation2 + $0x117] sm:$0xff] }
 0x2ee   : > { %8810 = vst [vmem:[#allocation119_spill] sm:$0xff] %v6659_v51  ;;  %v2505_v51 = vld [vmem:[#allocation2 + $0x8b] sm:$0xff] }
 0x2ef   : > { %1363 = vmatmul.f32.gmra.mxu3 %v1238_v53  ;;  %2593 = vmatmul.f32.gmra.mxu1 %v2504_v49 }
 0x2f2   : > { %v1316_v26 = vpop.f32.mrf.mxu3 }
 0x2f3   : > { %v6667_v35 = vadd.f32 %v1316_v26, %v6175_v21  ;;  %2427 = vmatmul.f32.gmra.mxu0 %v2306_v0  ;;  %v6679_v26 = vpop.f32.mrf.mxu0  ;;  %v5079_v0 = vld [vmem:[%s8641_s4 + $0x300] sm:$0xff] }
 0x2f4   : > { %v6669_v41 = vpop.f32.mrf.mxu1  ;;  %2134 = vmatpush.msra.mxu3 %v5079_v0  ;;  %v5134_v0 = vld [vmem:[%s8643_s6 + $0xb8] sm:$0xff] }
 0x2f5   : > { %8811 = vst [vmem:[#allocation120_spill] sm:$0xff] %v6667_v35  ;;  %v2506_v35 = vld [vmem:[#allocation2 + $0x93] sm:$0xff]  ;;  %3013 = vmatpush.msra.mxu2 %v5134_v0 }
 0x2f6   : > { %8812 = vst [vmem:[#allocation121_spill] sm:$0xff] %v6669_v41  ;;  %v1240_v41 = vld [vmem:[#allocation2 + $0xff] sm:$0xff] }
 0x2f7   : > { %1366 = vmatmul.f32.gmra.mxu3 %v1239_v16  ;;  %2596 = vmatmul.f32.gmra.mxu1 %v2505_v51 }
 0x2fa   : > { %v1319_v49 = vpop.f32.mrf.mxu3 }
 0x2fb   : > { %v6675_v53 = vadd.f32 %v1319_v49, %v6179_v31  ;;  %2430 = vmatmul.f32.gmra.mxu0 %v2307_v32  ;;  %v1241_v49 = vld [vmem:[#allocation2 + $0x107] sm:$0xff]  ;;  %v2507_v32 = vld [vmem:[#allocation2 + $0x9b] sm:$0xff] }
 0x2fc   : > { %v6677_v21 = vpop.f32.mrf.mxu1 }
 0x2fd   : > { %8813 = vst [vmem:[#allocation122_spill] sm:$0xff] %v6675_v53 }
 0x2fe   : > { %8814 = vst [vmem:[#allocation123_spill] sm:$0xff] %v6677_v21  ;;  %v6689_v21 = vpop.f32.mrf.mxu0 }
 0x2ff   : > { %1369 = vmatmul.f32.gmra.mxu3 %v1240_v41  ;;  %2599 = vmatmul.f32.gmra.mxu1 %v2506_v35  ;;  %v2309_v41 = vld [vmem:[#allocation2 + $0x11a] sm:$0xff] }
 0x302   : > { %v1322_v51 = vpop.f32.mrf.mxu3 }
 0x303   : > { %v6685_v16 = vadd.f32 %v1322_v51, %v6183_v45  ;;  %2433 = vmatmul.f32.gmra.mxu0 %v2308_v9  ;;  %v1242_v51 = vld [vmem:[#allocation2 + $0x10f] sm:$0xff]  ;;  %v2508_v9 = vld [vmem:[#allocation2 + $0xa3] sm:$0xff] }
 0x304   : > { %v6687_v31 = vpop.f32.mrf.mxu1 }
 0x305   : > { %8815 = vst [vmem:[#allocation124_spill] sm:$0xff] %v6685_v16 }
 0x306   : > { %8816 = vst [vmem:[#allocation125_spill] sm:$0xff] %v6687_v31  ;;  %v6699_v31 = vpop.f32.mrf.mxu0 }
 0x307   : > { %1372 = vmatmul.f32.gmra.mxu3 %v1241_v49  ;;  %2602 = vmatmul.f32.gmra.mxu1 %v2507_v32  ;;  %v2310_v32 = vld [vmem:[#allocation2 + $0x122] sm:$0xff] }
 0x30a   : > { %v1325_v35 = vpop.f32.mrf.mxu3 }
 0x30b   : > { %v6695_v53 = vadd.f32 %v1325_v35, %v6187_v13  ;;  %2436 = vmatmul.f32.gmra.mxu0 %v2309_v41  ;;  %v2509_v13 = vld [vmem:[#allocation2 + $0xab] sm:$0xff] }
 0x30c   : > { %v6697_v45 = vpop.f32.mrf.mxu1  ;;  %v5133_v35 = vld [vmem:[%s8643_s6 + $0xb0] sm:$0xff] }
 0x30d   : > { %8817 = vst [vmem:[#allocation126_spill] sm:$0xff] %v6695_v53  ;;  %3014 = vmatpush.msra.mxu2 %v5133_v35  ;;  %v1245_v53 = vld [vmem:[#allocation2 + $0x127] sm:$0xff] }
 0x30e   : > { %8818 = vst [vmem:[#allocation127_spill] sm:$0xff] %v6697_v45 }
 0x30f   : > { %1375 = vmatmul.f32.gmra.mxu3 %v1242_v51  ;;  %2605 = vmatmul.f32.gmra.mxu1 %v2508_v9  ;;  %v2311_v51 = vld [vmem:[#allocation2 + $0x12a] sm:$0xff]  ;;  %v6709_v9 = vpop.f32.mrf.mxu0 }
 0x312   : > { %v1328_v49 = vpop.f32.mrf.mxu3 }
 0x313   : > { %v6702_v16 = vadd.f32 %v1328_v49, %v6194_v15  ;;  %2439 = vmatmul.f32.gmra.mxu0 %v2310_v32  ;;  %v1244_v49 = vld [vmem:[#allocation2 + $0x11f] sm:$0xff]  ;;  %v2510_v32 = vld [vmem:[#allocation2 + $0xb3] sm:$0xff] }
 0x314   : > { %v6704_v0 = vpop.f32.mrf.mxu1 }
 0x315   : > { %8819 = vst [vmem:[#allocation128_spill] sm:$0xff] %v6702_v16 }
 0x316   : > { %8820 = vst [vmem:[#allocation129_spill] sm:$0xff] %v6704_v0 }
 0x317   : > { %1378 = vmatmul.f32.gmra.mxu3 %v1243_v18  ;;  %2608 = vmatmul.f32.gmra.mxu1 %v2509_v13  ;;  %v2312_v13 = vld [vmem:[#allocation2 + $0x132] sm:$0xff]  ;;  %v6721_v16 = vpop.f32.mrf.mxu0 }
 0x318   : > { %8823 = vst [vmem:[#allocation132_spill] sm:$0xff] %v6721_v16 }
 0x31a   : > { %v1331_v41 = vpop.f32.mrf.mxu3 }
 0x31b   : > { %v6712_v45 = vadd.f32 %v1331_v41, %v6204_v27  ;;  %2442 = vmatmul.f32.gmra.mxu0 %v2311_v51  ;;  %v2511_v27 = vld [vmem:[#allocation2 + $0xbb] sm:$0xff] }
 0x31c   : > { %v6714_v15 = vpop.f32.mrf.mxu1  ;;  %v2313_v51 = vld [vmem:[#allocation2 + $0x13a] sm:$0xff] }
 0x31d   : > { %8821 = vst [vmem:[#allocation130_spill] sm:$0xff] %v6712_v45 }
 0x31f   : > { %1381 = vmatmul.f32.gmra.mxu3 %v1244_v49  ;;  %2611 = vmatmul.f32.gmra.mxu1 %v2510_v32  ;;  %v2066_v32 = vld [vmem:[#allocation2 + $0x31] sm:$0xff] }
 0x322   : > { %v1334_v18 = vpop.f32.mrf.mxu3 }
 0x323   : > { %v6717_v0 = vadd.f32 %v1334_v18, %v6214_v29  ;;  %2445 = vmatmul.f32.gmra.mxu0 %v2312_v13  ;;  %v5132_v29 = vld [vmem:[%s8643_s6 + $0xa8] sm:$0xff]  ;;  %v6731_v13 = vpop.f32.mrf.mxu0 }
 0x324   : > { %v6719_v35 = vpop.f32.mrf.mxu1  ;;  %v2512_v18 = vld [vmem:[#allocation2 + $0xc3] sm:$0xff]  ;;  %3015 = vmatpush.msra.mxu2 %v5132_v29  ;;  %8825 = vst [vmem:[#allocation134_spill] sm:$0xff] %v6731_v13 }
 0x325   : > { %8822 = vst [vmem:[#allocation131_spill] sm:$0xff] %v6717_v0 }
 0x327   : > { %1384 = vmatmul.f32.gmra.mxu3 %v1245_v53  ;;  %2614 = vmatmul.f32.gmra.mxu1 %v2511_v27 }
 0x32a   : > { %v1337_v41 = vpop.f32.mrf.mxu3 }
 0x32b   : > { %v6724_v45 = vadd.f32 %v1337_v41, %v6221_v52  ;;  %2448 = vmatmul.f32.gmra.mxu0 %v2313_v51  ;;  %v2067_v41 = vld [vmem:[#allocation2 + $0x39] sm:$0xff]  ;;  %v2513_v51 = vld [vmem:[#allocation2 + $0xcb] sm:$0xff] }
 0x32c   : > { %v6726_v49 = vpop.f32.mrf.mxu1 }
 0x32d   : > { %8824 = vst [vmem:[#allocation133_spill] sm:$0xff] %v6724_v45  ;;  %v6738_v45 = vpop.f32.mrf.mxu0 }
 0x32e   : > { %8827 = vst [vmem:[#allocation136_spill] sm:$0xff] %v6738_v45 }
 0x32f   : > { %2135 = vmatmul.f32.vlgmr.msra.gmra.mxu3 %v2066_v32  ;;  %2617 = vmatmul.f32.gmra.mxu1 %v2512_v18  ;;  %v5131_v32 = vld [vmem:[%s8643_s6 + $0xa0] sm:$0xff]  ;;  %v2514_v18 = vld [vmem:[#allocation2 + $0xd3] sm:$0xff] }
 0x330   : > { %3016 = vmatpush.msra.mxu2 %v5131_v32 }
 0x332   : > { %v1340_v53 = vpop.f32.mrf.mxu3 }
 0x333   : > { %v6734_v27 = vadd.f32 %v1340_v53, %v6231_v54  ;;  %v2068_v54 = vld [vmem:[#allocation2 + $0x41] sm:$0xff] }
 0x334   : > { %v6736_v52 = vpop.f32.mrf.mxu1 }
 0x335   : > { %8826 = vst [vmem:[#allocation135_spill] sm:$0xff] %v6734_v27 }
 0x337   : > { %2138 = vmatmul.f32.gmra.mxu3 %v2067_v41  ;;  %2620 = vmatmul.f32.gmra.mxu1 %v2513_v51  ;;  %v6748_v41 = vpop.f32.mrf.mxu0 }
 0x338   : > { %8829 = vst [vmem:[#allocation138_spill] sm:$0xff] %v6748_v41  ;;  %v2516_v41 = vld [vmem:[#allocation2 + $0xe3] sm:$0xff] }
 0x33a   : > { %v1343_v0 = vpop.f32.mrf.mxu3 }
 0x33b   : > { %v6741_v16 = vadd.f32 %v1343_v0, %v6242_v24  ;;  %v2069_v24 = vld [vmem:[#allocation2 + $0x49] sm:$0xff]  ;;  %v2515_v0 = vld [vmem:[#allocation2 + $0xdb] sm:$0xff] }
 0x33c   : > { %v6743_v29 = vpop.f32.mrf.mxu1 }
 0x33d   : > { %8828 = vst [vmem:[#allocation137_spill] sm:$0xff] %v6741_v16  ;;  %v6755_v16 = vpop.f32.mrf.mxu2 }
 0x33e   : > { %8831 = vst [vmem:[#allocation140_spill] sm:$0xff] %v6755_v16  ;;  %v2518_v16 = vld [vmem:[#allocation2 + $0xf3] sm:$0xff] }
 0x33f   : > { %2141 = vmatmul.f32.gmra.mxu3 %v2068_v54  ;;  %2623 = vmatmul.f32.gmra.mxu1 %v2514_v18  ;;  %v6762_v54 = vpop.f32.mrf.mxu0  ;;  %v2070_v18 = vld [vmem:[#allocation2 + $0x51] sm:$0xff] }
 0x340   : > { %8833 = vst [vmem:[#allocation142_spill] sm:$0xff] %v6762_v54 }
 0x342   : > { %v1346_v53 = vpop.f32.mrf.mxu3 }
 0x343   : > { %v6751_v51 = vadd.f32 %v1346_v53, %v6253_v4  ;;  %v5130_v4 = vld [vmem:[%s8643_s6 + $0x98] sm:$0xff] }
 0x344   : > { %v6753_v27 = vpop.f32.mrf.mxu1  ;;  %3017 = vmatpush.msra.mxu2 %v5130_v4 }
 0x345   : > { %8830 = vst [vmem:[#allocation139_spill] sm:$0xff] %v6751_v51  ;;  %v6767_v53 = vpop.f32.mrf.mxu2 }
 0x346   : > { %8834 = vst [vmem:[#allocation143_spill] sm:$0xff] %v6767_v53  ;;  %v2072_v53 = vld [vmem:[#allocation2 + $0x61] sm:$0xff] }
 0x347   : > { %2144 = vmatmul.f32.gmra.mxu3 %v2069_v24  ;;  %2626 = vmatmul.f32.gmra.mxu1 %v2515_v0  ;;  %v6774_v51 = vpop.f32.mrf.mxu0 }
 0x348   : > { %8836 = vst [vmem:[#allocation145_spill] sm:$0xff] %v6774_v51 }
 0x34a   : > { %v1349_v45 = vpop.f32.mrf.mxu3 }
 0x34b   : > { %v6758_v13 = vadd.f32 %v1349_v45, %v6264_v36  ;;  %v2071_v45 = vld [vmem:[#allocation2 + $0x59] sm:$0xff] }
 0x34c   : > { %v6760_v32 = vpop.f32.mrf.mxu1 }
 0x34d   : > { %8832 = vst [vmem:[#allocation141_spill] sm:$0xff] %v6758_v13  ;;  %v2517_v13 = vld [vmem:[#allocation2 + $0xeb] sm:$0xff]  ;;  %v6779_v54 = vpop.f32.mrf.mxu2 }
 0x34f   : > { %2147 = vmatmul.f32.gmra.mxu3 %v2070_v18  ;;  %2629 = vmatmul.f32.gmra.mxu1 %v2516_v41 }
 0x352   : > { %v1352_v24 = vpop.f32.mrf.mxu3 }
 0x353   : > { %v6770_v0 = vadd.f32 %v1352_v24, %v6284_v14  ;;  %v5129_v14 = vld [vmem:[%s8643_s6 + $0x90] sm:$0xff]  ;;  %v6786_v24 = vpop.f32.mrf.mxu0 }
 0x354   : > { %v6772_v36 = vpop.f32.mrf.mxu1  ;;  %8838 = vst [vmem:[#allocation147_spill] sm:$0xff] %v6786_v24  ;;  %3018 = vmatpush.msra.mxu2 %v5129_v14 }
 0x355   : > { %8835 = vst [vmem:[#allocation144_spill] sm:$0xff] %v6770_v0  ;;  %v2519_v0 = vld [vmem:[#allocation2 + $0xfb] sm:$0xff] }
 0x357   : > { %2150 = vmatmul.f32.gmra.mxu3 %v2071_v45  ;;  %2632 = vmatmul.f32.gmra.mxu1 %v2517_v13 }
 0x35a   : > { %v1355_v41 = vpop.f32.mrf.mxu3 }
 0x35b   : > { %v6777_v18 = vadd.f32 %v1355_v41, %v6307_v61  ;;  %v6793_v41 = vpop.f32.mrf.mxu2  ;;  %v6797_v51 = vpop.f32.mrf.mxu0 }
 0x35c   : > { %v6781_v4 = vpop.f32.mrf.mxu1  ;;  %8840 = vst [vmem:[#allocation149_spill] sm:$0xff] %v6793_v41 }
 0x35d   : > { %8837 = vst [vmem:[#allocation146_spill] sm:$0xff] %v6777_v18  ;;  %v2073_v18 = vld [vmem:[#allocation2 + $0x69] sm:$0xff] }
 0x35f   : > { %2153 = vmatmul.f32.gmra.mxu3 %v2072_v53  ;;  %2635 = vmatmul.f32.gmra.mxu1 %v2518_v16  ;;  %v1184_v16 = vadd.f32 %v6440_v23, %v6344_v56 }
 0x362   : > { %v1358_v13 = vpop.f32.mrf.mxu3 }
 0x363   : > { %v6789_v45 = vadd.f32 %v1358_v13, %v6327_v62  ;;  %v2074_v62 = vld [vmem:[#allocation2 + $0x71] sm:$0xff]  ;;  %v2520_v13 = vld [vmem:[#allocation2 + $0x103] sm:$0xff]  ;;  %v6811_v23 = vpop.f32.mrf.mxu0 }
 0x364   : > { %v6791_v61 = vpop.f32.mrf.mxu1 }
 0x365   : > { %8839 = vst [vmem:[#allocation148_spill] sm:$0xff] %v6789_v45  ;;  %v6803_v45 = vpop.f32.mrf.mxu2 }
 0x367   : > { %2156 = vmatmul.f32.gmra.mxu3 %v2073_v18  ;;  %2638 = vmatmul.f32.gmra.mxu1 %v2519_v0  ;;  %v1187_v18 = vadd.f32 %v6447_v44, %v6354_v10  ;;  %v5158_v10 = vld [vmem:[%s8643_s6 + $0x178] sm:$0xff]  ;;  %v1190_v44 = vadd.f32 %v6456_v7, %v6364_v46  ;;  %v5155_v7 = vld [vmem:[%s8643_s6 + $0x160] sm:$0xff] }
 0x368   : > { %3308 = vmatpush.msrb.mxu0 %v5158_v10  ;;  %v1193_v10 = vadd.f32 %v6467_v58, %v6374_v19  ;;  %v5152_v19 = vld [vmem:[%s8643_s6 + $0x148] sm:$0xff]  ;;  %v5127_v58 = vld [vmem:[%s8643_s6 + $0x80] sm:$0xff] }
 0x36a   : > { %v1361_v53 = vpop.f32.mrf.mxu3 }
 0x36b   : > { %v6799_v24 = vadd.f32 %v1361_v53, %v1184_v16  ;;  %v5128_v16 = vld [vmem:[%s8643_s6 + $0x88] sm:$0xff]  ;;  %v2075_v53 = vld [vmem:[#allocation2 + $0x79] sm:$0xff]  ;;  %v6833_v46 = vpop.f32.mrf.mxu0 }
 0x36c   : > { %v6801_v14 = vpop.f32.mrf.mxu1  ;;  %3019 = vmatpush.msra.mxu2 %v5128_v16  ;;  %v5157_v16 = vld [vmem:[%s8643_s6 + $0x170] sm:$0xff]  ;;  %8844 = vst [vmem:[#allocation153_spill] sm:$0xff] %v6833_v46 }
 0x36d   : > { %8841 = vst [vmem:[#allocation150_spill] sm:$0xff] %v6799_v24  ;;  %v2521_v24 = vld [vmem:[#allocation2 + $0x10b] sm:$0xff]  ;;  %3309 = vmatpush.msrb.mxu0 %v5157_v16 }
 0x36e   : > { %3020 = vmatpush.msra.mxu2 %v5127_v58 }
 0x36f   : > { %2159 = vmatmul.f32.gmra.mxu3 %v2074_v62  ;;  %2641 = vmatmul.f32.gmra.mxu1 %v2520_v13  ;;  %v6821_v62 = vpop.f32.mrf.mxu2 }
 0x372   : > { %v1364_v0 = vpop.f32.mrf.mxu3 }
 0x373   : > { %v6807_v41 = vadd.f32 %v1364_v0, %v1187_v18  ;;  %v6866_v46 = vpop.f32.mrf.mxu0 }
 0x374   : > { %v6809_v56 = vpop.f32.mrf.mxu1  ;;  %8847 = vst [vmem:[#allocation156_spill] sm:$0xff] %v6866_v46 }
 0x375   : > { %8842 = vst [vmem:[#allocation151_spill] sm:$0xff] %v6807_v41  ;;  %v2522_v41 = vld [vmem:[#allocation2 + $0x113] sm:$0xff] }
 0x377   : > { %2162 = vmatmul.f32.gmra.mxu3 %v2075_v53  ;;  %2644 = vmatmul.f32.gmra.mxu1 %v2521_v24  ;;  %v5156_v24 = vld [vmem:[%s8643_s6 + $0x168] sm:$0xff]  ;;  %v6845_v16 = vpop.f32.mrf.mxu2 }
 0x378   : > { %v2076_v53 = vld [vmem:[#allocation2 + $0x81] sm:$0xff]  ;;  %3310 = vmatpush.msrb.mxu0 %v5156_v24  ;;  %8846 = vst [vmem:[#allocation155_spill] sm:$0xff] %v6845_v16  ;;  %v2077_v24 = vld [vmem:[#allocation2 + $0x89] sm:$0xff] }
 0x37a   : > { %v1367_v13 = vpop.f32.mrf.mxu3  ;;  %3311 = vmatpush.msrb.mxu0 %v5155_v7  ;;  %v2523_v7 = vld [vmem:[#allocation2 + $0x11b] sm:$0xff] }
 0x37b   : > { %v6823_v18 = vadd.f32 %v1367_v13, %v1190_v44  ;;  %v5154_v44 = vld [vmem:[%s8643_s6 + $0x158] sm:$0xff] }
 0x37c   : > { %v6825_v0 = vpop.f32.mrf.mxu1  ;;  %3312 = vmatpush.msrb.mxu0 %v5154_v44  ;;  %v2314_v44 = vld [vmem:[#allocation2 + $0x142] sm:$0xff] }
 0x37d   : > { %8843 = vst [vmem:[#allocation152_spill] sm:$0xff] %v6823_v18  ;;  %2451 = vmatmul.f32.gmra.mxu0 %v2314_v44 }
 0x37f   : > { %2165 = vmatmul.f32.gmra.mxu3 %v2076_v53  ;;  %2647 = vmatmul.f32.gmra.mxu1 %v2522_v41  ;;  %v5153_v41 = vld [vmem:[%s8643_s6 + $0x150] sm:$0xff]  ;;  %v6884_v44 = vpop.f32.mrf.mxu2 }
 0x380   : > { %3313 = vmatpush.msrb.mxu0 %v5153_v41  ;;  %v5150_v41 = vld [vmem:[%s8643_s6 + $0x138] sm:$0xff]  ;;  %8849 = vst [vmem:[#allocation158_spill] sm:$0xff] %v6884_v44 }
 0x382   : > { %v1370_v13 = vpop.f32.mrf.mxu3  ;;  %3314 = vmatpush.msrb.mxu0 %v5152_v19 }
 0x383   : > { %v6843_v18 = vadd.f32 %v1370_v13, %v1193_v10  ;;  %v5151_v10 = vld [vmem:[%s8643_s6 + $0x140] sm:$0xff]  ;;  %v5174_v13 = vld [vmem:[%s8643_s6 + $0x1f8] sm:$0xff] }
 0x384   : > { %v6847_v53 = vpop.f32.mrf.mxu1  ;;  %3522 = vmatpush.msrb.mxu1 %v5174_v13  ;;  %3315 = vmatpush.msrb.mxu0 %v5151_v10  ;;  %v2078_v10 = vld [vmem:[#allocation2 + $0x91] sm:$0xff]  ;;  %v5172_v13 = vld [vmem:[%s8643_s6 + $0x1e8] sm:$0xff] }
 0x385   : > { %8845 = vst [vmem:[#allocation154_spill] sm:$0xff] %v6843_v18  ;;  %v1196_v18 = vadd.f32 %v6478_v11, %v6384_v34  ;;  %v5173_v34 = vld [vmem:[%s8643_s6 + $0x1f0] sm:$0xff]  ;;  %v5148_v11 = vld [vmem:[%s8643_s6 + $0x128] sm:$0xff] }
 0x386   : > { %3316 = vmatpush.msrb.mxu0 %v5150_v41  ;;  %3523 = vmatpush.msrb.mxu1 %v5173_v34  ;;  %v5147_v41 = vld [vmem:[%s8643_s6 + $0x120] sm:$0xff]  ;;  %v1199_v34 = vadd.f32 %v6495_v63, %v6394_v38  ;;  %v2525_v63 = vld [vmem:[#allocation2 + $0x12b] sm:$0xff] }
 0x387   : > { %2168 = vmatmul.f32.gmra.mxu3 %v2077_v24  ;;  %2650 = vmatmul.f32.gmra.mxu1 %v2523_v7  ;;  %v5149_v7 = vld [vmem:[%s8643_s6 + $0x130] sm:$0xff]  ;;  %v2079_v38 = vld [vmem:[#allocation2 + $0x99] sm:$0xff] }
 0x388   : > { %3317 = vmatpush.msrb.mxu0 %v5149_v7  ;;  %3524 = vmatpush.msrb.mxu1 %v5172_v13  ;;  %v2951_v7 = vld [vmem:[%s8643_s6 + $0x78] sm:$0xff] }
 0x389   : > { %3130 = vmatpush.msrb.mxu3 %v2951_v7  ;;  %v1202_v7 = vadd.f32 %v6516_v28, %v6404_v57  ;;  %v5144_v28 = vld [vmem:[%s8643_s6 + $0x108] sm:$0xff] }
 0x38a   : > { %v1373_v58 = vpop.f32.mrf.mxu3  ;;  %3318 = vmatpush.msrb.mxu0 %v5148_v11  ;;  %v6906_v11 = vpop.f32.mrf.mxu0  ;;  %v5168_v57 = vld [vmem:[%s8643_s6 + $0x1c8] sm:$0xff] }
 0x38b   : > { %v6871_v24 = vadd.f32 %v1373_v58, %v1196_v18  ;;  %v2524_v18 = vld [vmem:[#allocation2 + $0x123] sm:$0xff]  ;;  %8850 = vst [vmem:[#allocation159_spill] sm:$0xff] %v6906_v11 }
 0x38c   : > { %v6873_v19 = vpop.f32.mrf.mxu1  ;;  %v5171_v58 = vld [vmem:[%s8643_s6 + $0x1e0] sm:$0xff]  ;;  %3319 = vmatpush.msrb.mxu0 %v5147_v41 }
 0x38d   : > { %8848 = vst [vmem:[#allocation157_spill] sm:$0xff] %v6871_v24  ;;  %v2315_v24 = vld [vmem:[#allocation2 + $0x14a] sm:$0xff]  ;;  %3525 = vmatpush.msrb.mxu1 %v5171_v58 }
 0x38e   : > { %2454 = vmatmul.f32.gmra.mxu0 %v2315_v24  ;;  %v6912_v24 = vpop.f32.mrf.mxu2 }
 0x38f   : > { %2171 = vmatmul.f32.gmra.mxu3 %v2078_v10  ;;  %2653 = vmatmul.f32.gmra.mxu1 %v2524_v18  ;;  %v5146_v10 = vld [vmem:[%s8643_s6 + $0x118] sm:$0xff] }
 0x390   : > { %v5170_v18 = vld [vmem:[%s8643_s6 + $0x1d8] sm:$0xff]  ;;  %3320 = vmatpush.msrb.mxu0 %v5146_v10  ;;  %v5145_v10 = vld [vmem:[%s8643_s6 + $0x110] sm:$0xff] }
 0x391   : > { %3526 = vmatpush.msrb.mxu1 %v5170_v18  ;;  %v5169_v18 = vld [vmem:[%s8643_s6 + $0x1d0] sm:$0xff] }
 0x392   : > { %v1376_v46 = vpop.f32.mrf.mxu3  ;;  %3321 = vmatpush.msrb.mxu0 %v5145_v10  ;;  %v3255_v10 = vld [vmem:[#allocation3 + $0xf] sm:$0xff] }
 0x393   : > { %v6908_v13 = vadd.f32 %v1376_v46, %v1199_v34  ;;  %v6920_v46 = vpop.f32.mrf.mxu0  ;;  %v2080_v34 = vld [vmem:[#allocation2 + $0xa1] sm:$0xff]  ;;  %3527 = vmatpush.msrb.mxu1 %v5169_v18  ;;  %v5190_v18 = vld [vmem:[%s8643_s6 + $0x278] sm:$0xff] }
 0x394   : > { %v6910_v44 = vpop.f32.mrf.mxu1  ;;  %8853 = vst [vmem:[#allocation162_spill] sm:$0xff] %v6920_v46  ;;  %3322 = vmatpush.msrb.mxu0 %v5144_v28  ;;  %3736 = vmatpush.msrb.mxu2 %v5190_v18 }
 0x395   : > { %8851 = vst [vmem:[#allocation160_spill] sm:$0xff] %v6908_v13  ;;  %v2526_v13 = vld [vmem:[#allocation2 + $0x133] sm:$0xff]  ;;  %3528 = vmatpush.msrb.mxu1 %v5168_v57  ;;  %v2081_v57 = vld [vmem:[#allocation2 + $0xa9] sm:$0xff] }
 0x397   : > { %2174 = vmatmul.f32.gmra.mxu3 %v2079_v38  ;;  %2656 = vmatmul.f32.gmra.mxu1 %v2525_v63  ;;  %v5167_v38 = vld [vmem:[%s8643_s6 + $0x1c0] sm:$0xff]  ;;  %v2952_v63 = vld [vmem:[#allocation3 + $0xe] sm:$0xff] }
 0x398   : > { %3021 = vmatmul.f32.vlgmr.msra.gmra.mxu2 %v2952_v63  ;;  %3529 = vmatpush.msrb.mxu1 %v5167_v38  ;;  %v3256_v63 = vld [vmem:[#allocation3 + $0x17] sm:$0xff] }
 0x39a   : > { %v1379_v16 = vpop.f32.mrf.mxu3 }
 0x39b   : > { %v6916_v41 = vadd.f32 %v1379_v16, %v1202_v7  ;;  %v1205_v16 = vadd.f32 %v6534_v47, %v6416_v37  ;;  %v6942_v7 = vpop.f32.mrf.mxu2  ;;  %v1103_v37 = vadd.f32 %v5971_v20, %v5961_v5  ;;  %v6957_v11 = vpop.f32.mrf.mxu0  ;;  %v5165_v5 = vld [vmem:[%s8643_s6 + $0x1b0] sm:$0xff]  ;;  %v5164_v20 = vld [vmem:[%s8643_s6 + $0x1a8] sm:$0xff] }
 0x39c   : > { %v6918_v58 = vpop.f32.mrf.mxu1  ;;  %8854 = vst [vmem:[#allocation163_spill] sm:$0xff] %v6942_v7  ;;  %v2527_v7 = vld [vmem:[#allocation2 + $0x13b] sm:$0xff] }
 0x39d   : > { %8852 = vst [vmem:[#allocation161_spill] sm:$0xff] %v6916_v41  ;;  %v5166_v41 = vld [vmem:[%s8643_s6 + $0x1b8] sm:$0xff]  ;;  %v1388_v28 = vadd.f32 %v6556_v17, %v1103_v37  ;;  %v1208_v17 = vadd.f32 %v6545_v55, %v6428_v25  ;;  %v2528_v55 = vld [vmem:[#allocation2 + $0x143] sm:$0xff] }
 0x39e   : > { %3530 = vmatpush.msrb.mxu1 %v5166_v41  ;;  %v5163_v41 = vld [vmem:[%s8643_s6 + $0x1a0] sm:$0xff] }
 0x39f   : > { %2177 = vmatmul.f32.gmra.mxu3 %v2080_v34  ;;  %2659 = vmatmul.f32.gmra.mxu1 %v2526_v13  ;;  %v5143_v13 = vld [vmem:[%s8643_s6 + $0x100] sm:$0xff] }
 0x3a0   : > { %3323 = vmatpush.msrb.mxu0 %v5143_v13  ;;  %3531 = vmatpush.msrb.mxu1 %v5165_v5  ;;  %v1602_v13 = vadd.f32 %v6169_v42, %v1388_v28  ;;  %v2082_v28 = vld [vmem:[#allocation2 + $0xb1] sm:$0xff] }
 0x3a1   : > { %3324 = vmatmul.f32.vlgmr.msrb.gmra.mxu0 %v3255_v10  ;;  %v5162_v10 = vld [vmem:[%s8643_s6 + $0x198] sm:$0xff] }
 0x3a2   : > { %v1382_v34 = vpop.f32.mrf.mxu3  ;;  %3532 = vmatpush.msrb.mxu1 %v5164_v20  ;;  %v1816_v37 = vadd.f32 %v6329_v8, %v1602_v13  ;;  %v5189_v8 = vld [vmem:[%s8643_s6 + $0x270] sm:$0xff] }
 0x3a3   : > { %v6949_v47 = vadd.f32 %v1382_v34, %v1205_v16  ;;  %v2953_v16 = vld [vmem:[#allocation3 + $0x16] sm:$0xff]  ;;  %v6978_v25 = vpop.f32.mrf.mxu2  ;;  %v6997_v5 = vpop.f32.mrf.mxu0  ;;  %3737 = vmatpush.msrb.mxu2 %v5189_v8 }
 0x3a4   : > { %v6954_v46 = vpop.f32.mrf.mxu1  ;;  %3024 = vmatmul.f32.gmra.mxu2 %v2953_v16  ;;  %3533 = vmatpush.msrb.mxu1 %v5163_v41  ;;  %v2030_v20 = vadd.f32 %v6392_v30, %v1816_v37  ;;  %v5159_v16 = vld [vmem:[%s8643_s6 + $0x180] sm:$0xff]  ;;  %v8857_v30 = vld [vmem:[#allocation55_spill] sm:$0xff] }
 0x3a5   : > { %8855 = vst [vmem:[#allocation164_spill] sm:$0xff] %v6949_v47  ;;  %v8858_v37 = vld [vmem:[#allocation40_spill] sm:$0xff] }
 0x3a6   : > { %3534 = vmatpush.msrb.mxu1 %v5162_v10 }
 0x3a7   : > { %2180 = vmatmul.f32.gmra.mxu3 %v2081_v57  ;;  %2662 = vmatmul.f32.gmra.mxu1 %v2527_v7  ;;  %v1106_v7 = vadd.f32 %v5994_v2, %v5980_v40  ;;  %v5161_v40 = vld [vmem:[%s8643_s6 + $0x190] sm:$0xff]  ;;  %v5160_v57 = vld [vmem:[%s8643_s6 + $0x188] sm:$0xff] }
 0x3a8   : > { %v2950_v2 = vld [vmem:[%s8643_s6 + $0x70] sm:$0xff]  ;;  %3535 = vmatpush.msrb.mxu1 %v5161_v40 }
 0x3a9   : > { %v1389_v18 = vadd.f32 %v6564_v22, %v1106_v7  ;;  %3327 = vmatmul.f32.gmra.mxu0 %v3256_v63  ;;  %3131 = vmatpush.msrb.mxu3 %v2950_v2 }
 0x3aa   : > { %v1385_v38 = vpop.f32.mrf.mxu3  ;;  %3536 = vmatpush.msrb.mxu1 %v5160_v57 }
 0x3ab   : > { %v6973_v34 = vadd.f32 %v1385_v38, %v1208_v17  ;;  %v1603_v22 = vadd.f32 %v6173_v1, %v1389_v18  ;;  %v2529_v38 = vld [vmem:[#allocation2 + $0x14b] sm:$0xff]  ;;  %v7009_v1 = vld [vmem:[%s8642_s5] ss:$0 sm:$0xff]  ;;  %v7012_v10 = vpop.f32.mrf.mxu2  ;;  %v7019_v8 = vpop.f32.mrf.mxu0 }
 0x3ac   : > { %v6980_v42 = vpop.f32.mrf.mxu1  ;;  %3537 = vmatpush.msrb.mxu1 %v5159_v16 }
 0x3ad   : > { %8856 = vst [vmem:[#allocation165_spill] sm:$0xff] %v6973_v34  ;;  %v1817_v7 = vadd.f32 %v8857_v30, %v1603_v22  ;;  %v2084_v30 = vld [vmem:[#allocation2 + $0xc1] sm:$0xff]  ;;  %v8899_v34 = vld [vmem:[#allocation74_spill] sm:$0xff] }
 0x3af   : > { %2183 = vmatmul.f32.gmra.mxu3 %v2082_v28  ;;  %2665 = vmatmul.f32.gmra.mxu1 %v2528_v55  ;;  %v2083_v55 = vld [vmem:[#allocation2 + $0xb9] sm:$0xff]  ;;  %v1604_v28 = vadd.f32 %v8858_v37, %v6574_v48 }
 0x3b2   : > { %v2136_v17 = vpop.f32.mrf.mxu3 }
 0x3b3   : > { %v2244_v13 = vadd.f32 %v2136_v17, %v2030_v20  ;;  %v8860_v17 = vld [vmem:[#allocation4_spill] sm:$0xff] }
 0x3b4   : > { %v7003_v41 = vpop.f32.mrf.mxu1 }
 0x3b5   : > { %v2458_v63 = vadd.f32 %v6619_v3, %v2244_v13  ;;  %v8859_v3 = vld [vmem:[#allocation65_spill] sm:$0xff] }
 0x3b6   : > { %v2031_v2 = vadd.f32 %v8859_v3, %v1817_v7  ;;  %v2949_v7 = vld [vmem:[%s8643_s6 + $0x68] sm:$0xff] }
 0x3b7   : > { %v2672_v18 = vadd.f32 %v6714_v15, %v2458_v63  ;;  %2186 = vmatmul.f32.gmra.mxu3 %v2083_v55  ;;  %2668 = vmatmul.f32.gmra.mxu1 %v2529_v38  ;;  %v8861_v63 = vld [vmem:[#allocation56_spill] sm:$0xff]  ;;  %v7030_v55 = vpop.f32.mrf.mxu2 }
 0x3b8   : > { %v1818_v38 = vadd.f32 %v8861_v63, %v1604_v28  ;;  %3132 = vmatpush.msrb.mxu3 %v2949_v7 }
 0x3b9   : > { %v2712_v40 = vadd.f32 %v7009_v1, %v2672_v18  ;;  %v8862_v18 = vld [vmem:[#allocation41_spill] sm:$0xff] }
 0x3ba   : > { %v2139_v57 = vpop.f32.mrf.mxu3  ;;  %v1605_v37 = vadd.f32 %v8862_v18, %v6582_v12  ;;  %v8866_v18 = vld [vmem:[#allocation42_spill] sm:$0xff] }
 0x3bb   : > { %v2748_v20 = vmax.f32 %v2712_v40, 0.0  ;;  %v2245_v16 = vadd.f32 %v2139_v57, %v2031_v2 }
 0x3bc   : > { %v7021_v22 = vpop.f32.mrf.mxu1 }
 0x3bd   : > { %v2784_v13 = vmul.f32 %v2748_v20, %v8860_v17  ;;  %v2459_v15 = vadd.f32 %v6634_v33, %v2245_v16  ;;  %v8863_v33 = vld [vmem:[#allocation69_spill] sm:$0xff] }
 0x3be   : > { %v2032_v3 = vadd.f32 %v8863_v33, %v1818_v38  ;;  %v8864_v16 = vld [vmem:[#allocation5_spill] sm:$0xff] }
 0x3bf   : > { %2864 = vst [vmem:[#allocation3 + $0x20] sm:$0xff] %v2784_v13  ;;  %v2673_v48 = vadd.f32 %v6719_v35, %v2459_v15  ;;  %2189 = vmatmul.f32.gmra.mxu3 %v2084_v30  ;;  %v7038_v35 = vpop.f32.mrf.mxu0  ;;  %v8865_v15 = vld [vmem:[#allocation58_spill] sm:$0xff]  ;;  %v5188_v38 = vld [vmem:[%s8643_s6 + $0x268] sm:$0xff] }
 0x3c0   : > { %v1819_v63 = vadd.f32 %v8865_v15, %v1605_v37  ;;  %v2085_v30 = vld [vmem:[#allocation2 + $0xc9] sm:$0xff]  ;;  %v8867_v37 = vld [vmem:[#allocation72_spill] sm:$0xff]  ;;  %3738 = vmatpush.msrb.mxu2 %v5188_v38 }
 0x3c1   : > { %v2713_v40 = vadd.f32 %v7009_v1, %v2673_v48  ;;  %v8869_v15 = vld [vmem:[#allocation60_spill] sm:$0xff] }
 0x3c2   : > { %v2142_v28 = vpop.f32.mrf.mxu3  ;;  %v2033_v33 = vadd.f32 %v8867_v37, %v1819_v63  ;;  %v2948_v38 = vld [vmem:[%s8643_s6 + $0x60] sm:$0xff] }
 0x3c3   : > { %v2749_v2 = vmax.f32 %v2713_v40, 0.0  ;;  %v2246_v57 = vadd.f32 %v2142_v28, %v2032_v3  ;;  %v1606_v40 = vadd.f32 %v8866_v18, %v6592_v39  ;;  %v7051_v3 = vpop.f32.mrf.mxu2  ;;  %3133 = vmatpush.msrb.mxu3 %v2948_v38  ;;  %v8874_v38 = vld [vmem:[#allocation44_spill] sm:$0xff] }
 0x3c4   : > { %v7036_v20 = vpop.f32.mrf.mxu1 }
 0x3c5   : > { %v2785_v17 = vmul.f32 %v2749_v2, %v8864_v16  ;;  %v2460_v13 = vadd.f32 %v6644_v6, %v2246_v57  ;;  %v8868_v16 = vld [vmem:[#allocation6_spill] sm:$0xff] }
 0x3c6   : > { %v2954_v7 = vld [vmem:[#allocation3 + $0x1e] sm:$0xff] }
 0x3c7   : > { %v3257_v12 = vld [vmem:[#allocation3 + $0x1f] sm:$0xff]  ;;  %2865 = vst [vmem:[#allocation3 + $0x28] sm:$0xff] %v2785_v17  ;;  %v2674_v48 = vadd.f32 %v6726_v49, %v2460_v13  ;;  %2192 = vmatmul.f32.gmra.mxu3 %v2085_v30  ;;  %3027 = vmatmul.f32.gmra.mxu2 %v2954_v7  ;;  %v1820_v30 = vadd.f32 %v8869_v15, %v1606_v40  ;;  %v2086_v7 = vld [vmem:[#allocation2 + $0xd1] sm:$0xff] }
 0x3c8   : > { %3330 = vmatmul.f32.gmra.mxu0 %v3257_v12  ;;  %3538 = vmatmul.f32.vlgmr.msrb.gmra.mxu1 %v3257_v12  ;;  %v8873_v15 = vld [vmem:[#allocation62_spill] sm:$0xff] }
 0x3c9   : > { %v2714_v6 = vadd.f32 %v7009_v1, %v2674_v48  ;;  %v7058_v48 = vpop.f32.mrf.mxu0 }
 0x3ca   : > { %v2145_v28 = vpop.f32.mrf.mxu3 }
 0x3cb   : > { %v2750_v49 = vmax.f32 %v2714_v6, 0.0  ;;  %v2247_v2 = vadd.f32 %v2145_v28, %v2033_v33  ;;  %v8871_v6 = vld [vmem:[#allocation75_spill] sm:$0xff] }
 0x3cc   : > { %v7053_v57 = vpop.f32.mrf.mxu1  ;;  %v2034_v37 = vadd.f32 %v8871_v6, %v1820_v30 }
 0x3cd   : > { %v2786_v17 = vmul.f32 %v2750_v49, %v8868_v16  ;;  %v2461_v13 = vadd.f32 %v6654_v59, %v2247_v2  ;;  %v8870_v59 = vld [vmem:[#allocation43_spill] sm:$0xff] }
 0x3ce   : > { %v2955_v39 = vld [vmem:[#allocation3 + $0x26] sm:$0xff]  ;;  %v1607_v18 = vadd.f32 %v8870_v59, %v6602_v60  ;;  %v8872_v16 = vld [vmem:[#allocation7_spill] sm:$0xff]  ;;  %v1608_v59 = vadd.f32 %v8874_v38, %v6612_v50 }
 0x3cf   : > { %v3258_v12 = vld [vmem:[#allocation3 + $0x27] sm:$0xff]  ;;  %2866 = vst [vmem:[#allocation3 + $0x30] sm:$0xff] %v2786_v17  ;;  %v2675_v63 = vadd.f32 %v6736_v52, %v2461_v13  ;;  %2195 = vmatmul.f32.gmra.mxu3 %v2086_v7  ;;  %3030 = vmatmul.f32.gmra.mxu2 %v2955_v39  ;;  %v7068_v52 = vpop.f32.mrf.mxu2  ;;  %v2087_v39 = vld [vmem:[#allocation2 + $0xd9] sm:$0xff] }
 0x3d0   : > { %3333 = vmatmul.f32.gmra.mxu0 %v3258_v12  ;;  %3541 = vmatmul.f32.gmra.mxu1 %v3258_v12  ;;  %v1821_v7 = vadd.f32 %v8873_v15, %v1607_v18  ;;  %v2088_v50 = vld [vmem:[#allocation2 + $0xe1] sm:$0xff] }
 0x3d1   : > { %v2715_v40 = vadd.f32 %v7009_v1, %v2675_v63  ;;  %v5187_v63 = vld [vmem:[%s8643_s6 + $0x260] sm:$0xff] }
 0x3d2   : > { %v2148_v33 = vpop.f32.mrf.mxu3  ;;  %3739 = vmatpush.msrb.mxu2 %v5187_v63  ;;  %v8878_v63 = vld [vmem:[#allocation110_spill] sm:$0xff] }
 0x3d3   : > { %v2751_v28 = vmax.f32 %v2715_v40, 0.0  ;;  %v2248_v49 = vadd.f32 %v2148_v33, %v2034_v37  ;;  %v8875_v40 = vld [vmem:[#allocation78_spill] sm:$0xff] }
 0x3d4   : > { %v7070_v2 = vpop.f32.mrf.mxu1  ;;  %v2035_v6 = vadd.f32 %v8875_v40, %v1821_v7 }
 0x3d5   : > { %v2787_v17 = vmul.f32 %v2751_v28, %v8872_v16  ;;  %v2462_v13 = vadd.f32 %v6664_v43, %v2248_v49  ;;  %v7081_v43 = vpop.f32.mrf.mxu0  ;;  %v8876_v49 = vld [vmem:[#allocation8_spill] sm:$0xff] }
 0x3d6   : > { %v2956_v60 = vld [vmem:[#allocation3 + $0x2e] sm:$0xff] }
 0x3d7   : > { %v3259_v12 = vld [vmem:[#allocation3 + $0x2f] sm:$0xff]  ;;  %2867 = vst [vmem:[#allocation3 + $0x38] sm:$0xff] %v2787_v17  ;;  %v2676_v30 = vadd.f32 %v6743_v29, %v2462_v13  ;;  %2198 = vmatmul.f32.gmra.mxu3 %v2087_v39  ;;  %3033 = vmatmul.f32.gmra.mxu2 %v2956_v60  ;;  %v8877_v13 = vld [vmem:[#allocation64_spill] sm:$0xff]  ;;  %v7090_v39 = vpop.f32.mrf.mxu2 }
 0x3d8   : > { %3336 = vmatmul.f32.gmra.mxu0 %v3259_v12  ;;  %3544 = vmatmul.f32.gmra.mxu1 %v3259_v12  ;;  %v1822_v15 = vadd.f32 %v8877_v13, %v1608_v59  ;;  %v8882_v13 = vld [vmem:[#allocation66_spill] sm:$0xff] }
 0x3d9   : > { %v2716_v18 = vadd.f32 %v7009_v1, %v2676_v30  ;;  %v2947_v30 = vld [vmem:[%s8643_s6 + $0x58] sm:$0xff] }
 0x3da   : > { %v2151_v37 = vpop.f32.mrf.mxu3  ;;  %3134 = vmatpush.msrb.mxu3 %v2947_v30 }
 0x3db   : > { %v2752_v29 = vmax.f32 %v2716_v18, 0.0  ;;  %v2249_v33 = vadd.f32 %v2151_v37, %v2035_v6  ;;  %v8880_v18 = vld [vmem:[#allocation82_spill] sm:$0xff] }
 0x3dc   : > { %v7085_v28 = vpop.f32.mrf.mxu1  ;;  %v2036_v40 = vadd.f32 %v8880_v18, %v1822_v15  ;;  %v8885_v18 = vld [vmem:[#allocation85_spill] sm:$0xff] }
 0x3dd   : > { %v2788_v16 = vmul.f32 %v2752_v29, %v8876_v49  ;;  %v2463_v17 = vadd.f32 %v6679_v26, %v2249_v33  ;;  %v8879_v26 = vld [vmem:[#allocation45_spill] sm:$0xff]  ;;  %v7100_v37 = vpop.f32.mrf.mxu0 }
 0x3de   : > { %v2957_v60 = vld [vmem:[#allocation3 + $0x36] sm:$0xff]  ;;  %v1609_v38 = vadd.f32 %v8879_v26, %v8878_v63  ;;  %v8881_v49 = vld [vmem:[#allocation9_spill] sm:$0xff]  ;;  %v8883_v26 = vld [vmem:[#allocation112_spill] sm:$0xff] }
 0x3df   : > { %v3260_v12 = vld [vmem:[#allocation3 + $0x37] sm:$0xff]  ;;  %2868 = vst [vmem:[#allocation3 + $0x40] sm:$0xff] %v2788_v16  ;;  %v2677_v7 = vadd.f32 %v6753_v27, %v2463_v17  ;;  %2201 = vmatmul.f32.gmra.mxu3 %v2088_v50  ;;  %3036 = vmatmul.f32.gmra.mxu2 %v2957_v60  ;;  %v2089_v60 = vld [vmem:[#allocation2 + $0xe9] sm:$0xff]  ;;  %v7111_v30 = vpop.f32.mrf.mxu2 }
 0x3e0   : > { %3339 = vmatmul.f32.gmra.mxu0 %v3260_v12  ;;  %3547 = vmatmul.f32.gmra.mxu1 %v3260_v12  ;;  %v1823_v50 = vadd.f32 %v8882_v13, %v1609_v38 }
 0x3e1   : > { %v2717_v59 = vadd.f32 %v7009_v1, %v2677_v7  ;;  %v5186_v7 = vld [vmem:[%s8643_s6 + $0x258] sm:$0xff] }
 0x3e2   : > { %v2154_v6 = vpop.f32.mrf.mxu3  ;;  %3740 = vmatpush.msrb.mxu2 %v5186_v7  ;;  %v8889_v7 = vld [vmem:[#allocation47_spill] sm:$0xff] }
 0x3e3   : > { %v2753_v27 = vmax.f32 %v2717_v59, 0.0  ;;  %v2250_v29 = vadd.f32 %v2154_v6, %v2036_v40  ;;  %v2037_v40 = vadd.f32 %v8885_v18, %v1823_v50 }
 0x3e4   : > { %v7102_v33 = vpop.f32.mrf.mxu1 }
 0x3e5   : > { %v2789_v16 = vmul.f32 %v2753_v27, %v8881_v49  ;;  %v2464_v17 = vadd.f32 %v6689_v21, %v2250_v29  ;;  %v8884_v21 = vld [vmem:[#allocation46_spill] sm:$0xff]  ;;  %v7119_v49 = vpop.f32.mrf.mxu0 }
 0x3e6   : > { %v2958_v12 = vld [vmem:[#allocation3 + $0x3e] sm:$0xff]  ;;  %v1610_v59 = vadd.f32 %v8884_v21, %v8883_v26 }
 0x3e7   : > { %v3261_v63 = vld [vmem:[#allocation3 + $0x3f] sm:$0xff]  ;;  %2869 = vst [vmem:[#allocation3 + $0x48] sm:$0xff] %v2789_v16  ;;  %v2678_v15 = vadd.f32 %v6760_v32, %v2464_v17  ;;  %2204 = vmatmul.f32.gmra.mxu3 %v2089_v60  ;;  %3039 = vmatmul.f32.gmra.mxu2 %v2958_v12 }
 0x3e8   : > { %3342 = vmatmul.f32.gmra.mxu0 %v3261_v63  ;;  %3550 = vmatmul.f32.gmra.mxu1 %v3261_v63  ;;  %v8886_v16 = vld [vmem:[#allocation12_spill] sm:$0xff]  ;;  %v2090_v63 = vld [vmem:[#allocation2 + $0xf1] sm:$0xff] }
 0x3e9   : > { %v2718_v38 = vadd.f32 %v7009_v1, %v2678_v15  ;;  %v8887_v60 = vld [vmem:[#allocation68_spill] sm:$0xff]  ;;  %v8888_v15 = vld [vmem:[#allocation114_spill] sm:$0xff] }
 0x3ea   : > { %v2157_v6 = vpop.f32.mrf.mxu3  ;;  %v1824_v12 = vadd.f32 %v8887_v60, %v1610_v59  ;;  %v8892_v60 = vld [vmem:[#allocation71_spill] sm:$0xff] }
 0x3eb   : > { %v2754_v32 = vmax.f32 %v2718_v38, 0.0  ;;  %v2251_v27 = vadd.f32 %v2157_v6, %v2037_v40  ;;  %v1611_v38 = vadd.f32 %v8889_v7, %v8888_v15  ;;  %v8890_v40 = vld [vmem:[#allocation88_spill] sm:$0xff] }
 0x3ec   : > { %v7117_v29 = vpop.f32.mrf.mxu1  ;;  %v2038_v6 = vadd.f32 %v8890_v40, %v1824_v12 }
 0x3ed   : > { %v2790_v17 = vmul.f32 %v2754_v32, %v8886_v16  ;;  %v2465_v13 = vadd.f32 %v6699_v31, %v2251_v27  ;;  %v7129_v31 = vpop.f32.mrf.mxu2  ;;  %v7136_v7 = vpop.f32.mrf.mxu0 }
 0x3ee   : > { %v2959_v26 = vld [vmem:[#allocation3 + $0x46] sm:$0xff]  ;;  %8893 = vst [vmem:[#allocation55_spill] sm:$0xff] %v7136_v7  ;;  %v2094_v7 = vld [vmem:[#allocation2 + $0x111] sm:$0xff] }
 0x3ef   : > { %v3262_v21 = vld [vmem:[#allocation3 + $0x47] sm:$0xff]  ;;  %2870 = vst [vmem:[#allocation3 + $0x50] sm:$0xff] %v2790_v17  ;;  %v2679_v50 = vadd.f32 %v6772_v36, %v2465_v13  ;;  %2207 = vmatmul.f32.gmra.mxu3 %v2090_v63  ;;  %3042 = vmatmul.f32.gmra.mxu2 %v2959_v26  ;;  %v8891_v17 = vld [vmem:[#allocation14_spill] sm:$0xff]  ;;  %v1825_v63 = vadd.f32 %v8892_v60, %v1611_v38  ;;  %v2091_v26 = vld [vmem:[#allocation2 + $0xf9] sm:$0xff] }
 0x3f0   : > { %3345 = vmatmul.f32.gmra.mxu0 %v3262_v21  ;;  %3553 = vmatmul.f32.gmra.mxu1 %v3262_v21  ;;  %v8894_v38 = vld [vmem:[#allocation116_spill] sm:$0xff] }
 0x3f1   : > { %v2719_v18 = vadd.f32 %v7009_v1, %v2679_v50  ;;  %v2946_v50 = vld [vmem:[%s8643_s6 + $0x50] sm:$0xff]  ;;  %v8897_v60 = vld [vmem:[#allocation16_spill] sm:$0xff] }
 0x3f2   : > { %v2160_v59 = vpop.f32.mrf.mxu3  ;;  %3135 = vmatpush.msrb.mxu3 %v2946_v50  ;;  %v8900_v50 = vld [vmem:[#allocation118_spill] sm:$0xff] }
 0x3f3   : > { %v2755_v32 = vmax.f32 %v2719_v18, 0.0  ;;  %v2252_v27 = vadd.f32 %v2160_v59, %v2038_v6  ;;  %v8895_v18 = vld [vmem:[#allocation48_spill] sm:$0xff]  ;;  %v8896_v59 = vld [vmem:[#allocation91_spill] sm:$0xff] }
 0x3f4   : > { %v7131_v16 = vpop.f32.mrf.mxu1  ;;  %v1612_v40 = vadd.f32 %v8895_v18, %v8894_v38  ;;  %v2092_v38 = vld [vmem:[#allocation2 + $0x101] sm:$0xff] }
 0x3f5   : > { %v2791_v36 = vmul.f32 %v2755_v32, %v8891_v17  ;;  %v2466_v13 = vadd.f32 %v6709_v9, %v2252_v27  ;;  %v5185_v9 = vld [vmem:[%s8643_s6 + $0x250] sm:$0xff]  ;;  %v2039_v32 = vadd.f32 %v8896_v59, %v1825_v63  ;;  %v7159_v59 = vpop.f32.mrf.mxu0 }
 0x3f6   : > { %v2960_v21 = vld [vmem:[#allocation3 + $0x4e] sm:$0xff]  ;;  %3741 = vmatpush.msrb.mxu2 %v5185_v9  ;;  %v1826_v47 = vadd.f32 %v8899_v34, %v1612_v40  ;;  %8902 = vst [vmem:[#allocation40_spill] sm:$0xff] %v7159_v59 }
 0x3f7   : > { %v3263_v15 = vld [vmem:[#allocation3 + $0x4f] sm:$0xff]  ;;  %2871 = vst [vmem:[#allocation3 + $0x58] sm:$0xff] %v2791_v36  ;;  %v2680_v12 = vadd.f32 %v6781_v4, %v2466_v13  ;;  %2210 = vmatmul.f32.gmra.mxu3 %v2091_v26  ;;  %3045 = vmatmul.f32.gmra.mxu2 %v2960_v21  ;;  %v7149_v36 = vpop.f32.mrf.mxu2  ;;  %v8898_v21 = vld [vmem:[#allocation132_spill] sm:$0xff] }
 0x3f8   : > { %3348 = vmatmul.f32.gmra.mxu0 %v3263_v15  ;;  %3556 = vmatmul.f32.gmra.mxu1 %v3263_v15  ;;  %v8901_v9 = vld [vmem:[#allocation49_spill] sm:$0xff] }
 0x3f9   : > { %v2720_v6 = vadd.f32 %v7009_v1, %v2680_v12 }
 0x3fa   : > { %v2163_v4 = vpop.f32.mrf.mxu3 }
 0x3fb   : > { %v2756_v27 = vmax.f32 %v2720_v6, 0.0  ;;  %v2253_v17 = vadd.f32 %v2163_v4, %v2039_v32  ;;  %v1613_v6 = vadd.f32 %v8901_v9, %v8900_v50  ;;  %v8903_v4 = vld [vmem:[#allocation95_spill] sm:$0xff]  ;;  %v2093_v50 = vld [vmem:[#allocation2 + $0x109] sm:$0xff] }
 0x3fc   : > { %v7151_v13 = vpop.f32.mrf.mxu1 }
 0x3fd   : > { %v2792_v26 = vmul.f32 %v2756_v27, %v8897_v60  ;;  %v2467_v15 = vadd.f32 %v8898_v21, %v2253_v17  ;;  %v2040_v27 = vadd.f32 %v8903_v4, %v1826_v47  ;;  %v8905_v21 = vld [vmem:[#allocation134_spill] sm:$0xff]  ;;  %v2945_v47 = vld [vmem:[%s8643_s6 + $0x48] sm:$0xff] }
 0x3fe   : > { %v2961_v18 = vld [vmem:[#allocation3 + $0x56] sm:$0xff]  ;;  %3136 = vmatpush.msrb.mxu3 %v2945_v47 }
 0x3ff   : > { %v3264_v12 = vld [vmem:[#allocation3 + $0x57] sm:$0xff]  ;;  %2872 = vst [vmem:[#allocation3 + $0x60] sm:$0xff] %v2792_v26  ;;  %v2681_v63 = vadd.f32 %v6791_v61, %v2467_v15  ;;  %2213 = vmatmul.f32.gmra.mxu3 %v2092_v38  ;;  %3048 = vmatmul.f32.gmra.mxu2 %v2961_v18  ;;  %v8906_v38 = vld [vmem:[#allocation77_spill] sm:$0xff] }
 0x400   : > { %3351 = vmatmul.f32.gmra.mxu0 %v3264_v12  ;;  %3559 = vmatmul.f32.gmra.mxu1 %v3264_v12  ;;  %v8904_v26 = vld [vmem:[#allocation18_spill] sm:$0xff]  ;;  %v1827_v18 = vadd.f32 %v8906_v38, %v1613_v6  ;;  %v7168_v12 = vpop.f32.mrf.mxu2 }
 0x401   : > { %v2721_v32 = vadd.f32 %v7009_v1, %v2681_v63  ;;  %8907 = vst [vmem:[#allocation65_spill] sm:$0xff] %v7168_v12  ;;  %v8909_v4 = vld [vmem:[#allocation50_spill] sm:$0xff] }
 0x402   : > { %v2166_v34 = vpop.f32.mrf.mxu3 }
 0x403   : > { %v2757_v40 = vmax.f32 %v2721_v32, 0.0  ;;  %v2254_v17 = vadd.f32 %v2166_v34, %v2040_v27  ;;  %v8908_v32 = vld [vmem:[#allocation120_spill] sm:$0xff]  ;;  %v8910_v34 = vld [vmem:[#allocation98_spill] sm:$0xff] }
 0x404   : > { %v7163_v60 = vpop.f32.mrf.mxu1  ;;  %v1614_v27 = vadd.f32 %v8909_v4, %v8908_v32 }
 0x405   : > { %v2793_v61 = vmul.f32 %v2757_v40, %v8904_v26  ;;  %v2468_v15 = vadd.f32 %v8905_v21, %v2254_v17  ;;  %v2041_v40 = vadd.f32 %v8910_v34, %v1827_v18  ;;  %v7178_v26 = vpop.f32.mrf.mxu0  ;;  %v8917_v34 = vld [vmem:[#allocation51_spill] sm:$0xff] }
 0x406   : > { %v2962_v9 = vld [vmem:[#allocation3 + $0x5e] sm:$0xff]  ;;  %8911 = vst [vmem:[#allocation4_spill] sm:$0xff] %v7178_v26 }
 0x407   : > { %v3265_v59 = vld [vmem:[#allocation3 + $0x5f] sm:$0xff]  ;;  %2873 = vst [vmem:[#allocation3 + $0x68] sm:$0xff] %v2793_v61  ;;  %v2682_v63 = vadd.f32 %v6801_v14, %v2468_v15  ;;  %2216 = vmatmul.f32.gmra.mxu3 %v2093_v50  ;;  %3051 = vmatmul.f32.gmra.mxu2 %v2962_v9 }
 0x408   : > { %3354 = vmatmul.f32.gmra.mxu0 %v3265_v59  ;;  %3562 = vmatmul.f32.gmra.mxu1 %v3265_v59  ;;  %v8912_v15 = vld [vmem:[#allocation20_spill] sm:$0xff]  ;;  %v8914_v59 = vld [vmem:[#allocation79_spill] sm:$0xff]  ;;  %v7189_v47 = vpop.f32.mrf.mxu2 }
 0x409   : > { %v2722_v6 = vadd.f32 %v7009_v1, %v2682_v63  ;;  %v8913_v50 = vld [vmem:[#allocation136_spill] sm:$0xff]  ;;  %v1828_v12 = vadd.f32 %v8914_v59, %v1614_v27  ;;  %v5184_v63 = vld [vmem:[%s8643_s6 + $0x248] sm:$0xff]  ;;  %8915 = vst [vmem:[#allocation56_spill] sm:$0xff] %v7189_v47 }
 0x40a   : > { %v2169_v17 = vpop.f32.mrf.mxu3  ;;  %3742 = vmatpush.msrb.mxu2 %v5184_v63  ;;  %v2095_v47 = vld [vmem:[#allocation2 + $0x119] sm:$0xff] }
 0x40b   : > { %v2758_v14 = vmax.f32 %v2722_v6, 0.0  ;;  %v2255_v61 = vadd.f32 %v2169_v17, %v2041_v40  ;;  %v8916_v6 = vld [vmem:[#allocation122_spill] sm:$0xff]  ;;  %v8918_v17 = vld [vmem:[#allocation140_spill] sm:$0xff] }
 0x40c   : > { %v7180_v21 = vpop.f32.mrf.mxu1  ;;  %v1615_v40 = vadd.f32 %v8917_v34, %v8916_v6  ;;  %v8923_v63 = vld [vmem:[#allocation124_spill] sm:$0xff] }
 0x40d   : > { %v2794_v38 = vmul.f32 %v2758_v14, %v8912_v15  ;;  %v2469_v9 = vadd.f32 %v8913_v50, %v2255_v61  ;;  %v2042_v14 = vadd.f32 %v8918_v17, %v1828_v12  ;;  %v7195_v15 = vpop.f32.mrf.mxu0 }
 0x40e   : > { %v2963_v32 = vld [vmem:[#allocation3 + $0x66] sm:$0xff]  ;;  %8919 = vst [vmem:[#allocation41_spill] sm:$0xff] %v7195_v15 }
 0x40f   : > { %v3266_v4 = vld [vmem:[#allocation3 + $0x67] sm:$0xff]  ;;  %2874 = vst [vmem:[#allocation3 + $0x70] sm:$0xff] %v2794_v38  ;;  %v2683_v18 = vadd.f32 %v6809_v56, %v2469_v9  ;;  %2219 = vmatmul.f32.gmra.mxu3 %v2094_v7  ;;  %3054 = vmatmul.f32.gmra.mxu2 %v2963_v32  ;;  %v8920_v38 = vld [vmem:[#allocation22_spill] sm:$0xff] }
 0x410   : > { %3357 = vmatmul.f32.gmra.mxu0 %v3266_v4  ;;  %3565 = vmatmul.f32.gmra.mxu1 %v3266_v4  ;;  %v8921_v9 = vld [vmem:[#allocation138_spill] sm:$0xff]  ;;  %v8922_v4 = vld [vmem:[#allocation81_spill] sm:$0xff] }
 0x411   : > { %v2723_v27 = vadd.f32 %v7009_v1, %v2683_v18  ;;  %v1829_v26 = vadd.f32 %v8922_v4, %v1615_v40  ;;  %v2944_v18 = vld [vmem:[%s8643_s6 + $0x40] sm:$0xff]  ;;  %v8925_v40 = vld [vmem:[#allocation143_spill] sm:$0xff] }
 0x412   : > { %v2172_v61 = vpop.f32.mrf.mxu3  ;;  %3137 = vmatpush.msrb.mxu3 %v2944_v18  ;;  %v8929_v4 = vld [vmem:[#allocation84_spill] sm:$0xff] }
 0x413   : > { %v2759_v56 = vmax.f32 %v2723_v27, 0.0  ;;  %v2256_v7 = vadd.f32 %v2172_v61, %v2042_v14  ;;  %v8924_v27 = vld [vmem:[#allocation52_spill] sm:$0xff]  ;;  %v2043_v61 = vadd.f32 %v8925_v40, %v1829_v26 }
 0x414   : > { %v7199_v32 = vpop.f32.mrf.mxu1  ;;  %v1616_v17 = vadd.f32 %v8924_v27, %v8923_v63  ;;  %v2096_v15 = vld [vmem:[#allocation2 + $0x121] sm:$0xff] }
 0x415   : > { %v2795_v50 = vmul.f32 %v2759_v56, %v8920_v38  ;;  %v2470_v59 = vadd.f32 %v8921_v9, %v2256_v7  ;;  %v7210_v56 = vpop.f32.mrf.mxu2  ;;  %v8927_v38 = vld [vmem:[#allocation24_spill] sm:$0xff]  ;;  %v8928_v9 = vld [vmem:[#allocation142_spill] sm:$0xff] }
 0x416   : > { %v2964_v6 = vld [vmem:[#allocation3 + $0x6e] sm:$0xff]  ;;  %8926 = vst [vmem:[#allocation69_spill] sm:$0xff] %v7210_v56  ;;  %v5183_v18 = vld [vmem:[%s8643_s6 + $0x240] sm:$0xff] }
 0x417   : > { %v3267_v34 = vld [vmem:[#allocation3 + $0x6f] sm:$0xff]  ;;  %2875 = vst [vmem:[#allocation3 + $0x78] sm:$0xff] %v2795_v50  ;;  %v2684_v12 = vadd.f32 %v6825_v0, %v2470_v59  ;;  %2222 = vmatmul.f32.gmra.mxu3 %v2095_v47  ;;  %3057 = vmatmul.f32.gmra.mxu2 %v2964_v6  ;;  %v1830_v6 = vadd.f32 %v8929_v4, %v1616_v17  ;;  %v8935_v4 = vld [vmem:[#allocation87_spill] sm:$0xff] }
 0x418   : > { %3360 = vmatmul.f32.gmra.mxu0 %v3267_v34  ;;  %3568 = vmatmul.f32.gmra.mxu1 %v3267_v34  ;;  %v7215_v34 = vpop.f32.mrf.mxu0  ;;  %v8932_v17 = vld [vmem:[#allocation53_spill] sm:$0xff] }
 0x419   : > { %v2724_v14 = vadd.f32 %v7009_v1, %v2684_v12  ;;  %8930 = vst [vmem:[#allocation5_spill] sm:$0xff] %v7215_v34  ;;  %3743 = vmatpush.msrb.mxu2 %v5183_v18  ;;  %v8936_v18 = vld [vmem:[#allocation128_spill] sm:$0xff] }
 0x41a   : > { %v2175_v7 = vpop.f32.mrf.mxu3 }
 0x41b   : > { %v2760_v0 = vmax.f32 %v2724_v14, 0.0  ;;  %v2257_v47 = vadd.f32 %v2175_v7, %v2043_v61  ;;  %v8931_v14 = vld [vmem:[#allocation126_spill] sm:$0xff]  ;;  %v2044_v7 = vadd.f32 %v6779_v54, %v1830_v6  ;;  %v2943_v6 = vld [vmem:[%s8643_s6 + $0x38] sm:$0xff] }
 0x41c   : > { %v7218_v12 = vpop.f32.mrf.mxu1  ;;  %v1617_v40 = vadd.f32 %v8932_v17, %v8931_v14  ;;  %v8937_v14 = vld [vmem:[#allocation54_spill] sm:$0xff]  ;;  %3138 = vmatpush.msrb.mxu3 %v2943_v6  ;;  %v2941_v6 = vld [vmem:[%s8643_s6 + $0x28] sm:$0xff] }
 0x41d   : > { %v2796_v50 = vmul.f32 %v2760_v0, %v8927_v38  ;;  %v2471_v59 = vadd.f32 %v8928_v9, %v2257_v47  ;;  %v7227_v38 = vpop.f32.mrf.mxu2  ;;  %v8934_v9 = vld [vmem:[#allocation145_spill] sm:$0xff]  ;;  %v1618_v17 = vadd.f32 %v8937_v14, %v8936_v18 }
 0x41e   : > { %v2965_v63 = vld [vmem:[#allocation3 + $0x76] sm:$0xff] }
 0x41f   : > { %v3268_v27 = vld [vmem:[#allocation3 + $0x77] sm:$0xff]  ;;  %2876 = vst [vmem:[#allocation3 + $0x80] sm:$0xff] %v2796_v50  ;;  %v2685_v26 = vadd.f32 %v6847_v53, %v2471_v59  ;;  %2225 = vmatmul.f32.gmra.mxu3 %v2096_v15  ;;  %3060 = vmatmul.f32.gmra.mxu2 %v2965_v63  ;;  %v1831_v63 = vadd.f32 %v8935_v4, %v1617_v40 }
 0x420   : > { %3363 = vmatmul.f32.gmra.mxu0 %v3268_v27  ;;  %3571 = vmatmul.f32.gmra.mxu1 %v3268_v27  ;;  %v8933_v15 = vld [vmem:[#allocation26_spill] sm:$0xff]  ;;  %v7233_v54 = vpop.f32.mrf.mxu0 }
 0x421   : > { %v2725_v61 = vadd.f32 %v7009_v1, %v2685_v26  ;;  %v2097_v27 = vld [vmem:[#allocation2 + $0x129] sm:$0xff] }
 0x422   : > { %v2178_v0 = vpop.f32.mrf.mxu3 }
 0x423   : > { %v2761_v53 = vmax.f32 %v2725_v61, 0.0  ;;  %v2258_v47 = vadd.f32 %v2178_v0, %v2044_v7  ;;  %v8938_v7 = vld [vmem:[#allocation149_spill] sm:$0xff] }
 0x424   : > { %v7241_v61 = vpop.f32.mrf.mxu1  ;;  %v2045_v0 = vadd.f32 %v8938_v7, %v1831_v63  ;;  %v2942_v63 = vld [vmem:[%s8643_s6 + $0x30] sm:$0xff]  ;;  %v8943_v7 = vld [vmem:[#allocation57_spill] sm:$0xff] }
 0x425   : > { %v2797_v50 = vmul.f32 %v2761_v53, %v8933_v15  ;;  %v2472_v59 = vadd.f32 %v8934_v9, %v2258_v47  ;;  %v8939_v47 = vld [vmem:[#allocation28_spill] sm:$0xff]  ;;  %3139 = vmatpush.msrb.mxu3 %v2942_v63 }
 0x426   : > { %v2966_v34 = vld [vmem:[#allocation3 + $0x7e] sm:$0xff] }
 0x427   : > { %v3269_v56 = vld [vmem:[#allocation3 + $0x7f] sm:$0xff]  ;;  %2877 = vst [vmem:[#allocation3 + $0x88] sm:$0xff] %v2797_v50  ;;  %v2686_v26 = vadd.f32 %v6873_v19, %v2472_v59  ;;  %2228 = vmatmul.f32.gmra.mxu3 %v2097_v27  ;;  %3063 = vmatmul.f32.gmra.mxu2 %v2966_v34  ;;  %v8941_v59 = vld [vmem:[#allocation90_spill] sm:$0xff] }
 0x428   : > { %3366 = vmatmul.f32.gmra.mxu0 %v3269_v56  ;;  %3574 = vmatmul.f32.gmra.mxu1 %v3269_v56  ;;  %v8940_v50 = vld [vmem:[#allocation147_spill] sm:$0xff]  ;;  %v1832_v4 = vadd.f32 %v8941_v59, %v1618_v17  ;;  %v7247_v56 = vpop.f32.mrf.mxu2  ;;  %v8944_v59 = vld [vmem:[#allocation29_spill] sm:$0xff] }
 0x429   : > { %v2726_v40 = vadd.f32 %v7009_v1, %v2686_v26  ;;  %v2098_v27 = vld [vmem:[#allocation2 + $0x131] sm:$0xff]  ;;  %3140 = vmatpush.msrb.mxu3 %v2941_v6 }
 0x42a   : > { %v2181_v19 = vpop.f32.mrf.mxu3  ;;  %v5182_v17 = vld [vmem:[%s8643_s6 + $0x238] sm:$0xff] }
 0x42b   : > { %v2762_v34 = vmax.f32 %v2726_v40, 0.0  ;;  %v2259_v53 = vadd.f32 %v2181_v19, %v2045_v0  ;;  %v8942_v40 = vld [vmem:[#allocation130_spill] sm:$0xff]  ;;  %v2046_v19 = vadd.f32 %v6803_v45, %v1832_v4  ;;  %3744 = vmatpush.msrb.mxu2 %v5182_v17  ;;  %v8945_v45 = vld [vmem:[#allocation92_spill] sm:$0xff]  ;;  %v2939_v17 = vld [vmem:[%s8643_s6 + $0x18] sm:$0xff] }
 0x42c   : > { %v1619_v0 = vadd.f32 %v8943_v7, %v8942_v40  ;;  %v8946_v6 = vld [vmem:[#allocation131_spill] sm:$0xff] }
 0x42d   : > { %v2798_v15 = vmul.f32 %v2762_v34, %v8939_v47  ;;  %v2473_v9 = vadd.f32 %v8940_v50, %v2259_v53  ;;  %v7263_v34 = vpop.f32.mrf.mxu1  ;;  %v7265_v53 = vpop.f32.mrf.mxu0 }
 0x42e   : > { %v2967_v18 = vld [vmem:[#allocation3 + $0x86] sm:$0xff]  ;;  %v1833_v4 = vadd.f32 %v8945_v45, %v1619_v0  ;;  %v8947_v0 = vld [vmem:[#allocation59_spill] sm:$0xff] }
 0x42f   : > { %v3270_v14 = vld [vmem:[#allocation3 + $0x87] sm:$0xff]  ;;  %2878 = vst [vmem:[#allocation3 + $0x90] sm:$0xff] %v2798_v15  ;;  %v2687_v26 = vadd.f32 %v6910_v44, %v2473_v9  ;;  %2231 = vmatmul.f32.gmra.mxu3 %v2098_v27  ;;  %3066 = vmatmul.f32.gmra.mxu2 %v2967_v18 }
 0x430   : > { %3369 = vmatmul.f32.gmra.mxu0 %v3270_v14  ;;  %3577 = vmatmul.f32.gmra.mxu1 %v3270_v14  ;;  %v2940_v15 = vld [vmem:[%s8643_s6 + $0x20] sm:$0xff]  ;;  %v7273_v63 = vpop.f32.mrf.mxu2 }
 0x431   : > { %v2727_v44 = vadd.f32 %v7009_v1, %v2687_v26  ;;  %v2099_v14 = vld [vmem:[#allocation2 + $0x139] sm:$0xff]  ;;  %3141 = vmatpush.msrb.mxu3 %v2940_v15 }
 0x432   : > { %v2184_v47 = vpop.f32.mrf.mxu3 }
 0x433   : > { %v2763_v50 = vmax.f32 %v2727_v44, 0.0  ;;  %v2260_v9 = vadd.f32 %v2184_v47, %v2046_v19  ;;  %v1620_v44 = vadd.f32 %v8947_v0, %v8946_v6  ;;  %v2047_v47 = vadd.f32 %v6821_v62, %v1833_v4  ;;  %3142 = vmatpush.msrb.mxu3 %v2939_v17  ;;  %v8951_v0 = vld [vmem:[#allocation133_spill] sm:$0xff] }
 0x435   : > { %v2799_v27 = vmul.f32 %v2763_v50, %v8944_v59  ;;  %v2474_v18 = vadd.f32 %v6797_v51, %v2260_v9  ;;  %v2938_v51 = vld [vmem:[%s8643_s6 + $0x10] sm:$0xff]  ;;  %v7289_v59 = vpop.f32.mrf.mxu1 }
 0x436   : > { %v2968_v26 = vld [vmem:[#allocation3 + $0x8e] sm:$0xff]  ;;  %3143 = vmatpush.msrb.mxu3 %v2938_v51 }
 0x437   : > { %v3271_v40 = vld [vmem:[#allocation3 + $0x8f] sm:$0xff]  ;;  %2879 = vst [vmem:[#allocation3 + $0x98] sm:$0xff] %v2799_v27  ;;  %v2688_v7 = vadd.f32 %v6918_v58, %v2474_v18  ;;  %2234 = vmatmul.f32.gmra.mxu3 %v2099_v14  ;;  %3069 = vmatmul.f32.gmra.mxu2 %v2968_v26  ;;  %v7291_v27 = vpop.f32.mrf.mxu0  ;;  %v2100_v18 = vld [vmem:[#allocation2 + $0x141] sm:$0xff] }
 0x438   : > { %3372 = vmatmul.f32.gmra.mxu0 %v3271_v40  ;;  %3580 = vmatmul.f32.gmra.mxu1 %v3271_v40  ;;  %v2937_v58 = vld [vmem:[%s8643_s6 + $0x8] sm:$0xff]  ;;  %8948 = vst [vmem:[#allocation58_spill] sm:$0xff] %v7291_v27  ;;  %v8949_v14 = vld [vmem:[#allocation30_spill] sm:$0xff] }
 0x439   : > { %v2728_v19 = vadd.f32 %v7009_v1, %v2688_v7  ;;  %v8950_v40 = vld [vmem:[#allocation94_spill] sm:$0xff]  ;;  %3144 = vmatpush.msrb.mxu3 %v2937_v58  ;;  %v2936_v7 = vld [vmem:[%s8643_s6] sm:$0xff]  ;;  %v8956_v27 = vld [vmem:[#allocation97_spill] sm:$0xff] }
 0x43a   : > { %v2187_v15 = vpop.f32.mrf.mxu3  ;;  %v1834_v62 = vadd.f32 %v8950_v40, %v1620_v44  ;;  %v5181_v51 = vld [vmem:[%s8643_s6 + $0x230] sm:$0xff]  ;;  %v8952_v44 = vld [vmem:[#allocation61_spill] sm:$0xff] }
 0x43b   : > { %v2764_v50 = vmax.f32 %v2728_v19, 0.0  ;;  %v2261_v9 = vadd.f32 %v2187_v15, %v2047_v47  ;;  %v1621_v19 = vadd.f32 %v8952_v44, %v8951_v0  ;;  %v8953_v15 = vld [vmem:[#allocation155_spill] sm:$0xff]  ;;  %3145 = vmatpush.msrb.mxu3 %v2936_v7  ;;  %3745 = vmatpush.msrb.mxu2 %v5181_v51 }
 0x43c   : > { %v2048_v58 = vadd.f32 %v8953_v15, %v1834_v62  ;;  %v8957_v7 = vld [vmem:[#allocation135_spill] sm:$0xff] }
 0x43d   : > { %v2800_v45 = vmul.f32 %v2764_v50, %v8949_v14  ;;  %v2475_v26 = vadd.f32 %v6811_v23, %v2261_v9  ;;  %v7303_v23 = vpop.f32.mrf.mxu2  ;;  %v8954_v14 = vld [vmem:[#allocation35_spill] sm:$0xff]  ;;  %v1835_v0 = vadd.f32 %v8956_v27, %v1621_v19 }
 0x43e   : > { %v2969_v4 = vld [vmem:[#allocation3 + $0x96] sm:$0xff] }
 0x43f   : > { %v3272_v17 = vld [vmem:[#allocation3 + $0x97] sm:$0xff]  ;;  %2880 = vst [vmem:[#allocation3 + $0xa0] sm:$0xff] %v2800_v45  ;;  %v2689_v6 = vadd.f32 %v6954_v46, %v2475_v26  ;;  %2237 = vmatmul.f32.gmra.mxu3 %v2100_v18  ;;  %3072 = vmatmul.f32.gmra.mxu2 %v2969_v4  ;;  %v2101_v18 = vld [vmem:[#allocation2 + $0x149] sm:$0xff] }
 0x440   : > { %3375 = vmatmul.f32.gmra.mxu0 %v3272_v17  ;;  %3583 = vmatmul.f32.gmra.mxu1 %v3272_v17  ;;  %v8955_v26 = vld [vmem:[#allocation153_spill] sm:$0xff]  ;;  %v8958_v51 = vld [vmem:[#allocation63_spill] sm:$0xff] }
 0x441   : > { %v2729_v47 = vadd.f32 %v7009_v1, %v2689_v6 }
 0x442   : > { %v2190_v46 = vpop.f32.mrf.mxu3 }
 0x443   : > { %v2765_v50 = vmax.f32 %v2729_v47, 0.0  ;;  %v2262_v9 = vadd.f32 %v2190_v46, %v2048_v58  ;;  %v1622_v47 = vadd.f32 %v8958_v51, %v8957_v7  ;;  %v8959_v58 = vld [vmem:[#allocation158_spill] sm:$0xff] }
 0x444   : > { %v2049_v46 = vadd.f32 %v8959_v58, %v1835_v0  ;;  %v8965_v58 = vld [vmem:[#allocation67_spill] sm:$0xff] }
 0x445   : > { %v2801_v45 = vmul.f32 %v2765_v50, %v8954_v14  ;;  %v2476_v40 = vadd.f32 %v8955_v26, %v2262_v9  ;;  %v7311_v4 = vpop.f32.mrf.mxu0  ;;  %v7313_v17 = vpop.f32.mrf.mxu1  ;;  %v2900_v14 = vld [vmem:[#allocation3 + $0xd] sm:$0xff] }
 0x446   : > { %v2970_v44 = vld [vmem:[#allocation3 + $0x9e] sm:$0xff] }
 0x447   : > { %v3273_v6 = vld [vmem:[#allocation3 + $0x9f] sm:$0xff]  ;;  %2881 = vst [vmem:[#allocation3 + $0xa8] sm:$0xff] %v2801_v45  ;;  %v2690_v62 = vadd.f32 %v6980_v42, %v2476_v40  ;;  %2240 = vmatmul.f32.gmra.mxu3 %v2101_v18  ;;  %3075 = vmatmul.f32.gmra.mxu2 %v2970_v44 }
 0x448   : > { %3378 = vmatmul.f32.gmra.mxu0 %v3273_v6  ;;  %3586 = vmatmul.f32.gmra.mxu1 %v3273_v6  ;;  %v8960_v45 = vld [vmem:[#allocation31_spill] sm:$0xff]  ;;  %v8961_v42 = vld [vmem:[#allocation156_spill] sm:$0xff] }
 0x449   : > { %v2730_v15 = vadd.f32 %v7009_v1, %v2690_v62  ;;  %v8963_v6 = vld [vmem:[#allocation100_spill] sm:$0xff] }
 0x44a   : > { %v2193_v50 = vpop.f32.mrf.mxu3  ;;  %v7321_v9 = vpop.f32.mrf.mxu2  ;;  %v1836_v7 = vadd.f32 %v8963_v6, %v1622_v47  ;;  %v2901_v6 = vld [vmem:[#allocation3 + $0x15] sm:$0xff] }
 0x44b   : > { %v2766_v27 = vmax.f32 %v2730_v15, 0.0  ;;  %v2263_v19 = vadd.f32 %v2193_v50, %v2049_v46  ;;  %v8964_v15 = vld [vmem:[#allocation137_spill] sm:$0xff] }
 0x44c   : > { %v1623_v46 = vadd.f32 %v8965_v58, %v8964_v15 }
 0x44d   : > { %v2802_v26 = vmul.f32 %v2766_v27, %v8960_v45  ;;  %v2477_v18 = vadd.f32 %v8961_v42, %v2263_v19  ;;  %v7325_v40 = vpop.f32.mrf.mxu0  ;;  %v7327_v44 = vpop.f32.mrf.mxu1  ;;  %v2050_v27 = vadd.f32 %v6912_v24, %v1836_v7  ;;  %v5180_v7 = vld [vmem:[%s8643_s6 + $0x228] sm:$0xff] }
 0x44e   : > { %8962 = vst [vmem:[#allocation42_spill] sm:$0xff] %v7325_v40  ;;  %v2971_v51 = vld [vmem:[#allocation3 + $0xa6] sm:$0xff]  ;;  %3746 = vmatpush.msrb.mxu2 %v5180_v7 }
 0x44f   : > { %v3274_v62 = vld [vmem:[#allocation3 + $0xa7] sm:$0xff]  ;;  %2882 = vst [vmem:[#allocation3 + $0xb0] sm:$0xff] %v2802_v26  ;;  %v2691_v0 = vadd.f32 %v7003_v41, %v2477_v18  ;;  %3078 = vmatmul.f32.gmra.mxu2 %v2971_v51  ;;  %3146 = vmatmul.f32.vlgmr.msrb.gmra.mxu3 %v2900_v14  ;;  %v8968_v41 = vld [vmem:[#allocation159_spill] sm:$0xff] }
 0x450   : > { %3381 = vmatmul.f32.gmra.mxu0 %v3274_v62  ;;  %3589 = vmatmul.f32.gmra.mxu1 %v3274_v62  ;;  %v8967_v26 = vld [vmem:[#allocation32_spill] sm:$0xff]  ;;  %v8971_v62 = vld [vmem:[#allocation102_spill] sm:$0xff]  ;;  %v8978_v7 = vld [vmem:[#allocation141_spill] sm:$0xff] }
 0x451   : > { %v2731_v50 = vadd.f32 %v7009_v1, %v2691_v0  ;;  %v1837_v15 = vadd.f32 %v8971_v62, %v1623_v46  ;;  %v8976_v62 = vld [vmem:[#allocation162_spill] sm:$0xff] }
 0x452   : > { %v2196_v19 = vpop.f32.mrf.mxu3  ;;  %v7335_v45 = vpop.f32.mrf.mxu2 }
 0x453   : > { %8966 = vst [vmem:[#allocation72_spill] sm:$0xff] %v7335_v45  ;;  %v2767_v47 = vmax.f32 %v2731_v50, 0.0  ;;  %v2264_v42 = vadd.f32 %v2196_v19, %v2050_v27  ;;  %v8972_v50 = vld [vmem:[#allocation139_spill] sm:$0xff]  ;;  %v8973_v27 = vld [vmem:[#allocation70_spill] sm:$0xff] }
 0x454   : > { %v1624_v19 = vadd.f32 %v8973_v27, %v8972_v50 }
 0x455   : > { %v2803_v40 = vmul.f32 %v2767_v47, %v8967_v26  ;;  %v2478_v18 = vadd.f32 %v8968_v41, %v2264_v42  ;;  %v7339_v14 = vpop.f32.mrf.mxu0  ;;  %v7341_v51 = vpop.f32.mrf.mxu1  ;;  %v8974_v42 = vld [vmem:[#allocation163_spill] sm:$0xff] }
 0x456   : > { %8969 = vst [vmem:[#allocation6_spill] sm:$0xff] %v7339_v14  ;;  %v2972_v58 = vld [vmem:[#allocation3 + $0xae] sm:$0xff]  ;;  %v2051_v46 = vadd.f32 %v8974_v42, %v1837_v15 }
 0x457   : > { %8970 = vst [vmem:[#allocation60_spill] sm:$0xff] %v7341_v51  ;;  %v3275_v0 = vld [vmem:[#allocation3 + $0xaf] sm:$0xff]  ;;  %v2692_v24 = vadd.f32 %v7021_v22, %v2478_v18  ;;  %3081 = vmatmul.f32.gmra.mxu2 %v2972_v58  ;;  %3149 = vmatmul.f32.gmra.mxu3 %v2901_v6  ;;  %v8977_v51 = vld [vmem:[#allocation103_spill] sm:$0xff] }
 0x458   : > { %2883 = vst [vmem:[#allocation3 + $0xb8] sm:$0xff] %v2803_v40  ;;  %3384 = vmatmul.f32.gmra.mxu0 %v3275_v0  ;;  %3592 = vmatmul.f32.gmra.mxu1 %v3275_v0  ;;  %v8975_v6 = vld [vmem:[#allocation38_spill] sm:$0xff]  ;;  %v1838_v50 = vadd.f32 %v8977_v51, %v1624_v19 }
 0x459   : > { %v2732_v47 = vadd.f32 %v7009_v1, %v2692_v24  ;;  %v2902_v24 = vld [vmem:[#allocation3 + $0x1d] sm:$0xff] }
 0x45a   : > { %v2199_v26 = vpop.f32.mrf.mxu3  ;;  %v7352_v40 = vpop.f32.mrf.mxu2 }
 0x45b   : > { %v2768_v22 = vmax.f32 %v2732_v47, 0.0  ;;  %v2265_v41 = vadd.f32 %v2199_v26, %v2051_v46  ;;  %v8979_v47 = vld [vmem:[#allocation73_spill] sm:$0xff]  ;;  %v2052_v26 = vadd.f32 %v6978_v25, %v1838_v50  ;;  %v5179_v50 = vld [vmem:[%s8643_s6 + $0x220] sm:$0xff] }
 0x45c   : > { %v1625_v42 = vadd.f32 %v8979_v47, %v8978_v7  ;;  %v2903_v7 = vld [vmem:[#allocation3 + $0x25] sm:$0xff]  ;;  %3747 = vmatpush.msrb.mxu2 %v5179_v50 }
 0x45d   : > { %v2804_v18 = vmul.f32 %v2768_v22, %v8975_v6  ;;  %v2479_v58 = vadd.f32 %v8976_v62, %v2265_v41  ;;  %v7356_v14 = vpop.f32.mrf.mxu0  ;;  %v7358_v0 = vpop.f32.mrf.mxu1  ;;  %v8980_v6 = vld [vmem:[#allocation34_spill] sm:$0xff]  ;;  %v8983_v47 = vld [vmem:[#allocation76_spill] sm:$0xff] }
 0x45e   : > { %v8987_v50 = vld [vmem:[#allocation80_spill] sm:$0xff] }
 0x45f   : > { %v2973_v27 = vld [vmem:[#allocation3 + $0xb6] sm:$0xff]  ;;  %2884 = vst [vmem:[#allocation3 + $0xc0] sm:$0xff] %v2804_v18  ;;  %v2693_v15 = vadd.f32 %v7036_v20, %v2479_v58  ;;  %3152 = vmatmul.f32.gmra.mxu3 %v2902_v24 }
 0x460   : > { %v3276_v45 = vld [vmem:[#allocation3 + $0xb7] sm:$0xff]  ;;  %3084 = vmatmul.f32.gmra.mxu2 %v2973_v27 }
 0x461   : > { %3387 = vmatmul.f32.gmra.mxu0 %v3276_v45  ;;  %3595 = vmatmul.f32.gmra.mxu1 %v3276_v45  ;;  %v2733_v46 = vadd.f32 %v7009_v1, %v2693_v15  ;;  %v8981_v45 = vld [vmem:[#allocation105_spill] sm:$0xff] }
 0x462   : > { %v2202_v22 = vpop.f32.mrf.mxu3  ;;  %v7366_v41 = vpop.f32.mrf.mxu2  ;;  %v1839_v27 = vadd.f32 %v8981_v45, %v1625_v42 }
 0x463   : > { %v2769_v51 = vmax.f32 %v2733_v46, 0.0  ;;  %v2266_v19 = vadd.f32 %v2202_v22, %v2052_v26 }
 0x464   : > { %v2053_v42 = vadd.f32 %v7012_v10, %v1839_v27  ;;  %v8986_v27 = vld [vmem:[#allocation146_spill] sm:$0xff] }
 0x465   : > { %v2805_v18 = vmul.f32 %v2769_v51, %v8980_v6  ;;  %v2480_v20 = vadd.f32 %v6957_v11, %v2266_v19  ;;  %v7370_v62 = vpop.f32.mrf.mxu0  ;;  %v7372_v58 = vpop.f32.mrf.mxu1  ;;  %v8982_v11 = vld [vmem:[#allocation144_spill] sm:$0xff]  ;;  %v8984_v6 = vld [vmem:[#allocation33_spill] sm:$0xff] }
 0x466   : > { %v2974_v24 = vld [vmem:[#allocation3 + $0xbe] sm:$0xff]  ;;  %v1626_v46 = vadd.f32 %v8983_v47, %v8982_v11  ;;  %v1627_v47 = vadd.f32 %v8987_v50, %v8986_v27  ;;  %v2905_v27 = vld [vmem:[#allocation3 + $0x35] sm:$0xff] }
 0x467   : > { %v3277_v15 = vld [vmem:[#allocation3 + $0xbf] sm:$0xff]  ;;  %2885 = vst [vmem:[#allocation3 + $0xc8] sm:$0xff] %v2805_v18  ;;  %v2694_v25 = vadd.f32 %v7053_v57, %v2480_v20  ;;  %3155 = vmatmul.f32.gmra.mxu3 %v2903_v7 }
 0x468   : > { %3087 = vmatmul.f32.gmra.mxu2 %v2974_v24  ;;  %v8985_v7 = vld [vmem:[#allocation107_spill] sm:$0xff] }
 0x469   : > { %3390 = vmatmul.f32.gmra.mxu0 %v3277_v15  ;;  %3598 = vmatmul.f32.gmra.mxu1 %v3277_v15  ;;  %v2734_v26 = vadd.f32 %v7009_v1, %v2694_v25  ;;  %v1840_v15 = vadd.f32 %v8985_v7, %v1626_v46  ;;  %v2904_v1 = vld [vmem:[#allocation3 + $0x2d] sm:$0xff]  ;;  %v8991_v50 = vld [vmem:[#allocation83_spill] sm:$0xff] }
 0x46a   : > { %v2205_v22 = vpop.f32.mrf.mxu3  ;;  %v7383_v51 = vpop.f32.mrf.mxu2 }
 0x46b   : > { %v2770_v57 = vmax.f32 %v2734_v26, 0.0  ;;  %v2267_v19 = vadd.f32 %v2205_v22, %v2053_v42  ;;  %v2054_v26 = vadd.f32 %v7030_v55, %v1840_v15  ;;  %v5178_v15 = vld [vmem:[%s8643_s6 + $0x218] sm:$0xff] }
 0x46c   : > { %3748 = vmatpush.msrb.mxu2 %v5178_v15  ;;  %v8995_v15 = vld [vmem:[#allocation86_spill] sm:$0xff] }
 0x46d   : > { %v2806_v18 = vmul.f32 %v2770_v57, %v8984_v6  ;;  %v2481_v20 = vadd.f32 %v6997_v5, %v2267_v19  ;;  %v7387_v45 = vpop.f32.mrf.mxu0  ;;  %v7389_v24 = vpop.f32.mrf.mxu1  ;;  %v7398_v5 = vld [vmem:[%s8642_s5] ss:$0 sm:$0xff]  ;;  %v8988_v19 = vld [vmem:[#allocation39_spill] sm:$0xff] }
 0x46e   : > { %v2975_v11 = vld [vmem:[#allocation3 + $0xc6] sm:$0xff] }
 0x46f   : > { %v3278_v25 = vld [vmem:[#allocation3 + $0xc7] sm:$0xff]  ;;  %2886 = vst [vmem:[#allocation3 + $0xd0] sm:$0xff] %v2806_v18  ;;  %v2695_v10 = vadd.f32 %v7070_v2, %v2481_v20  ;;  %3158 = vmatmul.f32.gmra.mxu3 %v2904_v1 }
 0x470   : > { %3090 = vmatmul.f32.gmra.mxu2 %v2975_v11  ;;  %v8989_v11 = vld [vmem:[#allocation109_spill] sm:$0xff] }
 0x471   : > { %3393 = vmatmul.f32.gmra.mxu0 %v3278_v25  ;;  %3601 = vmatmul.f32.gmra.mxu1 %v3278_v25  ;;  %v2735_v46 = vadd.f32 %v7398_v5, %v2695_v10  ;;  %v1841_v1 = vadd.f32 %v8989_v11, %v1627_v47 }
 0x472   : > { %v2208_v42 = vpop.f32.mrf.mxu3  ;;  %v7402_v22 = vpop.f32.mrf.mxu2 }
 0x473   : > { %v2771_v2 = vmax.f32 %v2735_v46, 0.0  ;;  %v2268_v57 = vadd.f32 %v2208_v42, %v2054_v26  ;;  %v2055_v47 = vadd.f32 %v7051_v3, %v1841_v1  ;;  %v8994_v1 = vld [vmem:[#allocation150_spill] sm:$0xff] }
 0x475   : > { %v2807_v6 = vmul.f32 %v2771_v2, %v8988_v19  ;;  %v2482_v18 = vadd.f32 %v7019_v8, %v2268_v57  ;;  %v7406_v20 = vpop.f32.mrf.mxu0  ;;  %v7408_v7 = vpop.f32.mrf.mxu1  ;;  %v8990_v8 = vld [vmem:[#allocation148_spill] sm:$0xff]  ;;  %v8992_v19 = vld [vmem:[#allocation10_spill] sm:$0xff] }
 0x476   : > { %v2976_v25 = vld [vmem:[#allocation3 + $0xce] sm:$0xff]  ;;  %v1628_v46 = vadd.f32 %v8991_v50, %v8990_v8 }
 0x477   : > { %v3279_v10 = vld [vmem:[#allocation3 + $0xcf] sm:$0xff]  ;;  %2887 = vst [vmem:[#allocation3 + $0xd8] sm:$0xff] %v2807_v6  ;;  %v2696_v55 = vadd.f32 %v7085_v28, %v2482_v18  ;;  %3161 = vmatmul.f32.gmra.mxu3 %v2905_v27  ;;  %v8993_v27 = vld [vmem:[#allocation111_spill] sm:$0xff] }
 0x478   : > { %3093 = vmatmul.f32.gmra.mxu2 %v2976_v25 }
 0x479   : > { %3396 = vmatmul.f32.gmra.mxu0 %v3279_v10  ;;  %3604 = vmatmul.f32.gmra.mxu1 %v3279_v10  ;;  %v2736_v26 = vadd.f32 %v7398_v5, %v2696_v55  ;;  %v1842_v10 = vadd.f32 %v8993_v27, %v1628_v46  ;;  %v2906_v55 = vld [vmem:[#allocation3 + $0x3d] sm:$0xff] }
 0x47a   : > { %v2211_v42 = vpop.f32.mrf.mxu3  ;;  %v7419_v2 = vpop.f32.mrf.mxu2 }
 0x47b   : > { %v2772_v28 = vmax.f32 %v2736_v26, 0.0  ;;  %v2269_v57 = vadd.f32 %v2211_v42, %v2055_v47  ;;  %v1629_v26 = vadd.f32 %v8995_v15, %v8994_v1  ;;  %v2056_v47 = vadd.f32 %v7068_v52, %v1842_v10  ;;  %v2907_v1 = vld [vmem:[#allocation3 + $0x45] sm:$0xff]  ;;  %v5177_v10 = vld [vmem:[%s8643_s6 + $0x210] sm:$0xff] }
 0x47c   : > { %v8999_v15 = vld [vmem:[#allocation89_spill] sm:$0xff]  ;;  %3749 = vmatpush.msrb.mxu2 %v5177_v10 }
 0x47d   : > { %v2808_v6 = vmul.f32 %v2772_v28, %v8992_v19  ;;  %v2483_v18 = vadd.f32 %v7038_v35, %v2269_v57  ;;  %v7423_v11 = vpop.f32.mrf.mxu0  ;;  %v7425_v25 = vpop.f32.mrf.mxu1  ;;  %v8996_v19 = vld [vmem:[#allocation11_spill] sm:$0xff]  ;;  %v9003_v10 = vld [vmem:[#allocation93_spill] sm:$0xff] }
 0x47e   : > { %v2977_v8 = vld [vmem:[#allocation3 + $0xd6] sm:$0xff] }
 0x47f   : > { %v3280_v50 = vld [vmem:[#allocation3 + $0xd7] sm:$0xff]  ;;  %2888 = vst [vmem:[#allocation3 + $0xe0] sm:$0xff] %v2808_v6  ;;  %v2697_v3 = vadd.f32 %v7102_v33, %v2483_v18  ;;  %3164 = vmatmul.f32.gmra.mxu3 %v2906_v55 }
 0x480   : > { %3096 = vmatmul.f32.gmra.mxu2 %v2977_v8  ;;  %v8997_v8 = vld [vmem:[#allocation113_spill] sm:$0xff] }
 0x481   : > { %3399 = vmatmul.f32.gmra.mxu0 %v3280_v50  ;;  %3607 = vmatmul.f32.gmra.mxu1 %v3280_v50  ;;  %v2737_v35 = vadd.f32 %v7398_v5, %v2697_v3  ;;  %v1843_v55 = vadd.f32 %v8997_v8, %v1629_v26 }
 0x482   : > { %v2214_v42 = vpop.f32.mrf.mxu3  ;;  %v7433_v28 = vpop.f32.mrf.mxu2 }
 0x483   : > { %v2773_v46 = vmax.f32 %v2737_v35, 0.0  ;;  %v2270_v57 = vadd.f32 %v2214_v42, %v2056_v47  ;;  %v2057_v26 = vadd.f32 %v7090_v39, %v1843_v55  ;;  %v9002_v55 = vld [vmem:[#allocation152_spill] sm:$0xff] }
 0x485   : > { %v2809_v6 = vmul.f32 %v2773_v46, %v8996_v19  ;;  %v2484_v33 = vadd.f32 %v7058_v48, %v2270_v57  ;;  %v7437_v18 = vpop.f32.mrf.mxu0  ;;  %v7439_v27 = vpop.f32.mrf.mxu1  ;;  %v8998_v48 = vld [vmem:[#allocation151_spill] sm:$0xff]  ;;  %v9000_v19 = vld [vmem:[#allocation13_spill] sm:$0xff] }
 0x486   : > { %v2978_v50 = vld [vmem:[#allocation3 + $0xde] sm:$0xff]  ;;  %v1630_v35 = vadd.f32 %v8999_v15, %v8998_v48 }
 0x487   : > { %v3281_v3 = vld [vmem:[#allocation3 + $0xdf] sm:$0xff]  ;;  %2889 = vst [vmem:[#allocation3 + $0xe8] sm:$0xff] %v2809_v6  ;;  %v2698_v52 = vadd.f32 %v7117_v29, %v2484_v33  ;;  %3167 = vmatmul.f32.gmra.mxu3 %v2907_v1 }
 0x488   : > { %3099 = vmatmul.f32.gmra.mxu2 %v2978_v50  ;;  %v9001_v1 = vld [vmem:[#allocation115_spill] sm:$0xff] }
 0x489   : > { %3402 = vmatmul.f32.gmra.mxu0 %v3281_v3  ;;  %3610 = vmatmul.f32.gmra.mxu1 %v3281_v3  ;;  %v2738_v47 = vadd.f32 %v7398_v5, %v2698_v52  ;;  %v1844_v3 = vadd.f32 %v9001_v1, %v1630_v35  ;;  %v2908_v52 = vld [vmem:[#allocation3 + $0x4d] sm:$0xff] }
 0x48a   : > { %v2217_v42 = vpop.f32.mrf.mxu3  ;;  %v7450_v46 = vpop.f32.mrf.mxu2 }
 0x48b   : > { %v2774_v29 = vmax.f32 %v2738_v47, 0.0  ;;  %v2271_v57 = vadd.f32 %v2217_v42, %v2057_v26  ;;  %v1631_v47 = vadd.f32 %v9003_v10, %v9002_v55  ;;  %v2058_v26 = vadd.f32 %v7111_v30, %v1844_v3  ;;  %v2909_v55 = vld [vmem:[#allocation3 + $0x55] sm:$0xff]  ;;  %v9007_v10 = vld [vmem:[#allocation96_spill] sm:$0xff] }
 0x48c   : > { %v9006_v3 = vld [vmem:[#allocation154_spill] sm:$0xff] }
 0x48d   : > { %v2810_v6 = vmul.f32 %v2774_v29, %v9000_v19  ;;  %v2485_v33 = vadd.f32 %v7081_v43, %v2271_v57  ;;  %v7454_v8 = vpop.f32.mrf.mxu0  ;;  %v7456_v50 = vpop.f32.mrf.mxu1  ;;  %v9004_v19 = vld [vmem:[#allocation15_spill] sm:$0xff] }
 0x48e   : > { %v2979_v48 = vld [vmem:[#allocation3 + $0xe6] sm:$0xff] }
 0x48f   : > { %v3282_v15 = vld [vmem:[#allocation3 + $0xe7] sm:$0xff]  ;;  %2890 = vst [vmem:[#allocation3 + $0xf0] sm:$0xff] %v2810_v6  ;;  %v2699_v39 = vadd.f32 %v7131_v16, %v2485_v33  ;;  %3170 = vmatmul.f32.gmra.mxu3 %v2908_v52 }
 0x490   : > { %3102 = vmatmul.f32.gmra.mxu2 %v2979_v48  ;;  %v9005_v48 = vld [vmem:[#allocation117_spill] sm:$0xff] }
 0x491   : > { %3405 = vmatmul.f32.gmra.mxu0 %v3282_v15  ;;  %3613 = vmatmul.f32.gmra.mxu1 %v3282_v15  ;;  %v2739_v43 = vadd.f32 %v7398_v5, %v2699_v39  ;;  %v1845_v52 = vadd.f32 %v9005_v48, %v1631_v47  ;;  %v9009_v48 = vld [vmem:[#allocation119_spill] sm:$0xff] }
 0x492   : > { %v2220_v42 = vpop.f32.mrf.mxu3  ;;  %v7464_v29 = vpop.f32.mrf.mxu2 }
 0x493   : > { %v2775_v35 = vmax.f32 %v2739_v43, 0.0  ;;  %v2272_v57 = vadd.f32 %v2220_v42, %v2058_v26  ;;  %v1632_v43 = vadd.f32 %v9007_v10, %v9006_v3  ;;  %v2059_v26 = vadd.f32 %v7129_v31, %v1845_v52  ;;  %v5176_v52 = vld [vmem:[%s8643_s6 + $0x208] sm:$0xff] }
 0x494   : > { %v9011_v10 = vld [vmem:[#allocation157_spill] sm:$0xff]  ;;  %3750 = vmatpush.msrb.mxu2 %v5176_v52 }
 0x495   : > { %v2811_v6 = vmul.f32 %v2775_v35, %v9004_v19  ;;  %v2486_v16 = vadd.f32 %v7100_v37, %v2272_v57  ;;  %v7468_v33 = vpop.f32.mrf.mxu0  ;;  %v7470_v1 = vpop.f32.mrf.mxu1  ;;  %v9008_v19 = vld [vmem:[#allocation17_spill] sm:$0xff] }
 0x496   : > { %v2980_v15 = vld [vmem:[#allocation3 + $0xee] sm:$0xff] }
 0x497   : > { %v3283_v39 = vld [vmem:[#allocation3 + $0xef] sm:$0xff]  ;;  %2891 = vst [vmem:[#allocation3 + $0xf8] sm:$0xff] %v2811_v6  ;;  %v2700_v30 = vadd.f32 %v7151_v13, %v2486_v16  ;;  %3173 = vmatmul.f32.gmra.mxu3 %v2909_v55 }
 0x498   : > { %3105 = vmatmul.f32.gmra.mxu2 %v2980_v15  ;;  %v1846_v15 = vadd.f32 %v9009_v48, %v1632_v43  ;;  %v9012_v43 = vld [vmem:[#allocation99_spill] sm:$0xff]  ;;  %v5220_v52 = vld [vmem:[%s8643_s6 + $0x368] sm:$0xff] }
 0x499   : > { %3408 = vmatmul.f32.gmra.mxu0 %v3283_v39  ;;  %3616 = vmatmul.f32.gmra.mxu1 %v3283_v39  ;;  %v2740_v37 = vadd.f32 %v7398_v5, %v2700_v30  ;;  %v2910_v39 = vld [vmem:[#allocation3 + $0x5d] sm:$0xff] }
 0x49a   : > { %v2223_v42 = vpop.f32.mrf.mxu3  ;;  %v7478_v35 = vpop.f32.mrf.mxu2  ;;  %v9015_v48 = vld [vmem:[#allocation55_spill] sm:$0xff] }
 0x49b   : > { %v2776_v47 = vmax.f32 %v2740_v37, 0.0  ;;  %v2273_v57 = vadd.f32 %v2223_v42, %v2059_v26  ;;  %v1633_v37 = vadd.f32 %v9012_v43, %v9011_v10  ;;  %v2911_v43 = vld [vmem:[#allocation3 + $0x65] sm:$0xff] }
 0x49d   : > { %v2812_v6 = vmul.f32 %v2776_v47, %v9008_v19  ;;  %v2487_v13 = vadd.f32 %v7119_v49, %v2273_v57  ;;  %v7482_v16 = vpop.f32.mrf.mxu1  ;;  %v7486_v31 = vpop.f32.mrf.mxu0  ;;  %v5222_v49 = vld [vmem:[%s8643_s6 + $0x378] sm:$0xff] }
 0x49e   : > { %v2981_v55 = vld [vmem:[#allocation3 + $0xf6] sm:$0xff]  ;;  %9010 = vst [vmem:[#allocation43_spill] sm:$0xff] %v7486_v31  ;;  %4164 = vmatpush.msra.mxu0 %v5222_v49  ;;  %v9018_v49 = vld [vmem:[#allocation160_spill] sm:$0xff] }
 0x49f   : > { %v3284_v3 = vld [vmem:[#allocation3 + $0xf7] sm:$0xff]  ;;  %2892 = vst [vmem:[#allocation3 + $0x100] sm:$0xff] %v2812_v6  ;;  %v2701_v30 = vadd.f32 %v7163_v60, %v2487_v13  ;;  %3176 = vmatmul.f32.gmra.mxu3 %v2910_v39  ;;  %v2060_v60 = vadd.f32 %v7149_v36, %v1846_v15 }
 0x4a0   : > { %3108 = vmatmul.f32.gmra.mxu2 %v2981_v55  ;;  %v9014_v6 = vld [vmem:[#allocation19_spill] sm:$0xff]  ;;  %v5221_v15 = vld [vmem:[%s8643_s6 + $0x370] sm:$0xff] }
 0x4a1   : > { %3411 = vmatmul.f32.gmra.mxu0 %v3284_v3  ;;  %3619 = vmatmul.f32.gmra.mxu1 %v3284_v3  ;;  %v2741_v26 = vadd.f32 %v7398_v5, %v2701_v30  ;;  %v9017_v3 = vld [vmem:[#allocation121_spill] sm:$0xff] }
 0x4a2   : > { %v2226_v42 = vpop.f32.mrf.mxu3  ;;  %v7498_v47 = vpop.f32.mrf.mxu2  ;;  %v1847_v31 = vadd.f32 %v9017_v3, %v1633_v37  ;;  %v9019_v37 = vld [vmem:[#allocation101_spill] sm:$0xff]  ;;  %4165 = vmatpush.msra.mxu0 %v5221_v15 }
 0x4a3   : > { %9013 = vst [vmem:[#allocation75_spill] sm:$0xff] %v7498_v47  ;;  %v2777_v57 = vmax.f32 %v2741_v26, 0.0  ;;  %v2274_v19 = vadd.f32 %v2226_v42, %v2060_v60  ;;  %v1634_v26 = vadd.f32 %v9019_v37, %v9018_v49  ;;  %v9023_v3 = vld [vmem:[#allocation21_spill] sm:$0xff]  ;;  %v9025_v49 = vld [vmem:[#allocation123_spill] sm:$0xff] }
 0x4a4   : > { %4166 = vmatpush.msra.mxu0 %v5220_v52  ;;  %v5175_v52 = vld [vmem:[%s8643_s6 + $0x200] sm:$0xff]  ;;  %v3696_v47 = vld [vmem:[#allocation3 + $0x88] sm:$0xff] }
 0x4a5   : > { %v2813_v13 = vmul.f32 %v2777_v57, %v9014_v6  ;;  %v2488_v55 = vadd.f32 %v9015_v48, %v2274_v19  ;;  %v7502_v39 = vpop.f32.mrf.mxu1  ;;  %v7515_v42 = vpop.f32.mrf.mxu0  ;;  %v1848_v37 = vadd.f32 %v9025_v49, %v1634_v26  ;;  %v5217_v26 = vld [vmem:[%s8643_s6 + $0x350] sm:$0xff]  ;;  %3751 = vmatpush.msrb.mxu2 %v5175_v52 }
 0x4a6   : > { %9016 = vst [vmem:[#allocation7_spill] sm:$0xff] %v7502_v39  ;;  %v2982_v10 = vld [vmem:[#allocation3 + $0xfe] sm:$0xff] }
 0x4a7   : > { %v3285_v30 = vld [vmem:[#allocation3 + $0xff] sm:$0xff]  ;;  %2893 = vst [vmem:[#allocation3 + $0x108] sm:$0xff] %v2813_v13  ;;  %v2702_v36 = vadd.f32 %v7180_v21, %v2488_v55  ;;  %3179 = vmatmul.f32.gmra.mxu3 %v2911_v43  ;;  %v9021_v21 = vld [vmem:[#allocation65_spill] sm:$0xff] }
 0x4a8   : > { %3111 = vmatmul.f32.gmra.mxu2 %v2982_v10  ;;  %9020 = vst [vmem:[#allocation62_spill] sm:$0xff] %v7515_v42  ;;  %v2061_v57 = vadd.f32 %v9021_v21, %v1847_v31  ;;  %v5219_v13 = vld [vmem:[%s8643_s6 + $0x360] sm:$0xff]  ;;  %v5218_v21 = vld [vmem:[%s8643_s6 + $0x358] sm:$0xff] }
 0x4a9   : > { %3414 = vmatmul.f32.gmra.mxu0 %v3285_v30  ;;  %3622 = vmatmul.f32.gmra.mxu1 %v3285_v30  ;;  %v2742_v60 = vadd.f32 %v7398_v5, %v2702_v36  ;;  %v9024_v43 = vld [vmem:[#allocation40_spill] sm:$0xff]  ;;  %v2912_v36 = vld [vmem:[#allocation3 + $0x6d] sm:$0xff]  ;;  %v3694_v39 = vld [vmem:[#allocation3 + $0x78] sm:$0xff] }
 0x4aa   : > { %v2229_v19 = vpop.f32.mrf.mxu3  ;;  %v7518_v6 = vpop.f32.mrf.mxu2  ;;  %4167 = vmatpush.msra.mxu0 %v5219_v13 }
 0x4ab   : > { %9022 = vst [vmem:[#allocation44_spill] sm:$0xff] %v7518_v6  ;;  %v2778_v48 = vmax.f32 %v2742_v60, 0.0  ;;  %v2275_v55 = vadd.f32 %v2229_v19, %v2061_v57  ;;  %v5238_v57 = vld [vmem:[%s8643_s6 + $0x3f8] sm:$0xff]  ;;  %v9027_v19 = vld [vmem:[#allocation161_spill] sm:$0xff] }
 0x4ac   : > { %4168 = vmatpush.msra.mxu0 %v5218_v21  ;;  %4378 = vmatpush.msra.mxu1 %v5238_v57  ;;  %v9034_v21 = vld [vmem:[#allocation125_spill] sm:$0xff] }
 0x4ad   : > { %v2814_v10 = vmul.f32 %v2778_v48, %v9023_v3  ;;  %v2489_v30 = vadd.f32 %v9024_v43, %v2275_v55  ;;  %v7530_v60 = vpop.f32.mrf.mxu1  ;;  %v9029_v55 = vld [vmem:[#allocation56_spill] sm:$0xff]  ;;  %v7550_v49 = vpop.f32.mrf.mxu0 }
 0x4ae   : > { %v2983_v31 = vld [vmem:[#allocation3 + $0x106] sm:$0xff]  ;;  %9026 = vst [vmem:[#allocation78_spill] sm:$0xff] %v7530_v60  ;;  %v2062_v3 = vadd.f32 %v9029_v55, %v1848_v37  ;;  %4169 = vmatpush.msra.mxu0 %v5217_v26  ;;  %v2913_v37 = vld [vmem:[#allocation3 + $0x75] sm:$0xff] }
 0x4af   : > { %v3286_v15 = vld [vmem:[#allocation3 + $0x107] sm:$0xff]  ;;  %2894 = vst [vmem:[#allocation3 + $0x110] sm:$0xff] %v2814_v10  ;;  %v2703_v42 = vadd.f32 %v7199_v32, %v2489_v30  ;;  %3182 = vmatmul.f32.gmra.mxu3 %v2912_v36  ;;  %v5237_v26 = vld [vmem:[%s8643_s6 + $0x3f0] sm:$0xff] }
 0x4b0   : > { %3114 = vmatmul.f32.gmra.mxu2 %v2983_v31  ;;  %v9028_v32 = vld [vmem:[#allocation104_spill] sm:$0xff]  ;;  %v5216_v30 = vld [vmem:[%s8643_s6 + $0x348] sm:$0xff]  ;;  %9031 = vst [vmem:[#allocation64_spill] sm:$0xff] %v7550_v49  ;;  %4379 = vmatpush.msra.mxu1 %v5237_v26 }
 0x4b1   : > { %3417 = vmatmul.f32.gmra.mxu0 %v3286_v15  ;;  %3625 = vmatmul.f32.gmra.mxu1 %v3286_v15  ;;  %v1635_v13 = vadd.f32 %v9028_v32, %v9027_v19  ;;  %v2743_v48 = vadd.f32 %v7398_v5, %v2703_v42  ;;  %v9032_v15 = vld [vmem:[#allocation23_spill] sm:$0xff]  ;;  %v9033_v42 = vld [vmem:[#allocation4_spill] sm:$0xff] }
 0x4b2   : > { %v2232_v10 = vpop.f32.mrf.mxu3  ;;  %v7545_v43 = vpop.f32.mrf.mxu2  ;;  %4170 = vmatpush.msra.mxu0 %v5216_v30  ;;  %v5215_v60 = vld [vmem:[%s8643_s6 + $0x340] sm:$0xff] }
 0x4b3   : > { %9030 = vst [vmem:[#allocation8_spill] sm:$0xff] %v7545_v43  ;;  %v2779_v36 = vmax.f32 %v2743_v48, 0.0  ;;  %v2276_v31 = vadd.f32 %v2232_v10, %v2062_v3  ;;  %v1849_v52 = vadd.f32 %v9034_v21, %v1635_v13  ;;  %v5214_v13 = vld [vmem:[%s8643_s6 + $0x338] sm:$0xff]  ;;  %v5236_v48 = vld [vmem:[%s8643_s6 + $0x3e8] sm:$0xff]  ;;  %v9035_v3 = vld [vmem:[#allocation164_spill] sm:$0xff] }
 0x4b4   : > { %v9036_v10 = vld [vmem:[#allocation106_spill] sm:$0xff]  ;;  %4171 = vmatpush.msra.mxu0 %v5215_v60  ;;  %4380 = vmatpush.msra.mxu1 %v5236_v48  ;;  %v5254_v60 = vld [vmem:[%s8643_s6 + $0x478] sm:$0xff]  ;;  %v2927_v6 = vld [vmem:[#allocation3 + $0xe5] sm:$0xff] }
 0x4b5   : > { %v2815_v19 = vmul.f32 %v2779_v36, %v9032_v15  ;;  %v2490_v32 = vadd.f32 %v9033_v42, %v2276_v31  ;;  %v1636_v30 = vadd.f32 %v9036_v10, %v9035_v3  ;;  %v7571_v36 = vpop.f32.mrf.mxu1  ;;  %v9038_v31 = vld [vmem:[#allocation69_spill] sm:$0xff]  ;;  %v7589_v26 = vpop.f32.mrf.mxu0  ;;  %4592 = vmatpush.msra.mxu2 %v5254_v60 }
 0x4b6   : > { %v2984_v55 = vld [vmem:[#allocation3 + $0x10e] sm:$0xff]  ;;  %9037 = vst [vmem:[#allocation110_spill] sm:$0xff] %v7571_v36  ;;  %v2063_v15 = vadd.f32 %v9038_v31, %v1849_v52  ;;  %4172 = vmatpush.msra.mxu0 %v5214_v13  ;;  %v2914_v31 = vld [vmem:[#allocation3 + $0x7d] sm:$0xff] }
 0x4b7   : > { %v3287_v43 = vld [vmem:[#allocation3 + $0x10f] sm:$0xff]  ;;  %2895 = vst [vmem:[#allocation3 + $0x118] sm:$0xff] %v2815_v19  ;;  %v2704_v57 = vadd.f32 %v7218_v12, %v2490_v32  ;;  %3185 = vmatmul.f32.gmra.mxu3 %v2913_v37  ;;  %v5235_v37 = vld [vmem:[%s8643_s6 + $0x3e0] sm:$0xff] }
 0x4b8   : > { %3117 = vmatmul.f32.gmra.mxu2 %v2984_v55  ;;  %v5213_v32 = vld [vmem:[%s8643_s6 + $0x330] sm:$0xff]  ;;  %v9040_v55 = vld [vmem:[#allocation25_spill] sm:$0xff]  ;;  %9041 = vst [vmem:[#allocation82_spill] sm:$0xff] %v7589_v26  ;;  %4381 = vmatpush.msra.mxu1 %v5235_v37 }
 0x4b9   : > { %3420 = vmatmul.f32.gmra.mxu0 %v3287_v43  ;;  %3628 = vmatmul.f32.gmra.mxu1 %v3287_v43  ;;  %v2744_v12 = vadd.f32 %v7398_v5, %v2704_v57  ;;  %v5206_v43 = vld [vmem:[%s8643_s6 + $0x2f8] sm:$0xff]  ;;  %v9042_v3 = vld [vmem:[#allocation41_spill] sm:$0xff] }
 0x4ba   : > { %v2235_v19 = vpop.f32.mrf.mxu3  ;;  %v7577_v42 = vpop.f32.mrf.mxu2  ;;  %3950 = vmatpush.msra.mxu3 %v5206_v43  ;;  %4173 = vmatpush.msra.mxu0 %v5213_v32  ;;  %v9045_v32 = vld [vmem:[#allocation108_spill] sm:$0xff]  ;;  %v5248_v36 = vld [vmem:[%s8643_s6 + $0x448] sm:$0xff] }
 0x4bb   : > { %9039 = vst [vmem:[#allocation45_spill] sm:$0xff] %v7577_v42  ;;  %v2780_v21 = vmax.f32 %v2744_v12, 0.0  ;;  %v2277_v52 = vadd.f32 %v2235_v19, %v2063_v15  ;;  %v9043_v42 = vld [vmem:[#allocation127_spill] sm:$0xff]  ;;  %v5212_v12 = vld [vmem:[%s8643_s6 + $0x328] sm:$0xff]  ;;  %v5233_v19 = vld [vmem:[%s8643_s6 + $0x3d0] sm:$0xff] }
 0x4bc   : > { %v1850_v49 = vadd.f32 %v9043_v42, %v1636_v30  ;;  %v5234_v15 = vld [vmem:[%s8643_s6 + $0x3d8] sm:$0xff]  ;;  %v5211_v30 = vld [vmem:[%s8643_s6 + $0x320] sm:$0xff]  ;;  %v9044_v42 = vld [vmem:[#allocation165_spill] sm:$0xff]  ;;  %4174 = vmatpush.msra.mxu0 %v5212_v12 }
 0x4bd   : > { %v2816_v57 = vmul.f32 %v2780_v21, %v9040_v55  ;;  %v2491_v10 = vadd.f32 %v9042_v3, %v2277_v52  ;;  %v1637_v37 = vadd.f32 %v9045_v32, %v9044_v42  ;;  %4382 = vmatpush.msra.mxu1 %v5234_v15  ;;  %v5210_v55 = vld [vmem:[%s8643_s6 + $0x318] sm:$0xff]  ;;  %v9049_v12 = vld [vmem:[#allocation5_spill] sm:$0xff]  ;;  %v5209_v42 = vld [vmem:[%s8643_s6 + $0x310] sm:$0xff] }
 0x4be   : > { %v2985_v13 = vld [vmem:[#allocation3 + $0x116] sm:$0xff]  ;;  %v2064_v52 = vadd.f32 %v7227_v38, %v1850_v49  ;;  %4175 = vmatpush.msra.mxu0 %v5211_v30  ;;  %v9050_v15 = vld [vmem:[#allocation129_spill] sm:$0xff] }
 0x4bf   : > { %v3288_v48 = vld [vmem:[#allocation3 + $0x117] sm:$0xff]  ;;  %2896 = vst [vmem:[#allocation3 + $0x120] sm:$0xff] %v2816_v57  ;;  %v2705_v43 = vadd.f32 %v7241_v61, %v2491_v10  ;;  %3188 = vmatmul.f32.gmra.mxu3 %v2914_v31  ;;  %v5232_v57 = vld [vmem:[%s8643_s6 + $0x3c8] sm:$0xff]  ;;  %v7618_v10 = vpop.f32.mrf.mxu1  ;;  %4383 = vmatpush.msra.mxu1 %v5233_v19  ;;  %v5231_v19 = vld [vmem:[%s8643_s6 + $0x3c0] sm:$0xff] }
 0x4c0   : > { %3120 = vmatmul.f32.gmra.mxu2 %v2985_v13  ;;  %9047 = vst [vmem:[#allocation66_spill] sm:$0xff] %v7618_v10  ;;  %v9048_v38 = vld [vmem:[#allocation27_spill] sm:$0xff]  ;;  %4176 = vmatpush.msra.mxu0 %v5210_v55  ;;  %v5205_v32 = vld [vmem:[%s8643_s6 + $0x2f0] sm:$0xff] }
 0x4c1   : > { %3423 = vmatmul.f32.gmra.mxu0 %v3288_v48  ;;  %3631 = vmatmul.f32.gmra.mxu1 %v3288_v48  ;;  %v2745_v21 = vadd.f32 %v7398_v5, %v2705_v43  ;;  %v2915_v48 = vld [vmem:[#allocation3 + $0x85] sm:$0xff]  ;;  %v1851_v43 = vadd.f32 %v9050_v15, %v1637_v37  ;;  %v5230_v55 = vld [vmem:[%s8643_s6 + $0x3b8] sm:$0xff] }
 0x4c2   : > { %v2238_v61 = vpop.f32.mrf.mxu3  ;;  %v7610_v60 = vpop.f32.mrf.mxu2  ;;  %4384 = vmatpush.msra.mxu1 %v5232_v57  ;;  %3951 = vmatpush.msra.mxu3 %v5205_v32  ;;  %v5253_v57 = vld [vmem:[%s8643_s6 + $0x470] sm:$0xff]  ;;  %v9053_v15 = vld [vmem:[#allocation37_spill] sm:$0xff]  ;;  %v2926_v10 = vld [vmem:[#allocation3 + $0xdd] sm:$0xff] }
 0x4c3   : > { %9046 = vst [vmem:[#allocation9_spill] sm:$0xff] %v7610_v60  ;;  %v2781_v3 = vmax.f32 %v2745_v21, 0.0  ;;  %v2278_v31 = vadd.f32 %v2238_v61, %v2064_v52  ;;  %v7632_v52 = vpop.f32.mrf.mxu0  ;;  %v5208_v61 = vld [vmem:[%s8643_s6 + $0x308] sm:$0xff]  ;;  %4177 = vmatpush.msra.mxu0 %v5209_v42  ;;  %4593 = vmatpush.msra.mxu2 %v5253_v57  ;;  %v7793_v60 = vld [vmem:[#allocation3 + $0x71] sm:$0xff] }
 0x4c4   : > { %9051 = vst [vmem:[#allocation112_spill] sm:$0xff] %v7632_v52  ;;  %4385 = vmatpush.msra.mxu1 %v5231_v19  ;;  %v2916_v32 = vld [vmem:[#allocation3 + $0x8d] sm:$0xff] }
 0x4c5   : > { %v2817_v49 = vmul.f32 %v2781_v3, %v9048_v38  ;;  %v2492_v13 = vadd.f32 %v9049_v12, %v2278_v31  ;;  %v5229_v12 = vld [vmem:[%s8643_s6 + $0x3b0] sm:$0xff]  ;;  %4178 = vmatpush.msra.mxu0 %v5208_v61  ;;  %v5228_v19 = vld [vmem:[%s8643_s6 + $0x3a8] sm:$0xff]  ;;  %9081 = vst [vmem:[#allocation122_spill] sm:$0xff] %v7793_v60 }
 0x4c6   : > { %v2986_v21 = vld [vmem:[#allocation3 + $0x11e] sm:$0xff]  ;;  %4386 = vmatpush.msra.mxu1 %v5230_v55  ;;  %v7779_v52 = vld [vmem:[#allocation3 + $0x69] sm:$0xff] }
 0x4c7   : > { %v3289_v30 = vld [vmem:[#allocation3 + $0x11f] sm:$0xff]  ;;  %2897 = vst [vmem:[#allocation3 + $0x128] sm:$0xff] %v2817_v49  ;;  %v2706_v37 = vadd.f32 %v7263_v34, %v2492_v13  ;;  %3191 = vmatmul.f32.gmra.mxu3 %v2915_v48  ;;  %v2065_v34 = vadd.f32 %v7247_v56, %v1851_v43  ;;  %v7655_v43 = vpop.f32.mrf.mxu1 }
 0x4c8   : > { %3123 = vmatmul.f32.gmra.mxu2 %v2986_v21  ;;  %v5207_v49 = vld [vmem:[%s8643_s6 + $0x300] sm:$0xff]  ;;  %9054 = vst [vmem:[#allocation85_spill] sm:$0xff] %v7655_v43  ;;  %4387 = vmatpush.msra.mxu1 %v5229_v12 }
 0x4c9   : > { %3426 = vmatmul.f32.gmra.mxu0 %v3289_v30  ;;  %3634 = vmatmul.f32.gmra.mxu1 %v3289_v30  ;;  %v2746_v3 = vadd.f32 %v7398_v5, %v2706_v37  ;;  %v3683_v12 = vld [vmem:[#allocation3 + $0x20] sm:$0xff]  ;;  %9077 = vst [vmem:[#allocation98_spill] sm:$0xff] %v7779_v52 }
 0x4ca   : > { %v2241_v31 = vpop.f32.mrf.mxu3  ;;  %v7646_v38 = vpop.f32.mrf.mxu2  ;;  %4179 = vmatpush.msra.mxu0 %v5207_v49  ;;  %4388 = vmatpush.msra.mxu1 %v5228_v19  ;;  %v5223_v19 = vld [vmem:[%s8643_s6 + $0x380] sm:$0xff] }
 0x4cb   : > { %9052 = vst [vmem:[#allocation46_spill] sm:$0xff] %v7646_v38  ;;  %v2782_v13 = vmax.f32 %v2746_v3, 0.0  ;;  %v2279_v48 = vadd.f32 %v2241_v31, %v2065_v34  ;;  %v7665_v61 = vpop.f32.mrf.mxu0  ;;  %v9057_v31 = vld [vmem:[#allocation36_spill] sm:$0xff] }
 0x4cc   : > { %9055 = vst [vmem:[#allocation12_spill] sm:$0xff] %v7665_v61 }
 0x4cd   : > { %v2818_v56 = vmul.f32 %v2782_v13, %v9053_v15  ;;  %v2493_v42 = vadd.f32 %v7233_v54, %v2279_v48  ;;  %v5227_v54 = vld [vmem:[%s8643_s6 + $0x3a0] sm:$0xff]  ;;  %v5204_v13 = vld [vmem:[%s8643_s6 + $0x2e8] sm:$0xff]  ;;  %v5225_v15 = vld [vmem:[%s8643_s6 + $0x390] sm:$0xff] }
 0x4ce   : > { %v2987_v21 = vld [vmem:[#allocation3 + $0x126] sm:$0xff]  ;;  %4389 = vmatpush.msra.mxu1 %v5227_v54  ;;  %3952 = vmatpush.msra.mxu3 %v5204_v13 }
 0x4cf   : > { %v3290_v30 = vld [vmem:[#allocation3 + $0x127] sm:$0xff]  ;;  %2898 = vst [vmem:[#allocation3 + $0x130] sm:$0xff] %v2818_v56  ;;  %v2707_v37 = vadd.f32 %v7289_v59, %v2493_v42  ;;  %3194 = vmatmul.f32.gmra.mxu3 %v2916_v32  ;;  %v5226_v59 = vld [vmem:[%s8643_s6 + $0x398] sm:$0xff]  ;;  %v7682_v56 = vpop.f32.mrf.mxu1 }
 0x4d0   : > { %3126 = vmatmul.f32.gmra.mxu2 %v2987_v21  ;;  %4390 = vmatpush.msra.mxu1 %v5226_v59  ;;  %9058 = vst [vmem:[#allocation114_spill] sm:$0xff] %v7682_v56  ;;  %v7684_v42 = vld [vmem:[#allocation3 + $0x31] sm:$0xff]  ;;  %v5224_v32 = vld [vmem:[%s8643_s6 + $0x388] sm:$0xff] }
 0x4d1   : > { %3429 = vmatmul.f32.gmra.mxu0 %v3290_v30  ;;  %3637 = vmatmul.f32.gmra.mxu1 %v3290_v30  ;;  %v2747_v55 = vadd.f32 %v7398_v5, %v2707_v37  ;;  %v2917_v5 = vld [vmem:[#allocation3 + $0x95] sm:$0xff]  ;;  %v5252_v54 = vld [vmem:[%s8643_s6 + $0x468] sm:$0xff] }
 0x4d2   : > { %v7668_v57 = vpop.f32.mrf.mxu2  ;;  %v7670_v3 = vpop.f32.mrf.mxu3  ;;  %4391 = vmatpush.msra.mxu1 %v5225_v15  ;;  %4594 = vmatpush.msra.mxu2 %v5252_v54  ;;  %v3685_v15 = vld [vmem:[#allocation3 + $0x30] sm:$0xff]  ;;  %v5203_v54 = vld [vmem:[%s8643_s6 + $0x2e0] sm:$0xff] }
 0x4d3   : > { %9056 = vst [vmem:[#allocation68_spill] sm:$0xff] %v7668_v57  ;;  %v2783_v34 = vmax.f32 %v2747_v55, 0.0  ;;  %v7697_v37 = vpop.f32.mrf.mxu0  ;;  %v2918_v55 = vld [vmem:[#allocation3 + $0x9d] sm:$0xff]  ;;  %3953 = vmatpush.msra.mxu3 %v5203_v54  ;;  %v4329_v56 = vld [vmem:[#allocation3 + $0x52] sm:$0xff] }
 0x4d4   : > { %9060 = vst [vmem:[#allocation88_spill] sm:$0xff] %v7697_v37  ;;  %4392 = vmatpush.msra.mxu1 %v5224_v32  ;;  %v7713_v32 = vld [vmem:[#allocation3 + $0x41] sm:$0xff]  ;;  %v2921_v37 = vld [vmem:[#allocation3 + $0xb5] sm:$0xff] }
 0x4d5   : > { %v2819_v49 = vmul.f32 %v2783_v34, %v9057_v31  ;;  %v3684_v34 = vld [vmem:[#allocation3 + $0x28] sm:$0xff]  ;;  %v7702_v31 = vld [vmem:[#allocation3 + $0x39] sm:$0xff] }
 0x4d6   : > { %v3503_v48 = vld [vmem:[#allocation3 + $0x12f] sm:$0xff]  ;;  %4393 = vmatpush.msra.mxu1 %v5223_v19  ;;  %v7753_v57 = vld [vmem:[#allocation3 + $0x59] sm:$0xff] }
 0x4d7   : > { %2899 = vst [vmem:[#allocation3 + $0x138] sm:$0xff] %v2819_v49  ;;  %3197 = vmatmul.f32.gmra.mxu3 %v2917_v5  ;;  %v7705_v49 = vpop.f32.mrf.mxu1  ;;  %v4325_v19 = vld [vmem:[#allocation3 + $0x32] sm:$0xff] }
 0x4d8   : > { %3752 = vmatmul.f32.vlgmr.msrb.gmra.mxu2 %v3683_v12  ;;  %9061 = vst [vmem:[#allocation14_spill] sm:$0xff] %v7705_v49  ;;  %v3687_v49 = vld [vmem:[#allocation3 + $0x40] sm:$0xff] }
 0x4d9   : > { %3640 = vmatmul.f32.gmra.mxu1 %v3503_v48  ;;  %4180 = vmatmul.f32.vlgmr.msra.gmra.mxu0 %v7684_v42  ;;  %v2919_v48 = vld [vmem:[#allocation3 + $0xa5] sm:$0xff] }
 0x4da   : > { %v7690_v21 = vpop.f32.mrf.mxu2  ;;  %v7692_v30 = vpop.f32.mrf.mxu3 }
 0x4db   : > { %9059 = vst [vmem:[#allocation47_spill] sm:$0xff] %v7690_v21  ;;  %v7711_v5 = vpop.f32.mrf.mxu0  ;;  %v7730_v21 = vld [vmem:[#allocation3 + $0x49] sm:$0xff] }
 0x4dc   : > { %9063 = vst [vmem:[#allocation116_spill] sm:$0xff] %v7711_v5 }
 0x4de   : > { %v3504_v59 = vld [vmem:[#allocation3 + $0x137] sm:$0xff] }
 0x4df   : > { %3200 = vmatmul.f32.gmra.mxu3 %v2918_v55 }
 0x4e0   : > { %3755 = vmatmul.f32.gmra.mxu2 %v3684_v34  ;;  %v7723_v34 = vpop.f32.mrf.mxu1 }
 0x4e1   : > { %3643 = vmatmul.f32.gmra.mxu1 %v3504_v59  ;;  %4183 = vmatmul.f32.gmra.mxu0 %v7702_v31  ;;  %9065 = vst [vmem:[#allocation91_spill] sm:$0xff] %v7723_v34 }
 0x4e2   : > { %v7709_v13 = vpop.f32.mrf.mxu3 }
 0x4e3   : > { %v7707_v12 = vpop.f32.mrf.mxu2  ;;  %v7728_v5 = vpop.f32.mrf.mxu0 }
 0x4e4   : > { %9062 = vst [vmem:[#allocation71_spill] sm:$0xff] %v7707_v12  ;;  %v3686_v12 = vld [vmem:[#allocation3 + $0x38] sm:$0xff] }
 0x4e5   : > { %9066 = vst [vmem:[#allocation16_spill] sm:$0xff] %v7728_v5 }
 0x4e7   : > { %3203 = vmatmul.f32.gmra.mxu3 %v2919_v48  ;;  %v5251_v48 = vld [vmem:[%s8643_s6 + $0x460] sm:$0xff] }
 0x4e8   : > { %3758 = vmatmul.f32.gmra.mxu2 %v3685_v15  ;;  %v2920_v15 = vld [vmem:[#allocation3 + $0xad] sm:$0xff]  ;;  %v7737_v34 = vpop.f32.mrf.mxu1 }
 0x4e9   : > { %4186 = vmatmul.f32.gmra.mxu0 %v7713_v32  ;;  %4394 = vmatmul.f32.vlgmr.msra.gmra.mxu1 %v4325_v19  ;;  %v4326_v19 = vld [vmem:[#allocation3 + $0x3a] sm:$0xff]  ;;  %9068 = vst [vmem:[#allocation74_spill] sm:$0xff] %v7737_v34 }
 0x4ea   : > { %v7721_v59 = vpop.f32.mrf.mxu3  ;;  %4595 = vmatpush.msra.mxu2 %v5251_v48  ;;  %v7739_v48 = vld [vmem:[#allocation3 + $0x51] sm:$0xff]  ;;  %v2922_v34 = vld [vmem:[#allocation3 + $0xbd] sm:$0xff] }
 0x4eb   : > { %v7719_v55 = vpop.f32.mrf.mxu2 }
 0x4ec   : > { %9064 = vst [vmem:[#allocation48_spill] sm:$0xff] %v7719_v55 }
 0x4ef   : > { %3206 = vmatmul.f32.gmra.mxu3 %v2920_v15  ;;  %v4327_v15 = vld [vmem:[#allocation3 + $0x42] sm:$0xff] }
 0x4f0   : > { %3761 = vmatmul.f32.gmra.mxu2 %v3686_v12  ;;  %v5202_v12 = vld [vmem:[%s8643_s6 + $0x2d8] sm:$0xff] }
 0x4f1   : > { %4189 = vmatmul.f32.gmra.mxu0 %v7730_v21  ;;  %4397 = vmatmul.f32.gmra.mxu1 %v4326_v19  ;;  %v7745_v19 = vpop.f32.mrf.mxu0 }
 0x4f2   : > { %v7735_v55 = vpop.f32.mrf.mxu3  ;;  %9069 = vst [vmem:[#allocation118_spill] sm:$0xff] %v7745_v19  ;;  %3954 = vmatpush.msra.mxu3 %v5202_v12  ;;  %v5250_v12 = vld [vmem:[%s8643_s6 + $0x458] sm:$0xff] }
 0x4f3   : > { %v7733_v54 = vpop.f32.mrf.mxu2  ;;  %4596 = vmatpush.msra.mxu2 %v5250_v12 }
 0x4f4   : > { %9067 = vst [vmem:[#allocation132_spill] sm:$0xff] %v7733_v54 }
 0x4f7   : > { %3209 = vmatmul.f32.gmra.mxu3 %v2921_v37  ;;  %v3688_v37 = vld [vmem:[#allocation3 + $0x48] sm:$0xff] }
 0x4f8   : > { %3764 = vmatmul.f32.gmra.mxu2 %v3687_v49  ;;  %v7751_v49 = vpop.f32.mrf.mxu1 }
 0x4f9   : > { %4192 = vmatmul.f32.gmra.mxu0 %v7739_v48  ;;  %4400 = vmatmul.f32.gmra.mxu1 %v4327_v15  ;;  %9071 = vst [vmem:[#allocation95_spill] sm:$0xff] %v7751_v49  ;;  %v4328_v15 = vld [vmem:[#allocation3 + $0x4a] sm:$0xff]  ;;  %v7763_v61 = vpop.f32.mrf.mxu0 }
 0x4fa   : > { %v7749_v5 = vpop.f32.mrf.mxu3  ;;  %9073 = vst [vmem:[#allocation134_spill] sm:$0xff] %v7763_v61  ;;  %v2923_v49 = vld [vmem:[#allocation3 + $0xc5] sm:$0xff]  ;;  %v5201_v61 = vld [vmem:[%s8643_s6 + $0x2d0] sm:$0xff] }
 0x4fb   : > { %v7747_v54 = vpop.f32.mrf.mxu2  ;;  %3955 = vmatpush.msra.mxu3 %v5201_v61  ;;  %v2925_v61 = vld [vmem:[#allocation3 + $0xd5] sm:$0xff] }
 0x4fc   : > { %9070 = vst [vmem:[#allocation49_spill] sm:$0xff] %v7747_v54 }
 0x4ff   : > { %3212 = vmatmul.f32.gmra.mxu3 %v2922_v34  ;;  %v3689_v34 = vld [vmem:[#allocation3 + $0x50] sm:$0xff] }
 0x500   : > { %3767 = vmatmul.f32.gmra.mxu2 %v3688_v37  ;;  %v7765_v37 = vld [vmem:[#allocation3 + $0x61] sm:$0xff] }
 0x501   : > { %4195 = vmatmul.f32.gmra.mxu0 %v7753_v57  ;;  %4403 = vmatmul.f32.gmra.mxu1 %v4328_v15  ;;  %v7768_v15 = vpop.f32.mrf.mxu1 }
 0x502   : > { %v7761_v19 = vpop.f32.mrf.mxu3  ;;  %9074 = vst [vmem:[#allocation77_spill] sm:$0xff] %v7768_v15 }
 0x503   : > { %v7759_v54 = vpop.f32.mrf.mxu2 }
 0x504   : > { %9072 = vst [vmem:[#allocation18_spill] sm:$0xff] %v7759_v54  ;;  %v7774_v54 = vpop.f32.mrf.mxu0 }
 0x505   : > { %9076 = vst [vmem:[#allocation50_spill] sm:$0xff] %v7774_v54 }
 0x507   : > { %3215 = vmatmul.f32.gmra.mxu3 %v2923_v49  ;;  %v2924_v49 = vld [vmem:[#allocation3 + $0xcd] sm:$0xff] }
 0x508   : > { %3770 = vmatmul.f32.gmra.mxu2 %v3689_v34  ;;  %v3690_v34 = vld [vmem:[#allocation3 + $0x58] sm:$0xff] }
 0x509   : > { %4198 = vmatmul.f32.gmra.mxu0 %v7765_v37  ;;  %4406 = vmatmul.f32.gmra.mxu1 %v4329_v56  ;;  %v4330_v56 = vld [vmem:[#allocation3 + $0x5a] sm:$0xff]  ;;  %v7789_v43 = vpop.f32.mrf.mxu1 }
 0x50a   : > { %v7772_v12 = vpop.f32.mrf.mxu3  ;;  %9079 = vst [vmem:[#allocation136_spill] sm:$0xff] %v7789_v43  ;;  %v5200_v43 = vld [vmem:[%s8643_s6 + $0x2c8] sm:$0xff] }
 0x50b   : > { %v7770_v38 = vpop.f32.mrf.mxu2  ;;  %3956 = vmatpush.msra.mxu3 %v5200_v43  ;;  %v3693_v43 = vld [vmem:[#allocation3 + $0x70] sm:$0xff] }
 0x50c   : > { %9075 = vst [vmem:[#allocation120_spill] sm:$0xff] %v7770_v38  ;;  %v5249_v38 = vld [vmem:[%s8643_s6 + $0x450] sm:$0xff] }
 0x50d   : > { %4597 = vmatpush.msra.mxu2 %v5249_v38 }
 0x50f   : > { %3218 = vmatmul.f32.gmra.mxu3 %v2924_v49  ;;  %v3691_v49 = vld [vmem:[#allocation3 + $0x60] sm:$0xff]  ;;  %4598 = vmatpush.msra.mxu2 %v5248_v36  ;;  %v7828_v36 = vld [vmem:[#allocation3 + $0x89] sm:$0xff] }
 0x510   : > { %3773 = vmatmul.f32.gmra.mxu2 %v3690_v34  ;;  %v7791_v34 = vpop.f32.mrf.mxu0  ;;  %9091 = vst [vmem:[#allocation142_spill] sm:$0xff] %v7828_v36 }
 0x511   : > { %4201 = vmatmul.f32.gmra.mxu0 %v7779_v52  ;;  %4409 = vmatmul.f32.gmra.mxu1 %v4330_v56  ;;  %9080 = vst [vmem:[#allocation79_spill] sm:$0xff] %v7791_v34  ;;  %v4331_v56 = vld [vmem:[#allocation3 + $0x62] sm:$0xff] }
 0x512   : > { %v7787_v15 = vpop.f32.mrf.mxu3  ;;  %v3692_v34 = vld [vmem:[#allocation3 + $0x68] sm:$0xff] }
 0x513   : > { %v7785_v54 = vpop.f32.mrf.mxu2 }
 0x514   : > { %9078 = vst [vmem:[#allocation20_spill] sm:$0xff] %v7785_v54  ;;  %v7800_v54 = vpop.f32.mrf.mxu1 }
 0x515   : > { %9083 = vst [vmem:[#allocation140_spill] sm:$0xff] %v7800_v54 }
 0x517   : > { %3221 = vmatmul.f32.gmra.mxu3 %v2925_v61  ;;  %v7805_v61 = vld [vmem:[#allocation3 + $0x79] sm:$0xff] }
 0x518   : > { %3776 = vmatmul.f32.gmra.mxu2 %v3691_v49  ;;  %9084 = vst [vmem:[#allocation22_spill] sm:$0xff] %v7805_v61  ;;  %v4332_v49 = vld [vmem:[#allocation3 + $0x6a] sm:$0xff] }
 0x519   : > { %4204 = vmatmul.f32.gmra.mxu0 %v7793_v60  ;;  %4412 = vmatmul.f32.gmra.mxu1 %v4331_v56  ;;  %v7808_v56 = vpop.f32.mrf.mxu0  ;;  %v2928_v60 = vld [vmem:[#allocation3 + $0xed] sm:$0xff] }
 0x51a   : > { %v7798_v38 = vpop.f32.mrf.mxu3  ;;  %9085 = vst [vmem:[#allocation138_spill] sm:$0xff] %v7808_v56 }
 0x51b   : > { %v7796_v26 = vpop.f32.mrf.mxu2 }
 0x51c   : > { %9082 = vst [vmem:[#allocation51_spill] sm:$0xff] %v7796_v26 }
 0x51f   : > { %3224 = vmatmul.f32.gmra.mxu3 %v2926_v10  ;;  %v7817_v10 = vpop.f32.mrf.mxu1 }
 0x520   : > { %3779 = vmatmul.f32.gmra.mxu2 %v3692_v34  ;;  %9087 = vst [vmem:[#allocation124_spill] sm:$0xff] %v7817_v10  ;;  %v7819_v34 = vld [vmem:[#allocation3 + $0x81] sm:$0xff] }
 0x521   : > { %4207 = vmatmul.f32.gmra.mxu0 %v7805_v61  ;;  %4415 = vmatmul.f32.gmra.mxu1 %v4332_v49  ;;  %9088 = vst [vmem:[#allocation52_spill] sm:$0xff] %v7819_v34  ;;  %v4333_v49 = vld [vmem:[#allocation3 + $0x72] sm:$0xff]  ;;  %v7826_v61 = vpop.f32.mrf.mxu0 }
 0x522   : > { %v7812_v54 = vpop.f32.mrf.mxu3  ;;  %9090 = vst [vmem:[#allocation24_spill] sm:$0xff] %v7826_v61 }
 0x523   : > { %v7810_v26 = vpop.f32.mrf.mxu2 }
 0x524   : > { %9086 = vst [vmem:[#allocation81_spill] sm:$0xff] %v7810_v26 }
 0x527   : > { %3227 = vmatmul.f32.gmra.mxu3 %v2927_v6  ;;  %v4334_v6 = vld [vmem:[#allocation3 + $0x7a] sm:$0xff] }
 0x528   : > { %3782 = vmatmul.f32.gmra.mxu2 %v3693_v43  ;;  %v5199_v43 = vld [vmem:[%s8643_s6 + $0x2c0] sm:$0xff] }
 0x529   : > { %4210 = vmatmul.f32.gmra.mxu0 %v7819_v34  ;;  %4418 = vmatmul.f32.gmra.mxu1 %v4333_v49  ;;  %v7834_v49 = vpop.f32.mrf.mxu1  ;;  %v7840_v10 = vpop.f32.mrf.mxu0  ;;  %v3695_v34 = vld [vmem:[#allocation3 + $0x80] sm:$0xff] }
 0x52a   : > { %v7824_v56 = vpop.f32.mrf.mxu3  ;;  %9092 = vst [vmem:[#allocation84_spill] sm:$0xff] %v7834_v49  ;;  %3957 = vmatpush.msra.mxu3 %v5199_v43  ;;  %v2930_v49 = vld [vmem:[#allocation3 + $0xfd] sm:$0xff] }
 0x52b   : > { %v7822_v26 = vpop.f32.mrf.mxu2  ;;  %9094 = vst [vmem:[#allocation53_spill] sm:$0xff] %v7840_v10 }
 0x52c   : > { %9089 = vst [vmem:[#allocation143_spill] sm:$0xff] %v7822_v26 }
 0x52f   : > { %3230 = vmatmul.f32.gmra.mxu3 %v2928_v60  ;;  %v2929_v60 = vld [vmem:[#allocation3 + $0xf5] sm:$0xff] }
 0x530   : > { %3785 = vmatmul.f32.gmra.mxu2 %v3694_v39  ;;  %v5247_v39 = vld [vmem:[%s8643_s6 + $0x440] sm:$0xff] }
 0x531   : > { %4213 = vmatmul.f32.gmra.mxu0 %v7828_v36  ;;  %4421 = vmatmul.f32.gmra.mxu1 %v4334_v6  ;;  %v7845_v36 = vld [vmem:[#allocation3 + $0x91] sm:$0xff]  ;;  %v4335_v6 = vld [vmem:[#allocation3 + $0x82] sm:$0xff]  ;;  %v7852_v10 = vpop.f32.mrf.mxu1  ;;  %v7854_v52 = vpop.f32.mrf.mxu0 }
 0x532   : > { %v7838_v61 = vpop.f32.mrf.mxu3  ;;  %4599 = vmatpush.msra.mxu2 %v5247_v39  ;;  %9095 = vst [vmem:[#allocation26_spill] sm:$0xff] %v7845_v36  ;;  %v7856_v39 = vld [vmem:[#allocation3 + $0x99] sm:$0xff] }
 0x533   : > { %v7836_v26 = vpop.f32.mrf.mxu2  ;;  %9098 = vst [vmem:[#allocation128_spill] sm:$0xff] %v7852_v10 }
 0x534   : > { %9093 = vst [vmem:[#allocation126_spill] sm:$0xff] %v7836_v26 }
 0x535   : > { %9099 = vst [vmem:[#allocation54_spill] sm:$0xff] %v7854_v52  ;;  %v3697_v52 = vld [vmem:[#allocation3 + $0x90] sm:$0xff] }
 0x536   : > { %9100 = vst [vmem:[#allocation149_spill] sm:$0xff] %v7856_v39 }
 0x537   : > { %3233 = vmatmul.f32.gmra.mxu3 %v2929_v60  ;;  %v5198_v60 = vld [vmem:[%s8643_s6 + $0x2b8] sm:$0xff] }
 0x538   : > { %3788 = vmatmul.f32.gmra.mxu2 %v3695_v34  ;;  %v4336_v34 = vld [vmem:[#allocation3 + $0x8a] sm:$0xff]  ;;  %3958 = vmatpush.msra.mxu3 %v5198_v60  ;;  %v7874_v60 = vld [vmem:[#allocation3 + $0xa1] sm:$0xff] }
 0x539   : > { %4216 = vmatmul.f32.gmra.mxu0 %v7845_v36  ;;  %4424 = vmatmul.f32.gmra.mxu1 %v4335_v6  ;;  %v7866_v10 = vpop.f32.mrf.mxu1  ;;  %9104 = vst [vmem:[#allocation130_spill] sm:$0xff] %v7874_v60  ;;  %v3698_v36 = vld [vmem:[#allocation3 + $0x98] sm:$0xff] }
 0x53a   : > { %v7850_v26 = vpop.f32.mrf.mxu3  ;;  %9103 = vst [vmem:[#allocation90_spill] sm:$0xff] %v7866_v10  ;;  %v5195_v10 = vld [vmem:[%s8643_s6 + $0x2a0] sm:$0xff] }
 0x53b   : > { %v7848_v43 = vpop.f32.mrf.mxu2  ;;  %9097 = vst [vmem:[#allocation87_spill] sm:$0xff] %v7850_v26 }
 0x53c   : > { %9096 = vst [vmem:[#allocation145_spill] sm:$0xff] %v7848_v43 }
 0x53f   : > { %3236 = vmatmul.f32.gmra.mxu3 %v2930_v49  ;;  %v2931_v49 = vld [vmem:[#allocation3 + $0x105] sm:$0xff] }
 0x540   : > { %3791 = vmatmul.f32.gmra.mxu2 %v3696_v47  ;;  %v5197_v47 = vld [vmem:[%s8643_s6 + $0x2b0] sm:$0xff] }
 0x541   : > { %4219 = vmatmul.f32.gmra.mxu0 %v7856_v39  ;;  %4427 = vmatmul.f32.gmra.mxu1 %v4336_v34  ;;  %v5196_v34 = vld [vmem:[%s8643_s6 + $0x2a8] sm:$0xff]  ;;  %v7883_v39 = vpop.f32.mrf.mxu0  ;;  %v7895_v26 = vpop.f32.mrf.mxu1 }
 0x542   : > { %v7864_v43 = vpop.f32.mrf.mxu3  ;;  %3959 = vmatpush.msra.mxu3 %v5197_v47  ;;  %v5246_v47 = vld [vmem:[%s8643_s6 + $0x438] sm:$0xff]  ;;  %9105 = vst [vmem:[#allocation57_spill] sm:$0xff] %v7883_v39 }
 0x543   : > { %v7862_v6 = vpop.f32.mrf.mxu2  ;;  %9102 = vst [vmem:[#allocation147_spill] sm:$0xff] %v7864_v43  ;;  %4600 = vmatpush.msra.mxu2 %v5246_v47  ;;  %v5193_v43 = vld [vmem:[%s8643_s6 + $0x290] sm:$0xff]  ;;  %v4338_v47 = vld [vmem:[#allocation3 + $0x9a] sm:$0xff] }
 0x544   : > { %9101 = vst [vmem:[#allocation28_spill] sm:$0xff] %v7862_v6  ;;  %v4337_v6 = vld [vmem:[#allocation3 + $0x92] sm:$0xff]  ;;  %3960 = vmatpush.msra.mxu3 %v5196_v34  ;;  %v7897_v34 = vld [vmem:[#allocation3 + $0xa9] sm:$0xff] }
 0x545   : > { %9108 = vst [vmem:[#allocation131_spill] sm:$0xff] %v7895_v26  ;;  %v2933_v26 = vld [vmem:[#allocation3 + $0x115] sm:$0xff] }
 0x546   : > { %3961 = vmatpush.msra.mxu3 %v5195_v10  ;;  %9109 = vst [vmem:[#allocation59_spill] sm:$0xff] %v7897_v34  ;;  %v5192_v10 = vld [vmem:[%s8643_s6 + $0x288] sm:$0xff] }
 0x547   : > { %3239 = vmatmul.f32.gmra.mxu3 %v2931_v49 }
 0x548   : > { %3794 = vmatmul.f32.gmra.mxu2 %v3697_v52 }
 0x549   : > { %4222 = vmatmul.f32.gmra.mxu0 %v7874_v60  ;;  %4430 = vmatmul.f32.gmra.mxu1 %v4337_v6  ;;  %v5194_v6 = vld [vmem:[%s8643_s6 + $0x298] sm:$0xff]  ;;  %v2932_v60 = vld [vmem:[#allocation3 + $0x10d] sm:$0xff] }
 0x54a   : > { %v7887_v52 = vpop.f32.mrf.mxu3  ;;  %3962 = vmatpush.msra.mxu3 %v5194_v6  ;;  %v3148_v6 = vadd.f32 %v7670_v3, %v7273_v63  ;;  %v7915_v63 = vld [vmem:[#allocation3 + $0xb1] sm:$0xff]  ;;  %v4339_v3 = vld [vmem:[#allocation3 + $0xa2] sm:$0xff] }
 0x54b   : > { %v7885_v49 = vpop.f32.mrf.mxu2  ;;  %9107 = vst [vmem:[#allocation92_spill] sm:$0xff] %v7887_v52  ;;  %v7933_v52 = vld [vmem:[#allocation3 + $0xb9] sm:$0xff] }
 0x54c   : > { %9106 = vst [vmem:[#allocation29_spill] sm:$0xff] %v7885_v49  ;;  %3963 = vmatpush.msra.mxu3 %v5193_v43  ;;  %v5245_v43 = vld [vmem:[%s8643_s6 + $0x430] sm:$0xff] }
 0x54d   : > { %9113 = vst [vmem:[#allocation61_spill] sm:$0xff] %v7915_v63  ;;  %4601 = vmatpush.msra.mxu2 %v5245_v43 }
 0x54e   : > { %3964 = vmatpush.msra.mxu3 %v5192_v10  ;;  %v3151_v10 = vadd.f32 %v7692_v30, %v7303_v23  ;;  %v4340_v23 = vld [vmem:[#allocation3 + $0xaa] sm:$0xff] }
 0x54f   : > { %3242 = vmatmul.f32.gmra.mxu3 %v2932_v60  ;;  %v7912_v60 = vpop.f32.mrf.mxu0 }
 0x550   : > { %3797 = vmatmul.f32.gmra.mxu2 %v3698_v36  ;;  %v5191_v36 = vld [vmem:[%s8643_s6 + $0x280] sm:$0xff]  ;;  %9112 = vst [vmem:[#allocation133_spill] sm:$0xff] %v7912_v60 }
 0x551   : > { %4225 = vmatmul.f32.gmra.mxu0 %v7897_v34  ;;  %4433 = vmatmul.f32.gmra.mxu1 %v4338_v47  ;;  %v3433_v47 = vadd.f32 %v7265_v53, %v3148_v6  ;;  %v3699_v34 = vld [vmem:[#allocation3 + $0xa0] sm:$0xff] }
 0x552   : > { %v7907_v39 = vpop.f32.mrf.mxu3  ;;  %3965 = vmatpush.msra.mxu3 %v5191_v36  ;;  %v9115_v36 = vld [vmem:[#allocation58_spill] sm:$0xff] }
 0x553   : > { %v7905_v49 = vpop.f32.mrf.mxu2  ;;  %9111 = vst [vmem:[#allocation94_spill] sm:$0xff] %v7907_v39  ;;  %v3647_v53 = vadd.f32 %v7313_v17, %v3433_v47  ;;  %v3434_v60 = vadd.f32 %v9115_v36, %v3151_v10  ;;  %v3700_v39 = vld [vmem:[#allocation3 + $0xa8] sm:$0xff]  ;;  %v3154_v17 = vadd.f32 %v7709_v13, %v7321_v9  ;;  %v4341_v9 = vld [vmem:[#allocation3 + $0xb2] sm:$0xff] }
 0x554   : > { %9110 = vst [vmem:[#allocation30_spill] sm:$0xff] %v7905_v49  ;;  %v7923_v49 = vpop.f32.mrf.mxu1 }
 0x555   : > { %9114 = vst [vmem:[#allocation155_spill] sm:$0xff] %v7923_v49  ;;  %v3648_v30 = vadd.f32 %v7327_v44, %v3434_v60  ;;  %v9119_v44 = vld [vmem:[#allocation72_spill] sm:$0xff] }
 0x556   : > { %v3157_v13 = vadd.f32 %v7721_v59, %v9119_v44  ;;  %v9120_v60 = vld [vmem:[#allocation60_spill] sm:$0xff]  ;;  %v7964_v59 = vld [vmem:[#allocation3 + $0xc9] sm:$0xff] }
 0x557   : > { %3245 = vmatmul.f32.gmra.mxu3 %v2933_v26 }
 0x558   : > { %3800 = vmatmul.f32.gmra.mxu2 %v3699_v34 }
 0x559   : > { %4228 = vmatmul.f32.gmra.mxu0 %v7915_v63  ;;  %4436 = vmatmul.f32.gmra.mxu1 %v4339_v3  ;;  %v7931_v3 = vpop.f32.mrf.mxu0  ;;  %v2934_v63 = vld [vmem:[#allocation3 + $0x11d] sm:$0xff] }
 0x55a   : > { %v7926_v26 = vpop.f32.mrf.mxu3  ;;  %9116 = vst [vmem:[#allocation35_spill] sm:$0xff] %v7931_v3  ;;  %v9121_v3 = vld [vmem:[#allocation42_spill] sm:$0xff] }
 0x55b   : > { %v3753_v34 = vpop.f32.mrf.mxu2 }
 0x55c   : > { %v7928_v6 = vadd.f32 %v3753_v34, %v3647_v53  ;;  %v7941_v10 = vpop.f32.mrf.mxu1  ;;  %v3701_v34 = vld [vmem:[#allocation3 + $0xb0] sm:$0xff] }
 0x55d   : > { %9117 = vst [vmem:[#allocation153_spill] sm:$0xff] %v7941_v10  ;;  %v3702_v10 = vld [vmem:[#allocation3 + $0xb8] sm:$0xff] }
 0x55f   : > { %3248 = vmatmul.f32.gmra.mxu3 %v2934_v63  ;;  %v2935_v63 = vld [vmem:[#allocation3 + $0x125] sm:$0xff] }
 0x560   : > { %3803 = vmatmul.f32.gmra.mxu2 %v3700_v39  ;;  %v3435_v39 = vadd.f32 %v7311_v4, %v3154_v17 }
 0x561   : > { %4231 = vmatmul.f32.gmra.mxu0 %v7933_v52  ;;  %4439 = vmatmul.f32.gmra.mxu1 %v4340_v23  ;;  %v7946_v36 = vpop.f32.mrf.mxu0  ;;  %v7948_v23 = vld [vmem:[#allocation3 + $0xc1] sm:$0xff] }
 0x562   : > { %v7939_v47 = vpop.f32.mrf.mxu3  ;;  %9118 = vst [vmem:[#allocation97_spill] sm:$0xff] %v7946_v36  ;;  %v3436_v36 = vadd.f32 %v9121_v3, %v3157_v13  ;;  %v3160_v3 = vadd.f32 %v7735_v55, %v7352_v40  ;;  %v4343_v40 = vld [vmem:[#allocation3 + $0xc2] sm:$0xff] }
 0x563   : > { %v3756_v43 = vpop.f32.mrf.mxu2 }
 0x564   : > { %v7943_v53 = vadd.f32 %v3756_v43, %v3648_v30  ;;  %v3649_v30 = vadd.f32 %v9120_v60, %v3435_v39  ;;  %v4342_v39 = vld [vmem:[#allocation3 + $0xba] sm:$0xff]  ;;  %v3650_v13 = vadd.f32 %v7358_v0, %v3436_v36  ;;  %v3163_v0 = vadd.f32 %v7749_v5, %v7366_v41 }
 0x565   : > { %v7996_v41 = vld [vmem:[#allocation3 + $0xd9] sm:$0xff]  ;;  %v3166_v5 = vadd.f32 %v7761_v19, %v7383_v51 }
 0x566   : > { %v4345_v51 = vld [vmem:[#allocation3 + $0xd2] sm:$0xff] }
 0x567   : > { %3251 = vmatmul.f32.gmra.mxu3 %v2935_v63  ;;  %v7959_v63 = vpop.f32.mrf.mxu1 }
 0x568   : > { %3806 = vmatmul.f32.gmra.mxu2 %v3701_v34  ;;  %9122 = vst [vmem:[#allocation135_spill] sm:$0xff] %v7959_v63  ;;  %v5244_v34 = vld [vmem:[%s8643_s6 + $0x428] sm:$0xff] }
 0x569   : > { %4234 = vmatmul.f32.gmra.mxu0 %v7948_v23  ;;  %4442 = vmatmul.f32.gmra.mxu1 %v4341_v9  ;;  %v3897_v9 = vld [vmem:[#allocation3 + $0x21] sm:$0xff]  ;;  %v7969_v44 = vpop.f32.mrf.mxu0  ;;  %v3898_v63 = vld [vmem:[#allocation3 + $0x29] sm:$0xff] }
 0x56a   : > { %v7954_v43 = vpop.f32.mrf.mxu3  ;;  %4602 = vmatpush.msra.mxu2 %v5244_v34 }
 0x56b   : > { %v3759_v4 = vpop.f32.mrf.mxu2 }
 0x56c   : > { %v7956_v17 = vadd.f32 %v3759_v4, %v3649_v30 }
 0x56f   : > { %3966 = vmatmul.f32.vlgmr.msra.gmra.mxu3 %v3897_v9  ;;  %v3703_v9 = vld [vmem:[#allocation3 + $0xc0] sm:$0xff]  ;;  %v7977_v49 = vpop.f32.mrf.mxu1 }
 0x570   : > { %3809 = vmatmul.f32.gmra.mxu2 %v3702_v10  ;;  %v9123_v10 = vld [vmem:[#allocation6_spill] sm:$0xff] }
 0x571   : > { %4237 = vmatmul.f32.gmra.mxu0 %v7964_v59  ;;  %4445 = vmatmul.f32.gmra.mxu1 %v4342_v39  ;;  %v3437_v34 = vadd.f32 %v9123_v10, %v3160_v3  ;;  %v7979_v39 = vld [vmem:[#allocation3 + $0xd1] sm:$0xff]  ;;  %v5243_v10 = vld [vmem:[%s8643_s6 + $0x420] sm:$0xff] }
 0x572   : > { %v7972_v60 = vpop.f32.mrf.mxu3  ;;  %4603 = vmatpush.msra.mxu2 %v5243_v10  ;;  %v3705_v10 = vld [vmem:[#allocation3 + $0xd0] sm:$0xff] }
 0x573   : > { %v3762_v30 = vpop.f32.mrf.mxu2  ;;  %v3651_v55 = vadd.f32 %v7372_v58, %v3437_v34  ;;  %v4344_v58 = vld [vmem:[#allocation3 + $0xca] sm:$0xff] }
 0x574   : > { %v7974_v4 = vadd.f32 %v3762_v30, %v3650_v13  ;;  %v7987_v13 = vpop.f32.mrf.mxu0 }
 0x577   : > { %3969 = vmatmul.f32.gmra.mxu3 %v3898_v63  ;;  %v3438_v63 = vadd.f32 %v7356_v14, %v3163_v0  ;;  %v8001_v34 = vpop.f32.mrf.mxu1 }
 0x578   : > { %3812 = vmatmul.f32.gmra.mxu2 %v3703_v9  ;;  %v3704_v9 = vld [vmem:[#allocation3 + $0xc8] sm:$0xff] }
 0x579   : > { %4240 = vmatmul.f32.gmra.mxu0 %v7979_v39  ;;  %4448 = vmatmul.f32.gmra.mxu1 %v4343_v40  ;;  %v3652_v14 = vadd.f32 %v7389_v24, %v3438_v63  ;;  %v3169_v24 = vadd.f32 %v7772_v12, %v7402_v22  ;;  %v4346_v22 = vld [vmem:[#allocation3 + $0xda] sm:$0xff]  ;;  %v3172_v12 = vadd.f32 %v7787_v15, %v7419_v2 }
 0x57a   : > { %v7985_v36 = vpop.f32.mrf.mxu3  ;;  %v3175_v2 = vadd.f32 %v7798_v38, %v7433_v28  ;;  %v4348_v28 = vld [vmem:[#allocation3 + $0xea] sm:$0xff]  ;;  %v3178_v38 = vadd.f32 %v7812_v54, %v7450_v46  ;;  %v3181_v46 = vadd.f32 %v7824_v56, %v7464_v29  ;;  %v4350_v29 = vld [vmem:[#allocation3 + $0xfa] sm:$0xff] }
 0x57b   : > { %v3765_v3 = vpop.f32.mrf.mxu2 }
 0x57c   : > { %v7989_v30 = vadd.f32 %v3765_v3, %v3651_v55  ;;  %v8009_v3 = vpop.f32.mrf.mxu0 }
 0x57d   : > { %9124 = vst [vmem:[#allocation63_spill] sm:$0xff] %v8009_v3 }
 0x57f   : > { %3972 = vmatmul.f32.gmra.mxu3 %v7684_v42  ;;  %v3439_v42 = vadd.f32 %v7370_v62, %v3166_v5 }
 0x580   : > { %3815 = vmatmul.f32.gmra.mxu2 %v3704_v9  ;;  %v8012_v9 = vld [vmem:[#allocation3 + $0xe1] sm:$0xff] }
 0x581   : > { %4243 = vmatmul.f32.gmra.mxu0 %v7996_v41  ;;  %4451 = vmatmul.f32.gmra.mxu1 %v4344_v58  ;;  %v3653_v19 = vadd.f32 %v7408_v7, %v3439_v42  ;;  %v8020_v58 = vpop.f32.mrf.mxu1  ;;  %v5242_v7 = vld [vmem:[%s8643_s6 + $0x418] sm:$0xff] }
 0x582   : > { %v8004_v40 = vpop.f32.mrf.mxu3  ;;  %4604 = vmatpush.msra.mxu2 %v5242_v7 }
 0x583   : > { %v3768_v0 = vpop.f32.mrf.mxu2 }
 0x584   : > { %v8006_v55 = vadd.f32 %v3768_v0, %v3652_v14  ;;  %v3706_v14 = vld [vmem:[#allocation3 + $0xd8] sm:$0xff]  ;;  %v8025_v0 = vpop.f32.mrf.mxu0 }
 0x585   : > { %9125 = vst [vmem:[#allocation158_spill] sm:$0xff] %v8025_v0  ;;  %v3715_v0 = vld [vmem:[#allocation3 + $0x120] sm:$0xff] }
 0x587   : > { %3975 = vmatmul.f32.gmra.mxu3 %v7702_v31  ;;  %v3440_v31 = vadd.f32 %v7387_v45, %v3169_v24  ;;  %v3441_v24 = vadd.f32 %v7406_v20, %v3172_v12  ;;  %v3708_v12 = vld [vmem:[#allocation3 + $0xe8] sm:$0xff] }
 0x588   : > { %3818 = vmatmul.f32.gmra.mxu2 %v3705_v10  ;;  %v8028_v10 = vld [vmem:[#allocation3 + $0xe9] sm:$0xff] }
 0x589   : > { %4246 = vmatmul.f32.gmra.mxu0 %v8012_v9  ;;  %4454 = vmatmul.f32.gmra.mxu1 %v4345_v51  ;;  %v3654_v45 = vadd.f32 %v7425_v25, %v3440_v31  ;;  %v3655_v15 = vadd.f32 %v7439_v27, %v3441_v24  ;;  %v5241_v27 = vld [vmem:[%s8643_s6 + $0x410] sm:$0xff] }
 0x58a   : > { %v8018_v63 = vpop.f32.mrf.mxu3  ;;  %4605 = vmatpush.msra.mxu2 %v5241_v27 }
 0x58b   : > { %v3771_v62 = vpop.f32.mrf.mxu2 }
 0x58c   : > { %v8022_v5 = vadd.f32 %v3771_v62, %v3653_v19  ;;  %v8042_v19 = vpop.f32.mrf.mxu1  ;;  %v3707_v62 = vld [vmem:[#allocation3 + $0xe0] sm:$0xff]  ;;  %v8050_v25 = vpop.f32.mrf.mxu0 }
 0x58d   : > { %9126 = vst [vmem:[#allocation31_spill] sm:$0xff] %v8042_v19  ;;  %v9165_v19 = vld [vmem:[#allocation142_spill] sm:$0xff] }
 0x58e   : > { %9127 = vst [vmem:[#allocation156_spill] sm:$0xff] %v8050_v25  ;;  %v9156_v25 = vld [vmem:[#allocation52_spill] sm:$0xff] }
 0x58f   : > { %3978 = vmatmul.f32.gmra.mxu3 %v7713_v32 }
 0x590   : > { %3821 = vmatmul.f32.gmra.mxu2 %v3706_v14  ;;  %v8045_v14 = vld [vmem:[#allocation3 + $0xf1] sm:$0xff] }
 0x591   : > { %4249 = vmatmul.f32.gmra.mxu0 %v8028_v10  ;;  %4457 = vmatmul.f32.gmra.mxu1 %v4346_v22  ;;  %v4347_v22 = vld [vmem:[#allocation3 + $0xe2] sm:$0xff] }
 0x592   : > { %v8037_v42 = vpop.f32.mrf.mxu3 }
 0x593   : > { %v3774_v51 = vpop.f32.mrf.mxu2 }
 0x594   : > { %v8039_v32 = vadd.f32 %v3774_v51, %v3654_v45  ;;  %v8058_v45 = vpop.f32.mrf.mxu1  ;;  %v8061_v51 = vld [vmem:[#allocation3 + $0xf9] sm:$0xff] }
 0x595   : > { %9128 = vst [vmem:[#allocation100_spill] sm:$0xff] %v8058_v45  ;;  %v8160_v45 = vld [vmem:[#allocation3 + $0x129] sm:$0xff] }
 0x596   : > { %9157 = vst [vmem:[#allocation73_spill] sm:$0xff] %v8160_v45 }
 0x597   : > { %3981 = vmatmul.f32.gmra.mxu3 %v7730_v21  ;;  %v3442_v21 = vadd.f32 %v7423_v11, %v3175_v2  ;;  %v3443_v2 = vadd.f32 %v7437_v18, %v3178_v38  ;;  %v3710_v38 = vld [vmem:[#allocation3 + $0xf8] sm:$0xff] }
 0x598   : > { %3824 = vmatmul.f32.gmra.mxu2 %v3707_v62 }
 0x599   : > { %4252 = vmatmul.f32.gmra.mxu0 %v8045_v14  ;;  %4460 = vmatmul.f32.gmra.mxu1 %v4347_v22  ;;  %v3656_v11 = vadd.f32 %v7456_v50, %v3442_v21  ;;  %v3657_v54 = vadd.f32 %v7470_v1, %v3443_v2  ;;  %v3184_v1 = vadd.f32 %v7838_v61, %v7478_v35  ;;  %v9134_v35 = vld [vmem:[#allocation98_spill] sm:$0xff]  ;;  %v4351_v61 = vld [vmem:[#allocation3 + $0x102] sm:$0xff] }
 0x59a   : > { %v8053_v20 = vpop.f32.mrf.mxu3 }
 0x59b   : > { %v3777_v31 = vpop.f32.mrf.mxu2 }
 0x59c   : > { %v8055_v7 = vadd.f32 %v3777_v31, %v3655_v15  ;;  %v3709_v15 = vld [vmem:[#allocation3 + $0xf0] sm:$0xff]  ;;  %v8078_v31 = vld [vmem:[#allocation3 + $0x101] sm:$0xff]  ;;  %v8083_v50 = vpop.f32.mrf.mxu1 }
 0x59d   : > { %9130 = vst [vmem:[#allocation67_spill] sm:$0xff] %v8083_v50  ;;  %v3714_v50 = vld [vmem:[#allocation3 + $0x118] sm:$0xff] }
 0x59f   : > { %3984 = vmatmul.f32.gmra.mxu3 %v7739_v48  ;;  %v8072_v48 = vpop.f32.mrf.mxu0 }
 0x5a0   : > { %3827 = vmatmul.f32.gmra.mxu2 %v3708_v12  ;;  %9129 = vst [vmem:[#allocation137_spill] sm:$0xff] %v8072_v48  ;;  %v4349_v12 = vld [vmem:[#allocation3 + $0xf2] sm:$0xff] }
 0x5a1   : > { %4255 = vmatmul.f32.gmra.mxu0 %v8061_v51  ;;  %4463 = vmatmul.f32.gmra.mxu1 %v4348_v28  ;;  %v3713_v48 = vld [vmem:[#allocation3 + $0x110] sm:$0xff] }
 0x5a2   : > { %v8070_v24 = vpop.f32.mrf.mxu3 }
 0x5a3   : > { %v3780_v62 = vpop.f32.mrf.mxu2 }
 0x5a4   : > { %v8074_v22 = vadd.f32 %v3780_v62, %v3656_v11  ;;  %v8094_v11 = vld [vmem:[#allocation3 + $0x109] sm:$0xff]  ;;  %v8102_v2 = vpop.f32.mrf.mxu1 }
 0x5a5   : > { %9132 = vst [vmem:[#allocation159_spill] sm:$0xff] %v8102_v2  ;;  %v8127_v2 = vld [vmem:[#allocation3 + $0x119] sm:$0xff] }
 0x5a7   : > { %3987 = vmatmul.f32.gmra.mxu3 %v7753_v57  ;;  %v3444_v57 = vadd.f32 %v7454_v8, %v3181_v46  ;;  %v8091_v27 = vpop.f32.mrf.mxu0  ;;  %v3711_v46 = vld [vmem:[#allocation3 + $0x100] sm:$0xff] }
 0x5a8   : > { %3830 = vmatmul.f32.gmra.mxu2 %v3709_v15  ;;  %9131 = vst [vmem:[#allocation32_spill] sm:$0xff] %v8091_v27  ;;  %v9141_v27 = vld [vmem:[#allocation122_spill] sm:$0xff] }
 0x5a9   : > { %4258 = vmatmul.f32.gmra.mxu0 %v8078_v31  ;;  %4466 = vmatmul.f32.gmra.mxu1 %v4349_v12  ;;  %v3658_v56 = vadd.f32 %v7482_v16, %v3444_v57  ;;  %v5240_v12 = vld [vmem:[%s8643_s6 + $0x408] sm:$0xff]  ;;  %v8113_v16 = vld [vmem:[#allocation3 + $0x111] sm:$0xff] }
 0x5aa   : > { %v8086_v21 = vpop.f32.mrf.mxu3  ;;  %4606 = vmatpush.msra.mxu2 %v5240_v12  ;;  %v9136_v57 = vld [vmem:[#allocation87_spill] sm:$0xff] }
 0x5ab   : > { %v3783_v18 = vpop.f32.mrf.mxu2  ;;  %v9139_v12 = vld [vmem:[#allocation43_spill] sm:$0xff] }
 0x5ac   : > { %v8088_v28 = vadd.f32 %v3783_v18, %v3657_v54  ;;  %v9135_v18 = vld [vmem:[#allocation75_spill] sm:$0xff] }
 0x5af   : > { %3990 = vmatmul.f32.gmra.mxu3 %v7765_v37  ;;  %v3445_v37 = vadd.f32 %v7468_v33, %v3184_v1  ;;  %v8110_v54 = vpop.f32.mrf.mxu0  ;;  %v3187_v33 = vadd.f32 %v9136_v57, %v9135_v18  ;;  %v9143_v18 = vld [vmem:[#allocation147_spill] sm:$0xff] }
 0x5b0   : > { %3833 = vmatmul.f32.gmra.mxu2 %v3710_v38  ;;  %9133 = vst [vmem:[#allocation102_spill] sm:$0xff] %v8110_v54  ;;  %v9137_v38 = vld [vmem:[#allocation7_spill] sm:$0xff]  ;;  %v8124_v54 = vpop.f32.mrf.mxu1 }
 0x5b1   : > { %4261 = vmatmul.f32.gmra.mxu0 %v8094_v11  ;;  %4469 = vmatmul.f32.gmra.mxu1 %v4350_v29  ;;  %v3659_v29 = vadd.f32 %v9137_v38, %v3445_v37  ;;  %9140 = vst [vmem:[#allocation70_spill] sm:$0xff] %v8124_v54  ;;  %v9142_v37 = vld [vmem:[#allocation44_spill] sm:$0xff] }
 0x5b2   : > { %v8100_v62 = vpop.f32.mrf.mxu3  ;;  %v3190_v57 = vadd.f32 %v9143_v18, %v9142_v37  ;;  %v5239_v54 = vld [vmem:[%s8643_s6 + $0x400] sm:$0xff]  ;;  %v9149_v37 = vld [vmem:[#allocation22_spill] sm:$0xff] }
 0x5b3   : > { %v3786_v8 = vpop.f32.mrf.mxu2  ;;  %4607 = vmatpush.msra.mxu2 %v5239_v54  ;;  %v8146_v18 = vld [vmem:[#allocation3 + $0x121] sm:$0xff] }
 0x5b4   : > { %v8104_v15 = vadd.f32 %v3786_v8, %v3658_v56 }
 0x5b7   : > { %3993 = vmatmul.f32.gmra.mxu3 %v9134_v35  ;;  %v3712_v35 = vld [vmem:[#allocation3 + $0x108] sm:$0xff]  ;;  %v8132_v38 = vpop.f32.mrf.mxu0 }
 0x5b8   : > { %3836 = vmatmul.f32.gmra.mxu2 %v3711_v46  ;;  %v3446_v46 = vadd.f32 %v9139_v12, %v3187_v33  ;;  %9144 = vst [vmem:[#allocation163_spill] sm:$0xff] %v8132_v38 }
 0x5b9   : > { %4264 = vmatmul.f32.gmra.mxu0 %v8113_v16  ;;  %4472 = vmatmul.f32.gmra.mxu1 %v4351_v61  ;;  %v4352_v61 = vld [vmem:[#allocation3 + $0x10a] sm:$0xff] }
 0x5ba   : > { %v8119_v1 = vpop.f32.mrf.mxu3 }
 0x5bb   : > { %v3789_v56 = vpop.f32.mrf.mxu2 }
 0x5bc   : > { %v8121_v8 = vadd.f32 %v3789_v56, %v3659_v29  ;;  %v9145_v29 = vld [vmem:[#allocation78_spill] sm:$0xff] }
 0x5bd   : > { %v3660_v56 = vadd.f32 %v9145_v29, %v3446_v46  ;;  %v4353_v46 = vld [vmem:[#allocation3 + $0x112] sm:$0xff]  ;;  %v9150_v29 = vld [vmem:[#allocation8_spill] sm:$0xff] }
 0x5be   : > { %9138 = vst [vmem:[#allocation139_spill] sm:$0xff] %v8121_v8 }
 0x5bf   : > { %3996 = vmatmul.f32.gmra.mxu3 %v9141_v27 }
 0x5c0   : > { %3839 = vmatmul.f32.gmra.mxu2 %v3712_v35  ;;  %v9147_v35 = vld [vmem:[#allocation62_spill] sm:$0xff] }
 0x5c1   : > { %4267 = vmatmul.f32.gmra.mxu0 %v8127_v2  ;;  %4475 = vmatmul.f32.gmra.mxu1 %v4352_v61  ;;  %v3447_v27 = vadd.f32 %v9147_v35, %v3190_v57  ;;  %v8143_v61 = vpop.f32.mrf.mxu1 }
 0x5c2   : > { %v8135_v33 = vpop.f32.mrf.mxu3  ;;  %9148 = vst [vmem:[#allocation162_spill] sm:$0xff] %v8143_v61  ;;  %v8156_v61 = vpop.f32.mrf.mxu0 }
 0x5c3   : > { %v3792_v12 = vpop.f32.mrf.mxu2  ;;  %9154 = vst [vmem:[#allocation141_spill] sm:$0xff] %v8156_v61 }
 0x5c4   : > { %v8137_v8 = vadd.f32 %v3792_v12, %v3660_v56  ;;  %v9151_v56 = vld [vmem:[#allocation92_spill] sm:$0xff]  ;;  %v9152_v12 = vld [vmem:[#allocation110_spill] sm:$0xff] }
 0x5c5   : > { %v3193_v57 = vadd.f32 %v9151_v56, %v9150_v29  ;;  %v3661_v35 = vadd.f32 %v9152_v12, %v3447_v27  ;;  %v9158_v27 = vld [vmem:[#allocation45_spill] sm:$0xff]  ;;  %v9159_v29 = vld [vmem:[#allocation94_spill] sm:$0xff] }
 0x5c6   : > { %9146 = vst [vmem:[#allocation38_spill] sm:$0xff] %v8137_v8  ;;  %v3196_v56 = vadd.f32 %v9159_v29, %v9158_v27  ;;  %v4355_v27 = vld [vmem:[#allocation3 + $0x122] sm:$0xff] }
 0x5c7   : > { %3999 = vmatmul.f32.gmra.mxu3 %v9149_v37 }
 0x5c8   : > { %3842 = vmatmul.f32.gmra.mxu2 %v3713_v48  ;;  %v9155_v48 = vld [vmem:[#allocation64_spill] sm:$0xff] }
 0x5c9   : > { %4270 = vmatmul.f32.gmra.mxu0 %v8146_v18  ;;  %4478 = vmatmul.f32.gmra.mxu1 %v4353_v46  ;;  %v3448_v37 = vadd.f32 %v9155_v48, %v3193_v57  ;;  %v4354_v46 = vld [vmem:[#allocation3 + $0x11a] sm:$0xff]  ;;  %v8165_v12 = vpop.f32.mrf.mxu1 }
 0x5ca   : > { %v8152_v8 = vpop.f32.mrf.mxu3  ;;  %9160 = vst [vmem:[#allocation34_spill] sm:$0xff] %v8165_v12  ;;  %v8173_v61 = vpop.f32.mrf.mxu0  ;;  %v9172_v12 = vld [vmem:[#allocation26_spill] sm:$0xff] }
 0x5cb   : > { %v3795_v38 = vpop.f32.mrf.mxu2  ;;  %9164 = vst [vmem:[#allocation144_spill] sm:$0xff] %v8173_v61  ;;  %v3716_v61 = vld [vmem:[#allocation3 + $0x128] sm:$0xff] }
 0x5cc   : > { %v8154_v54 = vadd.f32 %v3795_v38, %v3661_v35  ;;  %v9161_v38 = vld [vmem:[#allocation66_spill] sm:$0xff] }
 0x5cd   : > { %v3662_v35 = vadd.f32 %v9161_v38, %v3448_v37  ;;  %v9167_v37 = vld [vmem:[#allocation9_spill] sm:$0xff] }
 0x5ce   : > { %9153 = vst [vmem:[#allocation103_spill] sm:$0xff] %v8154_v54  ;;  %v3199_v29 = vadd.f32 %v7926_v26, %v9167_v37  ;;  %v9168_v38 = vld [vmem:[#allocation85_spill] sm:$0xff]  ;;  %v9175_v26 = vld [vmem:[#allocation46_spill] sm:$0xff] }
 0x5cf   : > { %4002 = vmatmul.f32.gmra.mxu3 %v9156_v25  ;;  %v9176_v37 = vld [vmem:[#allocation114_spill] sm:$0xff] }
 0x5d0   : > { %3845 = vmatmul.f32.gmra.mxu2 %v3714_v50  ;;  %v9163_v50 = vld [vmem:[#allocation82_spill] sm:$0xff] }
 0x5d1   : > { %4273 = vmatmul.f32.gmra.mxu0 %v8160_v45  ;;  %4481 = vmatmul.f32.gmra.mxu1 %v4354_v46  ;;  %v3449_v25 = vadd.f32 %v9163_v50, %v3196_v56  ;;  %v8176_v46 = vld [vmem:[#allocation3 + $0x131] sm:$0xff] }
 0x5d2   : > { %v8168_v54 = vpop.f32.mrf.mxu3  ;;  %9166 = vst [vmem:[#allocation76_spill] sm:$0xff] %v8176_v46  ;;  %v8192_v45 = vpop.f32.mrf.mxu0 }
 0x5d3   : > { %v3798_v57 = vpop.f32.mrf.mxu2  ;;  %9174 = vst [vmem:[#allocation80_spill] sm:$0xff] %v8192_v45  ;;  %v9180_v45 = vld [vmem:[#allocation149_spill] sm:$0xff] }
 0x5d4   : > { %v8170_v48 = vadd.f32 %v3798_v57, %v3662_v35  ;;  %v3663_v35 = vadd.f32 %v9168_v38, %v3449_v25  ;;  %v3202_v25 = vadd.f32 %v7939_v47, %v9175_v26  ;;  %v9182_v26 = vld [vmem:[#allocation14_spill] sm:$0xff] }
 0x5d6   : > { %9162 = vst [vmem:[#allocation105_spill] sm:$0xff] %v8170_v48  ;;  %v8186_v48 = vpop.f32.mrf.mxu1 }
 0x5d7   : > { %4005 = vmatmul.f32.gmra.mxu3 %v9165_v19  ;;  %9170 = vst [vmem:[#allocation107_spill] sm:$0xff] %v8186_v48  ;;  %v4357_v48 = vld [vmem:[#allocation3 + $0x132] sm:$0xff] }
 0x5d8   : > { %3848 = vmatmul.f32.gmra.mxu2 %v3715_v0  ;;  %v9171_v0 = vld [vmem:[#allocation112_spill] sm:$0xff] }
 0x5d9   : > { %4276 = vmatmul.f32.gmra.mxu0 %v8176_v46  ;;  %4484 = vmatmul.f32.gmra.mxu1 %v4355_v27  ;;  %v3450_v19 = vadd.f32 %v9171_v0, %v3199_v29  ;;  %v8190_v46 = vld [vmem:[#allocation3 + $0x139] sm:$0xff]  ;;  %v4356_v27 = vld [vmem:[#allocation3 + $0x12a] sm:$0xff] }
 0x5da   : > { %v8182_v57 = vpop.f32.mrf.mxu3  ;;  %9173 = vst [vmem:[#allocation146_spill] sm:$0xff] %v8190_v46 }
 0x5db   : > { %v3801_v56 = vpop.f32.mrf.mxu2  ;;  %v3664_v38 = vadd.f32 %v9176_v37, %v3450_v19 }
 0x5dc   : > { %v8184_v50 = vadd.f32 %v3801_v56, %v3663_v35 }
 0x5de   : > { %9169 = vst [vmem:[#allocation33_spill] sm:$0xff] %v8184_v50  ;;  %v8203_v0 = vpop.f32.mrf.mxu1  ;;  %v3717_v50 = vld [vmem:[#allocation3 + $0x130] sm:$0xff] }
 0x5df   : > { %4008 = vmatmul.f32.gmra.mxu3 %v9172_v12  ;;  %9179 = vst [vmem:[#allocation109_spill] sm:$0xff] %v8203_v0 }
 0x5e0   : > { %3851 = vmatmul.f32.gmra.mxu2 %v3716_v61  ;;  %v9178_v61 = vld [vmem:[#allocation12_spill] sm:$0xff] }
 0x5e1   : > { %4279 = vmatmul.f32.gmra.mxu0 %v8190_v46  ;;  %4487 = vmatmul.f32.gmra.mxu1 %v4356_v27  ;;  %v3451_v12 = vadd.f32 %v9178_v61, %v3202_v25  ;;  %v9181_v27 = vld [vmem:[#allocation68_spill] sm:$0xff]  ;;  %v3718_v61 = vld [vmem:[#allocation3 + $0x138] sm:$0xff] }
 0x5e2   : > { %v8198_v35 = vpop.f32.mrf.mxu3  ;;  %v3205_v47 = vadd.f32 %v7954_v43, %v9181_v27  ;;  %v9187_v27 = vld [vmem:[#allocation91_spill] sm:$0xff] }
 0x5e3   : > { %v3804_v29 = vpop.f32.mrf.mxu2  ;;  %v3665_v19 = vadd.f32 %v9182_v26, %v3451_v12 }
 0x5e4   : > { %v8200_v56 = vadd.f32 %v3804_v29, %v3664_v38  ;;  %v9184_v29 = vld [vmem:[#allocation88_spill] sm:$0xff] }
 0x5e5   : > { %v3452_v25 = vadd.f32 %v9184_v29, %v3205_v47  ;;  %v9188_v47 = vld [vmem:[#allocation116_spill] sm:$0xff]  ;;  %v4539_v29 = vld [vmem:[#allocation3 + $0x33] sm:$0xff] }
 0x5e6   : > { %9177 = vst [vmem:[#allocation39_spill] sm:$0xff] %v8200_v56  ;;  %v9185_v56 = vld [vmem:[#allocation130_spill] sm:$0xff] }
 0x5e7   : > { %4011 = vmatmul.f32.gmra.mxu3 %v9180_v45  ;;  %v8215_v45 = vpop.f32.mrf.mxu1  ;;  %v3666_v12 = vadd.f32 %v9187_v27, %v3452_v25 }
 0x5e8   : > { %3854 = vmatmul.f32.gmra.mxu2 %v3717_v50  ;;  %v4358_v50 = vld [vmem:[#allocation3 + $0x13a] sm:$0xff] }
 0x5e9   : > { %4490 = vmatmul.f32.gmra.mxu1 %v4357_v48  ;;  %v9186_v48 = vld [vmem:[#allocation47_spill] sm:$0xff] }
 0x5ea   : > { %v8209_v37 = vpop.f32.mrf.mxu3  ;;  %v3208_v43 = vadd.f32 %v7972_v60, %v9186_v48 }
 0x5eb   : > { %v3807_v46 = vpop.f32.mrf.mxu2 }
 0x5ec   : > { %v8211_v38 = vadd.f32 %v3807_v46, %v3665_v19  ;;  %v3453_v19 = vadd.f32 %v9188_v47, %v3208_v43  ;;  %v9193_v43 = vld [vmem:[#allocation61_spill] sm:$0xff]  ;;  %v9194_v47 = vld [vmem:[#allocation48_spill] sm:$0xff] }
 0x5ee   : > { %9183 = vst [vmem:[#allocation148_spill] sm:$0xff] %v8211_v38  ;;  %v9191_v38 = vld [vmem:[#allocation74_spill] sm:$0xff] }
 0x5ef   : > { %4014 = vmatmul.f32.gmra.mxu3 %v9185_v56  ;;  %v9189_v56 = vld [vmem:[#allocation59_spill] sm:$0xff]  ;;  %v3667_v60 = vadd.f32 %v9191_v38, %v3453_v19 }
 0x5f0   : > { %3857 = vmatmul.f32.gmra.mxu2 %v3718_v61  ;;  %v9190_v61 = vld [vmem:[#allocation71_spill] sm:$0xff] }
 0x5f1   : > { %4493 = vmatmul.f32.gmra.mxu1 %v4358_v50  ;;  %v3211_v50 = vadd.f32 %v7985_v36, %v9190_v61 }
 0x5f2   : > { %v3967_v0 = vpop.f32.mrf.mxu3 }
 0x5f3   : > { %v3810_v26 = vpop.f32.mrf.mxu2  ;;  %v8223_v46 = vadd.f32 %v3967_v0, %v7928_v6  ;;  %v9192_v6 = vld [vmem:[#allocation16_spill] sm:$0xff] }
 0x5f4   : > { %v8220_v3 = vadd.f32 %v3810_v26, %v3666_v12  ;;  %v3454_v0 = vadd.f32 %v9192_v6, %v3211_v50  ;;  %v4540_v26 = vld [vmem:[#allocation3 + $0x3b] sm:$0xff] }
 0x5f5   : > { %v9197_v50 = vld [vmem:[#allocation132_spill] sm:$0xff] }
 0x5f6   : > { %v3217_v6 = vadd.f32 %v8018_v63, %v9197_v50 }
 0x5f7   : > { %4017 = vmatmul.f32.gmra.mxu3 %v9189_v56  ;;  %v9195_v56 = vld [vmem:[#allocation95_spill] sm:$0xff] }
 0x5f8   : > { %4608 = vmatmul.f32.vlgmr.msra.gmra.mxu2 %v4539_v29  ;;  %v3214_v29 = vadd.f32 %v8004_v40, %v9194_v47  ;;  %v3668_v36 = vadd.f32 %v9195_v56, %v3454_v0 }
 0x5fa   : > { %v3970_v25 = vpop.f32.mrf.mxu3 }
 0x5fb   : > { %v3813_v48 = vpop.f32.mrf.mxu2  ;;  %v8233_v12 = vadd.f32 %v3970_v25, %v7943_v53  ;;  %v9196_v53 = vld [vmem:[#allocation118_spill] sm:$0xff]  ;;  %v4541_v25 = vld [vmem:[#allocation3 + $0x43] sm:$0xff] }
 0x5fc   : > { %v8230_v27 = vadd.f32 %v3813_v48, %v3667_v60  ;;  %v3455_v48 = vadd.f32 %v9196_v53, %v3214_v29 }
 0x5ff   : > { %4020 = vmatmul.f32.gmra.mxu3 %v9193_v43 }
 0x600   : > { %4611 = vmatmul.f32.gmra.mxu2 %v4540_v26  ;;  %v9198_v26 = vld [vmem:[#allocation77_spill] sm:$0xff] }
 0x601   : > { %v3669_v40 = vadd.f32 %v9198_v26, %v3455_v48 }
 0x602   : > { %v3973_v38 = vpop.f32.mrf.mxu3 }
 0x603   : > { %v3816_v61 = vpop.f32.mrf.mxu2  ;;  %v8243_v60 = vadd.f32 %v3973_v38, %v7956_v17  ;;  %v9199_v17 = vld [vmem:[#allocation134_spill] sm:$0xff]  ;;  %v9201_v38 = vld [vmem:[#allocation136_spill] sm:$0xff] }
 0x604   : > { %v8240_v19 = vadd.f32 %v3816_v61, %v3668_v36  ;;  %v3456_v36 = vadd.f32 %v9199_v17, %v3217_v6  ;;  %v4542_v61 = vld [vmem:[#allocation3 + $0x4b] sm:$0xff] }
 0x606   : > { %v3670_v63 = vadd.f32 %v9201_v38, %v3456_v36  ;;  %v4544_v38 = vld [vmem:[#allocation3 + $0x5b] sm:$0xff] }
 0x607   : > { %4023 = vmatmul.f32.gmra.mxu3 %v7933_v52  ;;  %v9200_v52 = vld [vmem:[#allocation49_spill] sm:$0xff] }
 0x608   : > { %4614 = vmatmul.f32.gmra.mxu2 %v4541_v25  ;;  %v3220_v29 = vadd.f32 %v8037_v42, %v9200_v52 }
 0x60a   : > { %v3976_v0 = vpop.f32.mrf.mxu3 }
 0x60b   : > { %v3819_v43 = vpop.f32.mrf.mxu2  ;;  %v8253_v56 = vadd.f32 %v3976_v0, %v7974_v4  ;;  %v9202_v4 = vld [vmem:[#allocation50_spill] sm:$0xff] }
 0x60c   : > { %v8250_v47 = vadd.f32 %v3819_v43, %v3669_v40  ;;  %v3457_v26 = vadd.f32 %v9202_v4, %v3220_v29  ;;  %v4543_v40 = vld [vmem:[#allocation3 + $0x53] sm:$0xff]  ;;  %v9204_v43 = vld [vmem:[#allocation140_spill] sm:$0xff] }
 0x60e   : > { %v3671_v42 = vadd.f32 %v9204_v43, %v3457_v26  ;;  %v9210_v43 = vld [vmem:[#allocation84_spill] sm:$0xff] }
 0x60f   : > { %4026 = vmatmul.f32.gmra.mxu3 %v7948_v23  ;;  %v9203_v23 = vld [vmem:[#allocation18_spill] sm:$0xff] }
 0x610   : > { %4617 = vmatmul.f32.gmra.mxu2 %v4542_v61  ;;  %v3223_v6 = vadd.f32 %v8053_v20, %v9203_v23  ;;  %v4545_v23 = vld [vmem:[#allocation3 + $0x63] sm:$0xff] }
 0x612   : > { %v3979_v48 = vpop.f32.mrf.mxu3 }
 0x613   : > { %v3822_v53 = vpop.f32.mrf.mxu2  ;;  %v8263_v50 = vadd.f32 %v3979_v48, %v7989_v30  ;;  %v9205_v30 = vld [vmem:[#allocation79_spill] sm:$0xff] }
 0x614   : > { %v8260_v25 = vadd.f32 %v3822_v53, %v3670_v63  ;;  %v3458_v52 = vadd.f32 %v9205_v30, %v3223_v6  ;;  %v9207_v63 = vld [vmem:[#allocation124_spill] sm:$0xff] }
 0x616   : > { %v3672_v20 = vadd.f32 %v9207_v63, %v3458_v52 }
 0x617   : > { %4029 = vmatmul.f32.gmra.mxu3 %v7964_v59  ;;  %v9206_v59 = vld [vmem:[#allocation120_spill] sm:$0xff] }
 0x618   : > { %4620 = vmatmul.f32.gmra.mxu2 %v4543_v40  ;;  %v3226_v29 = vadd.f32 %v8070_v24, %v9206_v59 }
 0x61a   : > { %v3982_v17 = vpop.f32.mrf.mxu3 }
 0x61b   : > { %v3825_v0 = vpop.f32.mrf.mxu2  ;;  %v8273_v61 = vadd.f32 %v3982_v17, %v8006_v55  ;;  %v9208_v55 = vld [vmem:[#allocation138_spill] sm:$0xff] }
 0x61c   : > { %v8270_v36 = vadd.f32 %v3825_v0, %v3671_v42  ;;  %v3459_v40 = vadd.f32 %v9208_v55, %v3226_v29  ;;  %v9213_v29 = vld [vmem:[#allocation128_spill] sm:$0xff] }
 0x61e   : > { %v3673_v24 = vadd.f32 %v9210_v43, %v3459_v40  ;;  %v4547_v40 = vld [vmem:[#allocation3 + $0x73] sm:$0xff] }
 0x61f   : > { %4032 = vmatmul.f32.gmra.mxu3 %v7979_v39  ;;  %v9209_v39 = vld [vmem:[#allocation20_spill] sm:$0xff] }
 0x620   : > { %4623 = vmatmul.f32.gmra.mxu2 %v4544_v38  ;;  %v3229_v6 = vadd.f32 %v8086_v21, %v9209_v39  ;;  %v4546_v38 = vld [vmem:[#allocation3 + $0x6b] sm:$0xff] }
 0x621   : > { %v9216_v39 = vld [vmem:[#allocation90_spill] sm:$0xff] }
 0x622   : > { %v3985_v48 = vpop.f32.mrf.mxu3 }
 0x623   : > { %v3828_v53 = vpop.f32.mrf.mxu2  ;;  %v8283_v26 = vadd.f32 %v3985_v48, %v8022_v5  ;;  %v9211_v5 = vld [vmem:[#allocation24_spill] sm:$0xff] }
 0x624   : > { %v8280_v4 = vadd.f32 %v3828_v53, %v3672_v20  ;;  %v3460_v52 = vadd.f32 %v9211_v5, %v3229_v6  ;;  %v4548_v5 = vld [vmem:[#allocation3 + $0x7b] sm:$0xff] }
 0x626   : > { %v3674_v21 = vadd.f32 %v9213_v29, %v3460_v52 }
 0x627   : > { %4035 = vmatmul.f32.gmra.mxu3 %v7996_v41  ;;  %v9212_v41 = vld [vmem:[#allocation51_spill] sm:$0xff] }
 0x628   : > { %4626 = vmatmul.f32.gmra.mxu2 %v4545_v23  ;;  %v3232_v59 = vadd.f32 %v8100_v62, %v9212_v41 }
 0x62a   : > { %v3988_v0 = vpop.f32.mrf.mxu3 }
 0x62b   : > { %v3831_v42 = vpop.f32.mrf.mxu2  ;;  %v8293_v30 = vadd.f32 %v3988_v0, %v8039_v32  ;;  %v9214_v32 = vld [vmem:[#allocation53_spill] sm:$0xff] }
 0x62c   : > { %v8290_v17 = vadd.f32 %v3831_v42, %v3673_v24  ;;  %v3461_v55 = vadd.f32 %v9214_v32, %v3232_v59 }
 0x62e   : > { %v3675_v62 = vadd.f32 %v9216_v39, %v3461_v55  ;;  %v9222_v55 = vld [vmem:[#allocation155_spill] sm:$0xff] }
 0x62f   : > { %4038 = vmatmul.f32.gmra.mxu3 %v8012_v9  ;;  %v9215_v9 = vld [vmem:[#allocation81_spill] sm:$0xff] }
 0x630   : > { %4629 = vmatmul.f32.gmra.mxu2 %v4546_v38  ;;  %v3235_v23 = vadd.f32 %v8119_v1, %v9215_v9  ;;  %v9219_v38 = vld [vmem:[#allocation131_spill] sm:$0xff] }
 0x632   : > { %v3991_v20 = vpop.f32.mrf.mxu3 }
 0x633   : > { %v3834_v63 = vpop.f32.mrf.mxu2  ;;  %v8303_v48 = vadd.f32 %v3991_v20, %v8055_v7  ;;  %v9217_v7 = vld [vmem:[#allocation54_spill] sm:$0xff]  ;;  %v4549_v20 = vld [vmem:[#allocation3 + $0x83] sm:$0xff] }
 0x634   : > { %v8300_v53 = vadd.f32 %v3834_v63, %v3674_v21  ;;  %v3462_v0 = vadd.f32 %v9217_v7, %v3235_v23  ;;  %v9225_v7 = vld [vmem:[#allocation153_spill] sm:$0xff] }
 0x636   : > { %v3676_v1 = vadd.f32 %v9219_v38, %v3462_v0  ;;  %v4551_v38 = vld [vmem:[#allocation3 + $0x93] sm:$0xff] }
 0x637   : > { %4041 = vmatmul.f32.gmra.mxu3 %v8028_v10  ;;  %v9218_v10 = vld [vmem:[#allocation143_spill] sm:$0xff] }
 0x638   : > { %4632 = vmatmul.f32.gmra.mxu2 %v4547_v40  ;;  %v3238_v52 = vadd.f32 %v8135_v33, %v9218_v10  ;;  %v9226_v10 = vld [vmem:[#allocation35_spill] sm:$0xff] }
 0x63a   : > { %v3994_v43 = vpop.f32.mrf.mxu3 }
 0x63b   : > { %v3837_v6 = vpop.f32.mrf.mxu2  ;;  %v8313_v42 = vadd.f32 %v3994_v43, %v8074_v22  ;;  %v9220_v22 = vld [vmem:[#allocation57_spill] sm:$0xff] }
 0x63c   : > { %v8310_v24 = vadd.f32 %v3837_v6, %v3675_v62  ;;  %v3463_v63 = vadd.f32 %v9220_v22, %v3238_v52  ;;  %v4550_v6 = vld [vmem:[#allocation3 + $0x8b] sm:$0xff] }
 0x63e   : > { %v3677_v33 = vadd.f32 %v9222_v55, %v3463_v63 }
 0x63f   : > { %4044 = vmatmul.f32.gmra.mxu3 %v8045_v14  ;;  %v9221_v14 = vld [vmem:[#allocation126_spill] sm:$0xff] }
 0x640   : > { %4635 = vmatmul.f32.gmra.mxu2 %v4548_v5  ;;  %v3241_v32 = vadd.f32 %v8152_v8, %v9221_v14  ;;  %v9230_v14 = vld [vmem:[#allocation29_spill] sm:$0xff] }
 0x642   : > { %v3997_v59 = vpop.f32.mrf.mxu3 }
 0x643   : > { %v3840_v41 = vpop.f32.mrf.mxu2  ;;  %v8323_v21 = vadd.f32 %v3997_v59, %v8088_v28  ;;  %v9223_v28 = vld [vmem:[#allocation133_spill] sm:$0xff] }
 0x644   : > { %v8320_v29 = vadd.f32 %v3840_v41, %v3676_v1  ;;  %v3464_v62 = vadd.f32 %v9223_v28, %v3241_v32  ;;  %v9228_v41 = vld [vmem:[#allocation135_spill] sm:$0xff]  ;;  %v3250_v32 = vadd.f32 %v8198_v35, %v9230_v14  ;;  %v8363_v35 = vpop.f32.mrf.mxu0 }
 0x646   : > { %v3678_v8 = vadd.f32 %v9225_v7, %v3464_v62  ;;  %v4554_v7 = vld [vmem:[#allocation3 + $0xab] sm:$0xff] }
 0x647   : > { %4047 = vmatmul.f32.gmra.mxu3 %v8061_v51  ;;  %v9224_v51 = vld [vmem:[#allocation145_spill] sm:$0xff] }
 0x648   : > { %4638 = vmatmul.f32.gmra.mxu2 %v4549_v20  ;;  %v3244_v43 = vadd.f32 %v8168_v54, %v9224_v51  ;;  %v9229_v54 = vld [vmem:[#allocation97_spill] sm:$0xff]  ;;  %v4552_v20 = vld [vmem:[#allocation3 + $0x9b] sm:$0xff] }
 0x64a   : > { %v4000_v9 = vpop.f32.mrf.mxu3  ;;  %v3465_v52 = vadd.f32 %v9226_v10, %v3244_v43  ;;  %v4145_v43 = vld [vmem:[#allocation3 + $0x141] sm:$0xff]  ;;  %v4146_v10 = vld [vmem:[#allocation3 + $0x149] sm:$0xff] }
 0x64b   : > { %v3843_v40 = vpop.f32.mrf.mxu2  ;;  %v8333_v39 = vadd.f32 %v4000_v9, %v8104_v15  ;;  %v9227_v15 = vld [vmem:[#allocation28_spill] sm:$0xff]  ;;  %v9231_v9 = vld [vmem:[#allocation30_spill] sm:$0xff]  ;;  %4282 = vmatmul.f32.gmra.mxu0 %v4145_v43 }
 0x64c   : > { %v8330_v23 = vadd.f32 %v3843_v40, %v3677_v33  ;;  %v3247_v1 = vadd.f32 %v8182_v57, %v9227_v15  ;;  %v3467_v57 = vadd.f32 %v7969_v44, %v3250_v32  ;;  %v4553_v40 = vld [vmem:[#allocation3 + $0xa3] sm:$0xff]  ;;  %v3253_v28 = vadd.f32 %v8209_v37, %v9231_v9  ;;  %v4555_v15 = vld [vmem:[#allocation3 + $0xb3] sm:$0xff] }
 0x64d   : > { %v4359_v44 = vld [vmem:[#allocation3 + $0x142] sm:$0xff] }
 0x64e   : > { %v3466_v63 = vadd.f32 %v9229_v54, %v3247_v1  ;;  %v3468_v51 = vadd.f32 %v7987_v13, %v3253_v28  ;;  %v9236_v32 = vld [vmem:[#allocation76_spill] sm:$0xff] }
 0x64f   : > { %4050 = vmatmul.f32.gmra.mxu3 %v8078_v31  ;;  %v3679_v31 = vadd.f32 %v9228_v41, %v3465_v52  ;;  %v4360_v52 = vld [vmem:[#allocation3 + $0x14a] sm:$0xff] }
 0x650   : > { %4641 = vmatmul.f32.gmra.mxu2 %v4550_v6  ;;  %v4557_v43 = vld [vmem:[#allocation3 + $0xc3] sm:$0xff] }
 0x653   : > { %v3846_v0 = vpop.f32.mrf.mxu2 }
 0x654   : > { %v8340_v5 = vadd.f32 %v3846_v0, %v3678_v8  ;;  %v9232_v8 = vld [vmem:[#allocation63_spill] sm:$0xff] }
 0x655   : > { %v4289_v0 = vadd.f32 %v9232_v8, %v8223_v46  ;;  %v8383_v46 = vld [vmem:[%s8644_s7] ss:$0 sm:$0xff]  ;;  %v9240_v8 = vld [vmem:[#allocation67_spill] sm:$0xff] }
 0x657   : > { %4053 = vmatmul.f32.gmra.mxu3 %v8094_v11  ;;  %v3680_v11 = vadd.f32 %v7977_v49, %v3466_v63  ;;  %v8365_v49 = vpop.f32.mrf.mxu1  ;;  %4496 = vmatmul.f32.gmra.mxu1 %v4359_v44 }
 0x658   : > { %4644 = vmatmul.f32.gmra.mxu2 %v4551_v38  ;;  %v8374_v38 = vpop.f32.mrf.mxu0  ;;  %4285 = vmatmul.f32.gmra.mxu0 %v4146_v10 }
 0x65b   : > { %v3849_v59 = vpop.f32.mrf.mxu2 }
 0x65c   : > { %v8347_v22 = vadd.f32 %v3849_v59, %v3679_v31  ;;  %v9235_v59 = vld [vmem:[#allocation158_spill] sm:$0xff] }
 0x65d   : > { %v4290_v54 = vadd.f32 %v9235_v59, %v8233_v12 }
 0x65f   : > { %4056 = vmatmul.f32.gmra.mxu3 %v8113_v16  ;;  %v3681_v16 = vadd.f32 %v8001_v34, %v3467_v57  ;;  %v8376_v13 = vpop.f32.mrf.mxu1  ;;  %4499 = vmatmul.f32.gmra.mxu1 %v4360_v52  ;;  %v9237_v57 = vld [vmem:[#allocation100_spill] sm:$0xff] }
 0x660   : > { %4647 = vmatmul.f32.gmra.mxu2 %v4552_v20  ;;  %v4556_v20 = vld [vmem:[#allocation3 + $0xbb] sm:$0xff] }
 0x663   : > { %v3852_v55 = vpop.f32.mrf.mxu2 }
 0x664   : > { %v8354_v33 = vadd.f32 %v3852_v55, %v3680_v11  ;;  %v5324_v11 = vld [vmem:[%s5489_s26] sm:$0xff] }
 0x667   : > { %4059 = vmatmul.f32.gmra.mxu3 %v8127_v2  ;;  %v3682_v2 = vadd.f32 %v8020_v58, %v3468_v51  ;;  %v9234_v58 = vld [vmem:[#allocation31_spill] sm:$0xff] }
 0x668   : > { %4650 = vmatmul.f32.gmra.mxu2 %v4553_v40  ;;  %v4503_v1 = vadd.f32 %v9234_v58, %v4289_v0  ;;  %v4504_v40 = vadd.f32 %v9237_v57, %v4290_v54  ;;  %v9242_v54 = vld [vmem:[#allocation159_spill] sm:$0xff] }
 0x669   : > { %v4559_v57 = vld [vmem:[#allocation3 + $0xd3] sm:$0xff] }
 0x66b   : > { %v3855_v62 = vpop.f32.mrf.mxu2 }
 0x66c   : > { %v8361_v6 = vadd.f32 %v3855_v62, %v3681_v16  ;;  %v9238_v16 = vld [vmem:[#allocation156_spill] sm:$0xff] }
 0x66d   : > { %v4291_v62 = vadd.f32 %v9238_v16, %v8243_v60 }
 0x66f   : > { %4062 = vmatmul.f32.gmra.mxu3 %v8146_v18  ;;  %v9233_v18 = vld [vmem:[#allocation73_spill] sm:$0xff]  ;;  %v4505_v0 = vadd.f32 %v9240_v8, %v4291_v62  ;;  %v8421_v8 = vpop.f32.mrf.mxu3 }
 0x670   : > { %4653 = vmatmul.f32.gmra.mxu2 %v4554_v7  ;;  %v9239_v7 = vld [vmem:[#allocation146_spill] sm:$0xff] }
 0x673   : > { %v3858_v34 = vpop.f32.mrf.mxu2 }
 0x674   : > { %v8370_v37 = vadd.f32 %v3858_v34, %v3682_v2  ;;  %v5325_v2 = vld [vmem:[%s5489_s26 + $0x8] sm:$0xff] }
 0x677   : > { %4065 = vmatmul.f32.gmra.mxu3 %v9233_v18  ;;  %v9241_v18 = vld [vmem:[#allocation137_spill] sm:$0xff] }
 0x678   : > { %4656 = vmatmul.f32.gmra.mxu2 %v4555_v15  ;;  %v4292_v60 = vadd.f32 %v9241_v18, %v8253_v56 }
 0x67b   : > { %v4609_v41 = vpop.f32.mrf.mxu2 }
 0x67c   : > { %v4717_v31 = vadd.f32 %v4609_v41, %v4503_v1  ;;  %v4558_v1 = vld [vmem:[#allocation3 + $0xcb] sm:$0xff] }
 0x67e   : > { %v4757_v63 = vadd.f32 %v8383_v46, %v4717_v31  ;;  %v5326_v31 = vld [vmem:[%s5489_s26 + $0x10] sm:$0xff] }
 0x67f   : > { %4068 = vmatmul.f32.gmra.mxu3 %v9236_v32 }
 0x680   : > { %v4793_v14 = vmax.f32 %v4757_v63, 0.0  ;;  %4659 = vmatmul.f32.gmra.mxu2 %v4556_v20  ;;  %v4506_v63 = vadd.f32 %v9242_v54, %v4292_v60 }
 0x682   : > { %v4829_v55 = vadd.f32 %v5324_v11, %v4793_v14  ;;  %v9243_v11 = vld [vmem:[#allocation32_spill] sm:$0xff] }
 0x683   : > { %v4612_v12 = vpop.f32.mrf.mxu2 }
 0x684   : > { %v4865_v9 = vmax.f32 %v4829_v55, 0.0  ;;  %v4718_v28 = vadd.f32 %v4612_v12, %v4504_v40  ;;  %v4293_v55 = vadd.f32 %v9243_v11, %v8263_v50  ;;  %v5327_v12 = vld [vmem:[%s5489_s26 + $0x18] sm:$0xff] }
 0x686   : > { %4901 = vst [vmem:[%s8396_s15] sm:$0xff] %v4865_v9  ;;  %v4758_v51 = vadd.f32 %v8383_v46, %v4718_v28  ;;  %v9244_v28 = vld [vmem:[#allocation70_spill] sm:$0xff] }
 0x687   : > { %4071 = vmatmul.f32.gmra.mxu3 %v9239_v7  ;;  %v4507_v16 = vadd.f32 %v9244_v28, %v4293_v55  ;;  %v8435_v55 = vpop.f32.mrf.mxu3  ;;  %v4562_v28 = vld [vmem:[#allocation3 + $0xeb] sm:$0xff] }
 0x688   : > { %v4794_v44 = vmax.f32 %v4758_v51, 0.0  ;;  %4662 = vmatmul.f32.gmra.mxu2 %v4557_v43 }
 0x68a   : > { %v4830_v34 = vadd.f32 %v5325_v2, %v4794_v44  ;;  %v9245_v44 = vld [vmem:[#allocation102_spill] sm:$0xff]  ;;  %v4560_v2 = vld [vmem:[#allocation3 + $0xdb] sm:$0xff] }
 0x68b   : > { %v4615_v10 = vpop.f32.mrf.mxu2  ;;  %v4294_v7 = vadd.f32 %v9245_v44, %v8273_v61  ;;  %v9250_v44 = vld [vmem:[#allocation107_spill] sm:$0xff] }
 0x68c   : > { %v4866_v52 = vmax.f32 %v4830_v34, 0.0  ;;  %v4719_v15 = vadd.f32 %v4615_v10, %v4505_v0  ;;  %v5328_v0 = vld [vmem:[%s5489_s26 + $0x20] sm:$0xff] }
 0x68e   : > { %4902 = vst [vmem:[%s8396_s15 + $0x8] sm:$0xff] %v4866_v52  ;;  %v4759_v58 = vadd.f32 %v8383_v46, %v4719_v15  ;;  %v9246_v52 = vld [vmem:[#allocation162_spill] sm:$0xff] }
 0x68f   : > { %v4508_v15 = vadd.f32 %v9246_v52, %v4294_v7 }
 0x690   : > { %v4795_v41 = vmax.f32 %v4759_v58, 0.0  ;;  %4665 = vmatmul.f32.gmra.mxu2 %v4558_v1  ;;  %v9247_v1 = vld [vmem:[#allocation163_spill] sm:$0xff] }
 0x692   : > { %v4831_v59 = vadd.f32 %v5326_v31, %v4795_v41  ;;  %v4295_v41 = vadd.f32 %v9247_v1, %v8283_v26  ;;  %v8429_v31 = vpop.f32.mrf.mxu0 }
 0x693   : > { %v4618_v20 = vpop.f32.mrf.mxu2 }
 0x694   : > { %v4867_v14 = vmax.f32 %v4831_v59, 0.0  ;;  %v4720_v32 = vadd.f32 %v4618_v20, %v4506_v63  ;;  %v4561_v59 = vld [vmem:[#allocation3 + $0xe3] sm:$0xff]  ;;  %v8431_v63 = vpop.f32.mrf.mxu1 }
 0x695   : > { %v5329_v20 = vld [vmem:[%s5489_s26 + $0x28] sm:$0xff] }
 0x696   : > { %4903 = vst [vmem:[%s8396_s15 + $0x10] sm:$0xff] %v4867_v14  ;;  %v4760_v56 = vadd.f32 %v8383_v46, %v4720_v32  ;;  %v9248_v32 = vld [vmem:[#allocation34_spill] sm:$0xff] }
 0x697   : > { %v4509_v11 = vadd.f32 %v9248_v32, %v4295_v41  ;;  %v9252_v41 = vld [vmem:[#allocation109_spill] sm:$0xff] }
 0x698   : > { %v4796_v40 = vmax.f32 %v4760_v56, 0.0  ;;  %4668 = vmatmul.f32.gmra.mxu2 %v4559_v57 }
 0x69a   : > { %v4832_v9 = vadd.f32 %v5327_v12, %v4796_v40  ;;  %v9249_v40 = vld [vmem:[#allocation141_spill] sm:$0xff] }
 0x69b   : > { %v4621_v62 = vpop.f32.mrf.mxu2  ;;  %v4296_v12 = vadd.f32 %v9249_v40, %v8293_v30  ;;  %v8447_v30 = vpop.f32.mrf.mxu3 }
 0x69c   : > { %v4868_v51 = vmax.f32 %v4832_v9, 0.0  ;;  %v4721_v43 = vadd.f32 %v4621_v62, %v4507_v16  ;;  %v8441_v62 = vpop.f32.mrf.mxu0 }
 0x69d   : > { %v4510_v7 = vadd.f32 %v9250_v44, %v4296_v12  ;;  %v5332_v12 = vld [vmem:[%s5489_s26 + $0x40] sm:$0xff] }
 0x69e   : > { %4904 = vst [vmem:[%s8396_s15 + $0x18] sm:$0xff] %v4868_v51  ;;  %v4761_v50 = vadd.f32 %v8383_v46, %v4721_v43  ;;  %v5330_v51 = vld [vmem:[%s5489_s26 + $0x30] sm:$0xff] }
 0x6a0   : > { %v4797_v34 = vmax.f32 %v4761_v50, 0.0  ;;  %4671 = vmatmul.f32.gmra.mxu2 %v4560_v2  ;;  %v8445_v2 = vpop.f32.mrf.mxu1 }
 0x6a2   : > { %v4833_v10 = vadd.f32 %v5328_v0, %v4797_v34 }
 0x6a3   : > { %v4624_v18 = vpop.f32.mrf.mxu2 }
 0x6a4   : > { %v4869_v60 = vmax.f32 %v4833_v10, 0.0  ;;  %v4722_v58 = vadd.f32 %v4624_v18, %v4508_v15  ;;  %v9251_v10 = vld [vmem:[#allocation144_spill] sm:$0xff]  ;;  %v4563_v18 = vld [vmem:[#allocation3 + $0xf3] sm:$0xff] }
 0x6a5   : > { %v4297_v52 = vadd.f32 %v9251_v10, %v8303_v48  ;;  %v9253_v48 = vld [vmem:[#allocation80_spill] sm:$0xff] }
 0x6a6   : > { %4905 = vst [vmem:[%s8396_s15 + $0x20] sm:$0xff] %v4869_v60  ;;  %v4762_v61 = vadd.f32 %v8383_v46, %v4722_v58  ;;  %v5331_v58 = vld [vmem:[%s5489_s26 + $0x38] sm:$0xff] }
 0x6a8   : > { %v4798_v54 = vmax.f32 %v4762_v61, 0.0  ;;  %4674 = vmatmul.f32.gmra.mxu2 %v4561_v59  ;;  %v4511_v61 = vadd.f32 %v9252_v41, %v4297_v52  ;;  %v8455_v59 = vpop.f32.mrf.mxu0  ;;  %v8457_v32 = vpop.f32.mrf.mxu1  ;;  %v4566_v41 = vld [vmem:[#allocation3 + $0x10b] sm:$0xff] }
 0x6aa   : > { %v4834_v14 = vadd.f32 %v5329_v20, %v4798_v54 }
 0x6ab   : > { %v4627_v56 = vpop.f32.mrf.mxu2 }
 0x6ac   : > { %v4870_v26 = vmax.f32 %v4834_v14, 0.0  ;;  %v4723_v57 = vadd.f32 %v4627_v56, %v4509_v11  ;;  %v4298_v11 = vadd.f32 %v9253_v48, %v8313_v42  ;;  %v4299_v42 = vadd.f32 %v8363_v35, %v8323_v21 }
 0x6ad   : > { %v4300_v21 = vadd.f32 %v8374_v38, %v8333_v39 }
 0x6ae   : > { %4906 = vst [vmem:[%s8396_s15 + $0x28] sm:$0xff] %v4870_v26  ;;  %v4763_v9 = vadd.f32 %v8383_v46, %v4723_v57  ;;  %v8463_v26 = vpop.f32.mrf.mxu3  ;;  %v4564_v57 = vld [vmem:[#allocation3 + $0xfb] sm:$0xff] }
 0x6b0   : > { %v4799_v16 = vmax.f32 %v4763_v9, 0.0  ;;  %4677 = vmatmul.f32.gmra.mxu2 %v4562_v28  ;;  %v4512_v28 = vadd.f32 %v8215_v45, %v4298_v11  ;;  %v8467_v44 = vpop.f32.mrf.mxu0  ;;  %v5333_v45 = vld [vmem:[%s5489_s26 + $0x48] sm:$0xff]  ;;  %v4514_v11 = vadd.f32 %v8376_v13, %v4300_v21  ;;  %v5335_v13 = vld [vmem:[%s5489_s26 + $0x58] sm:$0xff] }
 0x6b2   : > { %v4835_v43 = vadd.f32 %v5330_v51, %v4799_v16 }
 0x6b3   : > { %v4630_v50 = vpop.f32.mrf.mxu2 }
 0x6b4   : > { %v4871_v34 = vmax.f32 %v4835_v43, 0.0  ;;  %v4724_v0 = vadd.f32 %v4630_v50, %v4510_v7  ;;  %v4565_v50 = vld [vmem:[#allocation3 + $0x103] sm:$0xff] }
 0x6b6   : > { %4907 = vst [vmem:[%s8396_s15 + $0x30] sm:$0xff] %v4871_v34  ;;  %v4764_v15 = vadd.f32 %v8383_v46, %v4724_v0  ;;  %v8473_v34 = vpop.f32.mrf.mxu1  ;;  %v8475_v10 = vpop.f32.mrf.mxu3 }
 0x6b8   : > { %v4800_v60 = vmax.f32 %v4764_v15, 0.0  ;;  %4680 = vmatmul.f32.gmra.mxu2 %v4563_v18  ;;  %v4513_v15 = vadd.f32 %v8365_v49, %v4299_v42 }
 0x6ba   : > { %v4836_v1 = vadd.f32 %v5331_v58, %v4800_v60 }
 0x6bb   : > { %v4633_v54 = vpop.f32.mrf.mxu2 }
 0x6bc   : > { %v4872_v20 = vmax.f32 %v4836_v1, 0.0  ;;  %v4725_v14 = vadd.f32 %v4633_v54, %v4511_v61  ;;  %v8483_v1 = vpop.f32.mrf.mxu0 }
 0x6be   : > { %4908 = vst [vmem:[%s8396_s15 + $0x38] sm:$0xff] %v4872_v20  ;;  %v4765_v56 = vadd.f32 %v8383_v46, %v4725_v14  ;;  %v8485_v54 = vpop.f32.mrf.mxu1  ;;  %v9254_v20 = vld [vmem:[#allocation139_spill] sm:$0xff]  ;;  %v5334_v14 = vld [vmem:[%s5489_s26 + $0x50] sm:$0xff]  ;;  %v8491_v39 = vpop.f32.mrf.mxu3 }
 0x6bf   : > { %v4087_v49 = vadd.f32 %v8421_v8, %v9254_v20 }
 0x6c0   : > { %v4801_v40 = vmax.f32 %v4765_v56, 0.0  ;;  %4683 = vmatmul.f32.gmra.mxu2 %v4564_v57 }
 0x6c2   : > { %v4837_v9 = vadd.f32 %v5332_v12, %v4801_v40  ;;  %v4301_v40 = vadd.f32 %v8429_v31, %v4087_v49 }
 0x6c3   : > { %v4636_v16 = vpop.f32.mrf.mxu2 }
 0x6c4   : > { %v4873_v51 = vmax.f32 %v4837_v9, 0.0  ;;  %v4726_v43 = vadd.f32 %v4636_v16, %v4512_v28  ;;  %v4567_v9 = vld [vmem:[#allocation3 + $0x113] sm:$0xff]  ;;  %v8496_v8 = vpop.f32.mrf.mxu0  ;;  %v4515_v42 = vadd.f32 %v8431_v63, %v4301_v40  ;;  %v5336_v63 = vld [vmem:[%s5489_s26 + $0x60] sm:$0xff] }
 0x6c5   : > { %v9255_v16 = vld [vmem:[#allocation38_spill] sm:$0xff] }
 0x6c6   : > { %4909 = vst [vmem:[%s8396_s15 + $0x40] sm:$0xff] %v4873_v51  ;;  %v4766_v7 = vadd.f32 %v8383_v46, %v4726_v43  ;;  %v4088_v51 = vadd.f32 %v8435_v55, %v9255_v16 }
 0x6c8   : > { %v4802_v0 = vmax.f32 %v4766_v7, 0.0  ;;  %4686 = vmatmul.f32.gmra.mxu2 %v4565_v50  ;;  %v8502_v50 = vpop.f32.mrf.mxu1 }
 0x6ca   : > { %v4838_v52 = vadd.f32 %v5333_v45, %v4802_v0  ;;  %v8504_v45 = vpop.f32.mrf.mxu3 }
 0x6cb   : > { %v4639_v18 = vpop.f32.mrf.mxu2 }
 0x6cc   : > { %v4874_v60 = vmax.f32 %v4838_v52, 0.0  ;;  %v4727_v58 = vadd.f32 %v4639_v18, %v4513_v15  ;;  %v4302_v52 = vadd.f32 %v8441_v62, %v4088_v51  ;;  %v4568_v18 = vld [vmem:[#allocation3 + $0x11b] sm:$0xff] }
 0x6ce   : > { %4910 = vst [vmem:[%s8396_s15 + $0x48] sm:$0xff] %v4874_v60  ;;  %v4767_v35 = vadd.f32 %v8383_v46, %v4727_v58  ;;  %v9256_v60 = vld [vmem:[#allocation103_spill] sm:$0xff] }
 0x6cf   : > { %v4089_v58 = vadd.f32 %v8447_v30, %v9256_v60  ;;  %v4569_v30 = vld [vmem:[#allocation3 + $0x123] sm:$0xff] }
 0x6d0   : > { %v4803_v61 = vmax.f32 %v4767_v35, 0.0  ;;  %4689 = vmatmul.f32.gmra.mxu2 %v4566_v41  ;;  %v4516_v35 = vadd.f32 %v8445_v2, %v4302_v52  ;;  %v8513_v41 = vpop.f32.mrf.mxu0  ;;  %v8515_v49 = vpop.f32.mrf.mxu1 }
 0x6d2   : > { %v4839_v48 = vadd.f32 %v5334_v14, %v4803_v61  ;;  %v4303_v14 = vadd.f32 %v8455_v59, %v4089_v58 }
 0x6d3   : > { %v4642_v38 = vpop.f32.mrf.mxu2 }
 0x6d4   : > { %v4875_v56 = vmax.f32 %v4839_v48, 0.0  ;;  %v4728_v57 = vadd.f32 %v4642_v38, %v4514_v11  ;;  %v8520_v11 = vpop.f32.mrf.mxu3 }
 0x6d6   : > { %4911 = vst [vmem:[%s8396_s15 + $0x50] sm:$0xff] %v4875_v56  ;;  %v4768_v12 = vadd.f32 %v8383_v46, %v4728_v57  ;;  %v9257_v56 = vld [vmem:[#allocation105_spill] sm:$0xff] }
 0x6d7   : > { %v4090_v2 = vadd.f32 %v8463_v26, %v9257_v56  ;;  %v5337_v57 = vld [vmem:[%s5489_s26 + $0x68] sm:$0xff] }
 0x6d8   : > { %v4804_v28 = vmax.f32 %v4768_v12, 0.0  ;;  %4692 = vmatmul.f32.gmra.mxu2 %v4567_v9  ;;  %v4517_v12 = vadd.f32 %v8457_v32, %v4303_v14  ;;  %v8526_v16 = vpop.f32.mrf.mxu0 }
 0x6d9   : > { %v4304_v51 = vadd.f32 %v8467_v44, %v4090_v2 }
 0x6da   : > { %v4840_v43 = vadd.f32 %v5335_v13, %v4804_v28 }
 0x6db   : > { %v4645_v7 = vpop.f32.mrf.mxu2 }
 0x6dc   : > { %v4876_v31 = vmax.f32 %v4840_v43, 0.0  ;;  %v4729_v0 = vadd.f32 %v4645_v7, %v4515_v42  ;;  %v4570_v43 = vld [vmem:[#allocation3 + $0x12b] sm:$0xff]  ;;  %v8531_v42 = vpop.f32.mrf.mxu1  ;;  %v4027_v7 = vpop.f32.mrf.mxu3 }
 0x6de   : > { %4912 = vst [vmem:[%s8396_s15 + $0x58] sm:$0xff] %v4876_v31  ;;  %v4769_v15 = vadd.f32 %v8383_v46, %v4729_v0  ;;  %v9258_v31 = vld [vmem:[#allocation33_spill] sm:$0xff]  ;;  %v5338_v0 = vld [vmem:[%s5489_s26 + $0x70] sm:$0xff] }
 0x6df   : > { %v4091_v32 = vadd.f32 %v8475_v10, %v9258_v31  ;;  %v9259_v10 = vld [vmem:[#allocation39_spill] sm:$0xff]  ;;  %v4573_v31 = vld [vmem:[#allocation3 + $0x143] sm:$0xff] }
 0x6e0   : > { %v4805_v55 = vmax.f32 %v4769_v15, 0.0  ;;  %4695 = vmatmul.f32.gmra.mxu2 %v4568_v18  ;;  %v4518_v15 = vadd.f32 %v8473_v34, %v4304_v51  ;;  %v5339_v34 = vld [vmem:[%s5489_s26 + $0x78] sm:$0xff] }
 0x6e1   : > { %v4305_v60 = vadd.f32 %v8483_v1, %v4091_v32 }
 0x6e2   : > { %v4841_v21 = vadd.f32 %v5336_v63, %v4805_v55  ;;  %v4241_v63 = vpop.f32.mrf.mxu0 }
 0x6e3   : > { %v4648_v61 = vpop.f32.mrf.mxu2  ;;  %v4519_v14 = vadd.f32 %v8485_v54, %v4305_v60 }
 0x6e4   : > { %v4877_v20 = vmax.f32 %v4841_v21, 0.0  ;;  %v4730_v62 = vadd.f32 %v4648_v61, %v4516_v35  ;;  %v4571_v21 = vld [vmem:[#allocation3 + $0x133] sm:$0xff]  ;;  %v8540_v61 = vpop.f32.mrf.mxu1 }
 0x6e6   : > { %4913 = vst [vmem:[%s8396_s15 + $0x60] sm:$0xff] %v4877_v20  ;;  %v4770_v48 = vadd.f32 %v8383_v46, %v4730_v62  ;;  %v4092_v20 = vadd.f32 %v8491_v39, %v9259_v10  ;;  %v9260_v39 = vld [vmem:[#allocation148_spill] sm:$0xff] }
 0x6e8   : > { %v4806_v38 = vmax.f32 %v4770_v48, 0.0  ;;  %4698 = vmatmul.f32.gmra.mxu2 %v4569_v30  ;;  %v4030_v48 = vpop.f32.mrf.mxu3  ;;  %v4306_v56 = vadd.f32 %v8496_v8, %v4092_v20 }
 0x6ea   : > { %v4842_v40 = vadd.f32 %v5337_v57, %v4806_v38  ;;  %v4572_v57 = vld [vmem:[#allocation3 + $0x13b] sm:$0xff] }
 0x6eb   : > { %v4651_v9 = vpop.f32.mrf.mxu2 }
 0x6ec   : > { %v4878_v28 = vmax.f32 %v4842_v40, 0.0  ;;  %v4731_v59 = vadd.f32 %v4651_v9, %v4517_v12  ;;  %v4244_v12 = vpop.f32.mrf.mxu0  ;;  %v4093_v9 = vadd.f32 %v8504_v45, %v9260_v39  ;;  %v4094_v45 = vadd.f32 %v8520_v11, %v8220_v3  ;;  %v5342_v11 = vld [vmem:[%s5489_s26 + $0x90] sm:$0xff] }
 0x6ed   : > { %v4095_v3 = vadd.f32 %v4027_v7, %v8230_v27  ;;  %v4096_v39 = vadd.f32 %v4030_v48, %v8240_v19  ;;  %v5343_v27 = vld [vmem:[%s5489_s26 + $0x98] sm:$0xff] }
 0x6ee   : > { %4914 = vst [vmem:[%s8396_s15 + $0x68] sm:$0xff] %v4878_v28  ;;  %v4771_v13 = vadd.f32 %v8383_v46, %v4731_v59  ;;  %v5340_v28 = vld [vmem:[%s5489_s26 + $0x80] sm:$0xff]  ;;  %v4520_v59 = vadd.f32 %v8502_v50, %v4306_v56  ;;  %v4307_v32 = vadd.f32 %v8513_v41, %v4093_v9 }
 0x6ef   : > { %v4309_v56 = vadd.f32 %v4241_v63, %v4095_v3 }
 0x6f0   : > { %v4807_v26 = vmax.f32 %v4771_v13, 0.0  ;;  %4701 = vmatmul.f32.gmra.mxu2 %v4570_v43  ;;  %v4458_v13 = vpop.f32.mrf.mxu1 }
 0x6f1   : > { %v4523_v9 = vadd.f32 %v8540_v61, %v4309_v56 }
 0x6f2   : > { %v4843_v52 = vadd.f32 %v5338_v0, %v4807_v26  ;;  %v4033_v26 = vpop.f32.mrf.mxu3 }
 0x6f3   : > { %v4654_v18 = vpop.f32.mrf.mxu2 }
 0x6f4   : > { %v4879_v44 = vmax.f32 %v4843_v52, 0.0  ;;  %v4732_v55 = vadd.f32 %v4654_v18, %v4518_v15  ;;  %v5341_v15 = vld [vmem:[%s5489_s26 + $0x88] sm:$0xff]  ;;  %v4521_v18 = vadd.f32 %v8515_v49, %v4307_v32  ;;  %v5344_v32 = vld [vmem:[%s5489_s26 + $0xa0] sm:$0xff] }
 0x6f6   : > { %4915 = vst [vmem:[%s8396_s15 + $0x70] sm:$0xff] %v4879_v44  ;;  %v4772_v58 = vadd.f32 %v8383_v46, %v4732_v55  ;;  %v4247_v44 = vpop.f32.mrf.mxu0 }
 0x6f8   : > { %v4808_v35 = vmax.f32 %v4772_v58, 0.0  ;;  %4704 = vmatmul.f32.gmra.mxu2 %v4571_v21  ;;  %v4574_v21 = vld [vmem:[#allocation3 + $0x14b] sm:$0xff]  ;;  %v4461_v41 = vpop.f32.mrf.mxu1 }
 0x6fa   : > { %v4844_v62 = vadd.f32 %v5339_v34, %v4808_v35  ;;  %v4308_v35 = vadd.f32 %v8526_v16, %v4094_v45  ;;  %v4036_v20 = vpop.f32.mrf.mxu3 }
 0x6fb   : > { %v4657_v1 = vpop.f32.mrf.mxu2 }
 0x6fc   : > { %v4880_v30 = vmax.f32 %v4844_v62, 0.0  ;;  %v4733_v38 = vadd.f32 %v4657_v1, %v4519_v14  ;;  %v4522_v62 = vadd.f32 %v8531_v42, %v4308_v35 }
 0x6fe   : > { %4916 = vst [vmem:[%s8396_s15 + $0x78] sm:$0xff] %v4880_v30  ;;  %v4773_v2 = vadd.f32 %v8383_v46, %v4733_v38  ;;  %v4250_v38 = vpop.f32.mrf.mxu0 }
 0x700   : > { %v4809_v40 = vmax.f32 %v4773_v2, 0.0  ;;  %4707 = vmatmul.f32.gmra.mxu2 %v4572_v57  ;;  %v4464_v2 = vpop.f32.mrf.mxu1 }
 0x702   : > { %v4845_v54 = vadd.f32 %v5340_v28, %v4809_v40  ;;  %v4039_v40 = vpop.f32.mrf.mxu3 }
 0x703   : > { %v4660_v51 = vpop.f32.mrf.mxu2 }
 0x704   : > { %v4881_v43 = vmax.f32 %v4845_v54, 0.0  ;;  %v4734_v8 = vadd.f32 %v4660_v51, %v4520_v59  ;;  %v4310_v59 = vadd.f32 %v4244_v12, %v4096_v39 }
 0x706   : > { %4917 = vst [vmem:[%s8396_s15 + $0x80] sm:$0xff] %v4881_v43  ;;  %v4774_v0 = vadd.f32 %v8383_v46, %v4734_v8  ;;  %v4253_v51 = vpop.f32.mrf.mxu0  ;;  %v4524_v48 = vadd.f32 %v4458_v13, %v4310_v59 }
 0x708   : > { %v4810_v52 = vmax.f32 %v4774_v0, 0.0  ;;  %4710 = vmatmul.f32.gmra.mxu2 %v4573_v31  ;;  %v4467_v8 = vpop.f32.mrf.mxu1  ;;  %v4097_v31 = vadd.f32 %v4033_v26, %v8250_v47 }
 0x70a   : > { %v4846_v50 = vadd.f32 %v5341_v15, %v4810_v52  ;;  %v4042_v0 = vpop.f32.mrf.mxu3  ;;  %v4311_v15 = vadd.f32 %v4247_v44, %v4097_v31  ;;  %v5348_v31 = vld [vmem:[%s5489_s26 + $0xc0] sm:$0xff] }
 0x70b   : > { %v4663_v55 = vpop.f32.mrf.mxu2  ;;  %v4100_v39 = vadd.f32 %v4042_v0, %v8280_v4 }
 0x70c   : > { %v4882_v60 = vmax.f32 %v4846_v50, 0.0  ;;  %v4735_v58 = vadd.f32 %v4663_v55, %v4521_v18  ;;  %v4098_v55 = vadd.f32 %v4036_v20, %v8260_v25  ;;  %v4525_v47 = vadd.f32 %v4461_v41, %v4311_v15 }
 0x70e   : > { %4918 = vst [vmem:[%s8396_s15 + $0x88] sm:$0xff] %v4882_v60  ;;  %v4775_v10 = vadd.f32 %v8383_v46, %v4735_v58  ;;  %v4256_v18 = vpop.f32.mrf.mxu0  ;;  %v5345_v60 = vld [vmem:[%s5489_s26 + $0xa8] sm:$0xff] }
 0x710   : > { %v4811_v34 = vmax.f32 %v4775_v10, 0.0  ;;  %4713 = vmatmul.f32.gmra.mxu2 %v4574_v21  ;;  %v4470_v21 = vpop.f32.mrf.mxu1 }
 0x712   : > { %v4847_v49 = vadd.f32 %v5342_v11, %v4811_v34  ;;  %v4045_v10 = vpop.f32.mrf.mxu3  ;;  %v4312_v34 = vadd.f32 %v4250_v38, %v4098_v55  ;;  %v4099_v11 = vadd.f32 %v4039_v40, %v8270_v36 }
 0x713   : > { %v4666_v14 = vpop.f32.mrf.mxu2 }
 0x714   : > { %v4883_v1 = vmax.f32 %v4847_v49, 0.0  ;;  %v4736_v30 = vadd.f32 %v4666_v14, %v4522_v62  ;;  %v5346_v49 = vld [vmem:[%s5489_s26 + $0xb0] sm:$0xff]  ;;  %v4526_v25 = vadd.f32 %v4464_v2, %v4312_v34  ;;  %v4313_v56 = vadd.f32 %v4253_v51, %v4099_v11 }
 0x715   : > { %v5350_v34 = vld [vmem:[%s5489_s26 + $0xd0] sm:$0xff] }
 0x716   : > { %4919 = vst [vmem:[%s8396_s15 + $0x90] sm:$0xff] %v4883_v1  ;;  %v4776_v16 = vadd.f32 %v8383_v46, %v4736_v30  ;;  %v4259_v20 = vpop.f32.mrf.mxu0  ;;  %v4527_v40 = vadd.f32 %v4467_v8, %v4313_v56 }
 0x718   : > { %v4812_v57 = vmax.f32 %v4776_v16, 0.0  ;;  %v4473_v30 = vpop.f32.mrf.mxu1 }
 0x71a   : > { %v4848_v7 = vadd.f32 %v5343_v27, %v4812_v57  ;;  %v4048_v16 = vpop.f32.mrf.mxu3  ;;  %v5347_v27 = vld [vmem:[%s5489_s26 + $0xb8] sm:$0xff] }
 0x71b   : > { %v4669_v42 = vpop.f32.mrf.mxu2 }
 0x71c   : > { %v4884_v28 = vmax.f32 %v4848_v7, 0.0  ;;  %v4737_v54 = vadd.f32 %v4669_v42, %v4523_v9 }
 0x71e   : > { %4920 = vst [vmem:[%s8396_s15 + $0x98] sm:$0xff] %v4884_v28  ;;  %v4777_v63 = vadd.f32 %v8383_v46, %v4737_v54  ;;  %v4262_v42 = vpop.f32.mrf.mxu0  ;;  %v4314_v28 = vadd.f32 %v4256_v18, %v4100_v39 }
 0x720   : > { %v4813_v43 = vmax.f32 %v4777_v63, 0.0  ;;  %v4476_v59 = vpop.f32.mrf.mxu1 }
 0x722   : > { %v4849_v19 = vadd.f32 %v5344_v32, %v4813_v43  ;;  %v4051_v51 = vpop.f32.mrf.mxu3  ;;  %v4101_v43 = vadd.f32 %v4045_v10, %v8290_v17  ;;  %v4528_v32 = vadd.f32 %v4470_v21, %v4314_v28 }
 0x723   : > { %v4672_v52 = vpop.f32.mrf.mxu2  ;;  %v4103_v10 = vadd.f32 %v4051_v51, %v8310_v24 }
 0x724   : > { %v4885_v61 = vmax.f32 %v4849_v19, 0.0  ;;  %v4738_v45 = vadd.f32 %v4672_v52, %v4524_v48  ;;  %v4315_v0 = vadd.f32 %v4259_v20, %v4101_v43 }
 0x726   : > { %4921 = vst [vmem:[%s8396_s15 + $0xa0] sm:$0xff] %v4885_v61  ;;  %v4778_v12 = vadd.f32 %v8383_v46, %v4738_v45  ;;  %v4265_v61 = vpop.f32.mrf.mxu0  ;;  %v4529_v17 = vadd.f32 %v4473_v30, %v4315_v0  ;;  %v5351_v30 = vld [vmem:[%s5489_s26 + $0xd8] sm:$0xff] }
 0x727   : > { %v4317_v20 = vadd.f32 %v4265_v61, %v4103_v10 }
 0x728   : > { %v4814_v50 = vmax.f32 %v4778_v12, 0.0  ;;  %v4479_v15 = vpop.f32.mrf.mxu1  ;;  %v4102_v12 = vadd.f32 %v4048_v16, %v8300_v53 }
 0x729   : > { %v4531_v24 = vadd.f32 %v4479_v15, %v4317_v20 }
 0x72a   : > { %v4850_v58 = vadd.f32 %v5345_v60, %v4814_v50  ;;  %v5349_v50 = vld [vmem:[%s5489_s26 + $0xc8] sm:$0xff]  ;;  %v4054_v55 = vpop.f32.mrf.mxu3 }
 0x72b   : > { %v4675_v26 = vpop.f32.mrf.mxu2 }
 0x72c   : > { %v4886_v13 = vmax.f32 %v4850_v58, 0.0  ;;  %v4739_v35 = vadd.f32 %v4675_v26, %v4525_v47  ;;  %v4316_v26 = vadd.f32 %v4262_v42, %v4102_v12  ;;  %v5352_v42 = vld [vmem:[%s5489_s26 + $0xe0] sm:$0xff] }
 0x72e   : > { %4922 = vst [vmem:[%s8396_s15 + $0xa8] sm:$0xff] %v4886_v13  ;;  %v4779_v44 = vadd.f32 %v8383_v46, %v4739_v35  ;;  %v4268_v35 = vpop.f32.mrf.mxu0  ;;  %v4530_v53 = vadd.f32 %v4476_v59, %v4316_v26 }
 0x730   : > { %v4815_v3 = vmax.f32 %v4779_v44, 0.0  ;;  %v4482_v11 = vpop.f32.mrf.mxu1 }
 0x732   : > { %v4851_v62 = vadd.f32 %v5346_v49, %v4815_v3 }
 0x733   : > { %v4678_v14 = vpop.f32.mrf.mxu2 }
 0x734   : > { %v4887_v41 = vmax.f32 %v4851_v62, 0.0  ;;  %v4740_v1 = vadd.f32 %v4678_v14, %v4526_v25  ;;  %v4057_v25 = vpop.f32.mrf.mxu3 }
 0x736   : > { %4923 = vst [vmem:[%s8396_s15 + $0xb0] sm:$0xff] %v4887_v41  ;;  %v4780_v38 = vadd.f32 %v8383_v46, %v4740_v1  ;;  %v4104_v1 = vadd.f32 %v4054_v55, %v8320_v29 }
 0x738   : > { %v4816_v57 = vmax.f32 %v4780_v38, 0.0  ;;  %v4271_v38 = vpop.f32.mrf.mxu0 }
 0x73a   : > { %v4852_v36 = vadd.f32 %v5347_v27, %v4816_v57  ;;  %v4485_v27 = vpop.f32.mrf.mxu1 }
 0x73b   : > { %v4681_v7 = vpop.f32.mrf.mxu2 }
 0x73c   : > { %v4888_v2 = vmax.f32 %v4852_v36, 0.0  ;;  %v4741_v9 = vadd.f32 %v4681_v7, %v4527_v40  ;;  %v4318_v36 = vadd.f32 %v4268_v35, %v4104_v1  ;;  %v4060_v7 = vpop.f32.mrf.mxu3 }
 0x73e   : > { %4924 = vst [vmem:[%s8396_s15 + $0xb8] sm:$0xff] %v4888_v2  ;;  %v4781_v54 = vadd.f32 %v8383_v46, %v4741_v9  ;;  %v4105_v9 = vadd.f32 %v4057_v25, %v8330_v23  ;;  %v4532_v28 = vadd.f32 %v4482_v11, %v4318_v36 }
 0x740   : > { %v4817_v63 = vmax.f32 %v4781_v54, 0.0  ;;  %v4274_v51 = vpop.f32.mrf.mxu0  ;;  %v4319_v43 = vadd.f32 %v4271_v38, %v4105_v9  ;;  %v5356_v38 = vld [vmem:[%s5489_s26 + $0x100] sm:$0xff] }
 0x742   : > { %v4853_v4 = vadd.f32 %v5348_v31, %v4817_v63  ;;  %v4533_v0 = vadd.f32 %v4485_v27, %v4319_v43 }
 0x743   : > { %v4684_v19 = vpop.f32.mrf.mxu2 }
 0x744   : > { %v4889_v8 = vmax.f32 %v4853_v4, 0.0  ;;  %v4742_v48 = vadd.f32 %v4684_v19, %v4528_v32  ;;  %v4488_v4 = vpop.f32.mrf.mxu1  ;;  %v4063_v19 = vpop.f32.mrf.mxu3 }
 0x745   : > { %v4107_v55 = vadd.f32 %v4063_v19, %v8347_v22 }
 0x746   : > { %4925 = vst [vmem:[%s8396_s15 + $0xc0] sm:$0xff] %v4889_v8  ;;  %v4782_v52 = vadd.f32 %v8383_v46, %v4742_v48  ;;  %v4106_v8 = vadd.f32 %v4060_v7, %v8340_v5  ;;  %v5353_v48 = vld [vmem:[%s5489_s26 + $0xe8] sm:$0xff] }
 0x748   : > { %v4818_v45 = vmax.f32 %v4782_v52, 0.0  ;;  %v4320_v15 = vadd.f32 %v4274_v51, %v4106_v8  ;;  %v5358_v8 = vld [vmem:[%s5489_s26 + $0x110] sm:$0xff] }
 0x74a   : > { %v4854_v18 = vadd.f32 %v5349_v50, %v4818_v45  ;;  %v4277_v50 = vpop.f32.mrf.mxu0  ;;  %v4534_v5 = vadd.f32 %v4488_v4, %v4320_v15 }
 0x74b   : > { %v4687_v60 = vpop.f32.mrf.mxu2  ;;  %v4321_v35 = vadd.f32 %v4277_v50, %v4107_v55 }
 0x74c   : > { %v4890_v58 = vmax.f32 %v4854_v18, 0.0  ;;  %v4743_v47 = vadd.f32 %v4687_v60, %v4529_v17  ;;  %v4491_v17 = vpop.f32.mrf.mxu1  ;;  %v5354_v60 = vld [vmem:[%s5489_s26 + $0xf0] sm:$0xff] }
 0x74d   : > { %v4535_v22 = vadd.f32 %v4491_v17, %v4321_v35 }
 0x74e   : > { %4926 = vst [vmem:[%s8396_s15 + $0xc8] sm:$0xff] %v4890_v58  ;;  %v4783_v21 = vadd.f32 %v8383_v46, %v4743_v47  ;;  %v4066_v47 = vpop.f32.mrf.mxu3 }
 0x750   : > { %v4819_v13 = vmax.f32 %v4783_v21, 0.0 }
 0x752   : > { %v4855_v44 = vadd.f32 %v5350_v34, %v4819_v13 }
 0x753   : > { %v4690_v3 = vpop.f32.mrf.mxu2 }
 0x754   : > { %v4891_v49 = vmax.f32 %v4855_v44, 0.0  ;;  %v4744_v62 = vadd.f32 %v4690_v3, %v4530_v53  ;;  %v4280_v44 = vpop.f32.mrf.mxu0  ;;  %v4108_v53 = vadd.f32 %v4066_v47, %v8354_v33  ;;  %v5355_v3 = vld [vmem:[%s5489_s26 + $0xf8] sm:$0xff]  ;;  %v4494_v20 = vpop.f32.mrf.mxu1 }
 0x756   : > { %4927 = vst [vmem:[%s8396_s15 + $0xd0] sm:$0xff] %v4891_v49  ;;  %v4784_v14 = vadd.f32 %v8383_v46, %v4744_v62 }
 0x758   : > { %v4820_v41 = vmax.f32 %v4784_v14, 0.0  ;;  %v4069_v14 = vpop.f32.mrf.mxu3 }
 0x75a   : > { %v4856_v56 = vadd.f32 %v5351_v30, %v4820_v41  ;;  %v4322_v41 = vadd.f32 %v4280_v44, %v4108_v53 }
 0x75b   : > { %v4693_v16 = vpop.f32.mrf.mxu2 }
 0x75c   : > { %v4892_v57 = vmax.f32 %v4856_v56, 0.0  ;;  %v4745_v39 = vadd.f32 %v4693_v16, %v4531_v24  ;;  %v4283_v56 = vpop.f32.mrf.mxu0  ;;  %v4109_v24 = vadd.f32 %v4069_v14, %v8361_v6  ;;  %v4536_v16 = vadd.f32 %v4494_v20, %v4322_v41  ;;  %v4497_v36 = vpop.f32.mrf.mxu1 }
 0x75e   : > { %4928 = vst [vmem:[%s8396_s15 + $0xd8] sm:$0xff] %v4892_v57  ;;  %v4785_v40 = vadd.f32 %v8383_v46, %v4745_v39 }
 0x760   : > { %v4821_v2 = vmax.f32 %v4785_v40, 0.0  ;;  %v4323_v40 = vadd.f32 %v4283_v56, %v4109_v24 }
 0x762   : > { %v4857_v29 = vadd.f32 %v5352_v42, %v4821_v2  ;;  %v4072_v2 = vpop.f32.mrf.mxu3  ;;  %v4537_v42 = vadd.f32 %v4497_v36, %v4323_v40 }
 0x763   : > { %v4696_v54 = vpop.f32.mrf.mxu2 }
 0x764   : > { %v4893_v59 = vmax.f32 %v4857_v29, 0.0  ;;  %v4746_v63 = vadd.f32 %v4696_v54, %v4532_v28  ;;  %v4110_v29 = vadd.f32 %v4072_v2, %v8370_v37  ;;  %v5357_v28 = vld [vmem:[%s5489_s26 + $0x108] sm:$0xff]  ;;  %v4286_v54 = vpop.f32.mrf.mxu0  ;;  %v4500_v4 = vpop.f32.mrf.mxu1 }
 0x766   : > { %4929 = vst [vmem:[%s8396_s15 + $0xe0] sm:$0xff] %v4893_v59  ;;  %v4786_v31 = vadd.f32 %v8383_v46, %v4746_v63  ;;  %v4324_v43 = vadd.f32 %v4286_v54, %v4110_v29 }
 0x768   : > { %v4822_v32 = vmax.f32 %v4786_v31, 0.0  ;;  %v4538_v19 = vadd.f32 %v4500_v4, %v4324_v43 }
 0x76a   : > { %v4858_v23 = vadd.f32 %v5353_v48, %v4822_v32 }
 0x76b   : > { %v4699_v52 = vpop.f32.mrf.mxu2 }
 0x76c   : > { %v4894_v61 = vmax.f32 %v4858_v23, 0.0  ;;  %v4747_v45 = vadd.f32 %v4699_v52, %v4533_v0 }
 0x76e   : > { %4930 = vst [vmem:[%s8396_s15 + $0xe8] sm:$0xff] %v4894_v61  ;;  %v4787_v12 = vadd.f32 %v8383_v46, %v4747_v45  ;;  %v5359_v45 = vld [vmem:[%s5489_s26 + $0x118] sm:$0xff] }
 0x770   : > { %v4823_v18 = vmax.f32 %v4787_v12, 0.0 }
 0x772   : > { %v4859_v58 = vadd.f32 %v5354_v60, %v4823_v18 }
 0x773   : > { %v4702_v26 = vpop.f32.mrf.mxu2 }
 0x774   : > { %v4895_v21 = vmax.f32 %v4859_v58, 0.0  ;;  %v4748_v13 = vadd.f32 %v4702_v26, %v4534_v5 }
 0x776   : > { %4931 = vst [vmem:[%s8396_s15 + $0xf0] sm:$0xff] %v4895_v21  ;;  %v4788_v10 = vadd.f32 %v8383_v46, %v4748_v13 }
 0x778   : > { %v4824_v34 = vmax.f32 %v4788_v10, 0.0 }
 0x77a   : > { %v4860_v11 = vadd.f32 %v5355_v3, %v4824_v34 }
 0x77b   : > { %v4705_v49 = vpop.f32.mrf.mxu2 }
 0x77c   : > { %v4896_v62 = vmax.f32 %v4860_v11, 0.0  ;;  %v4749_v25 = vadd.f32 %v4705_v49, %v4535_v22 }
 0x77e   : > { %4932 = vst [vmem:[%s8396_s15 + $0xf8] sm:$0xff] %v4896_v62  ;;  %v4789_v1 = vadd.f32 %v8383_v46, %v4749_v25 }
 0x780   : > { %v4825_v30 = vmax.f32 %v4789_v1, 0.0 }
 0x782   : > { %v4861_v33 = vadd.f32 %v5356_v38, %v4825_v30 }
 0x783   : > { %v4708_v57 = vpop.f32.mrf.mxu2 }
 0x784   : > { %v4897_v39 = vmax.f32 %v4861_v33, 0.0  ;;  %v4750_v27 = vadd.f32 %v4708_v57, %v4536_v16 }
 0x786   : > { %4933 = vst [vmem:[%s8396_s15 + $0x100] sm:$0xff] %v4897_v39  ;;  %v4790_v7 = vadd.f32 %v8383_v46, %v4750_v27 }
 0x788   : > { %v4826_v9 = vmax.f32 %v4790_v7, 0.0 }
 0x78a   : > { %v4862_v6 = vadd.f32 %v5357_v28, %v4826_v9 }
 0x78b   : > { %v4711_v59 = vpop.f32.mrf.mxu2 }
 0x78c   : > { %v4898_v63 = vmax.f32 %v4862_v6, 0.0  ;;  %v4751_v51 = vadd.f32 %v4711_v59, %v4537_v42 }
 0x78e   : > { %4934 = vst [vmem:[%s8396_s15 + $0x108] sm:$0xff] %v4898_v63  ;;  %v4791_v31 = vadd.f32 %v8383_v46, %v4751_v51 }
 0x790   : > { %v4827_v32 = vmax.f32 %v4791_v31, 0.0 }
 0x792   : > { %v4863_v48 = vadd.f32 %v5358_v8, %v4827_v32 }
 0x793   : > { %v4714_v23 = vpop.f32.mrf.mxu2 }
 0x794   : > { %v4899_v37 = vmax.f32 %v4863_v48, 0.0  ;;  %v4752_v0 = vadd.f32 %v4714_v23, %v4538_v19 }
 0x796   : > { %4935 = vst [vmem:[%s8396_s15 + $0x110] sm:$0xff] %v4899_v37  ;;  %v4792_v52 = vadd.f32 %v8383_v46, %v4752_v0 }
 0x798   : > { %v4828_v61 = vmax.f32 %v4792_v52, 0.0 }
 0x79a   : > { %v4864_v15 = vadd.f32 %v5359_v45, %v4828_v61 }
 0x79c   : > { %v4900_v12 = vmax.f32 %v4864_v15, 0.0 }
 0x79e   : > { %4936 = vst [vmem:[%s8396_s15 + $0x118] sm:$0xff] %v4900_v12 }
 0x79f PF: > { %s18_s27 = sadd.s32 1, %s5366_s27  }
 0x7a0   : > { %p15_p4 = scmp.ge.s32.totalorder %s18_s27, 4  }
 0x7a2   :  { %17 = sbr.rel (!%p15_p4) target bundleno = 1 (0x1), region = 98 }

</bundles_post_ra>
